<compile_context>
chip_gen: v7x
topology: tpu7x:2x2x1
jax: 0.10.0
libtpu: 0.0.40
codegen_flags: <defaults>
</compile_context>

<pallas_src>
import functools
import math

import jax
import jax.numpy as jnp
from jax.experimental import pallas as pl
from jax.experimental.pallas import tpu as pltpu

_EPS = 1e-5                      # PyTorch GroupNorm default eps
_GROUPS = 32                     # GroupNorm(32, C) everywhere in this module


@functools.lru_cache(maxsize=None)
def _vmem_limit():
    # ~3/4 of physical VMEM: 48 MiB on v7x (64 MiB part), ~96 MiB on v5e/v6e.
    cap = 64 * 1024 * 1024
    try:
        cap = int(getattr(pltpu.get_tpu_info(), "vmem_capacity_bytes", cap))
    except Exception:            # no TPU / API drift: stay conservative
        pass
    return max(32 * 1024 * 1024, (cap * 3) // 4)


def _cparams(n_axes):
    return pltpu.CompilerParams(
        dimension_semantics=("parallel",) * n_axes,
        vmem_limit_bytes=_vmem_limit(),
    )


def _pick_row_tile(h, cap=16):
    """Largest divisor of h that is <= cap (falls back to h for awkward sizes)."""
    if h <= cap:
        return h
    for t in range(cap, 3, -1):
        if h % t == 0:
            return t
    return h


def _row_windows(xp, t_h):
    """(N, H+3, Wp, C) padded image -> (N, nt, (tH+3)*Wp, C) overlapping row tiles."""
    n, hp3, wp, c = xp.shape
    h = hp3 - 3
    nt = h // t_h
    if nt == 1:
        return xp.reshape(n, 1, hp3 * wp, c)
    # TODO(synk): replace the wrapper-side halo duplication with manual halo DMA.
    wins = [xp[:, r * t_h:r * t_h + t_h + 3] for r in range(nt)]
    return jnp.stack(wins, axis=1).reshape(n, nt, (t_h + 3) * wp, c)


# --------------------------------------------------------------------------- #
# Pallas kernels
# --------------------------------------------------------------------------- #
def _groupnorm_kernel(x_ref, g_ref, b_ref, mcg_ref, mgc_ref, o_ref, *,
                      eps, swish, count):
    # x_ref: (1, HW, Cb); mcg: (Cb, Gb) one-hot channel->group; mgc = mcg^T.
    # Two-pass (mean, then E[(x-mean)^2]) so bf16 inputs stay numerically safe.
    x = x_ref[0].astype(jnp.float32)                               # (HW, Cb)
    s1 = jnp.sum(x, axis=0, keepdims=True)                         # (1, Cb)
    gmean = jnp.dot(s1, mcg_ref[...],
                    preferred_element_type=jnp.float32) / count    # (1, Gb)
    mean_c = jnp.dot(gmean, mgc_ref[...],
                     preferred_element_type=jnp.float32)           # (1, Cb)
    d = x - mean_c
    s2 = jnp.sum(d * d, axis=0, keepdims=True)
    gvar = jnp.dot(s2, mcg_ref[...],
                   preferred_element_type=jnp.float32) / count
    var_c = jnp.dot(gvar, mgc_ref[...], preferred_element_type=jnp.float32)
    y = d * jax.lax.rsqrt(var_c + eps)
    y = y * g_ref[...] + b_ref[...]
    if swish:
        y = y * jax.nn.sigmoid(y)
    o_ref[0] = y.astype(o_ref.dtype)


def _matmul_bias_kernel(x_ref, w_ref, b_ref, *args):
    # 1x1 conv: bf16 operands, f32 accumulation, optional fused f32 residual.
    o_ref = args[-1]
    acc = jnp.dot(x_ref[...].astype(jnp.bfloat16), w_ref[...],
                  preferred_element_type=jnp.float32) + b_ref[...]
    if len(args) == 2:                       # (residual_ref, o_ref)
        acc = acc + args[0][...]
    o_ref[...] = acc.astype(o_ref.dtype)


def _conv3x3_kernel(x_ref, w_ref, b_ref, o_ref, *, offsets, t_h, w_out, w_pad):
    # x_ref: (1, 1, (tH+3)*Wp, Cin) bf16 flattened padded row tile.  Each of the
    # 9 taps is a contiguous bf16 row slice at static offset dy*Wp+dx (no f32
    # round trip).  w_ref: (9, Cin, tn).  o_ref: (1, tH, W, tn) -- only the valid
    # W columns are stored (per-row chunk stores drop the 2 garbage columns).
    l = t_h * w_pad
    tn = o_ref.shape[-1]
    acc = jnp.zeros((l, tn), jnp.float32)
    for t, off in enumerate(offsets):
        acc = acc + jnp.dot(x_ref[0, 0, pl.ds(off, l), :], w_ref[t],
                            preferred_element_type=jnp.float32)
    acc = acc + b_ref[...]
    for i in range(t_h):
        o_ref[0, i] = acc[i * w_pad:i * w_pad + w_out, :].astype(o_ref.dtype)


def _conv3x3_up2x_kernel(x_ref, w_ref, b_ref, o_ref, *, t_h, w2, w_q):
    # Fused nearest-2x upsample + 3x3 conv.  x_ref: (1, 1, (tH+3)*Wq, Cin) bf16
    # flattened padded COLUMN-duplicated image at original height (Wq = 2W+2).
    # Row duplication is folded into the weights: w_ref (2, 6, Cin, tn), phase a
    # (= output row parity) uses 6 taps (ry in {0,1}, dx in {0,1,2}) at offsets
    # (a+ry)*Wq + dx.  o_ref: (1, tH, 2, 2W, tn); o[0, i, a] is output row 2i+a.
    l = t_h * w_q
    tn = o_ref.shape[-1]
    bias = b_ref[...]
    for a in (0, 1):
        acc = jnp.zeros((l, tn), jnp.float32)
        for ry in (0, 1):
            for dx in (0, 1, 2):
                off = (a + ry) * w_q + dx
                acc = acc + jnp.dot(x_ref[0, 0, pl.ds(off, l), :],
                                    w_ref[a, ry * 3 + dx],
                                    preferred_element_type=jnp.float32)
        acc = acc + bias
        for i in range(t_h):
            o_ref[0, i, a] = acc[i * w_q:i * w_q + w2, :].astype(o_ref.dtype)


def _attention_kernel(q_ref, k_ref, v_ref, o_ref, *, scale):
    # q_ref: (1, tq, C), k_ref/v_ref: (1, HW, C), all bf16 (channel blocks of the
    # fused qkv projection).
    q = q_ref[0]
    k = k_ref[0]
    v = v_ref[0]
    s = jax.lax.dot_general(q, k, (((1,), (1,)), ((), ())),
                            preferred_element_type=jnp.float32) * scale
    s = s - jnp.max(s, axis=-1, keepdims=True)
    p = jnp.exp(s)
    p = p * pl.reciprocal(jnp.sum(p, axis=-1, keepdims=True), approx=True)
    o_ref[0] = jnp.dot(p.astype(jnp.bfloat16), v,
                       preferred_element_type=jnp.float32).astype(o_ref.dtype)


# --------------------------------------------------------------------------- #
# Pallas-backed ops (thin JAX wrappers)
# --------------------------------------------------------------------------- #
def group_norm(x, gamma, beta, *, swish, out_dtype=jnp.float32):
    # TODO(synk): fuse GroupNorm+swish into the consumer conv; tile HW with a
    # reduction grid axis for large decoder resolutions; lane-dense layout for
    # the 32-channel stage.
    N, H, W, C = x.shape
    HW = H * W
    cg = C // _GROUPS
    cb = C if C <= 256 else 256          # channel block = whole number of groups
    assert C % cb == 0 and cb % cg == 0
    gb = cb // cg
    assert 6 * HW * cb * 4 <= _vmem_limit(), (
        "GroupNorm single-HW-block form exceeds VMEM; TODO(synk): tile HW")
    x2 = x.reshape(N, HW, C)
    mcg = (jnp.arange(cb)[:, None] // cg ==
           jnp.arange(gb)[None, :]).astype(jnp.float32)            # (Cb, Gb)
    mgc = mcg.T
    kernel = functools.partial(_groupnorm_kernel, eps=_EPS, swish=swish,
                               count=float(HW * cg))
    out = pl.pallas_call(
        kernel,
        out_shape=jax.ShapeDtypeStruct((N, HW, C), out_dtype),
        grid_spec=pltpu.PrefetchScalarGridSpec(
            num_scalar_prefetch=0,
            grid=(N, C // cb),
            in_specs=[
                pl.BlockSpec((1, HW, cb), lambda n, j: (n, 0, j)),
                pl.BlockSpec((1, cb), lambda n, j: (0, j)),
                pl.BlockSpec((1, cb), lambda n, j: (0, j)),
                pl.BlockSpec((cb, gb), lambda n, j: (0, 0)),
                pl.BlockSpec((gb, cb), lambda n, j: (0, 0)),
            ],
            out_specs=pl.BlockSpec((1, HW, cb), lambda n, j: (n, 0, j)),
        ),
        compiler_params=_cparams(2),
    )(x2, gamma.reshape(1, C), beta.reshape(1, C), mcg, mgc)
    return out.reshape(N, H, W, C)


def conv1x1(x, w, b, *, residual=None, out_dtype=jnp.float32):
    """1x1 conv (matmul + bias) with optional fused f32 residual add."""
    N, H, W, Cin = x.shape
    Cout = w.shape[1]
    M = N * H * W
    assert M % 8 == 0
    tm = M
    if M > 1024:
        tm = max(d for d in range(8, 1025, 8) if M % d == 0)
    tn = min(Cout, 256)
    assert Cout % tn == 0
    if (M // tm) * (Cout // tn) < 2 and tm % 16 == 0:
        tm //= 2                           # >= 2 grid points (megacore / overlap)
    x2 = x.reshape(M, Cin)
    args = [x2, w.astype(jnp.bfloat16), b.reshape(1, Cout).astype(jnp.float32)]
    in_specs = [
        pl.BlockSpec((tm, Cin), lambda i, j: (i, 0)),
        pl.BlockSpec((Cin, tn), lambda i, j: (0, j)),
        pl.BlockSpec((1, tn), lambda i, j: (0, j)),
    ]
    bytes_acc = (M * Cin * x2.dtype.itemsize + Cin * Cout * 2
                 + M * Cout * jnp.dtype(out_dtype).itemsize)
    if residual is not None:
        args.append(residual.reshape(M, Cout).astype(jnp.float32))
        in_specs.append(pl.BlockSpec((tm, tn), lambda i, j: (i, j)))
        bytes_acc += M * Cout * 4
    # TODO(synk): single-buffer the weight spec (pl.Buffered(1)) once the grid is
    # reordered so the weight block is constant along the inner axis.
    out = pl.pallas_call(
        _matmul_bias_kernel,
        out_shape=jax.ShapeDtypeStruct((M, Cout), out_dtype),
        grid_spec=pltpu.PrefetchScalarGridSpec(
            num_scalar_prefetch=0,
            grid=(M // tm, Cout // tn),
            in_specs=in_specs,
            out_specs=pl.BlockSpec((tm, tn), lambda i, j: (i, j)),
        ),
        compiler_params=_cparams(2),
        cost_estimate=pl.CostEstimate(flops=2 * M * Cin * Cout,
                                      transcendentals=0,
                                      bytes_accessed=int(bytes_acc)),
    )(*args)
    return out.reshape(N, H, W, Cout)


def conv3x3(x, w_hwio, b, *, out_dtype=jnp.float32):
    """3x3 conv, stride 1, padding 1 (PyTorch Conv2d(k=3, padding=1)).

    The padded image is flattened row-major (width W+2) in bf16 so each of the
    9 taps is a contiguous bf16 row slice inside the kernel; the kernel stores
    only the valid W output columns.  Rows are tiled (with a 3-row halo window
    built once in the wrapper) so the grid has >= 2 points even at batch 1.
    """
    N, H, W, Cin = x.shape
    Cout = w_hwio.shape[-1]
    Wp = W + 2
    tn = min(Cout, 256)
    assert Cout % tn == 0
    tH = _pick_row_tile(H)
    nt = H // tH
    Lt = (tH + 3) * Wp
    xp = jnp.pad(x.astype(jnp.bfloat16), ((0, 0), (1, 2), (1, 1), (0, 0)))
    xw = _row_windows(xp, tH)                                     # (N, nt, Lt, Cin)
    wt = w_hwio.reshape(9, Cin, Cout).astype(jnp.bfloat16)
    offsets = tuple(dy * Wp + dx for dy in range(3) for dx in range(3))
    kernel = functools.partial(_conv3x3_kernel, offsets=offsets,
                               t_h=tH, w_out=W, w_pad=Wp)
    flops = 2 * N * H * Wp * 9 * Cin * Cout
    bytes_acc = (N * nt * Lt * Cin * 2 + 9 * Cin * Cout * 2
                 + N * H * W * Cout * jnp.dtype(out_dtype).itemsize)
    out = pl.pallas_call(
        kernel,
        out_shape=jax.ShapeDtypeStruct((N, H, W, Cout), out_dtype),
        grid_spec=pltpu.PrefetchScalarGridSpec(
            num_scalar_prefetch=0,
            grid=(N, nt, Cout // tn),
            in_specs=[
                pl.BlockSpec((1, 1, Lt, Cin), lambda n, r, j: (n, r, 0, 0)),
                pl.BlockSpec((9, Cin, tn), lambda n, r, j: (0, 0, j)),
                pl.BlockSpec((1, tn), lambda n, r, j: (0, j)),
            ],
            out_specs=pl.BlockSpec((1, tH, W, tn), lambda n, r, j: (n, r, 0, j)),
        ),
        compiler_params=_cparams(3),
        cost_estimate=pl.CostEstimate(flops=int(flops), transcendentals=0,
                                      bytes_accessed=int(bytes_acc)),
    )(xw, wt, b.reshape(1, Cout).astype(jnp.float32))
    return out


def conv3x3_nearest2x(x, w_hwio, b, *, out_dtype=jnp.float32):
    """nearest-2x upsample followed by 3x3 conv, fused into one kernel.

    out[2i+a, 2j+c] = sum_{ry,dx} Wfold_a[ry, dx] . xcol_pad[i+a+ry, 2j+c+dx]
    where xcol_pad is the column-duplicated (2x width), zero-padded input at the
    ORIGINAL height and Wfold folds the 3 dy taps into 2 per output-row phase a.
    The 4x upsampled image never touches HBM; output rows are written directly
    to their interleaved positions via the (N, H, 2, 2W, Cout) output layout.
    """
    N, H, W, Cin = x.shape
    Cout = w_hwio.shape[-1]
    W2 = 2 * W
    Wq = W2 + 2
    tn = min(Cout, 256)
    assert Cout % tn == 0
    tH = _pick_row_tile(H)
    nt = H // tH
    Lt = (tH + 3) * Wq
    xc = jnp.repeat(x.astype(jnp.bfloat16), 2, axis=2)            # (N, H, 2W, Cin)
    xp = jnp.pad(xc, ((0, 0), (1, 2), (1, 1), (0, 0)))            # (N, H+3, Wq, Cin)
    xw = _row_windows(xp, tH)                                     # (N, nt, Lt, Cin)
    w = w_hwio.astype(jnp.float32)                                # (3, 3, Cin, Cout)
    w_a0 = jnp.stack([w[0], w[1] + w[2]], axis=0)                 # (ry, dx, Cin, Cout)
    w_a1 = jnp.stack([w[0] + w[1], w[2]], axis=0)
    wt = jnp.stack([w_a0, w_a1], axis=0).reshape(2, 6, Cin, Cout)
    wt = wt.astype(jnp.bfloat16)
    kernel = functools.partial(_conv3x3_up2x_kernel, t_h=tH, w2=W2, w_q=Wq)
    flops = 2 * N * H * Wq * 12 * Cin * Cout
    bytes_acc = (N * nt * Lt * Cin * 2 + 12 * Cin * Cout * 2
                 + N * 4 * H * W * Cout * jnp.dtype(out_dtype).itemsize)
    out = pl.pallas_call(
        kernel,
        out_shape=jax.ShapeDtypeStruct((N, H, 2, W2, Cout), out_dtype),
        grid_spec=pltpu.PrefetchScalarGridSpec(
            num_scalar_prefetch=0,
            grid=(N, nt, Cout // tn),
            in_specs=[
                pl.BlockSpec((1, 1, Lt, Cin), lambda n, r, j: (n, r, 0, 0)),
                pl.BlockSpec((2, 6, Cin, tn), lambda n, r, j: (0, 0, 0, j)),
                pl.BlockSpec((1, tn), lambda n, r, j: (0, j)),
            ],
            out_specs=pl.BlockSpec((1, tH, 2, W2, tn),
                                   lambda n, r, j: (n, r, 0, 0, j)),
        ),
        compiler_params=_cparams(3),
        cost_estimate=pl.CostEstimate(flops=int(flops), transcendentals=0,
                                      bytes_accessed=int(bytes_acc)),
    )(xw, wt, b.reshape(1, Cout).astype(jnp.float32))
    # (N, H, 2, 2W, Cout) -> (N, 2H, 2W, Cout) is an order-preserving (free) reshape.
    return out.reshape(N, 2 * H, W2, Cout)


def attention_core(qkv, channels):
    """softmax(Q K^T / sqrt(C)) V, reading q/k/v as channel blocks of qkv."""
    N, H, W, C3 = qkv.shape
    C = channels
    assert C3 == 3 * C
    HW = H * W
    tq = HW // 2 if (HW % 16 == 0 and HW >= 16) else HW   # >= 2 query blocks
    scale = 1.0 / math.sqrt(C)
    kernel = functools.partial(_attention_kernel, scale=scale)
    qkv2 = qkv.reshape(N, HW, C3)
    bytes_acc = N * HW * C3 * 2 + N * HW * C * 2
    out = pl.pallas_call(
        kernel,
        out_shape=jax.ShapeDtypeStruct((N, HW, C), jnp.bfloat16),
        grid_spec=pltpu.PrefetchScalarGridSpec(
            num_scalar_prefetch=0,
            grid=(N, HW // tq),
            in_specs=[
                pl.BlockSpec((1, tq, C), lambda n, i: (n, i, 0)),   # q rows
                pl.BlockSpec((1, HW, C), lambda n, i: (n, 0, 1)),   # full k
                pl.BlockSpec((1, HW, C), lambda n, i: (n, 0, 2)),   # full v
            ],
            out_specs=pl.BlockSpec((1, tq, C), lambda n, i: (n, i, 0)),
        ),
        compiler_params=_cparams(2),
        cost_estimate=pl.CostEstimate(flops=4 * N * HW * HW * C,
                                      transcendentals=N * HW * HW,
                                      bytes_accessed=int(bytes_acc)),
    )(qkv2, qkv2, qkv2)
    return out.reshape(N, H, W, C)


# --------------------------------------------------------------------------- #
# Module forward passes (Pallas path)
# --------------------------------------------------------------------------- #
def resnet_block_forward(x, p):
    h = group_norm(x, p["norm1_g"], p["norm1_b"], swish=True,
                   out_dtype=jnp.bfloat16)
    # conv1 output only feeds norm2+conv2 -> bf16 halves that HBM round trip.
    h = conv3x3(h, p["conv1_w"], p["conv1_b"], out_dtype=jnp.bfloat16)
    h = group_norm(h, p["norm2_g"], p["norm2_b"], swish=True,
                   out_dtype=jnp.bfloat16)
    h = conv3x3(h, p["conv2_w"], p["conv2_b"])
    if "nin_w" in p:
        return conv1x1(x, p["nin_w"], p["nin_b"], residual=h)   # fused add
    return x + h


def attention_block_forward(x, p):
    C = x.shape[-1]
    assert C == 512, "AttentionBlock hard-codes 512 channels"
    h = group_norm(x, p["norm_g"], p["norm_b"], swish=False,
                   out_dtype=jnp.bfloat16)
    w_qkv = jnp.concatenate([p["q_w"], p["k_w"], p["v_w"]], axis=1)   # (C, 3C)
    b_qkv = jnp.concatenate([p["q_b"], p["k_b"], p["v_b"]], axis=0)
    qkv = conv1x1(h, w_qkv, b_qkv, out_dtype=jnp.bfloat16)
    a = attention_core(qkv, C)
    return conv1x1(a, p["proj_w"], p["proj_b"], residual=x)          # fused add


def upsample_block_forward(h, params, *, has_attention, has_upsample):
    if has_attention:
        for bp, ap in zip(params["block"], params["attn"]):
            h = resnet_block_forward(h, bp)
            h = attention_block_forward(h, ap)
    else:
        for bp in params["block"]:
            h = resnet_block_forward(h, bp)
    if has_upsample:
        h = conv3x3_nearest2x(h, params["upsample"]["conv_w"],
                              params["upsample"]["conv_b"])
    return h


# --------------------------------------------------------------------------- #
# Pure-JAX reference (for validation only; f32 HIGHEST precision)
# --------------------------------------------------------------------------- #
_HI = jax.lax.Precision.HIGHEST


def _ref_group_norm(x, g, b, swish):
    N, H, W, C = x.shape
    xg = x.reshape(N, H * W, _GROUPS, C // _GROUPS)
    mean = jnp.mean(xg, axis=(1, 3), keepdims=True)
    var = jnp.mean((xg - mean) ** 2, axis=(1, 3), keepdims=True)
    y = ((xg - mean) / jnp.sqrt(var + _EPS)).reshape(N, H, W, C) * g + b
    if swish:
        y = y * jax.nn.sigmoid(y)
    return y


def _ref_conv3x3(x, w, b):
    return jax.lax.conv_general_dilated(
        x, w, window_strides=(1, 1), padding="SAME",
        dimension_numbers=("NHWC", "HWIO", "NHWC"), precision=_HI) + b


def _ref_conv1x1(x, w, b):
    return jnp.einsum("nhwc,cd->nhwd", x, w, precision=_HI) + b


def _ref_attention(q, k, v):
    N, H, W, C = q.shape
    q2, k2, v2 = (t.reshape(N, H * W, C) for t in (q, k, v))
    s = jnp.einsum("nqc,nkc->nqk", q2, k2, precision=_HI) / math.sqrt(C)
    p = jax.nn.softmax(s, axis=-1)
    return jnp.einsum("nqk,nkc->nqc", p, v2, precision=_HI).reshape(N, H, W, C)


def _ref_resnet_block(x, p):
    h = _ref_group_norm(x, p["norm1_g"], p["norm1_b"], True)
    h = _ref_conv3x3(h, p["conv1_w"], p["conv1_b"])
    h = _ref_group_norm(h, p["norm2_g"], p["norm2_b"], True)
    h = _ref_conv3x3(h, p["conv2_w"], p["conv2_b"])
    if "nin_w" in p:
        x = _ref_conv1x1(x, p["nin_w"], p["nin_b"])
    return x + h


def _ref_attention_block(x, p):
    h = _ref_group_norm(x, p["norm_g"], p["norm_b"], False)
    q = _ref_conv1x1(h, p["q_w"], p["q_b"])
    k = _ref_conv1x1(h, p["k_w"], p["k_b"])
    v = _ref_conv1x1(h, p["v_w"], p["v_b"])
    a = _ref_attention(q, k, v)
    return x + _ref_conv1x1(a, p["proj_w"], p["proj_b"])


def ref_upsample_block_forward(h, params, *, has_attention, has_upsample):
    if has_attention:
        for bp, ap in zip(params["block"], params["attn"]):
            h = _ref_resnet_block(h, bp)
            h = _ref_attention_block(h, ap)
    else:
        for bp in params["block"]:
            h = _ref_resnet_block(h, bp)
    if has_upsample:
        h = jnp.repeat(jnp.repeat(h.astype(jnp.float32), 2, axis=1), 2, axis=2)
        h = _ref_conv3x3(h, params["upsample"]["conv_w"],
                         params["upsample"]["conv_b"])
    return h


# --------------------------------------------------------------------------- #
# Deterministic parameter init (synthetic; shapes follow the nn.Module __init__)
# --------------------------------------------------------------------------- #
def _normal(key, shape, scale):
    return scale * jax.random.normal(key, shape, dtype=jnp.float32)


def init_resnet_block(key, log2_in, log2_out):
    m, n = 2 ** log2_in, 2 ** log2_out
    ks = jax.random.split(key, 10)
    p = dict(
        norm1_g=1.0 + _normal(ks[0], (m,), 0.05),
        norm1_b=_normal(ks[1], (m,), 0.05),
        conv1_w=_normal(ks[2], (3, 3, m, n), 0.02),
        conv1_b=_normal(ks[3], (n,), 0.02),
        norm2_g=1.0 + _normal(ks[4], (n,), 0.05),
        norm2_b=_normal(ks[5], (n,), 0.05),
        conv2_w=_normal(ks[6], (3, 3, n, n), 0.02),
        conv2_b=_normal(ks[7], (n,), 0.02),
    )
    if m != n:
        p["nin_w"] = _normal(ks[8], (m, n), 0.03)
        p["nin_b"] = _normal(ks[9], (n,), 0.02)
    return p


def init_attention_block(key):
    c = 512
    ks = jax.random.split(key, 10)
    return dict(
        norm_g=1.0 + _normal(ks[0], (c,), 0.05),
        norm_b=_normal(ks[1], (c,), 0.05),
        q_w=_normal(ks[2], (c, c), 0.03), q_b=_normal(ks[3], (c,), 0.01),
        k_w=_normal(ks[4], (c, c), 0.03), k_b=_normal(ks[5], (c,), 0.01),
        v_w=_normal(ks[6], (c, c), 0.03), v_b=_normal(ks[7], (c,), 0.01),
        proj_w=_normal(ks[8], (c, c), 0.03), proj_b=_normal(ks[9], (c,), 0.01),
    )


def init_upsample(key, log2_dim):
    n = 2 ** log2_dim
    ks = jax.random.split(key, 2)
    return dict(conv_w=_normal(ks[0], (3, 3, n, n), 0.02),
                conv_b=_normal(ks[1], (n,), 0.02))


def init_upsample_block(key, log2_in, log2_out, has_attention, has_upsample):
    ks = jax.random.split(key, 7)
    params = dict(block=[init_resnet_block(ks[0], log2_in, log2_out),
                         init_resnet_block(ks[1], log2_out, log2_out),
                         init_resnet_block(ks[2], log2_out, log2_out)])
    if has_attention:
        params["attn"] = [init_attention_block(ks[3]),
                          init_attention_block(ks[4]),
                          init_attention_block(ks[5])]
    if has_upsample:
        params["upsample"] = init_upsample(ks[6], log2_out)
    return params


# --------------------------------------------------------------------------- #
if __name__ == "__main__":
    # (log2_dim_in, log2_dim_out, has_attention, has_upsample, batch, spatial)
    configs = [
        (6, 5, False, True, 2, 8),   # 64 -> 32 channels: nin_shortcut + upsample
        (9, 9, True, True, 1, 8),    # 512 channels: attention path + upsample
    ]
    root = jax.random.PRNGKey(0)
    for idx, (li, lo, attn, ups, batch, spatial) in enumerate(configs):
        kp, kx = jax.random.split(jax.random.fold_in(root, idx))
        params = init_upsample_block(kp, li, lo, attn, ups)
        x = jax.random.normal(kx, (batch, spatial, spatial, 2 ** li),
                              dtype=jnp.float32)

        fwd = jax.jit(functools.partial(upsample_block_forward,
                                        has_attention=attn, has_upsample=ups))
        out = jax.block_until_ready(fwd(x, params))

        ref_fwd = jax.jit(functools.partial(ref_upsample_block_forward,
                                            has_attention=attn,
                                            has_upsample=ups))
        ref = jax.block_until_ready(ref_fwd(x, params))

        assert out.shape == ref.shape, (out.shape, ref.shape)
        # Tolerance scaled for bf16 MXU operands vs. the f32 HIGHEST reference.
        err = float(jnp.max(jnp.abs(out - ref)))
        scale = float(jnp.max(jnp.abs(ref)))
        assert err <= 5e-2 * scale + 5e-2, (
            f"config {idx}: max abs err = {err}, max |ref| = {scale}")

    print("KERNEL_OK")
</pallas_src>

<mosaic_0001>
module attributes {stable_mosaic.version = 11 : i64} {
  func.func @_groupnorm_kernel(%arg0: i32, %arg1: i32, %arg2: memref<1x64x64xf32, #tpu.memory_space<vmem>>, %arg3: memref<1x64xf32, #tpu.memory_space<vmem>>, %arg4: memref<1x64xf32, #tpu.memory_space<vmem>>, %arg5: memref<64x32xf32, #tpu.memory_space<vmem>>, %arg6: memref<32x64xf32, #tpu.memory_space<vmem>>, %arg7: memref<1x64x64xbf16, #tpu.memory_space<vmem>>) attributes {dimension_semantics = [#tpu.dimension_semantics<parallel>, #tpu.dimension_semantics<parallel>], iteration_bounds = array<i64: 2, 1>, scalar_prefetch = 0 : i64, scratch_operands = 0 : i64, tpu.core_type = #tpu.core_type<tc>, window_params = [{transform_indices = @transform_0, window_bounds = array<i64: 1, 64, 64>}, {transform_indices = @transform_1, window_bounds = array<i64: 1, 64>}, {transform_indices = @transform_2, window_bounds = array<i64: 1, 64>}, {pipeline_mode = #tpu.pipeline_mode<synchronous>, transform_indices = @transform_3, window_bounds = array<i64: 64, 32>}, {pipeline_mode = #tpu.pipeline_mode<synchronous>, transform_indices = @transform_4, window_bounds = array<i64: 32, 64>}, {transform_indices = @transform_5, window_bounds = array<i64: 1, 64, 64>}]} {
    %c0 = arith.constant 0 : index
    %c0_0 = arith.constant 0 : index
    %c0_1 = arith.constant 0 : index
    %0 = vector.load %arg2[%c0, %c0_0, %c0_1] : memref<1x64x64xf32, #tpu.memory_space<vmem>>, vector<1x64x64xf32>
    %1 = vector.shape_cast %0 : vector<1x64x64xf32> to vector<64x64xf32>
    %cst = arith.constant dense<0.000000e+00> : vector<64xf32>
    %2 = vector.multi_reduction <add>, %1, %cst [0] : vector<64x64xf32> to vector<64xf32>
    %3 = vector.shape_cast %2 : vector<64xf32> to vector<1x64xf32>
    %c0_2 = arith.constant 0 : index
    %c0_3 = arith.constant 0 : index
    %4 = vector.load %arg5[%c0_2, %c0_3] : memref<64x32xf32, #tpu.memory_space<vmem>>, vector<64x32xf32>
    %cst_4 = arith.constant dense<0.000000e+00> : vector<1x32xf32>
    %5 = tpu.matmul %3, %4, %cst_4 {dimension_numbers = #tpu.dot_dimension_numbers<[1], [0], [0], [1], [0, 0, 1, 1], [], []>} : vector<1x64xf32>, vector<64x32xf32>, vector<1x32xf32> -> vector<1x32xf32>
    %cst_5 = arith.constant 1.280000e+02 : f32
    %6 = vector.broadcast %cst_5 : f32 to vector<1x32xf32>
    %7 = arith.divf %5, %6 : vector<1x32xf32>
    %c0_6 = arith.constant 0 : index
    %c0_7 = arith.constant 0 : index
    %8 = vector.load %arg6[%c0_6, %c0_7] : memref<32x64xf32, #tpu.memory_space<vmem>>, vector<32x64xf32>
    %cst_8 = arith.constant dense<0.000000e+00> : vector<1x64xf32>
    %9 = tpu.matmul %7, %8, %cst_8 {dimension_numbers = #tpu.dot_dimension_numbers<[1], [0], [0], [1], [0, 0, 1, 1], [], []>} : vector<1x32xf32>, vector<32x64xf32>, vector<1x64xf32> -> vector<1x64xf32>
    %10 = vector.broadcast %9 : vector<1x64xf32> to vector<64x64xf32>
    %11 = arith.subf %1, %10 : vector<64x64xf32>
    %12 = arith.mulf %11, %11 : vector<64x64xf32>
    %cst_9 = arith.constant dense<0.000000e+00> : vector<64xf32>
    %13 = vector.multi_reduction <add>, %12, %cst_9 [0] : vector<64x64xf32> to vector<64xf32>
    %14 = vector.shape_cast %13 : vector<64xf32> to vector<1x64xf32>
    %c0_10 = arith.constant 0 : index
    %c0_11 = arith.constant 0 : index
    %15 = vector.load %arg5[%c0_10, %c0_11] : memref<64x32xf32, #tpu.memory_space<vmem>>, vector<64x32xf32>
    %cst_12 = arith.constant dense<0.000000e+00> : vector<1x32xf32>
    %16 = tpu.matmul %14, %15, %cst_12 {dimension_numbers = #tpu.dot_dimension_numbers<[1], [0], [0], [1], [0, 0, 1, 1], [], []>} : vector<1x64xf32>, vector<64x32xf32>, vector<1x32xf32> -> vector<1x32xf32>
    %cst_13 = arith.constant 1.280000e+02 : f32
    %17 = vector.broadcast %cst_13 : f32 to vector<1x32xf32>
    %18 = arith.divf %16, %17 : vector<1x32xf32>
    %c0_14 = arith.constant 0 : index
    %c0_15 = arith.constant 0 : index
    %19 = vector.load %arg6[%c0_14, %c0_15] : memref<32x64xf32, #tpu.memory_space<vmem>>, vector<32x64xf32>
    %cst_16 = arith.constant dense<0.000000e+00> : vector<1x64xf32>
    %20 = tpu.matmul %18, %19, %cst_16 {dimension_numbers = #tpu.dot_dimension_numbers<[1], [0], [0], [1], [0, 0, 1, 1], [], []>} : vector<1x32xf32>, vector<32x64xf32>, vector<1x64xf32> -> vector<1x64xf32>
    %cst_17 = arith.constant 9.99999974E-6 : f32
    %21 = vector.broadcast %cst_17 : f32 to vector<1x64xf32>
    %22 = arith.addf %20, %21 : vector<1x64xf32>
    %23 = math.rsqrt %22 : vector<1x64xf32>
    %24 = vector.broadcast %23 : vector<1x64xf32> to vector<64x64xf32>
    %25 = arith.mulf %11, %24 : vector<64x64xf32>
    %c0_18 = arith.constant 0 : index
    %c0_19 = arith.constant 0 : index
    %26 = vector.load %arg3[%c0_18, %c0_19] : memref<1x64xf32, #tpu.memory_space<vmem>>, vector<1x64xf32>
    %27 = vector.broadcast %26 : vector<1x64xf32> to vector<64x64xf32>
    %28 = arith.mulf %25, %27 : vector<64x64xf32>
    %c0_20 = arith.constant 0 : index
    %c0_21 = arith.constant 0 : index
    %29 = vector.load %arg4[%c0_20, %c0_21] : memref<1x64xf32, #tpu.memory_space<vmem>>, vector<1x64xf32>
    %30 = vector.broadcast %29 : vector<1x64xf32> to vector<64x64xf32>
    %31 = arith.addf %28, %30 : vector<64x64xf32>
    %32 = arith.negf %31 : vector<64x64xf32>
    %33 = math.exp %32 : vector<64x64xf32>
    %cst_22 = arith.constant 1.000000e+00 : f32
    %34 = vector.broadcast %cst_22 : f32 to vector<64x64xf32>
    %35 = arith.addf %34, %33 : vector<64x64xf32>
    %36 = arith.divf %34, %35 : vector<64x64xf32>
    %37 = arith.mulf %31, %36 : vector<64x64xf32>
    %38 = arith.truncf %37 : vector<64x64xf32> to vector<64x64xbf16>
    %c0_23 = arith.constant 0 : index
    %c0_24 = arith.constant 0 : index
    %c0_25 = arith.constant 0 : index
    %39 = vector.load %arg7[%c0_23, %c0_24, %c0_25] : memref<1x64x64xbf16, #tpu.memory_space<vmem>>, vector<1x64x64xbf16>
    %40 = vector.shape_cast %39 : vector<1x64x64xbf16> to vector<64x64xbf16>
    %41 = vector.shape_cast %38 : vector<64x64xbf16> to vector<1x64x64xbf16>
    tpu.vector_store %arg7[%c0_23, %c0_24, %c0_25], %41 {strides = array<i32>} : memref<1x64x64xbf16, #tpu.memory_space<vmem>>, vector<1x64x64xbf16>,
    return
  }
  func.func @transform_0(%arg0: i32, %arg1: i32) -> (i32, i32, i32) {
    %c0_i32 = arith.constant 0 : i32
    %c0_i32_0 = arith.constant 0 : i32
    return %arg0, %c0_i32, %arg1 : i32, i32, i32
  }
  func.func @transform_1(%arg0: i32, %arg1: i32) -> (i32, i32) {
    %c0_i32 = arith.constant 0 : i32
    %c0_i32_0 = arith.constant 0 : i32
    return %c0_i32, %arg1 : i32, i32
  }
  func.func @transform_2(%arg0: i32, %arg1: i32) -> (i32, i32) {
    %c0_i32 = arith.constant 0 : i32
    %c0_i32_0 = arith.constant 0 : i32
    return %c0_i32, %arg1 : i32, i32
  }
  func.func @transform_3(%arg0: i32, %arg1: i32) -> (i32, i32) {
    %c0_i32 = arith.constant 0 : i32
    %c0_i32_0 = arith.constant 0 : i32
    %c0_i32_1 = arith.constant 0 : i32
    return %c0_i32, %c0_i32_0 : i32, i32
  }
  func.func @transform_4(%arg0: i32, %arg1: i32) -> (i32, i32) {
    %c0_i32 = arith.constant 0 : i32
    %c0_i32_0 = arith.constant 0 : i32
    %c0_i32_1 = arith.constant 0 : i32
    return %c0_i32, %c0_i32_0 : i32, i32
  }
  func.func @transform_5(%arg0: i32, %arg1: i32) -> (i32, i32, i32) {
    %c0_i32 = arith.constant 0 : i32
    %c0_i32_0 = arith.constant 0 : i32
    return %arg0, %c0_i32, %arg1 : i32, i32, i32
  }
}

module attributes {stable_mosaic.version = 11 : i64} {
  func.func @_groupnorm_kernel(%arg0: i32, %arg1: i32, %arg2: memref<1x64x32xbf16, #tpu.memory_space<vmem>>, %arg3: memref<1x32xf32, #tpu.memory_space<vmem>>, %arg4: memref<1x32xf32, #tpu.memory_space<vmem>>, %arg5: memref<32x32xf32, #tpu.memory_space<vmem>>, %arg6: memref<32x32xf32, #tpu.memory_space<vmem>>, %arg7: memref<1x64x32xbf16, #tpu.memory_space<vmem>>) attributes {dimension_semantics = [#tpu.dimension_semantics<parallel>, #tpu.dimension_semantics<parallel>], iteration_bounds = array<i64: 2, 1>, scalar_prefetch = 0 : i64, scratch_operands = 0 : i64, tpu.core_type = #tpu.core_type<tc>, window_params = [{transform_indices = @transform_0, window_bounds = array<i64: 1, 64, 32>}, {transform_indices = @transform_1, window_bounds = array<i64: 1, 32>}, {transform_indices = @transform_2, window_bounds = array<i64: 1, 32>}, {pipeline_mode = #tpu.pipeline_mode<synchronous>, transform_indices = @transform_3, window_bounds = array<i64: 32, 32>}, {pipeline_mode = #tpu.pipeline_mode<synchronous>, transform_indices = @transform_4, window_bounds = array<i64: 32, 32>}, {transform_indices = @transform_5, window_bounds = array<i64: 1, 64, 32>}]} {
    %c0 = arith.constant 0 : index
    %c0_0 = arith.constant 0 : index
    %c0_1 = arith.constant 0 : index
    %0 = vector.load %arg2[%c0, %c0_0, %c0_1] : memref<1x64x32xbf16, #tpu.memory_space<vmem>>, vector<1x64x32xbf16>
    %1 = vector.shape_cast %0 : vector<1x64x32xbf16> to vector<64x32xbf16>
    %2 = arith.extf %1 : vector<64x32xbf16> to vector<64x32xf32>
    %cst = arith.constant dense<0.000000e+00> : vector<32xf32>
    %3 = vector.multi_reduction <add>, %2, %cst [0] : vector<64x32xf32> to vector<32xf32>
    %4 = vector.shape_cast %3 : vector<32xf32> to vector<1x32xf32>
    %c0_2 = arith.constant 0 : index
    %c0_3 = arith.constant 0 : index
    %5 = vector.load %arg5[%c0_2, %c0_3] : memref<32x32xf32, #tpu.memory_space<vmem>>, vector<32x32xf32>
    %cst_4 = arith.constant dense<0.000000e+00> : vector<1x32xf32>
    %6 = tpu.matmul %4, %5, %cst_4 {dimension_numbers = #tpu.dot_dimension_numbers<[1], [0], [0], [1], [0, 0, 1, 1], [], []>} : vector<1x32xf32>, vector<32x32xf32>, vector<1x32xf32> -> vector<1x32xf32>
    %cst_5 = arith.constant 6.400000e+01 : f32
    %7 = vector.broadcast %cst_5 : f32 to vector<1x32xf32>
    %8 = arith.divf %6, %7 : vector<1x32xf32>
    %c0_6 = arith.constant 0 : index
    %c0_7 = arith.constant 0 : index
    %9 = vector.load %arg6[%c0_6, %c0_7] : memref<32x32xf32, #tpu.memory_space<vmem>>, vector<32x32xf32>
    %cst_8 = arith.constant dense<0.000000e+00> : vector<1x32xf32>
    %10 = tpu.matmul %8, %9, %cst_8 {dimension_numbers = #tpu.dot_dimension_numbers<[1], [0], [0], [1], [0, 0, 1, 1], [], []>} : vector<1x32xf32>, vector<32x32xf32>, vector<1x32xf32> -> vector<1x32xf32>
    %11 = vector.broadcast %10 : vector<1x32xf32> to vector<64x32xf32>
    %12 = arith.subf %2, %11 : vector<64x32xf32>
    %13 = arith.mulf %12, %12 : vector<64x32xf32>
    %cst_9 = arith.constant dense<0.000000e+00> : vector<32xf32>
    %14 = vector.multi_reduction <add>, %13, %cst_9 [0] : vector<64x32xf32> to vector<32xf32>
    %15 = vector.shape_cast %14 : vector<32xf32> to vector<1x32xf32>
    %c0_10 = arith.constant 0 : index
    %c0_11 = arith.constant 0 : index
    %16 = vector.load %arg5[%c0_10, %c0_11] : memref<32x32xf32, #tpu.memory_space<vmem>>, vector<32x32xf32>
    %cst_12 = arith.constant dense<0.000000e+00> : vector<1x32xf32>
    %17 = tpu.matmul %15, %16, %cst_12 {dimension_numbers = #tpu.dot_dimension_numbers<[1], [0], [0], [1], [0, 0, 1, 1], [], []>} : vector<1x32xf32>, vector<32x32xf32>, vector<1x32xf32> -> vector<1x32xf32>
    %cst_13 = arith.constant 6.400000e+01 : f32
    %18 = vector.broadcast %cst_13 : f32 to vector<1x32xf32>
    %19 = arith.divf %17, %18 : vector<1x32xf32>
    %c0_14 = arith.constant 0 : index
    %c0_15 = arith.constant 0 : index
    %20 = vector.load %arg6[%c0_14, %c0_15] : memref<32x32xf32, #tpu.memory_space<vmem>>, vector<32x32xf32>
    %cst_16 = arith.constant dense<0.000000e+00> : vector<1x32xf32>
    %21 = tpu.matmul %19, %20, %cst_16 {dimension_numbers = #tpu.dot_dimension_numbers<[1], [0], [0], [1], [0, 0, 1, 1], [], []>} : vector<1x32xf32>, vector<32x32xf32>, vector<1x32xf32> -> vector<1x32xf32>
    %cst_17 = arith.constant 9.99999974E-6 : f32
    %22 = vector.broadcast %cst_17 : f32 to vector<1x32xf32>
    %23 = arith.addf %21, %22 : vector<1x32xf32>
    %24 = math.rsqrt %23 : vector<1x32xf32>
    %25 = vector.broadcast %24 : vector<1x32xf32> to vector<64x32xf32>
    %26 = arith.mulf %12, %25 : vector<64x32xf32>
    %c0_18 = arith.constant 0 : index
    %c0_19 = arith.constant 0 : index
    %27 = vector.load %arg3[%c0_18, %c0_19] : memref<1x32xf32, #tpu.memory_space<vmem>>, vector<1x32xf32>
    %28 = vector.broadcast %27 : vector<1x32xf32> to vector<64x32xf32>
    %29 = arith.mulf %26, %28 : vector<64x32xf32>
    %c0_20 = arith.constant 0 : index
    %c0_21 = arith.constant 0 : index
    %30 = vector.load %arg4[%c0_20, %c0_21] : memref<1x32xf32, #tpu.memory_space<vmem>>, vector<1x32xf32>
    %31 = vector.broadcast %30 : vector<1x32xf32> to vector<64x32xf32>
    %32 = arith.addf %29, %31 : vector<64x32xf32>
    %33 = arith.negf %32 : vector<64x32xf32>
    %34 = math.exp %33 : vector<64x32xf32>
    %cst_22 = arith.constant 1.000000e+00 : f32
    %35 = vector.broadcast %cst_22 : f32 to vector<64x32xf32>
    %36 = arith.addf %35, %34 : vector<64x32xf32>
    %37 = arith.divf %35, %36 : vector<64x32xf32>
    %38 = arith.mulf %32, %37 : vector<64x32xf32>
    %39 = arith.truncf %38 : vector<64x32xf32> to vector<64x32xbf16>
    %c0_23 = arith.constant 0 : index
    %c0_24 = arith.constant 0 : index
    %c0_25 = arith.constant 0 : index
    %40 = vector.load %arg7[%c0_23, %c0_24, %c0_25] : memref<1x64x32xbf16, #tpu.memory_space<vmem>>, vector<1x64x32xbf16>
    %41 = vector.shape_cast %40 : vector<1x64x32xbf16> to vector<64x32xbf16>
    %42 = vector.shape_cast %39 : vector<64x32xbf16> to vector<1x64x32xbf16>
    tpu.vector_store %arg7[%c0_23, %c0_24, %c0_25], %42 {strides = array<i32>} : memref<1x64x32xbf16, #tpu.memory_space<vmem>>, vector<1x64x32xbf16>,
    return
  }
  func.func @transform_0(%arg0: i32, %arg1: i32) -> (i32, i32, i32) {
    %c0_i32 = arith.constant 0 : i32
    %c0_i32_0 = arith.constant 0 : i32
    return %arg0, %c0_i32, %arg1 : i32, i32, i32
  }
  func.func @transform_1(%arg0: i32, %arg1: i32) -> (i32, i32) {
    %c0_i32 = arith.constant 0 : i32
    %c0_i32_0 = arith.constant 0 : i32
    return %c0_i32, %arg1 : i32, i32
  }
  func.func @transform_2(%arg0: i32, %arg1: i32) -> (i32, i32) {
    %c0_i32 = arith.constant 0 : i32
    %c0_i32_0 = arith.constant 0 : i32
    return %c0_i32, %arg1 : i32, i32
  }
  func.func @transform_3(%arg0: i32, %arg1: i32) -> (i32, i32) {
    %c0_i32 = arith.constant 0 : i32
    %c0_i32_0 = arith.constant 0 : i32
    %c0_i32_1 = arith.constant 0 : i32
    return %c0_i32, %c0_i32_0 : i32, i32
  }
  func.func @transform_4(%arg0: i32, %arg1: i32) -> (i32, i32) {
    %c0_i32 = arith.constant 0 : i32
    %c0_i32_0 = arith.constant 0 : i32
    %c0_i32_1 = arith.constant 0 : i32
    return %c0_i32, %c0_i32_0 : i32, i32
  }
  func.func @transform_5(%arg0: i32, %arg1: i32) -> (i32, i32, i32) {
    %c0_i32 = arith.constant 0 : i32
    %c0_i32_0 = arith.constant 0 : i32
    return %arg0, %c0_i32, %arg1 : i32, i32, i32
  }
}

module attributes {stable_mosaic.version = 11 : i64} {
  func.func @_conv3x3_kernel(%arg0: i32, %arg1: i32, %arg2: i32, %arg3: memref<1x1x110x64xbf16, #tpu.memory_space<vmem>>, %arg4: memref<9x64x32xbf16, #tpu.memory_space<vmem>>, %arg5: memref<1x32xf32, #tpu.memory_space<vmem>>, %arg6: memref<1x8x8x32xbf16, #tpu.memory_space<vmem>>) attributes {dimension_semantics = [#tpu.dimension_semantics<parallel>, #tpu.dimension_semantics<parallel>, #tpu.dimension_semantics<parallel>], iteration_bounds = array<i64: 2, 1, 1>, scalar_prefetch = 0 : i64, scratch_operands = 0 : i64, tpu.core_type = #tpu.core_type<tc>, window_params = [{transform_indices = @transform_0, window_bounds = array<i64: 1, 1, 110, 64>}, {transform_indices = @transform_1, window_bounds = array<i64: 9, 64, 32>}, {transform_indices = @transform_2, window_bounds = array<i64: 1, 32>}, {transform_indices = @transform_3, window_bounds = array<i64: 1, 8, 8, 32>}]} {
    %cst = arith.constant 0.000000e+00 : f32
    %0 = vector.broadcast %cst : f32 to vector<80x32xf32>
    %c0 = arith.constant 0 : index
    %c0_0 = arith.constant 0 : index
    %c0_1 = arith.constant 0 : index
    %c0_2 = arith.constant 0 : index
    %1 = vector.load %arg3[%c0, %c0_0, %c0_1, %c0_2] : memref<1x1x110x64xbf16, #tpu.memory_space<vmem>>, vector<1x1x80x64xbf16>
    %2 = vector.shape_cast %1 : vector<1x1x80x64xbf16> to vector<80x64xbf16>
    %c0_3 = arith.constant 0 : index
    %c0_4 = arith.constant 0 : index
    %c0_5 = arith.constant 0 : index
    %3 = vector.load %arg4[%c0_3, %c0_4, %c0_5] : memref<9x64x32xbf16, #tpu.memory_space<vmem>>, vector<1x64x32xbf16>
    %4 = vector.shape_cast %3 : vector<1x64x32xbf16> to vector<64x32xbf16>
    %cst_6 = arith.constant dense<0.000000e+00> : vector<80x32xf32>
    %5 = tpu.matmul %2, %4, %cst_6 {dimension_numbers = #tpu.dot_dimension_numbers<[1], [0], [0], [1], [0, 0, 1, 1], [], []>} : vector<80x64xbf16>, vector<64x32xbf16>, vector<80x32xf32> -> vector<80x32xf32>
    %6 = arith.addf %0, %5 : vector<80x32xf32>
    %c0_7 = arith.constant 0 : index
    %c0_8 = arith.constant 0 : index
    %c1 = arith.constant 1 : index
    %c0_9 = arith.constant 0 : index
    %7 = vector.load %arg3[%c0_7, %c0_8, %c1, %c0_9] : memref<1x1x110x64xbf16, #tpu.memory_space<vmem>>, vector<1x1x80x64xbf16>
    %8 = vector.shape_cast %7 : vector<1x1x80x64xbf16> to vector<80x64xbf16>
    %c1_10 = arith.constant 1 : index
    %c0_11 = arith.constant 0 : index
    %c0_12 = arith.constant 0 : index
    %9 = vector.load %arg4[%c1_10, %c0_11, %c0_12] : memref<9x64x32xbf16, #tpu.memory_space<vmem>>, vector<1x64x32xbf16>
    %10 = vector.shape_cast %9 : vector<1x64x32xbf16> to vector<64x32xbf16>
    %cst_13 = arith.constant dense<0.000000e+00> : vector<80x32xf32>
    %11 = tpu.matmul %8, %10, %cst_13 {dimension_numbers = #tpu.dot_dimension_numbers<[1], [0], [0], [1], [0, 0, 1, 1], [], []>} : vector<80x64xbf16>, vector<64x32xbf16>, vector<80x32xf32> -> vector<80x32xf32>
    %12 = arith.addf %6, %11 : vector<80x32xf32>
    %c0_14 = arith.constant 0 : index
    %c0_15 = arith.constant 0 : index
    %c2 = arith.constant 2 : index
    %c0_16 = arith.constant 0 : index
    %13 = vector.load %arg3[%c0_14, %c0_15, %c2, %c0_16] : memref<1x1x110x64xbf16, #tpu.memory_space<vmem>>, vector<1x1x80x64xbf16>
    %14 = vector.shape_cast %13 : vector<1x1x80x64xbf16> to vector<80x64xbf16>
    %c2_17 = arith.constant 2 : index
    %c0_18 = arith.constant 0 : index
    %c0_19 = arith.constant 0 : index
    %15 = vector.load %arg4[%c2_17, %c0_18, %c0_19] : memref<9x64x32xbf16, #tpu.memory_space<vmem>>, vector<1x64x32xbf16>
    %16 = vector.shape_cast %15 : vector<1x64x32xbf16> to vector<64x32xbf16>
    %cst_20 = arith.constant dense<0.000000e+00> : vector<80x32xf32>
    %17 = tpu.matmul %14, %16, %cst_20 {dimension_numbers = #tpu.dot_dimension_numbers<[1], [0], [0], [1], [0, 0, 1, 1], [], []>} : vector<80x64xbf16>, vector<64x32xbf16>, vector<80x32xf32> -> vector<80x32xf32>
    %18 = arith.addf %12, %17 : vector<80x32xf32>
    %c0_21 = arith.constant 0 : index
    %c0_22 = arith.constant 0 : index
    %c10 = arith.constant 10 : index
    %c0_23 = arith.constant 0 : index
    %19 = vector.load %arg3[%c0_21, %c0_22, %c10, %c0_23] : memref<1x1x110x64xbf16, #tpu.memory_space<vmem>>, vector<1x1x80x64xbf16>
    %20 = vector.shape_cast %19 : vector<1x1x80x64xbf16> to vector<80x64xbf16>
    %c3 = arith.constant 3 : index
    %c0_24 = arith.constant 0 : index
    %c0_25 = arith.constant 0 : index
    %21 = vector.load %arg4[%c3, %c0_24, %c0_25] : memref<9x64x32xbf16, #tpu.memory_space<vmem>>, vector<1x64x32xbf16>
    %22 = vector.shape_cast %21 : vector<1x64x32xbf16> to vector<64x32xbf16>
    %cst_26 = arith.constant dense<0.000000e+00> : vector<80x32xf32>
    %23 = tpu.matmul %20, %22, %cst_26 {dimension_numbers = #tpu.dot_dimension_numbers<[1], [0], [0], [1], [0, 0, 1, 1], [], []>} : vector<80x64xbf16>, vector<64x32xbf16>, vector<80x32xf32> -> vector<80x32xf32>
    %24 = arith.addf %18, %23 : vector<80x32xf32>
    %c0_27 = arith.constant 0 : index
    %c0_28 = arith.constant 0 : index
    %c11 = arith.constant 11 : index
    %c0_29 = arith.constant 0 : index
    %25 = vector.load %arg3[%c0_27, %c0_28, %c11, %c0_29] : memref<1x1x110x64xbf16, #tpu.memory_space<vmem>>, vector<1x1x80x64xbf16>
    %26 = vector.shape_cast %25 : vector<1x1x80x64xbf16> to vector<80x64xbf16>
    %c4 = arith.constant 4 : index
    %c0_30 = arith.constant 0 : index
    %c0_31 = arith.constant 0 : index
    %27 = vector.load %arg4[%c4, %c0_30, %c0_31] : memref<9x64x32xbf16, #tpu.memory_space<vmem>>, vector<1x64x32xbf16>
    %28 = vector.shape_cast %27 : vector<1x64x32xbf16> to vector<64x32xbf16>
    %cst_32 = arith.constant dense<0.000000e+00> : vector<80x32xf32>
    %29 = tpu.matmul %26, %28, %cst_32 {dimension_numbers = #tpu.dot_dimension_numbers<[1], [0], [0], [1], [0, 0, 1, 1], [], []>} : vector<80x64xbf16>, vector<64x32xbf16>, vector<80x32xf32> -> vector<80x32xf32>
    %30 = arith.addf %24, %29 : vector<80x32xf32>
    %c0_33 = arith.constant 0 : index
    %c0_34 = arith.constant 0 : index
    %c12 = arith.constant 12 : index
    %c0_35 = arith.constant 0 : index
    %31 = vector.load %arg3[%c0_33, %c0_34, %c12, %c0_35] : memref<1x1x110x64xbf16, #tpu.memory_space<vmem>>, vector<1x1x80x64xbf16>
    %32 = vector.shape_cast %31 : vector<1x1x80x64xbf16> to vector<80x64xbf16>
    %c5 = arith.constant 5 : index
    %c0_36 = arith.constant 0 : index
    %c0_37 = arith.constant 0 : index
    %33 = vector.load %arg4[%c5, %c0_36, %c0_37] : memref<9x64x32xbf16, #tpu.memory_space<vmem>>, vector<1x64x32xbf16>
    %34 = vector.shape_cast %33 : vector<1x64x32xbf16> to vector<64x32xbf16>
    %cst_38 = arith.constant dense<0.000000e+00> : vector<80x32xf32>
    %35 = tpu.matmul %32, %34, %cst_38 {dimension_numbers = #tpu.dot_dimension_numbers<[1], [0], [0], [1], [0, 0, 1, 1], [], []>} : vector<80x64xbf16>, vector<64x32xbf16>, vector<80x32xf32> -> vector<80x32xf32>
    %36 = arith.addf %30, %35 : vector<80x32xf32>
    %c0_39 = arith.constant 0 : index
    %c0_40 = arith.constant 0 : index
    %c20 = arith.constant 20 : index
    %c0_41 = arith.constant 0 : index
    %37 = vector.load %arg3[%c0_39, %c0_40, %c20, %c0_41] : memref<1x1x110x64xbf16, #tpu.memory_space<vmem>>, vector<1x1x80x64xbf16>
    %38 = vector.shape_cast %37 : vector<1x1x80x64xbf16> to vector<80x64xbf16>
    %c6 = arith.constant 6 : index
    %c0_42 = arith.constant 0 : index
    %c0_43 = arith.constant 0 : index
    %39 = vector.load %arg4[%c6, %c0_42, %c0_43] : memref<9x64x32xbf16, #tpu.memory_space<vmem>>, vector<1x64x32xbf16>
    %40 = vector.shape_cast %39 : vector<1x64x32xbf16> to vector<64x32xbf16>
    %cst_44 = arith.constant dense<0.000000e+00> : vector<80x32xf32>
    %41 = tpu.matmul %38, %40, %cst_44 {dimension_numbers = #tpu.dot_dimension_numbers<[1], [0], [0], [1], [0, 0, 1, 1], [], []>} : vector<80x64xbf16>, vector<64x32xbf16>, vector<80x32xf32> -> vector<80x32xf32>
    %42 = arith.addf %36, %41 : vector<80x32xf32>
    %c0_45 = arith.constant 0 : index
    %c0_46 = arith.constant 0 : index
    %c21 = arith.constant 21 : index
    %c0_47 = arith.constant 0 : index
    %43 = vector.load %arg3[%c0_45, %c0_46, %c21, %c0_47] : memref<1x1x110x64xbf16, #tpu.memory_space<vmem>>, vector<1x1x80x64xbf16>
    %44 = vector.shape_cast %43 : vector<1x1x80x64xbf16> to vector<80x64xbf16>
    %c7 = arith.constant 7 : index
    %c0_48 = arith.constant 0 : index
    %c0_49 = arith.constant 0 : index
    %45 = vector.load %arg4[%c7, %c0_48, %c0_49] : memref<9x64x32xbf16, #tpu.memory_space<vmem>>, vector<1x64x32xbf16>
    %46 = vector.shape_cast %45 : vector<1x64x32xbf16> to vector<64x32xbf16>
    %cst_50 = arith.constant dense<0.000000e+00> : vector<80x32xf32>
    %47 = tpu.matmul %44, %46, %cst_50 {dimension_numbers = #tpu.dot_dimension_numbers<[1], [0], [0], [1], [0, 0, 1, 1], [], []>} : vector<80x64xbf16>, vector<64x32xbf16>, vector<80x32xf32> -> vector<80x32xf32>
    %48 = arith.addf %42, %47 : vector<80x32xf32>
    %c0_51 = arith.constant 0 : index
    %c0_52 = arith.constant 0 : index
    %c22 = arith.constant 22 : index
    %c0_53 = arith.constant 0 : index
    %49 = vector.load %arg3[%c0_51, %c0_52, %c22, %c0_53] : memref<1x1x110x64xbf16, #tpu.memory_space<vmem>>, vector<1x1x80x64xbf16>
    %50 = vector.shape_cast %49 : vector<1x1x80x64xbf16> to vector<80x64xbf16>
    %c8 = arith.constant 8 : index
    %c0_54 = arith.constant 0 : index
    %c0_55 = arith.constant 0 : index
    %51 = vector.load %arg4[%c8, %c0_54, %c0_55] : memref<9x64x32xbf16, #tpu.memory_space<vmem>>, vector<1x64x32xbf16>
    %52 = vector.shape_cast %51 : vector<1x64x32xbf16> to vector<64x32xbf16>
    %cst_56 = arith.constant dense<0.000000e+00> : vector<80x32xf32>
    %53 = tpu.matmul %50, %52, %cst_56 {dimension_numbers = #tpu.dot_dimension_numbers<[1], [0], [0], [1], [0, 0, 1, 1], [], []>} : vector<80x64xbf16>, vector<64x32xbf16>, vector<80x32xf32> -> vector<80x32xf32>
    %54 = arith.addf %48, %53 : vector<80x32xf32>
    %c0_57 = arith.constant 0 : index
    %c0_58 = arith.constant 0 : index
    %55 = vector.load %arg5[%c0_57, %c0_58] : memref<1x32xf32, #tpu.memory_space<vmem>>, vector<1x32xf32>
    %56 = vector.broadcast %55 : vector<1x32xf32> to vector<80x32xf32>
    %57 = arith.addf %54, %56 : vector<80x32xf32>
    %58 = vector.extract_strided_slice %57 {offsets = [0, 0], sizes = [8, 32], strides = [1, 1]} : vector<80x32xf32> to vector<8x32xf32>
    %59 = arith.truncf %58 : vector<8x32xf32> to vector<8x32xbf16>
    %c0_59 = arith.constant 0 : index
    %c0_60 = arith.constant 0 : index
    %c0_61 = arith.constant 0 : index
    %c0_62 = arith.constant 0 : index
    %60 = vector.load %arg6[%c0_59, %c0_60, %c0_61, %c0_62] : memref<1x8x8x32xbf16, #tpu.memory_space<vmem>>, vector<1x1x8x32xbf16>
    %61 = vector.shape_cast %60 : vector<1x1x8x32xbf16> to vector<8x32xbf16>
    %62 = vector.shape_cast %59 : vector<8x32xbf16> to vector<1x1x8x32xbf16>
    tpu.vector_store %arg6[%c0_59, %c0_60, %c0_61, %c0_62], %62 {strides = array<i32>} : memref<1x8x8x32xbf16, #tpu.memory_space<vmem>>, vector<1x1x8x32xbf16>,
    %63 = vector.extract_strided_slice %57 {offsets = [10, 0], sizes = [8, 32], strides = [1, 1]} : vector<80x32xf32> to vector<8x32xf32>
    %64 = arith.truncf %63 : vector<8x32xf32> to vector<8x32xbf16>
    %c0_63 = arith.constant 0 : index
    %c1_64 = arith.constant 1 : index
    %c0_65 = arith.constant 0 : index
    %c0_66 = arith.constant 0 : index
    %65 = vector.load %arg6[%c0_63, %c1_64, %c0_65, %c0_66] : memref<1x8x8x32xbf16, #tpu.memory_space<vmem>>, vector<1x1x8x32xbf16>
    %66 = vector.shape_cast %65 : vector<1x1x8x32xbf16> to vector<8x32xbf16>
    %67 = vector.shape_cast %64 : vector<8x32xbf16> to vector<1x1x8x32xbf16>
    tpu.vector_store %arg6[%c0_63, %c1_64, %c0_65, %c0_66], %67 {strides = array<i32>} : memref<1x8x8x32xbf16, #tpu.memory_space<vmem>>, vector<1x1x8x32xbf16>,
    %68 = vector.extract_strided_slice %57 {offsets = [20, 0], sizes = [8, 32], strides = [1, 1]} : vector<80x32xf32> to vector<8x32xf32>
    %69 = arith.truncf %68 : vector<8x32xf32> to vector<8x32xbf16>
    %c0_67 = arith.constant 0 : index
    %c2_68 = arith.constant 2 : index
    %c0_69 = arith.constant 0 : index
    %c0_70 = arith.constant 0 : index
    %70 = vector.load %arg6[%c0_67, %c2_68, %c0_69, %c0_70] : memref<1x8x8x32xbf16, #tpu.memory_space<vmem>>, vector<1x1x8x32xbf16>
    %71 = vector.shape_cast %70 : vector<1x1x8x32xbf16> to vector<8x32xbf16>
    %72 = vector.shape_cast %69 : vector<8x32xbf16> to vector<1x1x8x32xbf16>
    tpu.vector_store %arg6[%c0_67, %c2_68, %c0_69, %c0_70], %72 {strides = array<i32>} : memref<1x8x8x32xbf16, #tpu.memory_space<vmem>>, vector<1x1x8x32xbf16>,
    %73 = vector.extract_strided_slice %57 {offsets = [30, 0], sizes = [8, 32], strides = [1, 1]} : vector<80x32xf32> to vector<8x32xf32>
    %74 = arith.truncf %73 : vector<8x32xf32> to vector<8x32xbf16>
    %c0_71 = arith.constant 0 : index
    %c3_72 = arith.constant 3 : index
    %c0_73 = arith.constant 0 : index
    %c0_74 = arith.constant 0 : index
    %75 = vector.load %arg6[%c0_71, %c3_72, %c0_73, %c0_74] : memref<1x8x8x32xbf16, #tpu.memory_space<vmem>>, vector<1x1x8x32xbf16>
    %76 = vector.shape_cast %75 : vector<1x1x8x32xbf16> to vector<8x32xbf16>
    %77 = vector.shape_cast %74 : vector<8x32xbf16> to vector<1x1x8x32xbf16>
    tpu.vector_store %arg6[%c0_71, %c3_72, %c0_73, %c0_74], %77 {strides = array<i32>} : memref<1x8x8x32xbf16, #tpu.memory_space<vmem>>, vector<1x1x8x32xbf16>,
    %78 = vector.extract_strided_slice %57 {offsets = [40, 0], sizes = [8, 32], strides = [1, 1]} : vector<80x32xf32> to vector<8x32xf32>
    %79 = arith.truncf %78 : vector<8x32xf32> to vector<8x32xbf16>
    %c0_75 = arith.constant 0 : index
    %c4_76 = arith.constant 4 : index
    %c0_77 = arith.constant 0 : index
    %c0_78 = arith.constant 0 : index
    %80 = vector.load %arg6[%c0_75, %c4_76, %c0_77, %c0_78] : memref<1x8x8x32xbf16, #tpu.memory_space<vmem>>, vector<1x1x8x32xbf16>
    %81 = vector.shape_cast %80 : vector<1x1x8x32xbf16> to vector<8x32xbf16>
    %82 = vector.shape_cast %79 : vector<8x32xbf16> to vector<1x1x8x32xbf16>
    tpu.vector_store %arg6[%c0_75, %c4_76, %c0_77, %c0_78], %82 {strides = array<i32>} : memref<1x8x8x32xbf16, #tpu.memory_space<vmem>>, vector<1x1x8x32xbf16>,
    %83 = vector.extract_strided_slice %57 {offsets = [50, 0], sizes = [8, 32], strides = [1, 1]} : vector<80x32xf32> to vector<8x32xf32>
    %84 = arith.truncf %83 : vector<8x32xf32> to vector<8x32xbf16>
    %c0_79 = arith.constant 0 : index
    %c5_80 = arith.constant 5 : index
    %c0_81 = arith.constant 0 : index
    %c0_82 = arith.constant 0 : index
    %85 = vector.load %arg6[%c0_79, %c5_80, %c0_81, %c0_82] : memref<1x8x8x32xbf16, #tpu.memory_space<vmem>>, vector<1x1x8x32xbf16>
    %86 = vector.shape_cast %85 : vector<1x1x8x32xbf16> to vector<8x32xbf16>
    %87 = vector.shape_cast %84 : vector<8x32xbf16> to vector<1x1x8x32xbf16>
    tpu.vector_store %arg6[%c0_79, %c5_80, %c0_81, %c0_82], %87 {strides = array<i32>} : memref<1x8x8x32xbf16, #tpu.memory_space<vmem>>, vector<1x1x8x32xbf16>,
    %88 = vector.extract_strided_slice %57 {offsets = [60, 0], sizes = [8, 32], strides = [1, 1]} : vector<80x32xf32> to vector<8x32xf32>
    %89 = arith.truncf %88 : vector<8x32xf32> to vector<8x32xbf16>
    %c0_83 = arith.constant 0 : index
    %c6_84 = arith.constant 6 : index
    %c0_85 = arith.constant 0 : index
    %c0_86 = arith.constant 0 : index
    %90 = vector.load %arg6[%c0_83, %c6_84, %c0_85, %c0_86] : memref<1x8x8x32xbf16, #tpu.memory_space<vmem>>, vector<1x1x8x32xbf16>
    %91 = vector.shape_cast %90 : vector<1x1x8x32xbf16> to vector<8x32xbf16>
    %92 = vector.shape_cast %89 : vector<8x32xbf16> to vector<1x1x8x32xbf16>
    tpu.vector_store %arg6[%c0_83, %c6_84, %c0_85, %c0_86], %92 {strides = array<i32>} : memref<1x8x8x32xbf16, #tpu.memory_space<vmem>>, vector<1x1x8x32xbf16>,
    %93 = vector.extract_strided_slice %57 {offsets = [70, 0], sizes = [8, 32], strides = [1, 1]} : vector<80x32xf32> to vector<8x32xf32>
    %94 = arith.truncf %93 : vector<8x32xf32> to vector<8x32xbf16>
    %c0_87 = arith.constant 0 : index
    %c7_88 = arith.constant 7 : index
    %c0_89 = arith.constant 0 : index
    %c0_90 = arith.constant 0 : index
    %95 = vector.load %arg6[%c0_87, %c7_88, %c0_89, %c0_90] : memref<1x8x8x32xbf16, #tpu.memory_space<vmem>>, vector<1x1x8x32xbf16>
    %96 = vector.shape_cast %95 : vector<1x1x8x32xbf16> to vector<8x32xbf16>
    %97 = vector.shape_cast %94 : vector<8x32xbf16> to vector<1x1x8x32xbf16>
    tpu.vector_store %arg6[%c0_87, %c7_88, %c0_89, %c0_90], %97 {strides = array<i32>} : memref<1x8x8x32xbf16, #tpu.memory_space<vmem>>, vector<1x1x8x32xbf16>,
    return
  }
  func.func @transform_0(%arg0: i32, %arg1: i32, %arg2: i32) -> (i32, i32, i32, i32) {
    %c0_i32 = arith.constant 0 : i32
    %c0_i32_0 = arith.constant 0 : i32
    %c0_i32_1 = arith.constant 0 : i32
    return %arg0, %arg1, %c0_i32, %c0_i32_0 : i32, i32, i32, i32
  }
  func.func @transform_1(%arg0: i32, %arg1: i32, %arg2: i32) -> (i32, i32, i32) {
    %c0_i32 = arith.constant 0 : i32
    %c0_i32_0 = arith.constant 0 : i32
    %c0_i32_1 = arith.constant 0 : i32
    return %c0_i32, %c0_i32_0, %arg2 : i32, i32, i32
  }
  func.func @transform_2(%arg0: i32, %arg1: i32, %arg2: i32) -> (i32, i32) {
    %c0_i32 = arith.constant 0 : i32
    %c0_i32_0 = arith.constant 0 : i32
    return %c0_i32, %arg2 : i32, i32
  }
  func.func @transform_3(%arg0: i32, %arg1: i32, %arg2: i32) -> (i32, i32, i32, i32) {
    %c0_i32 = arith.constant 0 : i32
    %c0_i32_0 = arith.constant 0 : i32
    return %arg0, %arg1, %c0_i32, %arg2 : i32, i32, i32, i32
  }
}

module attributes {stable_mosaic.version = 11 : i64} {
  func.func @_matmul_bias_kernel(%arg0: i32, %arg1: i32, %arg2: memref<64x64xf32, #tpu.memory_space<vmem>>, %arg3: memref<64x32xbf16, #tpu.memory_space<vmem>>, %arg4: memref<1x32xf32, #tpu.memory_space<vmem>>, %arg5: memref<64x32xf32, #tpu.memory_space<vmem>>, %arg6: memref<64x32xf32, #tpu.memory_space<vmem>>) attributes {dimension_semantics = [#tpu.dimension_semantics<parallel>, #tpu.dimension_semantics<parallel>], iteration_bounds = array<i64: 2, 1>, scalar_prefetch = 0 : i64, scratch_operands = 0 : i64, tpu.core_type = #tpu.core_type<tc>, window_params = [{transform_indices = @transform_0, window_bounds = array<i64: 64, 64>}, {transform_indices = @transform_1, window_bounds = array<i64: 64, 32>}, {transform_indices = @transform_2, window_bounds = array<i64: 1, 32>}, {transform_indices = @transform_3, window_bounds = array<i64: 64, 32>}, {transform_indices = @transform_4, window_bounds = array<i64: 64, 32>}]} {
    %c0 = arith.constant 0 : index
    %c0_0 = arith.constant 0 : index
    %0 = vector.load %arg2[%c0, %c0_0] : memref<64x64xf32, #tpu.memory_space<vmem>>, vector<64x64xf32>
    %1 = arith.truncf %0 : vector<64x64xf32> to vector<64x64xbf16>
    %c0_1 = arith.constant 0 : index
    %c0_2 = arith.constant 0 : index
    %2 = vector.load %arg3[%c0_1, %c0_2] : memref<64x32xbf16, #tpu.memory_space<vmem>>, vector<64x32xbf16>
    %cst = arith.constant dense<0.000000e+00> : vector<64x32xf32>
    %3 = tpu.matmul %1, %2, %cst {dimension_numbers = #tpu.dot_dimension_numbers<[1], [0], [0], [1], [0, 0, 1, 1], [], []>} : vector<64x64xbf16>, vector<64x32xbf16>, vector<64x32xf32> -> vector<64x32xf32>
    %c0_3 = arith.constant 0 : index
    %c0_4 = arith.constant 0 : index
    %4 = vector.load %arg4[%c0_3, %c0_4] : memref<1x32xf32, #tpu.memory_space<vmem>>, vector<1x32xf32>
    %5 = vector.broadcast %4 : vector<1x32xf32> to vector<64x32xf32>
    %6 = arith.addf %3, %5 : vector<64x32xf32>
    %c0_5 = arith.constant 0 : index
    %c0_6 = arith.constant 0 : index
    %7 = vector.load %arg5[%c0_5, %c0_6] : memref<64x32xf32, #tpu.memory_space<vmem>>, vector<64x32xf32>
    %8 = arith.addf %6, %7 : vector<64x32xf32>
    %c0_7 = arith.constant 0 : index
    %c0_8 = arith.constant 0 : index
    %9 = vector.load %arg6[%c0_7, %c0_8] : memref<64x32xf32, #tpu.memory_space<vmem>>, vector<64x32xf32>
    tpu.vector_store %arg6[%c0_7, %c0_8], %8 {strides = array<i32>} : memref<64x32xf32, #tpu.memory_space<vmem>>, vector<64x32xf32>,
    return
  }
  func.func @transform_0(%arg0: i32, %arg1: i32) -> (i32, i32) {
    %c0_i32 = arith.constant 0 : i32
    %c0_i32_0 = arith.constant 0 : i32
    return %arg0, %c0_i32 : i32, i32
  }
  func.func @transform_1(%arg0: i32, %arg1: i32) -> (i32, i32) {
    %c0_i32 = arith.constant 0 : i32
    %c0_i32_0 = arith.constant 0 : i32
    return %c0_i32, %arg1 : i32, i32
  }
  func.func @transform_2(%arg0: i32, %arg1: i32) -> (i32, i32) {
    %c0_i32 = arith.constant 0 : i32
    %c0_i32_0 = arith.constant 0 : i32
    return %c0_i32, %arg1 : i32, i32
  }
  func.func @transform_3(%arg0: i32, %arg1: i32) -> (i32, i32) {
    %c0_i32 = arith.constant 0 : i32
    return %arg0, %arg1 : i32, i32
  }
  func.func @transform_4(%arg0: i32, %arg1: i32) -> (i32, i32) {
    %c0_i32 = arith.constant 0 : i32
    return %arg0, %arg1 : i32, i32
  }
}

module attributes {stable_mosaic.version = 11 : i64} {
  func.func @_groupnorm_kernel(%arg0: i32, %arg1: i32, %arg2: memref<1x64x32xf32, #tpu.memory_space<vmem>>, %arg3: memref<1x32xf32, #tpu.memory_space<vmem>>, %arg4: memref<1x32xf32, #tpu.memory_space<vmem>>, %arg5: memref<32x32xf32, #tpu.memory_space<vmem>>, %arg6: memref<32x32xf32, #tpu.memory_space<vmem>>, %arg7: memref<1x64x32xbf16, #tpu.memory_space<vmem>>) attributes {dimension_semantics = [#tpu.dimension_semantics<parallel>, #tpu.dimension_semantics<parallel>], iteration_bounds = array<i64: 2, 1>, scalar_prefetch = 0 : i64, scratch_operands = 0 : i64, tpu.core_type = #tpu.core_type<tc>, window_params = [{transform_indices = @transform_0, window_bounds = array<i64: 1, 64, 32>}, {transform_indices = @transform_1, window_bounds = array<i64: 1, 32>}, {transform_indices = @transform_2, window_bounds = array<i64: 1, 32>}, {pipeline_mode = #tpu.pipeline_mode<synchronous>, transform_indices = @transform_3, window_bounds = array<i64: 32, 32>}, {pipeline_mode = #tpu.pipeline_mode<synchronous>, transform_indices = @transform_4, window_bounds = array<i64: 32, 32>}, {transform_indices = @transform_5, window_bounds = array<i64: 1, 64, 32>}]} {
    %c0 = arith.constant 0 : index
    %c0_0 = arith.constant 0 : index
    %c0_1 = arith.constant 0 : index
    %0 = vector.load %arg2[%c0, %c0_0, %c0_1] : memref<1x64x32xf32, #tpu.memory_space<vmem>>, vector<1x64x32xf32>
    %1 = vector.shape_cast %0 : vector<1x64x32xf32> to vector<64x32xf32>
    %cst = arith.constant dense<0.000000e+00> : vector<32xf32>
    %2 = vector.multi_reduction <add>, %1, %cst [0] : vector<64x32xf32> to vector<32xf32>
    %3 = vector.shape_cast %2 : vector<32xf32> to vector<1x32xf32>
    %c0_2 = arith.constant 0 : index
    %c0_3 = arith.constant 0 : index
    %4 = vector.load %arg5[%c0_2, %c0_3] : memref<32x32xf32, #tpu.memory_space<vmem>>, vector<32x32xf32>
    %cst_4 = arith.constant dense<0.000000e+00> : vector<1x32xf32>
    %5 = tpu.matmul %3, %4, %cst_4 {dimension_numbers = #tpu.dot_dimension_numbers<[1], [0], [0], [1], [0, 0, 1, 1], [], []>} : vector<1x32xf32>, vector<32x32xf32>, vector<1x32xf32> -> vector<1x32xf32>
    %cst_5 = arith.constant 6.400000e+01 : f32
    %6 = vector.broadcast %cst_5 : f32 to vector<1x32xf32>
    %7 = arith.divf %5, %6 : vector<1x32xf32>
    %c0_6 = arith.constant 0 : index
    %c0_7 = arith.constant 0 : index
    %8 = vector.load %arg6[%c0_6, %c0_7] : memref<32x32xf32, #tpu.memory_space<vmem>>, vector<32x32xf32>
    %cst_8 = arith.constant dense<0.000000e+00> : vector<1x32xf32>
    %9 = tpu.matmul %7, %8, %cst_8 {dimension_numbers = #tpu.dot_dimension_numbers<[1], [0], [0], [1], [0, 0, 1, 1], [], []>} : vector<1x32xf32>, vector<32x32xf32>, vector<1x32xf32> -> vector<1x32xf32>
    %10 = vector.broadcast %9 : vector<1x32xf32> to vector<64x32xf32>
    %11 = arith.subf %1, %10 : vector<64x32xf32>
    %12 = arith.mulf %11, %11 : vector<64x32xf32>
    %cst_9 = arith.constant dense<0.000000e+00> : vector<32xf32>
    %13 = vector.multi_reduction <add>, %12, %cst_9 [0] : vector<64x32xf32> to vector<32xf32>
    %14 = vector.shape_cast %13 : vector<32xf32> to vector<1x32xf32>
    %c0_10 = arith.constant 0 : index
    %c0_11 = arith.constant 0 : index
    %15 = vector.load %arg5[%c0_10, %c0_11] : memref<32x32xf32, #tpu.memory_space<vmem>>, vector<32x32xf32>
    %cst_12 = arith.constant dense<0.000000e+00> : vector<1x32xf32>
    %16 = tpu.matmul %14, %15, %cst_12 {dimension_numbers = #tpu.dot_dimension_numbers<[1], [0], [0], [1], [0, 0, 1, 1], [], []>} : vector<1x32xf32>, vector<32x32xf32>, vector<1x32xf32> -> vector<1x32xf32>
    %cst_13 = arith.constant 6.400000e+01 : f32
    %17 = vector.broadcast %cst_13 : f32 to vector<1x32xf32>
    %18 = arith.divf %16, %17 : vector<1x32xf32>
    %c0_14 = arith.constant 0 : index
    %c0_15 = arith.constant 0 : index
    %19 = vector.load %arg6[%c0_14, %c0_15] : memref<32x32xf32, #tpu.memory_space<vmem>>, vector<32x32xf32>
    %cst_16 = arith.constant dense<0.000000e+00> : vector<1x32xf32>
    %20 = tpu.matmul %18, %19, %cst_16 {dimension_numbers = #tpu.dot_dimension_numbers<[1], [0], [0], [1], [0, 0, 1, 1], [], []>} : vector<1x32xf32>, vector<32x32xf32>, vector<1x32xf32> -> vector<1x32xf32>
    %cst_17 = arith.constant 9.99999974E-6 : f32
    %21 = vector.broadcast %cst_17 : f32 to vector<1x32xf32>
    %22 = arith.addf %20, %21 : vector<1x32xf32>
    %23 = math.rsqrt %22 : vector<1x32xf32>
    %24 = vector.broadcast %23 : vector<1x32xf32> to vector<64x32xf32>
    %25 = arith.mulf %11, %24 : vector<64x32xf32>
    %c0_18 = arith.constant 0 : index
    %c0_19 = arith.constant 0 : index
    %26 = vector.load %arg3[%c0_18, %c0_19] : memref<1x32xf32, #tpu.memory_space<vmem>>, vector<1x32xf32>
    %27 = vector.broadcast %26 : vector<1x32xf32> to vector<64x32xf32>
    %28 = arith.mulf %25, %27 : vector<64x32xf32>
    %c0_20 = arith.constant 0 : index
    %c0_21 = arith.constant 0 : index
    %29 = vector.load %arg4[%c0_20, %c0_21] : memref<1x32xf32, #tpu.memory_space<vmem>>, vector<1x32xf32>
    %30 = vector.broadcast %29 : vector<1x32xf32> to vector<64x32xf32>
    %31 = arith.addf %28, %30 : vector<64x32xf32>
    %32 = arith.negf %31 : vector<64x32xf32>
    %33 = math.exp %32 : vector<64x32xf32>
    %cst_22 = arith.constant 1.000000e+00 : f32
    %34 = vector.broadcast %cst_22 : f32 to vector<64x32xf32>
    %35 = arith.addf %34, %33 : vector<64x32xf32>
    %36 = arith.divf %34, %35 : vector<64x32xf32>
    %37 = arith.mulf %31, %36 : vector<64x32xf32>
    %38 = arith.truncf %37 : vector<64x32xf32> to vector<64x32xbf16>
    %c0_23 = arith.constant 0 : index
    %c0_24 = arith.constant 0 : index
    %c0_25 = arith.constant 0 : index
    %39 = vector.load %arg7[%c0_23, %c0_24, %c0_25] : memref<1x64x32xbf16, #tpu.memory_space<vmem>>, vector<1x64x32xbf16>
    %40 = vector.shape_cast %39 : vector<1x64x32xbf16> to vector<64x32xbf16>
    %41 = vector.shape_cast %38 : vector<64x32xbf16> to vector<1x64x32xbf16>
    tpu.vector_store %arg7[%c0_23, %c0_24, %c0_25], %41 {strides = array<i32>} : memref<1x64x32xbf16, #tpu.memory_space<vmem>>, vector<1x64x32xbf16>,
    return
  }
  func.func @transform_0(%arg0: i32, %arg1: i32) -> (i32, i32, i32) {
    %c0_i32 = arith.constant 0 : i32
    %c0_i32_0 = arith.constant 0 : i32
    return %arg0, %c0_i32, %arg1 : i32, i32, i32
  }
  func.func @transform_1(%arg0: i32, %arg1: i32) -> (i32, i32) {
    %c0_i32 = arith.constant 0 : i32
    %c0_i32_0 = arith.constant 0 : i32
    return %c0_i32, %arg1 : i32, i32
  }
  func.func @transform_2(%arg0: i32, %arg1: i32) -> (i32, i32) {
    %c0_i32 = arith.constant 0 : i32
    %c0_i32_0 = arith.constant 0 : i32
    return %c0_i32, %arg1 : i32, i32
  }
  func.func @transform_3(%arg0: i32, %arg1: i32) -> (i32, i32) {
    %c0_i32 = arith.constant 0 : i32
    %c0_i32_0 = arith.constant 0 : i32
    %c0_i32_1 = arith.constant 0 : i32
    return %c0_i32, %c0_i32_0 : i32, i32
  }
  func.func @transform_4(%arg0: i32, %arg1: i32) -> (i32, i32) {
    %c0_i32 = arith.constant 0 : i32
    %c0_i32_0 = arith.constant 0 : i32
    %c0_i32_1 = arith.constant 0 : i32
    return %c0_i32, %c0_i32_0 : i32, i32
  }
  func.func @transform_5(%arg0: i32, %arg1: i32) -> (i32, i32, i32) {
    %c0_i32 = arith.constant 0 : i32
    %c0_i32_0 = arith.constant 0 : i32
    return %arg0, %c0_i32, %arg1 : i32, i32, i32
  }
}

module attributes {stable_mosaic.version = 11 : i64} {
  func.func @_conv3x3_kernel(%arg0: i32, %arg1: i32, %arg2: i32, %arg3: memref<1x1x110x32xbf16, #tpu.memory_space<vmem>>, %arg4: memref<9x32x32xbf16, #tpu.memory_space<vmem>>, %arg5: memref<1x32xf32, #tpu.memory_space<vmem>>, %arg6: memref<1x8x8x32xf32, #tpu.memory_space<vmem>>) attributes {dimension_semantics = [#tpu.dimension_semantics<parallel>, #tpu.dimension_semantics<parallel>, #tpu.dimension_semantics<parallel>], iteration_bounds = array<i64: 2, 1, 1>, scalar_prefetch = 0 : i64, scratch_operands = 0 : i64, tpu.core_type = #tpu.core_type<tc>, window_params = [{transform_indices = @transform_0, window_bounds = array<i64: 1, 1, 110, 32>}, {transform_indices = @transform_1, window_bounds = array<i64: 9, 32, 32>}, {transform_indices = @transform_2, window_bounds = array<i64: 1, 32>}, {transform_indices = @transform_3, window_bounds = array<i64: 1, 8, 8, 32>}]} {
    %cst = arith.constant 0.000000e+00 : f32
    %0 = vector.broadcast %cst : f32 to vector<80x32xf32>
    %c0 = arith.constant 0 : index
    %c0_0 = arith.constant 0 : index
    %c0_1 = arith.constant 0 : index
    %c0_2 = arith.constant 0 : index
    %1 = vector.load %arg3[%c0, %c0_0, %c0_1, %c0_2] : memref<1x1x110x32xbf16, #tpu.memory_space<vmem>>, vector<1x1x80x32xbf16>
    %2 = vector.shape_cast %1 : vector<1x1x80x32xbf16> to vector<80x32xbf16>
    %c0_3 = arith.constant 0 : index
    %c0_4 = arith.constant 0 : index
    %c0_5 = arith.constant 0 : index
    %3 = vector.load %arg4[%c0_3, %c0_4, %c0_5] : memref<9x32x32xbf16, #tpu.memory_space<vmem>>, vector<1x32x32xbf16>
    %4 = vector.shape_cast %3 : vector<1x32x32xbf16> to vector<32x32xbf16>
    %cst_6 = arith.constant dense<0.000000e+00> : vector<80x32xf32>
    %5 = tpu.matmul %2, %4, %cst_6 {dimension_numbers = #tpu.dot_dimension_numbers<[1], [0], [0], [1], [0, 0, 1, 1], [], []>} : vector<80x32xbf16>, vector<32x32xbf16>, vector<80x32xf32> -> vector<80x32xf32>
    %6 = arith.addf %0, %5 : vector<80x32xf32>
    %c0_7 = arith.constant 0 : index
    %c0_8 = arith.constant 0 : index
    %c1 = arith.constant 1 : index
    %c0_9 = arith.constant 0 : index
    %7 = vector.load %arg3[%c0_7, %c0_8, %c1, %c0_9] : memref<1x1x110x32xbf16, #tpu.memory_space<vmem>>, vector<1x1x80x32xbf16>
    %8 = vector.shape_cast %7 : vector<1x1x80x32xbf16> to vector<80x32xbf16>
    %c1_10 = arith.constant 1 : index
    %c0_11 = arith.constant 0 : index
    %c0_12 = arith.constant 0 : index
    %9 = vector.load %arg4[%c1_10, %c0_11, %c0_12] : memref<9x32x32xbf16, #tpu.memory_space<vmem>>, vector<1x32x32xbf16>
    %10 = vector.shape_cast %9 : vector<1x32x32xbf16> to vector<32x32xbf16>
    %cst_13 = arith.constant dense<0.000000e+00> : vector<80x32xf32>
    %11 = tpu.matmul %8, %10, %cst_13 {dimension_numbers = #tpu.dot_dimension_numbers<[1], [0], [0], [1], [0, 0, 1, 1], [], []>} : vector<80x32xbf16>, vector<32x32xbf16>, vector<80x32xf32> -> vector<80x32xf32>
    %12 = arith.addf %6, %11 : vector<80x32xf32>
    %c0_14 = arith.constant 0 : index
    %c0_15 = arith.constant 0 : index
    %c2 = arith.constant 2 : index
    %c0_16 = arith.constant 0 : index
    %13 = vector.load %arg3[%c0_14, %c0_15, %c2, %c0_16] : memref<1x1x110x32xbf16, #tpu.memory_space<vmem>>, vector<1x1x80x32xbf16>
    %14 = vector.shape_cast %13 : vector<1x1x80x32xbf16> to vector<80x32xbf16>
    %c2_17 = arith.constant 2 : index
    %c0_18 = arith.constant 0 : index
    %c0_19 = arith.constant 0 : index
    %15 = vector.load %arg4[%c2_17, %c0_18, %c0_19] : memref<9x32x32xbf16, #tpu.memory_space<vmem>>, vector<1x32x32xbf16>
    %16 = vector.shape_cast %15 : vector<1x32x32xbf16> to vector<32x32xbf16>
    %cst_20 = arith.constant dense<0.000000e+00> : vector<80x32xf32>
    %17 = tpu.matmul %14, %16, %cst_20 {dimension_numbers = #tpu.dot_dimension_numbers<[1], [0], [0], [1], [0, 0, 1, 1], [], []>} : vector<80x32xbf16>, vector<32x32xbf16>, vector<80x32xf32> -> vector<80x32xf32>
    %18 = arith.addf %12, %17 : vector<80x32xf32>
    %c0_21 = arith.constant 0 : index
    %c0_22 = arith.constant 0 : index
    %c10 = arith.constant 10 : index
    %c0_23 = arith.constant 0 : index
    %19 = vector.load %arg3[%c0_21, %c0_22, %c10, %c0_23] : memref<1x1x110x32xbf16, #tpu.memory_space<vmem>>, vector<1x1x80x32xbf16>
    %20 = vector.shape_cast %19 : vector<1x1x80x32xbf16> to vector<80x32xbf16>
    %c3 = arith.constant 3 : index
    %c0_24 = arith.constant 0 : index
    %c0_25 = arith.constant 0 : index
    %21 = vector.load %arg4[%c3, %c0_24, %c0_25] : memref<9x32x32xbf16, #tpu.memory_space<vmem>>, vector<1x32x32xbf16>
    %22 = vector.shape_cast %21 : vector<1x32x32xbf16> to vector<32x32xbf16>
    %cst_26 = arith.constant dense<0.000000e+00> : vector<80x32xf32>
    %23 = tpu.matmul %20, %22, %cst_26 {dimension_numbers = #tpu.dot_dimension_numbers<[1], [0], [0], [1], [0, 0, 1, 1], [], []>} : vector<80x32xbf16>, vector<32x32xbf16>, vector<80x32xf32> -> vector<80x32xf32>
    %24 = arith.addf %18, %23 : vector<80x32xf32>
    %c0_27 = arith.constant 0 : index
    %c0_28 = arith.constant 0 : index
    %c11 = arith.constant 11 : index
    %c0_29 = arith.constant 0 : index
    %25 = vector.load %arg3[%c0_27, %c0_28, %c11, %c0_29] : memref<1x1x110x32xbf16, #tpu.memory_space<vmem>>, vector<1x1x80x32xbf16>
    %26 = vector.shape_cast %25 : vector<1x1x80x32xbf16> to vector<80x32xbf16>
    %c4 = arith.constant 4 : index
    %c0_30 = arith.constant 0 : index
    %c0_31 = arith.constant 0 : index
    %27 = vector.load %arg4[%c4, %c0_30, %c0_31] : memref<9x32x32xbf16, #tpu.memory_space<vmem>>, vector<1x32x32xbf16>
    %28 = vector.shape_cast %27 : vector<1x32x32xbf16> to vector<32x32xbf16>
    %cst_32 = arith.constant dense<0.000000e+00> : vector<80x32xf32>
    %29 = tpu.matmul %26, %28, %cst_32 {dimension_numbers = #tpu.dot_dimension_numbers<[1], [0], [0], [1], [0, 0, 1, 1], [], []>} : vector<80x32xbf16>, vector<32x32xbf16>, vector<80x32xf32> -> vector<80x32xf32>
    %30 = arith.addf %24, %29 : vector<80x32xf32>
    %c0_33 = arith.constant 0 : index
    %c0_34 = arith.constant 0 : index
    %c12 = arith.constant 12 : index
    %c0_35 = arith.constant 0 : index
    %31 = vector.load %arg3[%c0_33, %c0_34, %c12, %c0_35] : memref<1x1x110x32xbf16, #tpu.memory_space<vmem>>, vector<1x1x80x32xbf16>
    %32 = vector.shape_cast %31 : vector<1x1x80x32xbf16> to vector<80x32xbf16>
    %c5 = arith.constant 5 : index
    %c0_36 = arith.constant 0 : index
    %c0_37 = arith.constant 0 : index
    %33 = vector.load %arg4[%c5, %c0_36, %c0_37] : memref<9x32x32xbf16, #tpu.memory_space<vmem>>, vector<1x32x32xbf16>
    %34 = vector.shape_cast %33 : vector<1x32x32xbf16> to vector<32x32xbf16>
    %cst_38 = arith.constant dense<0.000000e+00> : vector<80x32xf32>
    %35 = tpu.matmul %32, %34, %cst_38 {dimension_numbers = #tpu.dot_dimension_numbers<[1], [0], [0], [1], [0, 0, 1, 1], [], []>} : vector<80x32xbf16>, vector<32x32xbf16>, vector<80x32xf32> -> vector<80x32xf32>
    %36 = arith.addf %30, %35 : vector<80x32xf32>
    %c0_39 = arith.constant 0 : index
    %c0_40 = arith.constant 0 : index
    %c20 = arith.constant 20 : index
    %c0_41 = arith.constant 0 : index
    %37 = vector.load %arg3[%c0_39, %c0_40, %c20, %c0_41] : memref<1x1x110x32xbf16, #tpu.memory_space<vmem>>, vector<1x1x80x32xbf16>
    %38 = vector.shape_cast %37 : vector<1x1x80x32xbf16> to vector<80x32xbf16>
    %c6 = arith.constant 6 : index
    %c0_42 = arith.constant 0 : index
    %c0_43 = arith.constant 0 : index
    %39 = vector.load %arg4[%c6, %c0_42, %c0_43] : memref<9x32x32xbf16, #tpu.memory_space<vmem>>, vector<1x32x32xbf16>
    %40 = vector.shape_cast %39 : vector<1x32x32xbf16> to vector<32x32xbf16>
    %cst_44 = arith.constant dense<0.000000e+00> : vector<80x32xf32>
    %41 = tpu.matmul %38, %40, %cst_44 {dimension_numbers = #tpu.dot_dimension_numbers<[1], [0], [0], [1], [0, 0, 1, 1], [], []>} : vector<80x32xbf16>, vector<32x32xbf16>, vector<80x32xf32> -> vector<80x32xf32>
    %42 = arith.addf %36, %41 : vector<80x32xf32>
    %c0_45 = arith.constant 0 : index
    %c0_46 = arith.constant 0 : index
    %c21 = arith.constant 21 : index
    %c0_47 = arith.constant 0 : index
    %43 = vector.load %arg3[%c0_45, %c0_46, %c21, %c0_47] : memref<1x1x110x32xbf16, #tpu.memory_space<vmem>>, vector<1x1x80x32xbf16>
    %44 = vector.shape_cast %43 : vector<1x1x80x32xbf16> to vector<80x32xbf16>
    %c7 = arith.constant 7 : index
    %c0_48 = arith.constant 0 : index
    %c0_49 = arith.constant 0 : index
    %45 = vector.load %arg4[%c7, %c0_48, %c0_49] : memref<9x32x32xbf16, #tpu.memory_space<vmem>>, vector<1x32x32xbf16>
    %46 = vector.shape_cast %45 : vector<1x32x32xbf16> to vector<32x32xbf16>
    %cst_50 = arith.constant dense<0.000000e+00> : vector<80x32xf32>
    %47 = tpu.matmul %44, %46, %cst_50 {dimension_numbers = #tpu.dot_dimension_numbers<[1], [0], [0], [1], [0, 0, 1, 1], [], []>} : vector<80x32xbf16>, vector<32x32xbf16>, vector<80x32xf32> -> vector<80x32xf32>
    %48 = arith.addf %42, %47 : vector<80x32xf32>
    %c0_51 = arith.constant 0 : index
    %c0_52 = arith.constant 0 : index
    %c22 = arith.constant 22 : index
    %c0_53 = arith.constant 0 : index
    %49 = vector.load %arg3[%c0_51, %c0_52, %c22, %c0_53] : memref<1x1x110x32xbf16, #tpu.memory_space<vmem>>, vector<1x1x80x32xbf16>
    %50 = vector.shape_cast %49 : vector<1x1x80x32xbf16> to vector<80x32xbf16>
    %c8 = arith.constant 8 : index
    %c0_54 = arith.constant 0 : index
    %c0_55 = arith.constant 0 : index
    %51 = vector.load %arg4[%c8, %c0_54, %c0_55] : memref<9x32x32xbf16, #tpu.memory_space<vmem>>, vector<1x32x32xbf16>
    %52 = vector.shape_cast %51 : vector<1x32x32xbf16> to vector<32x32xbf16>
    %cst_56 = arith.constant dense<0.000000e+00> : vector<80x32xf32>
    %53 = tpu.matmul %50, %52, %cst_56 {dimension_numbers = #tpu.dot_dimension_numbers<[1], [0], [0], [1], [0, 0, 1, 1], [], []>} : vector<80x32xbf16>, vector<32x32xbf16>, vector<80x32xf32> -> vector<80x32xf32>
    %54 = arith.addf %48, %53 : vector<80x32xf32>
    %c0_57 = arith.constant 0 : index
    %c0_58 = arith.constant 0 : index
    %55 = vector.load %arg5[%c0_57, %c0_58] : memref<1x32xf32, #tpu.memory_space<vmem>>, vector<1x32xf32>
    %56 = vector.broadcast %55 : vector<1x32xf32> to vector<80x32xf32>
    %57 = arith.addf %54, %56 : vector<80x32xf32>
    %58 = vector.extract_strided_slice %57 {offsets = [0, 0], sizes = [8, 32], strides = [1, 1]} : vector<80x32xf32> to vector<8x32xf32>
    %c0_59 = arith.constant 0 : index
    %c0_60 = arith.constant 0 : index
    %c0_61 = arith.constant 0 : index
    %c0_62 = arith.constant 0 : index
    %59 = vector.load %arg6[%c0_59, %c0_60, %c0_61, %c0_62] : memref<1x8x8x32xf32, #tpu.memory_space<vmem>>, vector<1x1x8x32xf32>
    %60 = vector.shape_cast %59 : vector<1x1x8x32xf32> to vector<8x32xf32>
    %61 = vector.shape_cast %58 : vector<8x32xf32> to vector<1x1x8x32xf32>
    tpu.vector_store %arg6[%c0_59, %c0_60, %c0_61, %c0_62], %61 {strides = array<i32>} : memref<1x8x8x32xf32, #tpu.memory_space<vmem>>, vector<1x1x8x32xf32>,
    %62 = vector.extract_strided_slice %57 {offsets = [10, 0], sizes = [8, 32], strides = [1, 1]} : vector<80x32xf32> to vector<8x32xf32>
    %c0_63 = arith.constant 0 : index
    %c1_64 = arith.constant 1 : index
    %c0_65 = arith.constant 0 : index
    %c0_66 = arith.constant 0 : index
    %63 = vector.load %arg6[%c0_63, %c1_64, %c0_65, %c0_66] : memref<1x8x8x32xf32, #tpu.memory_space<vmem>>, vector<1x1x8x32xf32>
    %64 = vector.shape_cast %63 : vector<1x1x8x32xf32> to vector<8x32xf32>
    %65 = vector.shape_cast %62 : vector<8x32xf32> to vector<1x1x8x32xf32>
    tpu.vector_store %arg6[%c0_63, %c1_64, %c0_65, %c0_66], %65 {strides = array<i32>} : memref<1x8x8x32xf32, #tpu.memory_space<vmem>>, vector<1x1x8x32xf32>,
    %66 = vector.extract_strided_slice %57 {offsets = [20, 0], sizes = [8, 32], strides = [1, 1]} : vector<80x32xf32> to vector<8x32xf32>
    %c0_67 = arith.constant 0 : index
    %c2_68 = arith.constant 2 : index
    %c0_69 = arith.constant 0 : index
    %c0_70 = arith.constant 0 : index
    %67 = vector.load %arg6[%c0_67, %c2_68, %c0_69, %c0_70] : memref<1x8x8x32xf32, #tpu.memory_space<vmem>>, vector<1x1x8x32xf32>
    %68 = vector.shape_cast %67 : vector<1x1x8x32xf32> to vector<8x32xf32>
    %69 = vector.shape_cast %66 : vector<8x32xf32> to vector<1x1x8x32xf32>
    tpu.vector_store %arg6[%c0_67, %c2_68, %c0_69, %c0_70], %69 {strides = array<i32>} : memref<1x8x8x32xf32, #tpu.memory_space<vmem>>, vector<1x1x8x32xf32>,
    %70 = vector.extract_strided_slice %57 {offsets = [30, 0], sizes = [8, 32], strides = [1, 1]} : vector<80x32xf32> to vector<8x32xf32>
    %c0_71 = arith.constant 0 : index
    %c3_72 = arith.constant 3 : index
    %c0_73 = arith.constant 0 : index
    %c0_74 = arith.constant 0 : index
    %71 = vector.load %arg6[%c0_71, %c3_72, %c0_73, %c0_74] : memref<1x8x8x32xf32, #tpu.memory_space<vmem>>, vector<1x1x8x32xf32>
    %72 = vector.shape_cast %71 : vector<1x1x8x32xf32> to vector<8x32xf32>
    %73 = vector.shape_cast %70 : vector<8x32xf32> to vector<1x1x8x32xf32>
    tpu.vector_store %arg6[%c0_71, %c3_72, %c0_73, %c0_74], %73 {strides = array<i32>} : memref<1x8x8x32xf32, #tpu.memory_space<vmem>>, vector<1x1x8x32xf32>,
    %74 = vector.extract_strided_slice %57 {offsets = [40, 0], sizes = [8, 32], strides = [1, 1]} : vector<80x32xf32> to vector<8x32xf32>
    %c0_75 = arith.constant 0 : index
    %c4_76 = arith.constant 4 : index
    %c0_77 = arith.constant 0 : index
    %c0_78 = arith.constant 0 : index
    %75 = vector.load %arg6[%c0_75, %c4_76, %c0_77, %c0_78] : memref<1x8x8x32xf32, #tpu.memory_space<vmem>>, vector<1x1x8x32xf32>
    %76 = vector.shape_cast %75 : vector<1x1x8x32xf32> to vector<8x32xf32>
    %77 = vector.shape_cast %74 : vector<8x32xf32> to vector<1x1x8x32xf32>
    tpu.vector_store %arg6[%c0_75, %c4_76, %c0_77, %c0_78], %77 {strides = array<i32>} : memref<1x8x8x32xf32, #tpu.memory_space<vmem>>, vector<1x1x8x32xf32>,
    %78 = vector.extract_strided_slice %57 {offsets = [50, 0], sizes = [8, 32], strides = [1, 1]} : vector<80x32xf32> to vector<8x32xf32>
    %c0_79 = arith.constant 0 : index
    %c5_80 = arith.constant 5 : index
    %c0_81 = arith.constant 0 : index
    %c0_82 = arith.constant 0 : index
    %79 = vector.load %arg6[%c0_79, %c5_80, %c0_81, %c0_82] : memref<1x8x8x32xf32, #tpu.memory_space<vmem>>, vector<1x1x8x32xf32>
    %80 = vector.shape_cast %79 : vector<1x1x8x32xf32> to vector<8x32xf32>
    %81 = vector.shape_cast %78 : vector<8x32xf32> to vector<1x1x8x32xf32>
    tpu.vector_store %arg6[%c0_79, %c5_80, %c0_81, %c0_82], %81 {strides = array<i32>} : memref<1x8x8x32xf32, #tpu.memory_space<vmem>>, vector<1x1x8x32xf32>,
    %82 = vector.extract_strided_slice %57 {offsets = [60, 0], sizes = [8, 32], strides = [1, 1]} : vector<80x32xf32> to vector<8x32xf32>
    %c0_83 = arith.constant 0 : index
    %c6_84 = arith.constant 6 : index
    %c0_85 = arith.constant 0 : index
    %c0_86 = arith.constant 0 : index
    %83 = vector.load %arg6[%c0_83, %c6_84, %c0_85, %c0_86] : memref<1x8x8x32xf32, #tpu.memory_space<vmem>>, vector<1x1x8x32xf32>
    %84 = vector.shape_cast %83 : vector<1x1x8x32xf32> to vector<8x32xf32>
    %85 = vector.shape_cast %82 : vector<8x32xf32> to vector<1x1x8x32xf32>
    tpu.vector_store %arg6[%c0_83, %c6_84, %c0_85, %c0_86], %85 {strides = array<i32>} : memref<1x8x8x32xf32, #tpu.memory_space<vmem>>, vector<1x1x8x32xf32>,
    %86 = vector.extract_strided_slice %57 {offsets = [70, 0], sizes = [8, 32], strides = [1, 1]} : vector<80x32xf32> to vector<8x32xf32>
    %c0_87 = arith.constant 0 : index
    %c7_88 = arith.constant 7 : index
    %c0_89 = arith.constant 0 : index
    %c0_90 = arith.constant 0 : index
    %87 = vector.load %arg6[%c0_87, %c7_88, %c0_89, %c0_90] : memref<1x8x8x32xf32, #tpu.memory_space<vmem>>, vector<1x1x8x32xf32>
    %88 = vector.shape_cast %87 : vector<1x1x8x32xf32> to vector<8x32xf32>
    %89 = vector.shape_cast %86 : vector<8x32xf32> to vector<1x1x8x32xf32>
    tpu.vector_store %arg6[%c0_87, %c7_88, %c0_89, %c0_90], %89 {strides = array<i32>} : memref<1x8x8x32xf32, #tpu.memory_space<vmem>>, vector<1x1x8x32xf32>,
    return
  }
  func.func @transform_0(%arg0: i32, %arg1: i32, %arg2: i32) -> (i32, i32, i32, i32) {
    %c0_i32 = arith.constant 0 : i32
    %c0_i32_0 = arith.constant 0 : i32
    %c0_i32_1 = arith.constant 0 : i32
    return %arg0, %arg1, %c0_i32, %c0_i32_0 : i32, i32, i32, i32
  }
  func.func @transform_1(%arg0: i32, %arg1: i32, %arg2: i32) -> (i32, i32, i32) {
    %c0_i32 = arith.constant 0 : i32
    %c0_i32_0 = arith.constant 0 : i32
    %c0_i32_1 = arith.constant 0 : i32
    return %c0_i32, %c0_i32_0, %arg2 : i32, i32, i32
  }
  func.func @transform_2(%arg0: i32, %arg1: i32, %arg2: i32) -> (i32, i32) {
    %c0_i32 = arith.constant 0 : i32
    %c0_i32_0 = arith.constant 0 : i32
    return %c0_i32, %arg2 : i32, i32
  }
  func.func @transform_3(%arg0: i32, %arg1: i32, %arg2: i32) -> (i32, i32, i32, i32) {
    %c0_i32 = arith.constant 0 : i32
    %c0_i32_0 = arith.constant 0 : i32
    return %arg0, %arg1, %c0_i32, %arg2 : i32, i32, i32, i32
  }
}

module attributes {stable_mosaic.version = 11 : i64} {
  func.func @_conv3x3_kernel(%arg0: i32, %arg1: i32, %arg2: i32, %arg3: memref<1x1x110x32xbf16, #tpu.memory_space<vmem>>, %arg4: memref<9x32x32xbf16, #tpu.memory_space<vmem>>, %arg5: memref<1x32xf32, #tpu.memory_space<vmem>>, %arg6: memref<1x8x8x32xbf16, #tpu.memory_space<vmem>>) attributes {dimension_semantics = [#tpu.dimension_semantics<parallel>, #tpu.dimension_semantics<parallel>, #tpu.dimension_semantics<parallel>], iteration_bounds = array<i64: 2, 1, 1>, scalar_prefetch = 0 : i64, scratch_operands = 0 : i64, tpu.core_type = #tpu.core_type<tc>, window_params = [{transform_indices = @transform_0, window_bounds = array<i64: 1, 1, 110, 32>}, {transform_indices = @transform_1, window_bounds = array<i64: 9, 32, 32>}, {transform_indices = @transform_2, window_bounds = array<i64: 1, 32>}, {transform_indices = @transform_3, window_bounds = array<i64: 1, 8, 8, 32>}]} {
    %cst = arith.constant 0.000000e+00 : f32
    %0 = vector.broadcast %cst : f32 to vector<80x32xf32>
    %c0 = arith.constant 0 : index
    %c0_0 = arith.constant 0 : index
    %c0_1 = arith.constant 0 : index
    %c0_2 = arith.constant 0 : index
    %1 = vector.load %arg3[%c0, %c0_0, %c0_1, %c0_2] : memref<1x1x110x32xbf16, #tpu.memory_space<vmem>>, vector<1x1x80x32xbf16>
    %2 = vector.shape_cast %1 : vector<1x1x80x32xbf16> to vector<80x32xbf16>
    %c0_3 = arith.constant 0 : index
    %c0_4 = arith.constant 0 : index
    %c0_5 = arith.constant 0 : index
    %3 = vector.load %arg4[%c0_3, %c0_4, %c0_5] : memref<9x32x32xbf16, #tpu.memory_space<vmem>>, vector<1x32x32xbf16>
    %4 = vector.shape_cast %3 : vector<1x32x32xbf16> to vector<32x32xbf16>
    %cst_6 = arith.constant dense<0.000000e+00> : vector<80x32xf32>
    %5 = tpu.matmul %2, %4, %cst_6 {dimension_numbers = #tpu.dot_dimension_numbers<[1], [0], [0], [1], [0, 0, 1, 1], [], []>} : vector<80x32xbf16>, vector<32x32xbf16>, vector<80x32xf32> -> vector<80x32xf32>
    %6 = arith.addf %0, %5 : vector<80x32xf32>
    %c0_7 = arith.constant 0 : index
    %c0_8 = arith.constant 0 : index
    %c1 = arith.constant 1 : index
    %c0_9 = arith.constant 0 : index
    %7 = vector.load %arg3[%c0_7, %c0_8, %c1, %c0_9] : memref<1x1x110x32xbf16, #tpu.memory_space<vmem>>, vector<1x1x80x32xbf16>
    %8 = vector.shape_cast %7 : vector<1x1x80x32xbf16> to vector<80x32xbf16>
    %c1_10 = arith.constant 1 : index
    %c0_11 = arith.constant 0 : index
    %c0_12 = arith.constant 0 : index
    %9 = vector.load %arg4[%c1_10, %c0_11, %c0_12] : memref<9x32x32xbf16, #tpu.memory_space<vmem>>, vector<1x32x32xbf16>
    %10 = vector.shape_cast %9 : vector<1x32x32xbf16> to vector<32x32xbf16>
    %cst_13 = arith.constant dense<0.000000e+00> : vector<80x32xf32>
    %11 = tpu.matmul %8, %10, %cst_13 {dimension_numbers = #tpu.dot_dimension_numbers<[1], [0], [0], [1], [0, 0, 1, 1], [], []>} : vector<80x32xbf16>, vector<32x32xbf16>, vector<80x32xf32> -> vector<80x32xf32>
    %12 = arith.addf %6, %11 : vector<80x32xf32>
    %c0_14 = arith.constant 0 : index
    %c0_15 = arith.constant 0 : index
    %c2 = arith.constant 2 : index
    %c0_16 = arith.constant 0 : index
    %13 = vector.load %arg3[%c0_14, %c0_15, %c2, %c0_16] : memref<1x1x110x32xbf16, #tpu.memory_space<vmem>>, vector<1x1x80x32xbf16>
    %14 = vector.shape_cast %13 : vector<1x1x80x32xbf16> to vector<80x32xbf16>
    %c2_17 = arith.constant 2 : index
    %c0_18 = arith.constant 0 : index
    %c0_19 = arith.constant 0 : index
    %15 = vector.load %arg4[%c2_17, %c0_18, %c0_19] : memref<9x32x32xbf16, #tpu.memory_space<vmem>>, vector<1x32x32xbf16>
    %16 = vector.shape_cast %15 : vector<1x32x32xbf16> to vector<32x32xbf16>
    %cst_20 = arith.constant dense<0.000000e+00> : vector<80x32xf32>
    %17 = tpu.matmul %14, %16, %cst_20 {dimension_numbers = #tpu.dot_dimension_numbers<[1], [0], [0], [1], [0, 0, 1, 1], [], []>} : vector<80x32xbf16>, vector<32x32xbf16>, vector<80x32xf32> -> vector<80x32xf32>
    %18 = arith.addf %12, %17 : vector<80x32xf32>
    %c0_21 = arith.constant 0 : index
    %c0_22 = arith.constant 0 : index
    %c10 = arith.constant 10 : index
    %c0_23 = arith.constant 0 : index
    %19 = vector.load %arg3[%c0_21, %c0_22, %c10, %c0_23] : memref<1x1x110x32xbf16, #tpu.memory_space<vmem>>, vector<1x1x80x32xbf16>
    %20 = vector.shape_cast %19 : vector<1x1x80x32xbf16> to vector<80x32xbf16>
    %c3 = arith.constant 3 : index
    %c0_24 = arith.constant 0 : index
    %c0_25 = arith.constant 0 : index
    %21 = vector.load %arg4[%c3, %c0_24, %c0_25] : memref<9x32x32xbf16, #tpu.memory_space<vmem>>, vector<1x32x32xbf16>
    %22 = vector.shape_cast %21 : vector<1x32x32xbf16> to vector<32x32xbf16>
    %cst_26 = arith.constant dense<0.000000e+00> : vector<80x32xf32>
    %23 = tpu.matmul %20, %22, %cst_26 {dimension_numbers = #tpu.dot_dimension_numbers<[1], [0], [0], [1], [0, 0, 1, 1], [], []>} : vector<80x32xbf16>, vector<32x32xbf16>, vector<80x32xf32> -> vector<80x32xf32>
    %24 = arith.addf %18, %23 : vector<80x32xf32>
    %c0_27 = arith.constant 0 : index
    %c0_28 = arith.constant 0 : index
    %c11 = arith.constant 11 : index
    %c0_29 = arith.constant 0 : index
    %25 = vector.load %arg3[%c0_27, %c0_28, %c11, %c0_29] : memref<1x1x110x32xbf16, #tpu.memory_space<vmem>>, vector<1x1x80x32xbf16>
    %26 = vector.shape_cast %25 : vector<1x1x80x32xbf16> to vector<80x32xbf16>
    %c4 = arith.constant 4 : index
    %c0_30 = arith.constant 0 : index
    %c0_31 = arith.constant 0 : index
    %27 = vector.load %arg4[%c4, %c0_30, %c0_31] : memref<9x32x32xbf16, #tpu.memory_space<vmem>>, vector<1x32x32xbf16>
    %28 = vector.shape_cast %27 : vector<1x32x32xbf16> to vector<32x32xbf16>
    %cst_32 = arith.constant dense<0.000000e+00> : vector<80x32xf32>
    %29 = tpu.matmul %26, %28, %cst_32 {dimension_numbers = #tpu.dot_dimension_numbers<[1], [0], [0], [1], [0, 0, 1, 1], [], []>} : vector<80x32xbf16>, vector<32x32xbf16>, vector<80x32xf32> -> vector<80x32xf32>
    %30 = arith.addf %24, %29 : vector<80x32xf32>
    %c0_33 = arith.constant 0 : index
    %c0_34 = arith.constant 0 : index
    %c12 = arith.constant 12 : index
    %c0_35 = arith.constant 0 : index
    %31 = vector.load %arg3[%c0_33, %c0_34, %c12, %c0_35] : memref<1x1x110x32xbf16, #tpu.memory_space<vmem>>, vector<1x1x80x32xbf16>
    %32 = vector.shape_cast %31 : vector<1x1x80x32xbf16> to vector<80x32xbf16>
    %c5 = arith.constant 5 : index
    %c0_36 = arith.constant 0 : index
    %c0_37 = arith.constant 0 : index
    %33 = vector.load %arg4[%c5, %c0_36, %c0_37] : memref<9x32x32xbf16, #tpu.memory_space<vmem>>, vector<1x32x32xbf16>
    %34 = vector.shape_cast %33 : vector<1x32x32xbf16> to vector<32x32xbf16>
    %cst_38 = arith.constant dense<0.000000e+00> : vector<80x32xf32>
    %35 = tpu.matmul %32, %34, %cst_38 {dimension_numbers = #tpu.dot_dimension_numbers<[1], [0], [0], [1], [0, 0, 1, 1], [], []>} : vector<80x32xbf16>, vector<32x32xbf16>, vector<80x32xf32> -> vector<80x32xf32>
    %36 = arith.addf %30, %35 : vector<80x32xf32>
    %c0_39 = arith.constant 0 : index
    %c0_40 = arith.constant 0 : index
    %c20 = arith.constant 20 : index
    %c0_41 = arith.constant 0 : index
    %37 = vector.load %arg3[%c0_39, %c0_40, %c20, %c0_41] : memref<1x1x110x32xbf16, #tpu.memory_space<vmem>>, vector<1x1x80x32xbf16>
    %38 = vector.shape_cast %37 : vector<1x1x80x32xbf16> to vector<80x32xbf16>
    %c6 = arith.constant 6 : index
    %c0_42 = arith.constant 0 : index
    %c0_43 = arith.constant 0 : index
    %39 = vector.load %arg4[%c6, %c0_42, %c0_43] : memref<9x32x32xbf16, #tpu.memory_space<vmem>>, vector<1x32x32xbf16>
    %40 = vector.shape_cast %39 : vector<1x32x32xbf16> to vector<32x32xbf16>
    %cst_44 = arith.constant dense<0.000000e+00> : vector<80x32xf32>
    %41 = tpu.matmul %38, %40, %cst_44 {dimension_numbers = #tpu.dot_dimension_numbers<[1], [0], [0], [1], [0, 0, 1, 1], [], []>} : vector<80x32xbf16>, vector<32x32xbf16>, vector<80x32xf32> -> vector<80x32xf32>
    %42 = arith.addf %36, %41 : vector<80x32xf32>
    %c0_45 = arith.constant 0 : index
    %c0_46 = arith.constant 0 : index
    %c21 = arith.constant 21 : index
    %c0_47 = arith.constant 0 : index
    %43 = vector.load %arg3[%c0_45, %c0_46, %c21, %c0_47] : memref<1x1x110x32xbf16, #tpu.memory_space<vmem>>, vector<1x1x80x32xbf16>
    %44 = vector.shape_cast %43 : vector<1x1x80x32xbf16> to vector<80x32xbf16>
    %c7 = arith.constant 7 : index
    %c0_48 = arith.constant 0 : index
    %c0_49 = arith.constant 0 : index
    %45 = vector.load %arg4[%c7, %c0_48, %c0_49] : memref<9x32x32xbf16, #tpu.memory_space<vmem>>, vector<1x32x32xbf16>
    %46 = vector.shape_cast %45 : vector<1x32x32xbf16> to vector<32x32xbf16>
    %cst_50 = arith.constant dense<0.000000e+00> : vector<80x32xf32>
    %47 = tpu.matmul %44, %46, %cst_50 {dimension_numbers = #tpu.dot_dimension_numbers<[1], [0], [0], [1], [0, 0, 1, 1], [], []>} : vector<80x32xbf16>, vector<32x32xbf16>, vector<80x32xf32> -> vector<80x32xf32>
    %48 = arith.addf %42, %47 : vector<80x32xf32>
    %c0_51 = arith.constant 0 : index
    %c0_52 = arith.constant 0 : index
    %c22 = arith.constant 22 : index
    %c0_53 = arith.constant 0 : index
    %49 = vector.load %arg3[%c0_51, %c0_52, %c22, %c0_53] : memref<1x1x110x32xbf16, #tpu.memory_space<vmem>>, vector<1x1x80x32xbf16>
    %50 = vector.shape_cast %49 : vector<1x1x80x32xbf16> to vector<80x32xbf16>
    %c8 = arith.constant 8 : index
    %c0_54 = arith.constant 0 : index
    %c0_55 = arith.constant 0 : index
    %51 = vector.load %arg4[%c8, %c0_54, %c0_55] : memref<9x32x32xbf16, #tpu.memory_space<vmem>>, vector<1x32x32xbf16>
    %52 = vector.shape_cast %51 : vector<1x32x32xbf16> to vector<32x32xbf16>
    %cst_56 = arith.constant dense<0.000000e+00> : vector<80x32xf32>
    %53 = tpu.matmul %50, %52, %cst_56 {dimension_numbers = #tpu.dot_dimension_numbers<[1], [0], [0], [1], [0, 0, 1, 1], [], []>} : vector<80x32xbf16>, vector<32x32xbf16>, vector<80x32xf32> -> vector<80x32xf32>
    %54 = arith.addf %48, %53 : vector<80x32xf32>
    %c0_57 = arith.constant 0 : index
    %c0_58 = arith.constant 0 : index
    %55 = vector.load %arg5[%c0_57, %c0_58] : memref<1x32xf32, #tpu.memory_space<vmem>>, vector<1x32xf32>
    %56 = vector.broadcast %55 : vector<1x32xf32> to vector<80x32xf32>
    %57 = arith.addf %54, %56 : vector<80x32xf32>
    %58 = vector.extract_strided_slice %57 {offsets = [0, 0], sizes = [8, 32], strides = [1, 1]} : vector<80x32xf32> to vector<8x32xf32>
    %59 = arith.truncf %58 : vector<8x32xf32> to vector<8x32xbf16>
    %c0_59 = arith.constant 0 : index
    %c0_60 = arith.constant 0 : index
    %c0_61 = arith.constant 0 : index
    %c0_62 = arith.constant 0 : index
    %60 = vector.load %arg6[%c0_59, %c0_60, %c0_61, %c0_62] : memref<1x8x8x32xbf16, #tpu.memory_space<vmem>>, vector<1x1x8x32xbf16>
    %61 = vector.shape_cast %60 : vector<1x1x8x32xbf16> to vector<8x32xbf16>
    %62 = vector.shape_cast %59 : vector<8x32xbf16> to vector<1x1x8x32xbf16>
    tpu.vector_store %arg6[%c0_59, %c0_60, %c0_61, %c0_62], %62 {strides = array<i32>} : memref<1x8x8x32xbf16, #tpu.memory_space<vmem>>, vector<1x1x8x32xbf16>,
    %63 = vector.extract_strided_slice %57 {offsets = [10, 0], sizes = [8, 32], strides = [1, 1]} : vector<80x32xf32> to vector<8x32xf32>
    %64 = arith.truncf %63 : vector<8x32xf32> to vector<8x32xbf16>
    %c0_63 = arith.constant 0 : index
    %c1_64 = arith.constant 1 : index
    %c0_65 = arith.constant 0 : index
    %c0_66 = arith.constant 0 : index
    %65 = vector.load %arg6[%c0_63, %c1_64, %c0_65, %c0_66] : memref<1x8x8x32xbf16, #tpu.memory_space<vmem>>, vector<1x1x8x32xbf16>
    %66 = vector.shape_cast %65 : vector<1x1x8x32xbf16> to vector<8x32xbf16>
    %67 = vector.shape_cast %64 : vector<8x32xbf16> to vector<1x1x8x32xbf16>
    tpu.vector_store %arg6[%c0_63, %c1_64, %c0_65, %c0_66], %67 {strides = array<i32>} : memref<1x8x8x32xbf16, #tpu.memory_space<vmem>>, vector<1x1x8x32xbf16>,
    %68 = vector.extract_strided_slice %57 {offsets = [20, 0], sizes = [8, 32], strides = [1, 1]} : vector<80x32xf32> to vector<8x32xf32>
    %69 = arith.truncf %68 : vector<8x32xf32> to vector<8x32xbf16>
    %c0_67 = arith.constant 0 : index
    %c2_68 = arith.constant 2 : index
    %c0_69 = arith.constant 0 : index
    %c0_70 = arith.constant 0 : index
    %70 = vector.load %arg6[%c0_67, %c2_68, %c0_69, %c0_70] : memref<1x8x8x32xbf16, #tpu.memory_space<vmem>>, vector<1x1x8x32xbf16>
    %71 = vector.shape_cast %70 : vector<1x1x8x32xbf16> to vector<8x32xbf16>
    %72 = vector.shape_cast %69 : vector<8x32xbf16> to vector<1x1x8x32xbf16>
    tpu.vector_store %arg6[%c0_67, %c2_68, %c0_69, %c0_70], %72 {strides = array<i32>} : memref<1x8x8x32xbf16, #tpu.memory_space<vmem>>, vector<1x1x8x32xbf16>,
    %73 = vector.extract_strided_slice %57 {offsets = [30, 0], sizes = [8, 32], strides = [1, 1]} : vector<80x32xf32> to vector<8x32xf32>
    %74 = arith.truncf %73 : vector<8x32xf32> to vector<8x32xbf16>
    %c0_71 = arith.constant 0 : index
    %c3_72 = arith.constant 3 : index
    %c0_73 = arith.constant 0 : index
    %c0_74 = arith.constant 0 : index
    %75 = vector.load %arg6[%c0_71, %c3_72, %c0_73, %c0_74] : memref<1x8x8x32xbf16, #tpu.memory_space<vmem>>, vector<1x1x8x32xbf16>
    %76 = vector.shape_cast %75 : vector<1x1x8x32xbf16> to vector<8x32xbf16>
    %77 = vector.shape_cast %74 : vector<8x32xbf16> to vector<1x1x8x32xbf16>
    tpu.vector_store %arg6[%c0_71, %c3_72, %c0_73, %c0_74], %77 {strides = array<i32>} : memref<1x8x8x32xbf16, #tpu.memory_space<vmem>>, vector<1x1x8x32xbf16>,
    %78 = vector.extract_strided_slice %57 {offsets = [40, 0], sizes = [8, 32], strides = [1, 1]} : vector<80x32xf32> to vector<8x32xf32>
    %79 = arith.truncf %78 : vector<8x32xf32> to vector<8x32xbf16>
    %c0_75 = arith.constant 0 : index
    %c4_76 = arith.constant 4 : index
    %c0_77 = arith.constant 0 : index
    %c0_78 = arith.constant 0 : index
    %80 = vector.load %arg6[%c0_75, %c4_76, %c0_77, %c0_78] : memref<1x8x8x32xbf16, #tpu.memory_space<vmem>>, vector<1x1x8x32xbf16>
    %81 = vector.shape_cast %80 : vector<1x1x8x32xbf16> to vector<8x32xbf16>
    %82 = vector.shape_cast %79 : vector<8x32xbf16> to vector<1x1x8x32xbf16>
    tpu.vector_store %arg6[%c0_75, %c4_76, %c0_77, %c0_78], %82 {strides = array<i32>} : memref<1x8x8x32xbf16, #tpu.memory_space<vmem>>, vector<1x1x8x32xbf16>,
    %83 = vector.extract_strided_slice %57 {offsets = [50, 0], sizes = [8, 32], strides = [1, 1]} : vector<80x32xf32> to vector<8x32xf32>
    %84 = arith.truncf %83 : vector<8x32xf32> to vector<8x32xbf16>
    %c0_79 = arith.constant 0 : index
    %c5_80 = arith.constant 5 : index
    %c0_81 = arith.constant 0 : index
    %c0_82 = arith.constant 0 : index
    %85 = vector.load %arg6[%c0_79, %c5_80, %c0_81, %c0_82] : memref<1x8x8x32xbf16, #tpu.memory_space<vmem>>, vector<1x1x8x32xbf16>
    %86 = vector.shape_cast %85 : vector<1x1x8x32xbf16> to vector<8x32xbf16>
    %87 = vector.shape_cast %84 : vector<8x32xbf16> to vector<1x1x8x32xbf16>
    tpu.vector_store %arg6[%c0_79, %c5_80, %c0_81, %c0_82], %87 {strides = array<i32>} : memref<1x8x8x32xbf16, #tpu.memory_space<vmem>>, vector<1x1x8x32xbf16>,
    %88 = vector.extract_strided_slice %57 {offsets = [60, 0], sizes = [8, 32], strides = [1, 1]} : vector<80x32xf32> to vector<8x32xf32>
    %89 = arith.truncf %88 : vector<8x32xf32> to vector<8x32xbf16>
    %c0_83 = arith.constant 0 : index
    %c6_84 = arith.constant 6 : index
    %c0_85 = arith.constant 0 : index
    %c0_86 = arith.constant 0 : index
    %90 = vector.load %arg6[%c0_83, %c6_84, %c0_85, %c0_86] : memref<1x8x8x32xbf16, #tpu.memory_space<vmem>>, vector<1x1x8x32xbf16>
    %91 = vector.shape_cast %90 : vector<1x1x8x32xbf16> to vector<8x32xbf16>
    %92 = vector.shape_cast %89 : vector<8x32xbf16> to vector<1x1x8x32xbf16>
    tpu.vector_store %arg6[%c0_83, %c6_84, %c0_85, %c0_86], %92 {strides = array<i32>} : memref<1x8x8x32xbf16, #tpu.memory_space<vmem>>, vector<1x1x8x32xbf16>,
    %93 = vector.extract_strided_slice %57 {offsets = [70, 0], sizes = [8, 32], strides = [1, 1]} : vector<80x32xf32> to vector<8x32xf32>
    %94 = arith.truncf %93 : vector<8x32xf32> to vector<8x32xbf16>
    %c0_87 = arith.constant 0 : index
    %c7_88 = arith.constant 7 : index
    %c0_89 = arith.constant 0 : index
    %c0_90 = arith.constant 0 : index
    %95 = vector.load %arg6[%c0_87, %c7_88, %c0_89, %c0_90] : memref<1x8x8x32xbf16, #tpu.memory_space<vmem>>, vector<1x1x8x32xbf16>
    %96 = vector.shape_cast %95 : vector<1x1x8x32xbf16> to vector<8x32xbf16>
    %97 = vector.shape_cast %94 : vector<8x32xbf16> to vector<1x1x8x32xbf16>
    tpu.vector_store %arg6[%c0_87, %c7_88, %c0_89, %c0_90], %97 {strides = array<i32>} : memref<1x8x8x32xbf16, #tpu.memory_space<vmem>>, vector<1x1x8x32xbf16>,
    return
  }
  func.func @transform_0(%arg0: i32, %arg1: i32, %arg2: i32) -> (i32, i32, i32, i32) {
    %c0_i32 = arith.constant 0 : i32
    %c0_i32_0 = arith.constant 0 : i32
    %c0_i32_1 = arith.constant 0 : i32
    return %arg0, %arg1, %c0_i32, %c0_i32_0 : i32, i32, i32, i32
  }
  func.func @transform_1(%arg0: i32, %arg1: i32, %arg2: i32) -> (i32, i32, i32) {
    %c0_i32 = arith.constant 0 : i32
    %c0_i32_0 = arith.constant 0 : i32
    %c0_i32_1 = arith.constant 0 : i32
    return %c0_i32, %c0_i32_0, %arg2 : i32, i32, i32
  }
  func.func @transform_2(%arg0: i32, %arg1: i32, %arg2: i32) -> (i32, i32) {
    %c0_i32 = arith.constant 0 : i32
    %c0_i32_0 = arith.constant 0 : i32
    return %c0_i32, %arg2 : i32, i32
  }
  func.func @transform_3(%arg0: i32, %arg1: i32, %arg2: i32) -> (i32, i32, i32, i32) {
    %c0_i32 = arith.constant 0 : i32
    %c0_i32_0 = arith.constant 0 : i32
    return %arg0, %arg1, %c0_i32, %arg2 : i32, i32, i32, i32
  }
}

module attributes {stable_mosaic.version = 11 : i64} {
  func.func @_conv3x3_up2x_kernel(%arg0: i32, %arg1: i32, %arg2: i32, %arg3: memref<1x1x198x32xbf16, #tpu.memory_space<vmem>>, %arg4: memref<2x6x32x32xbf16, #tpu.memory_space<vmem>>, %arg5: memref<1x32xf32, #tpu.memory_space<vmem>>, %arg6: memref<1x8x2x16x32xf32, #tpu.memory_space<vmem>>) attributes {dimension_semantics = [#tpu.dimension_semantics<parallel>, #tpu.dimension_semantics<parallel>, #tpu.dimension_semantics<parallel>], iteration_bounds = array<i64: 2, 1, 1>, scalar_prefetch = 0 : i64, scratch_operands = 0 : i64, tpu.core_type = #tpu.core_type<tc>, window_params = [{transform_indices = @transform_0, window_bounds = array<i64: 1, 1, 198, 32>}, {transform_indices = @transform_1, window_bounds = array<i64: 2, 6, 32, 32>}, {transform_indices = @transform_2, window_bounds = array<i64: 1, 32>}, {transform_indices = @transform_3, window_bounds = array<i64: 1, 8, 2, 16, 32>}]} {
    %c0 = arith.constant 0 : index
    %c0_0 = arith.constant 0 : index
    %0 = vector.load %arg5[%c0, %c0_0] : memref<1x32xf32, #tpu.memory_space<vmem>>, vector<1x32xf32>
    %cst = arith.constant 0.000000e+00 : f32
    %1 = vector.broadcast %cst : f32 to vector<144x32xf32>
    %c0_1 = arith.constant 0 : index
    %c0_2 = arith.constant 0 : index
    %c0_3 = arith.constant 0 : index
    %c0_4 = arith.constant 0 : index
    %2 = vector.load %arg3[%c0_1, %c0_2, %c0_3, %c0_4] : memref<1x1x198x32xbf16, #tpu.memory_space<vmem>>, vector<1x1x144x32xbf16>
    %3 = vector.shape_cast %2 : vector<1x1x144x32xbf16> to vector<144x32xbf16>
    %c0_5 = arith.constant 0 : index
    %c0_6 = arith.constant 0 : index
    %c0_7 = arith.constant 0 : index
    %c0_8 = arith.constant 0 : index
    %4 = vector.load %arg4[%c0_5, %c0_6, %c0_7, %c0_8] : memref<2x6x32x32xbf16, #tpu.memory_space<vmem>>, vector<1x1x32x32xbf16>
    %5 = vector.shape_cast %4 : vector<1x1x32x32xbf16> to vector<32x32xbf16>
    %cst_9 = arith.constant dense<0.000000e+00> : vector<144x32xf32>
    %6 = tpu.matmul %3, %5, %cst_9 {dimension_numbers = #tpu.dot_dimension_numbers<[1], [0], [0], [1], [0, 0, 1, 1], [], []>} : vector<144x32xbf16>, vector<32x32xbf16>, vector<144x32xf32> -> vector<144x32xf32>
    %7 = arith.addf %1, %6 : vector<144x32xf32>
    %c0_10 = arith.constant 0 : index
    %c0_11 = arith.constant 0 : index
    %c1 = arith.constant 1 : index
    %c0_12 = arith.constant 0 : index
    %8 = vector.load %arg3[%c0_10, %c0_11, %c1, %c0_12] : memref<1x1x198x32xbf16, #tpu.memory_space<vmem>>, vector<1x1x144x32xbf16>
    %9 = vector.shape_cast %8 : vector<1x1x144x32xbf16> to vector<144x32xbf16>
    %c0_13 = arith.constant 0 : index
    %c1_14 = arith.constant 1 : index
    %c0_15 = arith.constant 0 : index
    %c0_16 = arith.constant 0 : index
    %10 = vector.load %arg4[%c0_13, %c1_14, %c0_15, %c0_16] : memref<2x6x32x32xbf16, #tpu.memory_space<vmem>>, vector<1x1x32x32xbf16>
    %11 = vector.shape_cast %10 : vector<1x1x32x32xbf16> to vector<32x32xbf16>
    %cst_17 = arith.constant dense<0.000000e+00> : vector<144x32xf32>
    %12 = tpu.matmul %9, %11, %cst_17 {dimension_numbers = #tpu.dot_dimension_numbers<[1], [0], [0], [1], [0, 0, 1, 1], [], []>} : vector<144x32xbf16>, vector<32x32xbf16>, vector<144x32xf32> -> vector<144x32xf32>
    %13 = arith.addf %7, %12 : vector<144x32xf32>
    %c0_18 = arith.constant 0 : index
    %c0_19 = arith.constant 0 : index
    %c2 = arith.constant 2 : index
    %c0_20 = arith.constant 0 : index
    %14 = vector.load %arg3[%c0_18, %c0_19, %c2, %c0_20] : memref<1x1x198x32xbf16, #tpu.memory_space<vmem>>, vector<1x1x144x32xbf16>
    %15 = vector.shape_cast %14 : vector<1x1x144x32xbf16> to vector<144x32xbf16>
    %c0_21 = arith.constant 0 : index
    %c2_22 = arith.constant 2 : index
    %c0_23 = arith.constant 0 : index
    %c0_24 = arith.constant 0 : index
    %16 = vector.load %arg4[%c0_21, %c2_22, %c0_23, %c0_24] : memref<2x6x32x32xbf16, #tpu.memory_space<vmem>>, vector<1x1x32x32xbf16>
    %17 = vector.shape_cast %16 : vector<1x1x32x32xbf16> to vector<32x32xbf16>
    %cst_25 = arith.constant dense<0.000000e+00> : vector<144x32xf32>
    %18 = tpu.matmul %15, %17, %cst_25 {dimension_numbers = #tpu.dot_dimension_numbers<[1], [0], [0], [1], [0, 0, 1, 1], [], []>} : vector<144x32xbf16>, vector<32x32xbf16>, vector<144x32xf32> -> vector<144x32xf32>
    %19 = arith.addf %13, %18 : vector<144x32xf32>
    %c0_26 = arith.constant 0 : index
    %c0_27 = arith.constant 0 : index
    %c18 = arith.constant 18 : index
    %c0_28 = arith.constant 0 : index
    %20 = vector.load %arg3[%c0_26, %c0_27, %c18, %c0_28] : memref<1x1x198x32xbf16, #tpu.memory_space<vmem>>, vector<1x1x144x32xbf16>
    %21 = vector.shape_cast %20 : vector<1x1x144x32xbf16> to vector<144x32xbf16>
    %c0_29 = arith.constant 0 : index
    %c3 = arith.constant 3 : index
    %c0_30 = arith.constant 0 : index
    %c0_31 = arith.constant 0 : index
    %22 = vector.load %arg4[%c0_29, %c3, %c0_30, %c0_31] : memref<2x6x32x32xbf16, #tpu.memory_space<vmem>>, vector<1x1x32x32xbf16>
    %23 = vector.shape_cast %22 : vector<1x1x32x32xbf16> to vector<32x32xbf16>
    %cst_32 = arith.constant dense<0.000000e+00> : vector<144x32xf32>
    %24 = tpu.matmul %21, %23, %cst_32 {dimension_numbers = #tpu.dot_dimension_numbers<[1], [0], [0], [1], [0, 0, 1, 1], [], []>} : vector<144x32xbf16>, vector<32x32xbf16>, vector<144x32xf32> -> vector<144x32xf32>
    %25 = arith.addf %19, %24 : vector<144x32xf32>
    %c0_33 = arith.constant 0 : index
    %c0_34 = arith.constant 0 : index
    %c19 = arith.constant 19 : index
    %c0_35 = arith.constant 0 : index
    %26 = vector.load %arg3[%c0_33, %c0_34, %c19, %c0_35] : memref<1x1x198x32xbf16, #tpu.memory_space<vmem>>, vector<1x1x144x32xbf16>
    %27 = vector.shape_cast %26 : vector<1x1x144x32xbf16> to vector<144x32xbf16>
    %c0_36 = arith.constant 0 : index
    %c4 = arith.constant 4 : index
    %c0_37 = arith.constant 0 : index
    %c0_38 = arith.constant 0 : index
    %28 = vector.load %arg4[%c0_36, %c4, %c0_37, %c0_38] : memref<2x6x32x32xbf16, #tpu.memory_space<vmem>>, vector<1x1x32x32xbf16>
    %29 = vector.shape_cast %28 : vector<1x1x32x32xbf16> to vector<32x32xbf16>
    %cst_39 = arith.constant dense<0.000000e+00> : vector<144x32xf32>
    %30 = tpu.matmul %27, %29, %cst_39 {dimension_numbers = #tpu.dot_dimension_numbers<[1], [0], [0], [1], [0, 0, 1, 1], [], []>} : vector<144x32xbf16>, vector<32x32xbf16>, vector<144x32xf32> -> vector<144x32xf32>
    %31 = arith.addf %25, %30 : vector<144x32xf32>
    %c0_40 = arith.constant 0 : index
    %c0_41 = arith.constant 0 : index
    %c20 = arith.constant 20 : index
    %c0_42 = arith.constant 0 : index
    %32 = vector.load %arg3[%c0_40, %c0_41, %c20, %c0_42] : memref<1x1x198x32xbf16, #tpu.memory_space<vmem>>, vector<1x1x144x32xbf16>
    %33 = vector.shape_cast %32 : vector<1x1x144x32xbf16> to vector<144x32xbf16>
    %c0_43 = arith.constant 0 : index
    %c5 = arith.constant 5 : index
    %c0_44 = arith.constant 0 : index
    %c0_45 = arith.constant 0 : index
    %34 = vector.load %arg4[%c0_43, %c5, %c0_44, %c0_45] : memref<2x6x32x32xbf16, #tpu.memory_space<vmem>>, vector<1x1x32x32xbf16>
    %35 = vector.shape_cast %34 : vector<1x1x32x32xbf16> to vector<32x32xbf16>
    %cst_46 = arith.constant dense<0.000000e+00> : vector<144x32xf32>
    %36 = tpu.matmul %33, %35, %cst_46 {dimension_numbers = #tpu.dot_dimension_numbers<[1], [0], [0], [1], [0, 0, 1, 1], [], []>} : vector<144x32xbf16>, vector<32x32xbf16>, vector<144x32xf32> -> vector<144x32xf32>
    %37 = arith.addf %31, %36 : vector<144x32xf32>
    %38 = vector.broadcast %0 : vector<1x32xf32> to vector<144x32xf32>
    %39 = arith.addf %37, %38 : vector<144x32xf32>
    %40 = vector.extract_strided_slice %39 {offsets = [0, 0], sizes = [16, 32], strides = [1, 1]} : vector<144x32xf32> to vector<16x32xf32>
    %c0_47 = arith.constant 0 : index
    %c0_48 = arith.constant 0 : index
    %c0_49 = arith.constant 0 : index
    %c0_50 = arith.constant 0 : index
    %c0_51 = arith.constant 0 : index
    %41 = vector.load %arg6[%c0_47, %c0_48, %c0_49, %c0_50, %c0_51] : memref<1x8x2x16x32xf32, #tpu.memory_space<vmem>>, vector<1x1x1x16x32xf32>
    %42 = vector.shape_cast %41 : vector<1x1x1x16x32xf32> to vector<16x32xf32>
    %43 = vector.shape_cast %40 : vector<16x32xf32> to vector<1x1x1x16x32xf32>
    tpu.vector_store %arg6[%c0_47, %c0_48, %c0_49, %c0_50, %c0_51], %43 {strides = array<i32>} : memref<1x8x2x16x32xf32, #tpu.memory_space<vmem>>, vector<1x1x1x16x32xf32>,
    %44 = vector.extract_strided_slice %39 {offsets = [18, 0], sizes = [16, 32], strides = [1, 1]} : vector<144x32xf32> to vector<16x32xf32>
    %c0_52 = arith.constant 0 : index
    %c1_53 = arith.constant 1 : index
    %c0_54 = arith.constant 0 : index
    %c0_55 = arith.constant 0 : index
    %c0_56 = arith.constant 0 : index
    %45 = vector.load %arg6[%c0_52, %c1_53, %c0_54, %c0_55, %c0_56] : memref<1x8x2x16x32xf32, #tpu.memory_space<vmem>>, vector<1x1x1x16x32xf32>
    %46 = vector.shape_cast %45 : vector<1x1x1x16x32xf32> to vector<16x32xf32>
    %47 = vector.shape_cast %44 : vector<16x32xf32> to vector<1x1x1x16x32xf32>
    tpu.vector_store %arg6[%c0_52, %c1_53, %c0_54, %c0_55, %c0_56], %47 {strides = array<i32>} : memref<1x8x2x16x32xf32, #tpu.memory_space<vmem>>, vector<1x1x1x16x32xf32>,
    %48 = vector.extract_strided_slice %39 {offsets = [36, 0], sizes = [16, 32], strides = [1, 1]} : vector<144x32xf32> to vector<16x32xf32>
    %c0_57 = arith.constant 0 : index
    %c2_58 = arith.constant 2 : index
    %c0_59 = arith.constant 0 : index
    %c0_60 = arith.constant 0 : index
    %c0_61 = arith.constant 0 : index
    %49 = vector.load %arg6[%c0_57, %c2_58, %c0_59, %c0_60, %c0_61] : memref<1x8x2x16x32xf32, #tpu.memory_space<vmem>>, vector<1x1x1x16x32xf32>
    %50 = vector.shape_cast %49 : vector<1x1x1x16x32xf32> to vector<16x32xf32>
    %51 = vector.shape_cast %48 : vector<16x32xf32> to vector<1x1x1x16x32xf32>
    tpu.vector_store %arg6[%c0_57, %c2_58, %c0_59, %c0_60, %c0_61], %51 {strides = array<i32>} : memref<1x8x2x16x32xf32, #tpu.memory_space<vmem>>, vector<1x1x1x16x32xf32>,
    %52 = vector.extract_strided_slice %39 {offsets = [54, 0], sizes = [16, 32], strides = [1, 1]} : vector<144x32xf32> to vector<16x32xf32>
    %c0_62 = arith.constant 0 : index
    %c3_63 = arith.constant 3 : index
    %c0_64 = arith.constant 0 : index
    %c0_65 = arith.constant 0 : index
    %c0_66 = arith.constant 0 : index
    %53 = vector.load %arg6[%c0_62, %c3_63, %c0_64, %c0_65, %c0_66] : memref<1x8x2x16x32xf32, #tpu.memory_space<vmem>>, vector<1x1x1x16x32xf32>
    %54 = vector.shape_cast %53 : vector<1x1x1x16x32xf32> to vector<16x32xf32>
    %55 = vector.shape_cast %52 : vector<16x32xf32> to vector<1x1x1x16x32xf32>
    tpu.vector_store %arg6[%c0_62, %c3_63, %c0_64, %c0_65, %c0_66], %55 {strides = array<i32>} : memref<1x8x2x16x32xf32, #tpu.memory_space<vmem>>, vector<1x1x1x16x32xf32>,
    %56 = vector.extract_strided_slice %39 {offsets = [72, 0], sizes = [16, 32], strides = [1, 1]} : vector<144x32xf32> to vector<16x32xf32>
    %c0_67 = arith.constant 0 : index
    %c4_68 = arith.constant 4 : index
    %c0_69 = arith.constant 0 : index
    %c0_70 = arith.constant 0 : index
    %c0_71 = arith.constant 0 : index
    %57 = vector.load %arg6[%c0_67, %c4_68, %c0_69, %c0_70, %c0_71] : memref<1x8x2x16x32xf32, #tpu.memory_space<vmem>>, vector<1x1x1x16x32xf32>
    %58 = vector.shape_cast %57 : vector<1x1x1x16x32xf32> to vector<16x32xf32>
    %59 = vector.shape_cast %56 : vector<16x32xf32> to vector<1x1x1x16x32xf32>
    tpu.vector_store %arg6[%c0_67, %c4_68, %c0_69, %c0_70, %c0_71], %59 {strides = array<i32>} : memref<1x8x2x16x32xf32, #tpu.memory_space<vmem>>, vector<1x1x1x16x32xf32>,
    %60 = vector.extract_strided_slice %39 {offsets = [90, 0], sizes = [16, 32], strides = [1, 1]} : vector<144x32xf32> to vector<16x32xf32>
    %c0_72 = arith.constant 0 : index
    %c5_73 = arith.constant 5 : index
    %c0_74 = arith.constant 0 : index
    %c0_75 = arith.constant 0 : index
    %c0_76 = arith.constant 0 : index
    %61 = vector.load %arg6[%c0_72, %c5_73, %c0_74, %c0_75, %c0_76] : memref<1x8x2x16x32xf32, #tpu.memory_space<vmem>>, vector<1x1x1x16x32xf32>
    %62 = vector.shape_cast %61 : vector<1x1x1x16x32xf32> to vector<16x32xf32>
    %63 = vector.shape_cast %60 : vector<16x32xf32> to vector<1x1x1x16x32xf32>
    tpu.vector_store %arg6[%c0_72, %c5_73, %c0_74, %c0_75, %c0_76], %63 {strides = array<i32>} : memref<1x8x2x16x32xf32, #tpu.memory_space<vmem>>, vector<1x1x1x16x32xf32>,
    %64 = vector.extract_strided_slice %39 {offsets = [108, 0], sizes = [16, 32], strides = [1, 1]} : vector<144x32xf32> to vector<16x32xf32>
    %c0_77 = arith.constant 0 : index
    %c6 = arith.constant 6 : index
    %c0_78 = arith.constant 0 : index
    %c0_79 = arith.constant 0 : index
    %c0_80 = arith.constant 0 : index
    %65 = vector.load %arg6[%c0_77, %c6, %c0_78, %c0_79, %c0_80] : memref<1x8x2x16x32xf32, #tpu.memory_space<vmem>>, vector<1x1x1x16x32xf32>
    %66 = vector.shape_cast %65 : vector<1x1x1x16x32xf32> to vector<16x32xf32>
    %67 = vector.shape_cast %64 : vector<16x32xf32> to vector<1x1x1x16x32xf32>
    tpu.vector_store %arg6[%c0_77, %c6, %c0_78, %c0_79, %c0_80], %67 {strides = array<i32>} : memref<1x8x2x16x32xf32, #tpu.memory_space<vmem>>, vector<1x1x1x16x32xf32>,
    %68 = vector.extract_strided_slice %39 {offsets = [126, 0], sizes = [16, 32], strides = [1, 1]} : vector<144x32xf32> to vector<16x32xf32>
    %c0_81 = arith.constant 0 : index
    %c7 = arith.constant 7 : index
    %c0_82 = arith.constant 0 : index
    %c0_83 = arith.constant 0 : index
    %c0_84 = arith.constant 0 : index
    %69 = vector.load %arg6[%c0_81, %c7, %c0_82, %c0_83, %c0_84] : memref<1x8x2x16x32xf32, #tpu.memory_space<vmem>>, vector<1x1x1x16x32xf32>
    %70 = vector.shape_cast %69 : vector<1x1x1x16x32xf32> to vector<16x32xf32>
    %71 = vector.shape_cast %68 : vector<16x32xf32> to vector<1x1x1x16x32xf32>
    tpu.vector_store %arg6[%c0_81, %c7, %c0_82, %c0_83, %c0_84], %71 {strides = array<i32>} : memref<1x8x2x16x32xf32, #tpu.memory_space<vmem>>, vector<1x1x1x16x32xf32>,
    %cst_85 = arith.constant 0.000000e+00 : f32
    %72 = vector.broadcast %cst_85 : f32 to vector<144x32xf32>
    %c0_86 = arith.constant 0 : index
    %c0_87 = arith.constant 0 : index
    %c18_88 = arith.constant 18 : index
    %c0_89 = arith.constant 0 : index
    %73 = vector.load %arg3[%c0_86, %c0_87, %c18_88, %c0_89] : memref<1x1x198x32xbf16, #tpu.memory_space<vmem>>, vector<1x1x144x32xbf16>
    %74 = vector.shape_cast %73 : vector<1x1x144x32xbf16> to vector<144x32xbf16>
    %c1_90 = arith.constant 1 : index
    %c0_91 = arith.constant 0 : index
    %c0_92 = arith.constant 0 : index
    %c0_93 = arith.constant 0 : index
    %75 = vector.load %arg4[%c1_90, %c0_91, %c0_92, %c0_93] : memref<2x6x32x32xbf16, #tpu.memory_space<vmem>>, vector<1x1x32x32xbf16>
    %76 = vector.shape_cast %75 : vector<1x1x32x32xbf16> to vector<32x32xbf16>
    %cst_94 = arith.constant dense<0.000000e+00> : vector<144x32xf32>
    %77 = tpu.matmul %74, %76, %cst_94 {dimension_numbers = #tpu.dot_dimension_numbers<[1], [0], [0], [1], [0, 0, 1, 1], [], []>} : vector<144x32xbf16>, vector<32x32xbf16>, vector<144x32xf32> -> vector<144x32xf32>
    %78 = arith.addf %72, %77 : vector<144x32xf32>
    %c0_95 = arith.constant 0 : index
    %c0_96 = arith.constant 0 : index
    %c19_97 = arith.constant 19 : index
    %c0_98 = arith.constant 0 : index
    %79 = vector.load %arg3[%c0_95, %c0_96, %c19_97, %c0_98] : memref<1x1x198x32xbf16, #tpu.memory_space<vmem>>, vector<1x1x144x32xbf16>
    %80 = vector.shape_cast %79 : vector<1x1x144x32xbf16> to vector<144x32xbf16>
    %c1_99 = arith.constant 1 : index
    %c1_100 = arith.constant 1 : index
    %c0_101 = arith.constant 0 : index
    %c0_102 = arith.constant 0 : index
    %81 = vector.load %arg4[%c1_99, %c1_100, %c0_101, %c0_102] : memref<2x6x32x32xbf16, #tpu.memory_space<vmem>>, vector<1x1x32x32xbf16>
    %82 = vector.shape_cast %81 : vector<1x1x32x32xbf16> to vector<32x32xbf16>
    %cst_103 = arith.constant dense<0.000000e+00> : vector<144x32xf32>
    %83 = tpu.matmul %80, %82, %cst_103 {dimension_numbers = #tpu.dot_dimension_numbers<[1], [0], [0], [1], [0, 0, 1, 1], [], []>} : vector<144x32xbf16>, vector<32x32xbf16>, vector<144x32xf32> -> vector<144x32xf32>
    %84 = arith.addf %78, %83 : vector<144x32xf32>
    %c0_104 = arith.constant 0 : index
    %c0_105 = arith.constant 0 : index
    %c20_106 = arith.constant 20 : index
    %c0_107 = arith.constant 0 : index
    %85 = vector.load %arg3[%c0_104, %c0_105, %c20_106, %c0_107] : memref<1x1x198x32xbf16, #tpu.memory_space<vmem>>, vector<1x1x144x32xbf16>
    %86 = vector.shape_cast %85 : vector<1x1x144x32xbf16> to vector<144x32xbf16>
    %c1_108 = arith.constant 1 : index
    %c2_109 = arith.constant 2 : index
    %c0_110 = arith.constant 0 : index
    %c0_111 = arith.constant 0 : index
    %87 = vector.load %arg4[%c1_108, %c2_109, %c0_110, %c0_111] : memref<2x6x32x32xbf16, #tpu.memory_space<vmem>>, vector<1x1x32x32xbf16>
    %88 = vector.shape_cast %87 : vector<1x1x32x32xbf16> to vector<32x32xbf16>
    %cst_112 = arith.constant dense<0.000000e+00> : vector<144x32xf32>
    %89 = tpu.matmul %86, %88, %cst_112 {dimension_numbers = #tpu.dot_dimension_numbers<[1], [0], [0], [1], [0, 0, 1, 1], [], []>} : vector<144x32xbf16>, vector<32x32xbf16>, vector<144x32xf32> -> vector<144x32xf32>
    %90 = arith.addf %84, %89 : vector<144x32xf32>
    %c0_113 = arith.constant 0 : index
    %c0_114 = arith.constant 0 : index
    %c36 = arith.constant 36 : index
    %c0_115 = arith.constant 0 : index
    %91 = vector.load %arg3[%c0_113, %c0_114, %c36, %c0_115] : memref<1x1x198x32xbf16, #tpu.memory_space<vmem>>, vector<1x1x144x32xbf16>
    %92 = vector.shape_cast %91 : vector<1x1x144x32xbf16> to vector<144x32xbf16>
    %c1_116 = arith.constant 1 : index
    %c3_117 = arith.constant 3 : index
    %c0_118 = arith.constant 0 : index
    %c0_119 = arith.constant 0 : index
    %93 = vector.load %arg4[%c1_116, %c3_117, %c0_118, %c0_119] : memref<2x6x32x32xbf16, #tpu.memory_space<vmem>>, vector<1x1x32x32xbf16>
    %94 = vector.shape_cast %93 : vector<1x1x32x32xbf16> to vector<32x32xbf16>
    %cst_120 = arith.constant dense<0.000000e+00> : vector<144x32xf32>
    %95 = tpu.matmul %92, %94, %cst_120 {dimension_numbers = #tpu.dot_dimension_numbers<[1], [0], [0], [1], [0, 0, 1, 1], [], []>} : vector<144x32xbf16>, vector<32x32xbf16>, vector<144x32xf32> -> vector<144x32xf32>
    %96 = arith.addf %90, %95 : vector<144x32xf32>
    %c0_121 = arith.constant 0 : index
    %c0_122 = arith.constant 0 : index
    %c37 = arith.constant 37 : index
    %c0_123 = arith.constant 0 : index
    %97 = vector.load %arg3[%c0_121, %c0_122, %c37, %c0_123] : memref<1x1x198x32xbf16, #tpu.memory_space<vmem>>, vector<1x1x144x32xbf16>
    %98 = vector.shape_cast %97 : vector<1x1x144x32xbf16> to vector<144x32xbf16>
    %c1_124 = arith.constant 1 : index
    %c4_125 = arith.constant 4 : index
    %c0_126 = arith.constant 0 : index
    %c0_127 = arith.constant 0 : index
    %99 = vector.load %arg4[%c1_124, %c4_125, %c0_126, %c0_127] : memref<2x6x32x32xbf16, #tpu.memory_space<vmem>>, vector<1x1x32x32xbf16>
    %100 = vector.shape_cast %99 : vector<1x1x32x32xbf16> to vector<32x32xbf16>
    %cst_128 = arith.constant dense<0.000000e+00> : vector<144x32xf32>
    %101 = tpu.matmul %98, %100, %cst_128 {dimension_numbers = #tpu.dot_dimension_numbers<[1], [0], [0], [1], [0, 0, 1, 1], [], []>} : vector<144x32xbf16>, vector<32x32xbf16>, vector<144x32xf32> -> vector<144x32xf32>
    %102 = arith.addf %96, %101 : vector<144x32xf32>
    %c0_129 = arith.constant 0 : index
    %c0_130 = arith.constant 0 : index
    %c38 = arith.constant 38 : index
    %c0_131 = arith.constant 0 : index
    %103 = vector.load %arg3[%c0_129, %c0_130, %c38, %c0_131] : memref<1x1x198x32xbf16, #tpu.memory_space<vmem>>, vector<1x1x144x32xbf16>
    %104 = vector.shape_cast %103 : vector<1x1x144x32xbf16> to vector<144x32xbf16>
    %c1_132 = arith.constant 1 : index
    %c5_133 = arith.constant 5 : index
    %c0_134 = arith.constant 0 : index
    %c0_135 = arith.constant 0 : index
    %105 = vector.load %arg4[%c1_132, %c5_133, %c0_134, %c0_135] : memref<2x6x32x32xbf16, #tpu.memory_space<vmem>>, vector<1x1x32x32xbf16>
    %106 = vector.shape_cast %105 : vector<1x1x32x32xbf16> to vector<32x32xbf16>
    %cst_136 = arith.constant dense<0.000000e+00> : vector<144x32xf32>
    %107 = tpu.matmul %104, %106, %cst_136 {dimension_numbers = #tpu.dot_dimension_numbers<[1], [0], [0], [1], [0, 0, 1, 1], [], []>} : vector<144x32xbf16>, vector<32x32xbf16>, vector<144x32xf32> -> vector<144x32xf32>
    %108 = arith.addf %102, %107 : vector<144x32xf32>
    %109 = vector.broadcast %0 : vector<1x32xf32> to vector<144x32xf32>
    %110 = arith.addf %108, %109 : vector<144x32xf32>
    %111 = vector.extract_strided_slice %110 {offsets = [0, 0], sizes = [16, 32], strides = [1, 1]} : vector<144x32xf32> to vector<16x32xf32>
    %c0_137 = arith.constant 0 : index
    %c0_138 = arith.constant 0 : index
    %c1_139 = arith.constant 1 : index
    %c0_140 = arith.constant 0 : index
    %c0_141 = arith.constant 0 : index
    %112 = vector.load %arg6[%c0_137, %c0_138, %c1_139, %c0_140, %c0_141] : memref<1x8x2x16x32xf32, #tpu.memory_space<vmem>>, vector<1x1x1x16x32xf32>
    %113 = vector.shape_cast %112 : vector<1x1x1x16x32xf32> to vector<16x32xf32>
    %114 = vector.shape_cast %111 : vector<16x32xf32> to vector<1x1x1x16x32xf32>
    tpu.vector_store %arg6[%c0_137, %c0_138, %c1_139, %c0_140, %c0_141], %114 {strides = array<i32>} : memref<1x8x2x16x32xf32, #tpu.memory_space<vmem>>, vector<1x1x1x16x32xf32>,
    %115 = vector.extract_strided_slice %110 {offsets = [18, 0], sizes = [16, 32], strides = [1, 1]} : vector<144x32xf32> to vector<16x32xf32>
    %c0_142 = arith.constant 0 : index
    %c1_143 = arith.constant 1 : index
    %c1_144 = arith.constant 1 : index
    %c0_145 = arith.constant 0 : index
    %c0_146 = arith.constant 0 : index
    %116 = vector.load %arg6[%c0_142, %c1_143, %c1_144, %c0_145, %c0_146] : memref<1x8x2x16x32xf32, #tpu.memory_space<vmem>>, vector<1x1x1x16x32xf32>
    %117 = vector.shape_cast %116 : vector<1x1x1x16x32xf32> to vector<16x32xf32>
    %118 = vector.shape_cast %115 : vector<16x32xf32> to vector<1x1x1x16x32xf32>
    tpu.vector_store %arg6[%c0_142, %c1_143, %c1_144, %c0_145, %c0_146], %118 {strides = array<i32>} : memref<1x8x2x16x32xf32, #tpu.memory_space<vmem>>, vector<1x1x1x16x32xf32>,
    %119 = vector.extract_strided_slice %110 {offsets = [36, 0], sizes = [16, 32], strides = [1, 1]} : vector<144x32xf32> to vector<16x32xf32>
    %c0_147 = arith.constant 0 : index
    %c2_148 = arith.constant 2 : index
    %c1_149 = arith.constant 1 : index
    %c0_150 = arith.constant 0 : index
    %c0_151 = arith.constant 0 : index
    %120 = vector.load %arg6[%c0_147, %c2_148, %c1_149, %c0_150, %c0_151] : memref<1x8x2x16x32xf32, #tpu.memory_space<vmem>>, vector<1x1x1x16x32xf32>
    %121 = vector.shape_cast %120 : vector<1x1x1x16x32xf32> to vector<16x32xf32>
    %122 = vector.shape_cast %119 : vector<16x32xf32> to vector<1x1x1x16x32xf32>
    tpu.vector_store %arg6[%c0_147, %c2_148, %c1_149, %c0_150, %c0_151], %122 {strides = array<i32>} : memref<1x8x2x16x32xf32, #tpu.memory_space<vmem>>, vector<1x1x1x16x32xf32>,
    %123 = vector.extract_strided_slice %110 {offsets = [54, 0], sizes = [16, 32], strides = [1, 1]} : vector<144x32xf32> to vector<16x32xf32>
    %c0_152 = arith.constant 0 : index
    %c3_153 = arith.constant 3 : index
    %c1_154 = arith.constant 1 : index
    %c0_155 = arith.constant 0 : index
    %c0_156 = arith.constant 0 : index
    %124 = vector.load %arg6[%c0_152, %c3_153, %c1_154, %c0_155, %c0_156] : memref<1x8x2x16x32xf32, #tpu.memory_space<vmem>>, vector<1x1x1x16x32xf32>
    %125 = vector.shape_cast %124 : vector<1x1x1x16x32xf32> to vector<16x32xf32>
    %126 = vector.shape_cast %123 : vector<16x32xf32> to vector<1x1x1x16x32xf32>
    tpu.vector_store %arg6[%c0_152, %c3_153, %c1_154, %c0_155, %c0_156], %126 {strides = array<i32>} : memref<1x8x2x16x32xf32, #tpu.memory_space<vmem>>, vector<1x1x1x16x32xf32>,
    %127 = vector.extract_strided_slice %110 {offsets = [72, 0], sizes = [16, 32], strides = [1, 1]} : vector<144x32xf32> to vector<16x32xf32>
    %c0_157 = arith.constant 0 : index
    %c4_158 = arith.constant 4 : index
    %c1_159 = arith.constant 1 : index
    %c0_160 = arith.constant 0 : index
    %c0_161 = arith.constant 0 : index
    %128 = vector.load %arg6[%c0_157, %c4_158, %c1_159, %c0_160, %c0_161] : memref<1x8x2x16x32xf32, #tpu.memory_space<vmem>>, vector<1x1x1x16x32xf32>
    %129 = vector.shape_cast %128 : vector<1x1x1x16x32xf32> to vector<16x32xf32>
    %130 = vector.shape_cast %127 : vector<16x32xf32> to vector<1x1x1x16x32xf32>
    tpu.vector_store %arg6[%c0_157, %c4_158, %c1_159, %c0_160, %c0_161], %130 {strides = array<i32>} : memref<1x8x2x16x32xf32, #tpu.memory_space<vmem>>, vector<1x1x1x16x32xf32>,
    %131 = vector.extract_strided_slice %110 {offsets = [90, 0], sizes = [16, 32], strides = [1, 1]} : vector<144x32xf32> to vector<16x32xf32>
    %c0_162 = arith.constant 0 : index
    %c5_163 = arith.constant 5 : index
    %c1_164 = arith.constant 1 : index
    %c0_165 = arith.constant 0 : index
    %c0_166 = arith.constant 0 : index
    %132 = vector.load %arg6[%c0_162, %c5_163, %c1_164, %c0_165, %c0_166] : memref<1x8x2x16x32xf32, #tpu.memory_space<vmem>>, vector<1x1x1x16x32xf32>
    %133 = vector.shape_cast %132 : vector<1x1x1x16x32xf32> to vector<16x32xf32>
    %134 = vector.shape_cast %131 : vector<16x32xf32> to vector<1x1x1x16x32xf32>
    tpu.vector_store %arg6[%c0_162, %c5_163, %c1_164, %c0_165, %c0_166], %134 {strides = array<i32>} : memref<1x8x2x16x32xf32, #tpu.memory_space<vmem>>, vector<1x1x1x16x32xf32>,
    %135 = vector.extract_strided_slice %110 {offsets = [108, 0], sizes = [16, 32], strides = [1, 1]} : vector<144x32xf32> to vector<16x32xf32>
    %c0_167 = arith.constant 0 : index
    %c6_168 = arith.constant 6 : index
    %c1_169 = arith.constant 1 : index
    %c0_170 = arith.constant 0 : index
    %c0_171 = arith.constant 0 : index
    %136 = vector.load %arg6[%c0_167, %c6_168, %c1_169, %c0_170, %c0_171] : memref<1x8x2x16x32xf32, #tpu.memory_space<vmem>>, vector<1x1x1x16x32xf32>
    %137 = vector.shape_cast %136 : vector<1x1x1x16x32xf32> to vector<16x32xf32>
    %138 = vector.shape_cast %135 : vector<16x32xf32> to vector<1x1x1x16x32xf32>
    tpu.vector_store %arg6[%c0_167, %c6_168, %c1_169, %c0_170, %c0_171], %138 {strides = array<i32>} : memref<1x8x2x16x32xf32, #tpu.memory_space<vmem>>, vector<1x1x1x16x32xf32>,
    %139 = vector.extract_strided_slice %110 {offsets = [126, 0], sizes = [16, 32], strides = [1, 1]} : vector<144x32xf32> to vector<16x32xf32>
    %c0_172 = arith.constant 0 : index
    %c7_173 = arith.constant 7 : index
    %c1_174 = arith.constant 1 : index
    %c0_175 = arith.constant 0 : index
    %c0_176 = arith.constant 0 : index
    %140 = vector.load %arg6[%c0_172, %c7_173, %c1_174, %c0_175, %c0_176] : memref<1x8x2x16x32xf32, #tpu.memory_space<vmem>>, vector<1x1x1x16x32xf32>
    %141 = vector.shape_cast %140 : vector<1x1x1x16x32xf32> to vector<16x32xf32>
    %142 = vector.shape_cast %139 : vector<16x32xf32> to vector<1x1x1x16x32xf32>
    tpu.vector_store %arg6[%c0_172, %c7_173, %c1_174, %c0_175, %c0_176], %142 {strides = array<i32>} : memref<1x8x2x16x32xf32, #tpu.memory_space<vmem>>, vector<1x1x1x16x32xf32>,
    return
  }
  func.func @transform_0(%arg0: i32, %arg1: i32, %arg2: i32) -> (i32, i32, i32, i32) {
    %c0_i32 = arith.constant 0 : i32
    %c0_i32_0 = arith.constant 0 : i32
    %c0_i32_1 = arith.constant 0 : i32
    return %arg0, %arg1, %c0_i32, %c0_i32_0 : i32, i32, i32, i32
  }
  func.func @transform_1(%arg0: i32, %arg1: i32, %arg2: i32) -> (i32, i32, i32, i32) {
    %c0_i32 = arith.constant 0 : i32
    %c0_i32_0 = arith.constant 0 : i32
    %c0_i32_1 = arith.constant 0 : i32
    %c0_i32_2 = arith.constant 0 : i32
    return %c0_i32, %c0_i32_0, %c0_i32_1, %arg2 : i32, i32, i32, i32
  }
  func.func @transform_2(%arg0: i32, %arg1: i32, %arg2: i32) -> (i32, i32) {
    %c0_i32 = arith.constant 0 : i32
    %c0_i32_0 = arith.constant 0 : i32
    return %c0_i32, %arg2 : i32, i32
  }
  func.func @transform_3(%arg0: i32, %arg1: i32, %arg2: i32) -> (i32, i32, i32, i32, i32) {
    %c0_i32 = arith.constant 0 : i32
    %c0_i32_0 = arith.constant 0 : i32
    %c0_i32_1 = arith.constant 0 : i32
    return %arg0, %arg1, %c0_i32, %c0_i32_0, %arg2 : i32, i32, i32, i32, i32
  }
}

</mosaic_0001>

<bundles_post_ra>
// kernel: upsample_block_forward.16
= control target key start
LH: loop header
LB: loop body
LE: loop exit
PB: predicated region body
PF: predicated region fallthrough
CT: control target
= control target key end

     0   :  { %s1184_s18 = smov 0   ;;  %s1186_s19 = smov 0   ;;  %s1314_s0 = inlined_call_operand.vmem [shape: bf16[2,64,32], index: 0, kind: input, shape index: {}]   ;;  %s1315_s1 = inlined_call_operand.vmem [shape: f32[1,32], index: 1, kind: input, shape index: {}]   ;;  %s1316_s2 = inlined_call_operand.vmem [shape: f32[1,32], index: 2, kind: input, shape index: {}]   ;;  %s1317_s3 = inlined_call_operand.vmem [shape: f32[32,32], index: 3, kind: input, shape index: {}]   ;;  %s1318_s4 = inlined_call_operand.vmem [shape: f32[32,32], index: 4, kind: input, shape index: {}]   ;;  %s1319_s5 = inlined_call_operand.vmem [shape: bf16[2,64,32], index: 5, kind: output, shape index: {}]  }
   0x1   :  { %s1188_s20 = smov 0  }
   0x2 LB: > { %s27_s21 = sadd.s32 1, %s1145_s19  ;;  %p920_p0 = scmp.ge.s32.totalorder %s1149_s20, 1  ;;  %s1149_s20 = sphi %s1188_s20, %s15_s20   ;;  %s1145_s19 = sphi %s1186_s19, %s1321_s19   ;;  %s1141_s18 = sphi %s1184_s18, %s1320_s18  }
   0x3   : > { %p29_p1 = scmp.ge.s32.totalorder %s27_s21, 2  ;;  %p222_p2 = scmp.lt.s32.totalorder %s1149_s20, 3 }
   0x5   : > { %s1323_s21 = smov (%p29_p1, %s27_s21), 0  ;;  %p223_p3 = pnand %p920_p0, %p222_p2 }
   0x6   : > { %v322_v0 = vld [vmem:[%s1317_s3] sm:$0xff] (!%p223_p3)  ;;  %v323_v1 = vld [vmem:[%s1317_s3 + $0x8] sm:$0xff] (!%p223_p3)  ;;  %v324_v2 = vld [vmem:[%s1317_s3 + $0x10] sm:$0xff] (!%p223_p3)  ;;  %v1151_v3 = vmov (!%p223_p3), 0.0|0.0   ;;  %vm1152_vm0 = vmmov (!%p223_p3), 0   ;;  %v1153_v6 = vmov (!%p223_p3), 0.0   ;;  %v478_v50 = vlaneseq (!%p223_p3) }
   0x7   : > { %226 = sbr.rel (%p223_p3) target bundleno = 991 (0x3df), region = 40  ;;  %1042 = vmatprep.subr.bf16.mxu0 (!%p223_p3), %v1151_v3  ;;  %v1043_v4 = vpack.c.bf16 (!%p223_p3), %v323_v1, %v322_v0  ;;  %v325_v5 = vld [vmem:[%s1317_s3 + $0x18] sm:$0xff] (!%p223_p3)  ;;  %1006 = vmatprep.mubr.msk.f32.mxu0 (!%p223_p3), %vm1152_vm0, %v1153_v6  ;;  %p262_p4 = scmp.lt.s32.totalorder (!%p223_p3), %s1141_s18, 1  ;;  %v401_v7 = vld [vmem:[%s1318_s4] sm:$0xff] (!%p223_p3)  ;;  %v402_v8 = vld [vmem:[%s1318_s4 + $0x8] sm:$0xff] (!%p223_p3)  ;;  %vm300_vm1 = vcmask (!%p223_p3), 261120  }
   0x8   : > { %1048 = vmatprep.subr.bf16.mxu1 (!%p223_p3), %v1151_v3  ;;  %v1049_v9 = vpack.c.bf16 (!%p223_p3), %v402_v8, %v401_v7  ;;  %1017 = vmatprep.mubr.msk.f32.mxu1 (!%p223_p3), %vm1152_vm0, %v1153_v6  ;;  %v1046_v10 = vpack.c.bf16 (!%p223_p3), %v325_v5, %v324_v2  ;;  %v403_v44 = vld [vmem:[%s1318_s4 + $0x10] sm:$0xff] (!%p223_p3)  ;;  %v404_v45 = vld [vmem:[%s1318_s4 + $0x18] sm:$0xff] (!%p223_p3)  ;;  %v479_v51 = vshrl.u32 (!%p223_p3), %v478_v50, 7  ;;  %vm797_vm2 = vcmask (!%p223_p3), 257024  }
   0x9   : > { %1044 = vmatpush3.bf16.msra.mxu0 (!%p223_p3), %v1043_v4  ;;  %v1052_v46 = vpack.c.bf16 (!%p223_p3), %v404_v45, %v403_v44 }
   0xa   : > { %1045 = vmatprep.subr.bf16.mxu0 (!%p223_p3), %v1151_v3  ;;  %1050 = vmatpush3.bf16.msra.mxu1 (!%p223_p3), %v1049_v9  ;;  %v480_v52 = vsub.s32 (!%p223_p3), 0, %v479_v51 }
   0xb   : > { %1051 = vmatprep.subr.bf16.mxu1 (!%p223_p3), %v1151_v3 }
   0xd   : > { %1047 = vmatpush3.bf16.msra.mxu0 (!%p223_p3), %v1046_v10 }
   0xe   : > { %s1325_s18 = smov (!%p262_p4, %s1141_s18), 1  ;;  %1054 = vmatprep.subr.bf16.mxu0 %v1151_v3  ;;  %1053 = vmatpush3.bf16.msra.mxu1 %v1052_v46 }
   0xf   : > { %s949_s9 = sshll.u32 %s1325_s18, 5  ;;  %1060 = vmatprep.subr.bf16.mxu1 %v1151_v3 }
  0x10   : > { %s269_s12 = scalar_lea.vmem %s1314_s0, %s949_s9  ;;  %s283_s27 = scalar_lea.vmem %s1319_s5, %s949_s9 }
  0x11   : > { %v960_v11 = vld [vmem:[%s269_s12] sm:$0xff]   ;;  %v975_v12 = vld [vmem:[%s269_s12 + $0x8] sm:$0xff]   ;;  %v1236_v13 = vld [vmem:[%s269_s12 + $0x10] sm:$0xff]  }
  0x12   : > { %v961_v14 = vunpack.c.l.bf16 %v960_v11  ;;  %v962_v15 = vunpack.c.h.bf16 %v960_v11  ;;  %v965_v16 = vunpack.c.l.bf16 %v975_v12  ;;  %v966_v17 = vunpack.c.h.bf16 %v975_v12  ;;  %v1243_v22 = vld [vmem:[%s269_s12 + $0x18] sm:$0xff]  }
  0x13   : > { %v969_v18 = vunpack.c.l.bf16 %v1236_v13  ;;  %v970_v24 = vunpack.c.h.bf16 %v1236_v13  ;;  %v973_v27 = vunpack.c.l.bf16 %v1243_v22  ;;  %v974_v30 = vunpack.c.h.bf16 %v1243_v22 }
  0x14   : > { %v301_v19 = vsel %vm300_vm1, %v961_v14, 0.0  ;;  %v302_v20 = vsel %vm300_vm1, %v962_v15, 0.0  ;;  %v304_v21 = vsel %vm300_vm1, %v965_v16, 0.0  ;;  %v306_v25 = vsel %vm300_vm1, %v966_v17, 0.0 }
  0x15   : > { %v303_v23 = vadd.f32 %v302_v20, %v301_v19  ;;  %v308_v28 = vsel %vm300_vm1, %v969_v18, 0.0  ;;  %v310_v31 = vsel %vm300_vm1, %v970_v24, 0.0  ;;  %v312_v33 = vsel %vm300_vm1, %v973_v27, 0.0 }
  0x16   : > { %v314_v35 = vsel %vm300_vm1, %v974_v30, 0.0 }
  0x17   : > { %v305_v26 = vadd.f32 %v304_v21, %v303_v23 }
  0x19   : > { %v307_v29 = vadd.f32 %v306_v25, %v305_v26 }
  0x1b   : > { %v309_v32 = vadd.f32 %v308_v28, %v307_v29 }
  0x1d   : > { %v311_v34 = vadd.f32 %v310_v31, %v309_v32 }
  0x1f   : > { %v313_v36 = vadd.f32 %v312_v33, %v311_v34 }
  0x21   : > { %v315_v37 = vadd.f32 %v314_v35, %v313_v36 }
  0x23   : > { %v316_v38 = vrot.slane %v315_v37, 4 }
  0x25   : > { %v317_v39 = vadd.f32 %v316_v38, %v315_v37  ;;  %v929_v37 = vld [vmem:[%s1315_s1] ss:$0 sm:$0xff] }
  0x27   : > { %v318_v40 = vrot.slane %v317_v39, 2 }
  0x29   : > { %v319_v41 = vadd.f32 %v318_v40, %v317_v39 }
  0x2b   : > { %v320_v42 = vrot.slane %v319_v41, 1 }
  0x2d   : > { %v321_v43 = vadd.f32 %v320_v42, %v319_v41 }
  0x2f   : > { %1007 = vmatmul.mubr.msk.f32.vlgmr.msra.gmra.mrb[0].mxu0 %vm300_vm1, %v321_v43 }
  0x30   : > { %1056 = vmatpush3.bf16.msra.mxu0 %v1043_v4  ;;  %1028 = vmatprep.mubr.msk.f32.mxu0 %vm1152_vm0, %v1153_v6 }
  0x31   : > { %1057 = vmatprep.subr.bf16.mxu0 %v1151_v3 }
  0x34   : > { %1059 = vmatpush3.bf16.msra.mxu0 %v1046_v10 }
 0x102   : > { %v395_v47 = vpop.f32.mrb[0].mxu0 }
 0x103   : > { %v400_v48 = vmul.f32 0.015625, %v395_v47  ;;  %v1008_v49 = vpop.f32.mrb[1].mxu0 }
 0x105   : > { %1018 = vmatmul.mubr.msk.f32.vlgmr.msra.gmra.mrb[0].mxu1 %vm300_vm1, %v400_v48 }
 0x106   : > { %1062 = vmatpush3.bf16.msra.mxu1 %v1049_v9  ;;  %1039 = vmatprep.mubr.msk.f32.mxu1 %vm1152_vm0, %v1153_v6 }
 0x107   : > { %1063 = vmatprep.subr.bf16.mxu1 %v1151_v3 }
 0x10a   : > { %1065 = vmatpush3.bf16.msra.mxu1 %v1052_v46  ;;  %v930_v46 = vld [vmem:[%s1316_s2] ss:$0 sm:$0xff] }
 0x1d8   : > { %v474_v53 = vpop.f32.mrb[0].mxu1 }
 0x1d9   : > { %v481_v54 = vrot.slane %v474_v53, %v480_v52  ;;  %v1019_v55 = vpop.f32.mrb[1].mxu1 }
 0x1db   : > { %v482_v56 = vsub.f32 %v961_v14, %v481_v54  ;;  %v483_v57 = vsub.f32 %v962_v15, %v481_v54  ;;  %v484_v58 = vsub.f32 %v965_v16, %v481_v54  ;;  %v485_v59 = vsub.f32 %v966_v17, %v481_v54 }
 0x1dc   : > { %v486_v60 = vsub.f32 %v969_v18, %v481_v54  ;;  %v487_v0 = vsub.f32 %v970_v24, %v481_v54  ;;  %v488_v5 = vsub.f32 %v973_v27, %v481_v54  ;;  %v489_v9 = vsub.f32 %v974_v30, %v481_v54 }
 0x1dd   : > { %v490_v61 = vmul.f32 %v482_v56, %v482_v56  ;;  %v491_v62 = vmul.f32 %v483_v57, %v483_v57  ;;  %v492_v63 = vmul.f32 %v484_v58, %v484_v58  ;;  %v493_v1 = vmul.f32 %v485_v59, %v485_v59 }
 0x1de   : > { %v494_v6 = vmul.f32 %v486_v60, %v486_v60  ;;  %v495_v10 = vmul.f32 %v487_v0, %v487_v0  ;;  %v496_v13 = vmul.f32 %v488_v5, %v488_v5  ;;  %v497_v16 = vmul.f32 %v489_v9, %v489_v9 }
 0x1df   : > { %v498_v2 = vsel %vm300_vm1, %v490_v61, 0.0  ;;  %v499_v3 = vsel %vm300_vm1, %v491_v62, 0.0  ;;  %v501_v7 = vsel %vm300_vm1, %v492_v63, 0.0  ;;  %v503_v11 = vsel %vm300_vm1, %v493_v1, 0.0 }
 0x1e0   : > { %v500_v4 = vadd.f32 %v499_v3, %v498_v2  ;;  %v505_v14 = vsel %vm300_vm1, %v494_v6, 0.0  ;;  %v507_v17 = vsel %vm300_vm1, %v495_v10, 0.0  ;;  %v509_v19 = vsel %vm300_vm1, %v496_v13, 0.0 }
 0x1e1   : > { %v511_v21 = vsel %vm300_vm1, %v497_v16, 0.0 }
 0x1e2   : > { %v502_v8 = vadd.f32 %v501_v7, %v500_v4 }
 0x1e4   : > { %v504_v12 = vadd.f32 %v503_v11, %v502_v8 }
 0x1e6   : > { %v506_v15 = vadd.f32 %v505_v14, %v504_v12 }
 0x1e8   : > { %v508_v18 = vadd.f32 %v507_v17, %v506_v15 }
 0x1ea   : > { %v510_v20 = vadd.f32 %v509_v19, %v508_v18 }
 0x1ec   : > { %v512_v22 = vadd.f32 %v511_v21, %v510_v20 }
 0x1ee   : > { %v513_v23 = vrot.slane %v512_v22, 4 }
 0x1f0   : > { %v514_v24 = vadd.f32 %v513_v23, %v512_v22 }
 0x1f2   : > { %v515_v25 = vrot.slane %v514_v24, 2 }
 0x1f4   : > { %v516_v26 = vadd.f32 %v515_v25, %v514_v24 }
 0x1f6   : > { %v517_v27 = vrot.slane %v516_v26, 1 }
 0x1f8   : > { %v518_v28 = vadd.f32 %v517_v27, %v516_v26 }
 0x1fa   : > { %1029 = vmatmul.mubr.msk.f32.vlgmr.msra.gmra.mrb[2].mxu0 %vm300_vm1, %v518_v28 }
 0x2cd   : > { %v588_v29 = vpop.f32.mrb[2].mxu0 }
 0x2ce   : > { %v592_v30 = vmul.f32 0.015625, %v588_v29  ;;  %v1030_v31 = vpop.f32.mrb[3].mxu0 }
 0x2d0   : > { %1040 = vmatmul.mubr.msk.f32.vlgmr.msra.gmra.mrb[2].mxu1 %vm300_vm1, %v592_v30 }
 0x3a3   : > { %v662_v32 = vpop.f32.mrb[2].mxu1 }
 0x3a4   : > { %v663_v33 = vadd.f32 1e-05, %v662_v32  ;;  %v1041_v34 = vpop.f32.mrb[3].mxu1 }
 0x3a6   : > { %1093 = vrsqrt.f32 %v663_v33 }
 0x3b0   : > { %v1094_v35 = vpop.eup %1093 }
 0x3b1   : > { %v670_v36 = vrot.slane %v1094_v35, %v480_v52 }
 0x3b3   : > { %v671_v38 = vmul.f32 %v670_v36, %v482_v56  ;;  %v672_v39 = vmul.f32 %v670_v36, %v483_v57  ;;  %v673_v40 = vmul.f32 %v670_v36, %v484_v58  ;;  %v674_v41 = vmul.f32 %v670_v36, %v485_v59 }
 0x3b4   : > { %v675_v42 = vmul.f32 %v670_v36, %v486_v60  ;;  %v676_v43 = vmul.f32 %v670_v36, %v487_v0  ;;  %v677_v44 = vmul.f32 %v670_v36, %v488_v5  ;;  %v678_v45 = vmul.f32 %v670_v36, %v489_v9 }
 0x3b5   : > { %v686_v47 = vmul.f32 %v929_v37, %v671_v38  ;;  %v687_v48 = vmul.f32 %v929_v37, %v672_v39  ;;  %v688_v49 = vmul.f32 %v929_v37, %v673_v40  ;;  %v689_v50 = vmul.f32 %v929_v37, %v674_v41 }
 0x3b6   : > { %v690_v51 = vmul.f32 %v929_v37, %v675_v42  ;;  %v691_v52 = vmul.f32 %v929_v37, %v676_v43  ;;  %v692_v53 = vmul.f32 %v929_v37, %v677_v44  ;;  %v693_v54 = vmul.f32 %v929_v37, %v678_v45 }
 0x3b7   : > { %v701_v55 = vadd.f32 %v930_v46, %v686_v47  ;;  %v702_v56 = vadd.f32 %v930_v46, %v687_v48  ;;  %v703_v57 = vadd.f32 %v930_v46, %v688_v49  ;;  %v704_v58 = vadd.f32 %v930_v46, %v689_v50 }
 0x3b8   : > { %v705_v59 = vadd.f32 %v930_v46, %v690_v51  ;;  %v706_v60 = vadd.f32 %v930_v46, %v691_v52  ;;  %v1284_v61 = vadd.f32 %v930_v46, %v692_v53  ;;  %v1286_v1 = vadd.f32 %v930_v46, %v693_v54 }
 0x3b9   : > { %v931_v62 = vmul.f32 -1.442695, %v701_v55  ;;  %v932_v63 = vmul.f32 -1.442695, %v702_v56  ;;  %v933_v0 = vmul.f32 -1.442695, %v703_v57 }
 0x3ba   : > { %v934_v2 = vmul.f32 -1.442695, %v704_v58  ;;  %v935_v3 = vmul.f32 -1.442695, %v705_v59  ;;  %v936_v4 = vmul.f32 -1.442695, %v706_v60 }
 0x3bb   : > { %1095 = vpow2.f32 %v931_v62  ;;  %v937_v5 = vmul.f32 -1.442695, %v1284_v61  ;;  %v938_v6 = vmul.f32 -1.442695, %v1286_v1 }
 0x3bc   : > { %1097 = vpow2.f32 %v932_v63 }
 0x3bd   : > { %1099 = vpow2.f32 %v933_v0 }
 0x3be   : > { %1101 = vpow2.f32 %v934_v2 }
 0x3bf   : > { %1103 = vpow2.f32 %v935_v3 }
 0x3c0   : > { %1105 = vpow2.f32 %v936_v4 }
 0x3c1   : > { %1107 = vpow2.f32 %v937_v5 }
 0x3c2   : > { %1109 = vpow2.f32 %v938_v6 }
 0x3c5   : > { %v1096_v7 = vpop.eup %1095 }
 0x3c6   : > { %v1098_v8 = vpop.eup %1097  ;;  %v733_v9 = vadd.f32 1.0, %v1096_v7 }
 0x3c7   : > { %v1100_v10 = vpop.eup %1099  ;;  %v734_v11 = vadd.f32 1.0, %v1098_v8 }
 0x3c8   : > { %v1102_v12 = vpop.eup %1101  ;;  %v735_v13 = vadd.f32 1.0, %v1100_v10  ;;  %1111 = vrcp.f32 %v733_v9 }
 0x3c9   : > { %v1104_v14 = vpop.eup %1103  ;;  %v736_v15 = vadd.f32 1.0, %v1102_v12  ;;  %1113 = vrcp.f32 %v734_v11 }
 0x3ca   : > { %v1106_v16 = vpop.eup %1105  ;;  %v737_v17 = vadd.f32 1.0, %v1104_v14  ;;  %1115 = vrcp.f32 %v735_v13 }
 0x3cb   : > { %v1108_v18 = vpop.eup %1107  ;;  %v738_v19 = vadd.f32 1.0, %v1106_v16  ;;  %1117 = vrcp.f32 %v736_v15 }
 0x3cc   : > { %v1110_v20 = vpop.eup %1109  ;;  %v739_v21 = vadd.f32 1.0, %v1108_v18  ;;  %1119 = vrcp.f32 %v737_v17 }
 0x3cd   : > { %v740_v22 = vadd.f32 1.0, %v1110_v20  ;;  %1121 = vrcp.f32 %v738_v19 }
 0x3ce   : > { %1123 = vrcp.f32 %v739_v21 }
 0x3cf   : > { %1125 = vrcp.f32 %v740_v22 }
 0x3d2   : > { %v1112_v23 = vpop.eup %1111 }
 0x3d3   : > { %v1114_v24 = vpop.eup %1113  ;;  %v757_v25 = vmul.f32 %v1112_v23, %v701_v55 }
 0x3d4   : > { %v1116_v26 = vpop.eup %1115  ;;  %v758_v27 = vmul.f32 %v1114_v24, %v702_v56 }
 0x3d5   : > { %v1118_v28 = vpop.eup %1117  ;;  %v759_v29 = vmul.f32 %v1116_v26, %v703_v57  ;;  %v951_v30 = vpack.c.bf16 %v757_v25, %v757_v25 }
 0x3d6   : > { %v1120_v31 = vpop.eup %1119  ;;  %v760_v32 = vmul.f32 %v1118_v28, %v704_v58  ;;  %v952_v33 = vpack.c.bf16 %v758_v27, %v758_v27 }
 0x3d7   : > { %v1122_v34 = vpop.eup %1121  ;;  %v761_v35 = vmul.f32 %v1120_v31, %v705_v59  ;;  %v953_v36 = vpack.c.bf16 %v759_v29, %v759_v29  ;;  %798 = vst.msk [vmem:[%s283_s27] sm:$0xf] %vm797_vm2, %v951_v30 }
 0x3d8   : > { %v1124_v37 = vpop.eup %1123  ;;  %v762_v38 = vmul.f32 %v1122_v34, %v706_v60  ;;  %v954_v39 = vpack.c.bf16 %v760_v32, %v760_v32  ;;  %799 = vst.msk [vmem:[%s283_s27 + $0x4] sm:$0xf] %vm797_vm2, %v952_v33 }
 0x3d9   : > { %v1126_v40 = vpop.eup %1125  ;;  %v763_v41 = vmul.f32 %v1124_v37, %v1284_v61  ;;  %v955_v42 = vpack.c.bf16 %v761_v35, %v761_v35  ;;  %800 = vst.msk [vmem:[%s283_s27 + $0x8] sm:$0xf] %vm797_vm2, %v953_v36 }
 0x3da   : > { %v764_v43 = vmul.f32 %v1126_v40, %v1286_v1  ;;  %v956_v44 = vpack.c.bf16 %v762_v38, %v762_v38  ;;  %801 = vst.msk [vmem:[%s283_s27 + $0xc] sm:$0xf] %vm797_vm2, %v954_v39 }
 0x3db   : > { %v957_v45 = vpack.c.bf16 %v763_v41, %v763_v41  ;;  %802 = vst.msk [vmem:[%s283_s27 + $0x10] sm:$0xf] %vm797_vm2, %v955_v42 }
 0x3dc   : > { %v958_v46 = vpack.c.bf16 %v764_v43, %v764_v43  ;;  %803 = vst.msk [vmem:[%s283_s27 + $0x14] sm:$0xf] %vm797_vm2, %v956_v44 }
 0x3dd   : > { %804 = vst.msk [vmem:[%s283_s27 + $0x18] sm:$0xf] %vm797_vm2, %v957_v45 }
 0x3de   : > { %805 = vst.msk [vmem:[%s283_s27 + $0x1c] sm:$0xf] %vm797_vm2, %v958_v46 }
 0x3df PF: > { %s15_s20 = sadd.s32 1, %s1149_s20   ;;  %s1320_s18 = smov %s1145_s19 }
 0x3e0   : > { %p12_p5 = scmp.ge.s32.totalorder %s15_s20, 4   ;;  %s1321_s19 = smov %s1323_s21 }
 0x3e2   :  { %14 = sbr.rel (!%p12_p5) target bundleno = 2 (0x2), region = 76 }

// kernel: upsample_block_forward.14
= control target key start
LH: loop header
LB: loop body
LE: loop exit
PB: predicated region body
PF: predicated region fallthrough
CT: control target
= control target key end

     0   :  { %s1198_s18 = smov 0   ;;  %s1200_s19 = smov 0   ;;  %s1357_s0 = inlined_call_operand.vmem [shape: f32[2,64,64], index: 0, kind: input, shape index: {}]   ;;  %s1358_s1 = inlined_call_operand.vmem [shape: f32[1,64], index: 1, kind: input, shape index: {}]   ;;  %s1359_s2 = inlined_call_operand.vmem [shape: f32[1,64], index: 2, kind: input, shape index: {}]   ;;  %s1360_s3 = inlined_call_operand.vmem [shape: f32[64,32], index: 3, kind: input, shape index: {}]   ;;  %s1361_s4 = inlined_call_operand.vmem [shape: f32[32,64], index: 4, kind: input, shape index: {}]   ;;  %s1362_s5 = inlined_call_operand.vmem [shape: bf16[2,64,64], index: 5, kind: output, shape index: {}]  }
   0x1   :  { %s1202_s20 = smov 0  }
   0x2 LB: > { %s27_s21 = sadd.s32 1, %s1159_s19  ;;  %p917_p0 = scmp.ge.s32.totalorder %s1163_s20, 1  ;;  %s1163_s20 = sphi %s1202_s20, %s15_s20   ;;  %s1159_s19 = sphi %s1200_s19, %s1364_s19   ;;  %s1155_s18 = sphi %s1198_s18, %s1363_s18  }
   0x3   : > { %p29_p1 = scmp.ge.s32.totalorder %s27_s21, 2  ;;  %p222_p2 = scmp.lt.s32.totalorder %s1163_s20, 3 }
   0x5   : > { %s1366_s21 = smov (%p29_p1, %s27_s21), 0  ;;  %p223_p3 = pnand %p917_p0, %p222_p2 }
   0x6   : > { %v314_v0 = vld [vmem:[%s1360_s3] sm:$0xff] (!%p223_p3)  ;;  %v315_v1 = vld [vmem:[%s1360_s3 + $0x8] sm:$0xff] (!%p223_p3)  ;;  %v316_v2 = vld [vmem:[%s1360_s3 + $0x10] sm:$0xff] (!%p223_p3)  ;;  %v1165_v3 = vmov (!%p223_p3), 0.0|0.0   ;;  %vm1166_vm0 = vmmov (!%p223_p3), 0   ;;  %v1167_v6 = vmov (!%p223_p3), 0.0   ;;  %v475_v52 = vlaneseq (!%p223_p3) }
   0x7   : > { %226 = sbr.rel (%p223_p3) target bundleno = 989 (0x3dd), region = 40  ;;  %1044 = vmatprep.subr.bf16.mxu0 (!%p223_p3), %v1165_v3  ;;  %v1226_v4 = vpack.c.bf16 (!%p223_p3), %v315_v1, %v314_v0  ;;  %v317_v5 = vld [vmem:[%s1360_s3 + $0x18] sm:$0xff] (!%p223_p3)  ;;  %1000 = vmatprep.mubr.msk.f32.mxu0 (!%p223_p3), %vm1166_vm0, %v1167_v6  ;;  %p262_p4 = scmp.lt.s32.totalorder (!%p223_p3), %s1155_s18, 1  ;;  %v397_v7 = vld [vmem:[%s1361_s4] sm:$0xff] (!%p223_p3)  ;;  %v398_v9 = vld [vmem:[%s1361_s4 + $0x8] sm:$0xff] (!%p223_p3)  ;;  %vm292_vm1 = vcmask (!%p223_p3), 523264  }
   0x8   : > { %1056 = vmatprep.subr.bf16.mxu1 (!%p223_p3), %v1165_v3  ;;  %1011 = vmatprep.mubr.msk.f32.mxu1 (!%p223_p3), %vm1166_vm0, %v1167_v6  ;;  %v1240_v8 = vpack.c.bf16 (!%p223_p3), %v317_v5, %v316_v2  ;;  %v318_v10 = vld [vmem:[%s1360_s3 + $0x20] sm:$0xff] (!%p223_p3)  ;;  %v319_v11 = vld [vmem:[%s1360_s3 + $0x28] sm:$0xff] (!%p223_p3)  ;;  %v1057_v12 = vpack.c.bf16 (!%p223_p3), %v398_v9, %v397_v7  ;;  %v320_v17 = vld [vmem:[%s1360_s3 + $0x30] sm:$0xff] (!%p223_p3)  ;;  %vm401_vm2 = vcmask (!%p223_p3), 261120   ;;  %v476_v53 = vshrl.u32 (!%p223_p3), %v475_v52, 7 }
   0x9   : > { %1046 = vmatpush3.bf16.msra.mxu0 (!%p223_p3), %v1226_v4  ;;  %v1051_v13 = vpack.c.bf16 (!%p223_p3), %v319_v11, %v318_v10  ;;  %v321_v18 = vld [vmem:[%s1360_s3 + $0x38] sm:$0xff] (!%p223_p3)  ;;  %v399_v46 = vld [vmem:[%s1361_s4 + $0x10] sm:$0xff] (!%p223_p3)  ;;  %vm794_vm3 = vcmask (!%p223_p3), 519168  }
   0xa   : > { %1047 = vmatprep.subr.bf16.mxu0 (!%p223_p3), %v1165_v3  ;;  %1058 = vmatpush3.bf16.msra.mxu1 (!%p223_p3), %v1057_v12  ;;  %v1054_v26 = vpack.c.bf16 (!%p223_p3), %v321_v18, %v320_v17  ;;  %v400_v47 = vld [vmem:[%s1361_s4 + $0x18] sm:$0xff] (!%p223_p3)  ;;  %v477_v54 = vsub.s32 (!%p223_p3), 0, %v476_v53 }
   0xb   : > { %1059 = vmatprep.subr.bf16.mxu1 (!%p223_p3), %v1165_v3  ;;  %v1060_v48 = vpack.c.bf16 (!%p223_p3), %v400_v47, %v399_v46 }
   0xd   : > { %1049 = vmatpush3.bf16.msra.mxu0 (!%p223_p3), %v1240_v8 }
   0xe   : > { %s1368_s18 = smov (!%p262_p4, %s1155_s18), 1  ;;  %1050 = vmatprep.subr.bf16.mxu0 %v1165_v3  ;;  %1061 = vmatpush3.bf16.msra.mxu1 %v1060_v48 }
   0xf   : > { %s946_s13 = sshll.u32 %s1368_s18, 6  ;;  %1062 = vmatprep.subr.bf16.mxu1 %v1165_v3  ;;  %s947_s8 = sshll.u32 %s1368_s18, 5 }
  0x10   : > { %s269_s16 = scalar_lea.vmem %s1357_s0, %s946_s13  ;;  %s283_s11 = scalar_lea.vmem %s1362_s5, %s947_s8 }
  0x11   : > { %v1259_v14 = vld [vmem:[%s269_s16] sm:$0xff]  ;;  %v1261_v15 = vld [vmem:[%s269_s16 + $0x8] sm:$0xff]  ;;  %v1263_v16 = vld [vmem:[%s269_s16 + $0x10] sm:$0xff]  ;;  %1052 = vmatpush3.bf16.msra.mxu0 %v1051_v13 }
  0x12   : > { %v1273_v19 = vld [vmem:[%s269_s16 + $0x18] sm:$0xff]  ;;  %v293_v20 = vsel %vm292_vm1, %v1259_v14, 0.0  ;;  %v294_v21 = vsel %vm292_vm1, %v1261_v15, 0.0  ;;  %v296_v22 = vsel %vm292_vm1, %v1263_v16, 0.0  ;;  %v288_v23 = vld [vmem:[%s269_s16 + $0x20] sm:$0xff]  ;;  %v289_v27 = vld [vmem:[%s269_s16 + $0x28] sm:$0xff]  ;;  %1053 = vmatprep.subr.bf16.mxu0 %v1165_v3 }
  0x13   : > { %v295_v24 = vadd.f32 %v294_v21, %v293_v20  ;;  %v298_v25 = vsel %vm292_vm1, %v1273_v19, 0.0  ;;  %v300_v29 = vsel %vm292_vm1, %v288_v23, 0.0  ;;  %v290_v30 = vld [vmem:[%s269_s16 + $0x30] sm:$0xff]  ;;  %v302_v32 = vsel %vm292_vm1, %v289_v27, 0.0  ;;  %v291_v33 = vld [vmem:[%s269_s16 + $0x38] sm:$0xff] }
  0x14   : > { %v304_v35 = vsel %vm292_vm1, %v290_v30, 0.0  ;;  %v306_v37 = vsel %vm292_vm1, %v291_v33, 0.0 }
  0x15   : > { %v297_v28 = vadd.f32 %v296_v22, %v295_v24  ;;  %1055 = vmatpush3.bf16.msra.mxu0 %v1054_v26 }
  0x16   : > { %1074 = vmatprep.subr.bf16.mxu0 %v1165_v3 }
  0x17   : > { %v299_v31 = vadd.f32 %v298_v25, %v297_v28 }
  0x19   : > { %v301_v34 = vadd.f32 %v300_v29, %v299_v31 }
  0x1b   : > { %v303_v36 = vadd.f32 %v302_v32, %v301_v34 }
  0x1d   : > { %v305_v38 = vadd.f32 %v304_v35, %v303_v36 }
  0x1f   : > { %v307_v39 = vadd.f32 %v306_v37, %v305_v38 }
  0x21   : > { %v308_v40 = vrot.slane %v307_v39, 4 }
  0x23   : > { %v309_v41 = vadd.f32 %v308_v40, %v307_v39  ;;  %v926_v39 = vld [vmem:[%s1358_s1] ss:$0 sm:$0xff] }
  0x25   : > { %v310_v42 = vrot.slane %v309_v41, 2 }
  0x27   : > { %v311_v43 = vadd.f32 %v310_v42, %v309_v41 }
  0x29   : > { %v312_v44 = vrot.slane %v311_v43, 1 }
  0x2b   : > { %v313_v45 = vadd.f32 %v312_v44, %v311_v43 }
  0x2d   : > { %1001 = vmatmul.mubr.msk.f32.vlgmr.msra.gmra.mrb[0].mxu0 %vm292_vm1, %v313_v45 }
  0x2e   : > { %1076 = vmatpush3.bf16.msra.mxu0 %v1057_v12  ;;  %1041 = vmatprep.mubr.msk.f32.mxu0 %vm1166_vm0, %v1167_v6 }
  0x2f   : > { %1077 = vmatprep.subr.bf16.mxu0 %v1165_v3 }
  0x32   : > { %1079 = vmatpush3.bf16.msra.mxu0 %v1060_v48  ;;  %v927_v48 = vld [vmem:[%s1359_s2] ss:$0 sm:$0xff] }
 0x100   : > { %v391_v49 = vpop.f32.mrb[0].mxu0 }
 0x101   : > { %v396_v50 = vmul.f32 0.0078125, %v391_v49  ;;  %v1002_v51 = vpop.f32.mrb[1].mxu0 }
 0x103   : > { %1012 = vmatmul.mubr.msk.f32.vlgmr.msra.gmra.mrb[0].mxu1 %vm401_vm2, %v396_v50 }
 0x104   : > { %1064 = vmatpush3.bf16.msra.mxu1 %v1226_v4  ;;  %1030 = vmatprep.mubr.msk.f32.mxu1 %vm1166_vm0, %v1167_v6 }
 0x105   : > { %1065 = vmatprep.subr.bf16.mxu1 %v1165_v3 }
 0x108   : > { %1067 = vmatpush3.bf16.msra.mxu1 %v1240_v8 }
 0x109   : > { %1068 = vmatprep.subr.bf16.mxu1 %v1165_v3 }
 0x10c   : > { %1070 = vmatpush3.bf16.msra.mxu1 %v1051_v13 }
 0x10d   : > { %1071 = vmatprep.subr.bf16.mxu1 %v1165_v3 }
 0x110   : > { %1073 = vmatpush3.bf16.msra.mxu1 %v1054_v26 }
 0x1d6   : > { %v471_v55 = vpop.f32.mrb[0].mxu1 }
 0x1d7   : > { %v478_v56 = vrot.slane %v471_v55, %v477_v54  ;;  %v1013_v57 = vpop.f32.mrb[1].mxu1 }
 0x1d9   : > { %v479_v58 = vsub.f32 %v1259_v14, %v478_v56  ;;  %v480_v59 = vsub.f32 %v1261_v15, %v478_v56  ;;  %v481_v60 = vsub.f32 %v1263_v16, %v478_v56  ;;  %v482_v61 = vsub.f32 %v1273_v19, %v478_v56 }
 0x1da   : > { %v483_v62 = vsub.f32 %v288_v23, %v478_v56  ;;  %v484_v2 = vsub.f32 %v289_v27, %v478_v56  ;;  %v485_v7 = vsub.f32 %v290_v30, %v478_v56  ;;  %v486_v11 = vsub.f32 %v291_v33, %v478_v56 }
 0x1db   : > { %v487_v63 = vmul.f32 %v479_v58, %v479_v58  ;;  %v488_v0 = vmul.f32 %v480_v59, %v480_v59  ;;  %v489_v1 = vmul.f32 %v481_v60, %v481_v60  ;;  %v490_v3 = vmul.f32 %v482_v61, %v482_v61 }
 0x1dc   : > { %v491_v8 = vmul.f32 %v483_v62, %v483_v62  ;;  %v492_v12 = vmul.f32 %v484_v2, %v484_v2  ;;  %v493_v15 = vmul.f32 %v485_v7, %v485_v7  ;;  %v494_v18 = vmul.f32 %v486_v11, %v486_v11 }
 0x1dd   : > { %v495_v4 = vsel %vm292_vm1, %v487_v63, 0.0  ;;  %v496_v5 = vsel %vm292_vm1, %v488_v0, 0.0  ;;  %v498_v9 = vsel %vm292_vm1, %v489_v1, 0.0  ;;  %v500_v13 = vsel %vm292_vm1, %v490_v3, 0.0 }
 0x1de   : > { %v497_v6 = vadd.f32 %v496_v5, %v495_v4  ;;  %v502_v16 = vsel %vm292_vm1, %v491_v8, 0.0  ;;  %v504_v19 = vsel %vm292_vm1, %v492_v12, 0.0  ;;  %v506_v21 = vsel %vm292_vm1, %v493_v15, 0.0 }
 0x1df   : > { %v508_v23 = vsel %vm292_vm1, %v494_v18, 0.0 }
 0x1e0   : > { %v499_v10 = vadd.f32 %v498_v9, %v497_v6 }
 0x1e2   : > { %v501_v14 = vadd.f32 %v500_v13, %v499_v10 }
 0x1e4   : > { %v503_v17 = vadd.f32 %v502_v16, %v501_v14 }
 0x1e6   : > { %v505_v20 = vadd.f32 %v504_v19, %v503_v17 }
 0x1e8   : > { %v507_v22 = vadd.f32 %v506_v21, %v505_v20 }
 0x1ea   : > { %v509_v24 = vadd.f32 %v508_v23, %v507_v22 }
 0x1ec   : > { %v510_v25 = vrot.slane %v509_v24, 4 }
 0x1ee   : > { %v511_v26 = vadd.f32 %v510_v25, %v509_v24 }
 0x1f0   : > { %v512_v27 = vrot.slane %v511_v26, 2 }
 0x1f2   : > { %v513_v28 = vadd.f32 %v512_v27, %v511_v26 }
 0x1f4   : > { %v514_v29 = vrot.slane %v513_v28, 1 }
 0x1f6   : > { %v515_v30 = vadd.f32 %v514_v29, %v513_v28 }
 0x1f8   : > { %1031 = vmatmul.mubr.msk.f32.vlgmr.msra.gmra.mrb[2].mxu1 %vm292_vm1, %v515_v30 }
 0x2cb   : > { %v585_v31 = vpop.f32.mrb[2].mxu1 }
 0x2cc   : > { %v589_v32 = vmul.f32 0.0078125, %v585_v31  ;;  %v1032_v33 = vpop.f32.mrb[3].mxu1 }
 0x2ce   : > { %1042 = vmatmul.mubr.msk.f32.vlgmr.msra.gmra.mrb[2].mxu0 %vm401_vm2, %v589_v32 }
 0x3a1   : > { %v659_v34 = vpop.f32.mrb[2].mxu0 }
 0x3a2   : > { %v660_v35 = vadd.f32 1e-05, %v659_v34  ;;  %v1043_v36 = vpop.f32.mrb[3].mxu0 }
 0x3a4   : > { %1107 = vrsqrt.f32 %v660_v35 }
 0x3ae   : > { %v1108_v37 = vpop.eup %1107 }
 0x3af   : > { %v667_v38 = vrot.slane %v1108_v37, %v477_v54 }
 0x3b1   : > { %v668_v40 = vmul.f32 %v667_v38, %v479_v58  ;;  %v669_v41 = vmul.f32 %v667_v38, %v480_v59  ;;  %v670_v42 = vmul.f32 %v667_v38, %v481_v60  ;;  %v671_v43 = vmul.f32 %v667_v38, %v482_v61 }
 0x3b2   : > { %v672_v44 = vmul.f32 %v667_v38, %v483_v62  ;;  %v673_v45 = vmul.f32 %v667_v38, %v484_v2  ;;  %v674_v46 = vmul.f32 %v667_v38, %v485_v7  ;;  %v675_v47 = vmul.f32 %v667_v38, %v486_v11 }
 0x3b3   : > { %v683_v49 = vmul.f32 %v926_v39, %v668_v40  ;;  %v684_v50 = vmul.f32 %v926_v39, %v669_v41  ;;  %v685_v51 = vmul.f32 %v926_v39, %v670_v42  ;;  %v686_v52 = vmul.f32 %v926_v39, %v671_v43 }
 0x3b4   : > { %v687_v53 = vmul.f32 %v926_v39, %v672_v44  ;;  %v688_v54 = vmul.f32 %v926_v39, %v673_v45  ;;  %v689_v55 = vmul.f32 %v926_v39, %v674_v46  ;;  %v690_v56 = vmul.f32 %v926_v39, %v675_v47 }
 0x3b5   : > { %v698_v57 = vadd.f32 %v927_v48, %v683_v49  ;;  %v699_v58 = vadd.f32 %v927_v48, %v684_v50  ;;  %v700_v59 = vadd.f32 %v927_v48, %v685_v51  ;;  %v701_v60 = vadd.f32 %v927_v48, %v686_v52 }
 0x3b6   : > { %v702_v61 = vadd.f32 %v927_v48, %v687_v53  ;;  %v703_v62 = vadd.f32 %v927_v48, %v688_v54  ;;  %v1328_v63 = vadd.f32 %v927_v48, %v689_v55  ;;  %v1330_v3 = vadd.f32 %v927_v48, %v690_v56 }
 0x3b7   : > { %v928_v0 = vmul.f32 -1.442695, %v698_v57  ;;  %v929_v1 = vmul.f32 -1.442695, %v699_v58  ;;  %v930_v2 = vmul.f32 -1.442695, %v700_v59 }
 0x3b8   : > { %v931_v4 = vmul.f32 -1.442695, %v701_v60  ;;  %v932_v5 = vmul.f32 -1.442695, %v702_v61  ;;  %v933_v6 = vmul.f32 -1.442695, %v703_v62 }
 0x3b9   : > { %1109 = vpow2.f32 %v928_v0  ;;  %v934_v7 = vmul.f32 -1.442695, %v1328_v63  ;;  %v935_v8 = vmul.f32 -1.442695, %v1330_v3 }
 0x3ba   : > { %1111 = vpow2.f32 %v929_v1 }
 0x3bb   : > { %1113 = vpow2.f32 %v930_v2 }
 0x3bc   : > { %1115 = vpow2.f32 %v931_v4 }
 0x3bd   : > { %1117 = vpow2.f32 %v932_v5 }
 0x3be   : > { %1119 = vpow2.f32 %v933_v6 }
 0x3bf   : > { %1121 = vpow2.f32 %v934_v7 }
 0x3c0   : > { %1123 = vpow2.f32 %v935_v8 }
 0x3c3   : > { %v1110_v9 = vpop.eup %1109 }
 0x3c4   : > { %v1112_v10 = vpop.eup %1111  ;;  %v730_v11 = vadd.f32 1.0, %v1110_v9 }
 0x3c5   : > { %v1114_v12 = vpop.eup %1113  ;;  %v731_v13 = vadd.f32 1.0, %v1112_v10 }
 0x3c6   : > { %v1116_v14 = vpop.eup %1115  ;;  %v732_v15 = vadd.f32 1.0, %v1114_v12  ;;  %1125 = vrcp.f32 %v730_v11 }
 0x3c7   : > { %v1118_v16 = vpop.eup %1117  ;;  %v733_v17 = vadd.f32 1.0, %v1116_v14  ;;  %1127 = vrcp.f32 %v731_v13 }
 0x3c8   : > { %v1120_v18 = vpop.eup %1119  ;;  %v734_v19 = vadd.f32 1.0, %v1118_v16  ;;  %1129 = vrcp.f32 %v732_v15 }
 0x3c9   : > { %v1122_v20 = vpop.eup %1121  ;;  %v735_v21 = vadd.f32 1.0, %v1120_v18  ;;  %1131 = vrcp.f32 %v733_v17 }
 0x3ca   : > { %v1124_v22 = vpop.eup %1123  ;;  %v736_v23 = vadd.f32 1.0, %v1122_v20  ;;  %1133 = vrcp.f32 %v734_v19 }
 0x3cb   : > { %v737_v24 = vadd.f32 1.0, %v1124_v22  ;;  %1135 = vrcp.f32 %v735_v21 }
 0x3cc   : > { %1137 = vrcp.f32 %v736_v23 }
 0x3cd   : > { %1139 = vrcp.f32 %v737_v24 }
 0x3d0   : > { %v1126_v25 = vpop.eup %1125 }
 0x3d1   : > { %v1128_v26 = vpop.eup %1127  ;;  %v754_v27 = vmul.f32 %v1126_v25, %v698_v57 }
 0x3d2   : > { %v1130_v28 = vpop.eup %1129  ;;  %v755_v29 = vmul.f32 %v1128_v26, %v699_v58 }
 0x3d3   : > { %v1132_v30 = vpop.eup %1131  ;;  %v756_v31 = vmul.f32 %v1130_v28, %v700_v59  ;;  %v948_v32 = vpack.c.bf16 %v754_v27, %v754_v27 }
 0x3d4   : > { %v1134_v33 = vpop.eup %1133  ;;  %v757_v34 = vmul.f32 %v1132_v30, %v701_v60  ;;  %v949_v35 = vpack.c.bf16 %v755_v29, %v755_v29 }
 0x3d5   : > { %v1136_v36 = vpop.eup %1135  ;;  %v758_v37 = vmul.f32 %v1134_v33, %v702_v61  ;;  %v950_v38 = vpack.c.bf16 %v756_v31, %v756_v31  ;;  %795 = vst.msk [vmem:[%s283_s11] sm:$0xf] %vm794_vm3, %v948_v32 }
 0x3d6   : > { %v1138_v39 = vpop.eup %1137  ;;  %v759_v40 = vmul.f32 %v1136_v36, %v703_v62  ;;  %v951_v41 = vpack.c.bf16 %v757_v34, %v757_v34  ;;  %796 = vst.msk [vmem:[%s283_s11 + $0x4] sm:$0xf] %vm794_vm3, %v949_v35 }
 0x3d7   : > { %v1140_v42 = vpop.eup %1139  ;;  %v760_v43 = vmul.f32 %v1138_v39, %v1328_v63  ;;  %v952_v44 = vpack.c.bf16 %v758_v37, %v758_v37  ;;  %797 = vst.msk [vmem:[%s283_s11 + $0x8] sm:$0xf] %vm794_vm3, %v950_v38 }
 0x3d8   : > { %v761_v45 = vmul.f32 %v1140_v42, %v1330_v3  ;;  %v953_v46 = vpack.c.bf16 %v759_v40, %v759_v40  ;;  %798 = vst.msk [vmem:[%s283_s11 + $0xc] sm:$0xf] %vm794_vm3, %v951_v41 }
 0x3d9   : > { %v954_v47 = vpack.c.bf16 %v760_v43, %v760_v43  ;;  %799 = vst.msk [vmem:[%s283_s11 + $0x10] sm:$0xf] %vm794_vm3, %v952_v44 }
 0x3da   : > { %v955_v48 = vpack.c.bf16 %v761_v45, %v761_v45  ;;  %800 = vst.msk [vmem:[%s283_s11 + $0x14] sm:$0xf] %vm794_vm3, %v953_v46 }
 0x3db   : > { %801 = vst.msk [vmem:[%s283_s11 + $0x18] sm:$0xf] %vm794_vm3, %v954_v47 }
 0x3dc   : > { %802 = vst.msk [vmem:[%s283_s11 + $0x1c] sm:$0xf] %vm794_vm3, %v955_v48 }
 0x3dd PF: > { %s15_s20 = sadd.s32 1, %s1163_s20   ;;  %s1363_s18 = smov %s1159_s19 }
 0x3de   : > { %p12_p5 = scmp.ge.s32.totalorder %s15_s20, 4   ;;  %s1364_s19 = smov %s1366_s21 }
 0x3e0   :  { %14 = sbr.rel (!%p12_p5) target bundleno = 2 (0x2), region = 76 }

// kernel: upsample_block_forward.15
= control target key start
LH: loop header
LB: loop body
LE: loop exit
PB: predicated region body
PF: predicated region fallthrough
CT: control target
= control target key end

     0   :  { %s2689_s12 = smov 0   ;;  %s2691_s13 = smov 0   ;;  %s3271_s0 = inlined_call_operand.vmem [shape: bf16[2,1,110,64], index: 0, kind: input, shape index: {}]   ;;  %s3272_s1 = inlined_call_operand.vmem [shape: bf16[9,64,32], index: 1, kind: input, shape index: {}]   ;;  %s3273_s2 = inlined_call_operand.vmem [shape: f32[1,32], index: 2, kind: input, shape index: {}]   ;;  %s3274_s3 = inlined_call_operand.vmem [shape: bf16[2,8,8,32], index: 3, kind: output, shape index: {}]  }
   0x1   :  { %s2693_s14 = smov 0  }
   0x2 LB: > { %s32_s15 = sadd.s32 1, %s2661_s13  ;;  %p2003_p0 = scmp.ge.s32.totalorder %s2665_s14, 1  ;;  %s2665_s14 = sphi %s2693_s14, %s13_s14   ;;  %s2661_s13 = sphi %s2691_s13, %s3282_s13   ;;  %s2657_s12 = sphi %s2689_s12, %s3281_s12  }
   0x3   : > { %p34_p1 = scmp.ge.s32.totalorder %s32_s15, 2  ;;  %p183_p2 = scmp.lt.s32.totalorder %s2665_s14, 3 }
   0x5   : > { %s3284_s15 = smov (%p34_p1, %s32_s15), 0  ;;  %p184_p3 = pnand %p2003_p0, %p183_p2 }
   0x6   : > { %v2584_v0 = vld [vmem:[%s3272_s1 + $0x20] sm:$0xff] (!%p184_p3)   ;;  %v2667_v1 = vmov (!%p184_p3), 0.0   ;;  %v2585_v2 = vld [vmem:[%s3272_s1 + $0x28] sm:$0xff] (!%p184_p3)   ;;  %p225_p4 = scmp.lt.s32.totalorder (!%p184_p3), %s2657_s12, 1  ;;  %vm2668_vm0 = vmmov (!%p184_p3), 0   ;;  %v2586_v3 = vld [vmem:[%s3272_s1 + $0x30] sm:$0xff] (!%p184_p3)  }
   0x7   : > { %187 = sbr.rel (%p184_p3) target bundleno = 428 (0x1ac), region = 32  ;;  %2549 = vmatprep.subr.bf16.mxu1 (!%p184_p3), %v2667_v1  ;;  %2297 = vmatprep.subr.bf16.mxu0 (!%p184_p3), %v2667_v1  ;;  %v2587_v4 = vld [vmem:[%s3272_s1 + $0x38] sm:$0xff] (!%p184_p3)   ;;  %vm311_vm1 = vsmask.f32 (!%p184_p3), 7424  ;;  %vm380_vm2 = vcmask (!%p184_p3), 523264   ;;  %v2590_v21 = vld [vmem:[%s3272_s1] sm:$0xff] (!%p184_p3)  }
   0x8   : > { %2553 = vmatpush3.bf16.msra.mxu1 (!%p184_p3), %v2584_v0  ;;  %2298 = vmatpush3.bf16.msra.mxu0 (!%p184_p3), %v2584_v0  ;;  %v2595_v28 = vld [vmem:[%s3272_s1 + $0x40] sm:$0xff] (!%p184_p3)   ;;  %v2591_v31 = vld [vmem:[%s3272_s1 + $0x8] sm:$0xff] (!%p184_p3)   ;;  %v2596_v35 = vld [vmem:[%s3272_s1 + $0x10] sm:$0xff] (!%p184_p3)   ;;  %vm589_vm3 = vcmask (!%p184_p3), 1046528   ;;  %vm917_vm4 = vsmask.f32 (!%p184_p3), 6400 }
   0x9   : > { %2550 = vmatprep.subr.bf16.mxu1 (!%p184_p3), %v2667_v1  ;;  %2299 = vmatprep.subr.bf16.mxu0 (!%p184_p3), %v2667_v1  ;;  %v2597_v36 = vld [vmem:[%s3272_s1 + $0x48] sm:$0xff] (!%p184_p3)   ;;  %v2599_v43 = vld [vmem:[%s3272_s1 + $0x50] sm:$0xff] (!%p184_p3)   ;;  %v2600_v47 = vld [vmem:[%s3272_s1 + $0x18] sm:$0xff] (!%p184_p3)   ;;  %vm1106_vm5 = vcmask (!%p184_p3), 1045504   ;;  %vm1623_vm6 = vcmask (!%p184_p3), 1044480   ;;  %vm1775_vm8 = vcmask (!%p184_p3), 257024  }
   0xa   : > { %2313 = vmatprep.mubr.msk.bf16.mxu1 (!%p184_p3), %vm2668_vm0, %v2667_v1  ;;  %2305 = vmatprep.mubr.msk.bf16.mxu0 (!%p184_p3), %vm2668_vm0, %v2667_v1  ;;  %v2601_v48 = vld [vmem:[%s3272_s1 + $0x58] sm:$0xff] (!%p184_p3)   ;;  %v2604_v53 = vld [vmem:[%s3272_s1 + $0x80] sm:$0xff] (!%p184_p3)   ;;  %v2606_v55 = vld [vmem:[%s3272_s1 + $0x88] sm:$0xff] (!%p184_p3)   ;;  %vm1434_vm7 = vsmask.f32 (!%p184_p3), 5376  ;;  %vm1783_vm9 = vcmask (!%p184_p3), 1042432  }
   0xb   : > { %v2603_v56 = vld [vmem:[%s3272_s1 + $0x60] sm:$0xff] (!%p184_p3)   ;;  %v2608_v60 = vld [vmem:[%s3272_s1 + $0x90] sm:$0xff] (!%p184_p3)   ;;  %v2605_v0 = vld [vmem:[%s3272_s1 + $0x68] sm:$0xff] (!%p184_p3)   ;;  %vm1784_vm10 = vcmask (!%p184_p3), 1046532   ;;  %vm1799_vm11 = vcmask (!%p184_p3), 1041408   ;;  %vm1800_vm12 = vcmask (!%p184_p3), 1045508  }
   0xc   : > { %2554 = vmatpush3.bf16.msra.mxu1 (!%p184_p3), %v2585_v2  ;;  %2300 = vmatpush3.bf16.msra.mxu0 (!%p184_p3), %v2585_v2  ;;  %vm3212_vm13 = vmor (!%p184_p3), %vm1783_vm9, %vm1784_vm10  ;;  %vm1815_vm15 = vcmask (!%p184_p3), 1040384  }
   0xd   : > { %2551 = vmatprep.subr.bf16.mxu1 (!%p184_p3), %v2667_v1  ;;  %2301 = vmatprep.subr.bf16.mxu0 (!%p184_p3), %v2667_v1  ;;  %vm3217_vm14 = vmor (!%p184_p3), %vm1799_vm11, %vm1800_vm12 }
   0xe   : > { %s3286_s12 = smov (!%p225_p4, %s2657_s12), 1 }
   0xf   : > { %s2557_s22 = smul.u32 56, %s3286_s12  ;;  %s2203_s26 = sshll.u32 %s3286_s12, 5 }
  0x10   : > { %2555 = vmatpush3.bf16.msra.mxu1 %v2586_v3  ;;  %2302 = vmatpush3.bf16.msra.mxu0 %v2586_v3  ;;  %s3203_s30 = scalar_lea.vmem %s3274_s3, %s2203_s26 }
  0x11   : > { %s2735_s27 = scalar_lea.vmem %s3271_s0, %s2557_s22  ;;  %2552 = vmatprep.subr.bf16.mxu1 %v2667_v1  ;;  %2303 = vmatprep.subr.bf16.mxu0 %v2667_v1 }
  0x12   : > { %v2738_v5 = vld [vmem:[%s2735_s27 + $0x10] sm:$0xff]   ;;  %v2741_v6 = vld [vmem:[%s2735_s27 + $0x18] sm:$0xff]   ;;  %v255_v7 = vld [vmem:[%s2735_s27] sm:$0xf] }
  0x13   : > { %v2747_v8 = vld [vmem:[%s2735_s27 + $0x4] sm:$0xf]  ;;  %v328_v9 = vshll.u32 %v2738_v5, 16  ;;  %v332_v10 = vshrl.u32 %v2738_v5, 16  ;;  %v336_v11 = vshll.u32 %v2741_v6, 16  ;;  %v2756_v13 = vld [vmem:[%s2735_s27 + $0x8] sm:$0xff]  }
  0x14   : > { %v2753_v12 = vcombine.low %v255_v7, %v2747_v8  ;;  %v2759_v14 = vld [vmem:[%s2735_s27 + $0x20] sm:$0xff]   ;;  %2556 = vmatpush3.bf16.msra.mxu1 %v2587_v4  ;;  %2304 = vmatpush3.bf16.msra.mxu0 %v2587_v4  ;;  %v320_v19 = vshll.u32 %v2756_v13, 16  ;;  %v340_v23 = vshrl.u32 %v2741_v6, 16  ;;  %v324_v29 = vshrl.u32 %v2756_v13, 16  ;;  %v2610_v7 = vld [vmem:[%s3272_s1 + $0x98] sm:$0xff]  }
  0x15   : > { %v330_v15 = vrot.slane %v328_v9, 1  ;;  %v338_v16 = vrot.slane %v336_v11, 1  ;;  %2325 = vmatprep.subr.bf16.mxu1 %v2667_v1  ;;  %2353 = vmatprep.subr.bf16.mxu0 %v2667_v1  ;;  %v344_v24 = vshll.u32 %v2759_v14, 16  ;;  %v2778_v30 = vld [vmem:[%s2735_s27 + $0x28] ss:$0 sps:$4 sm:$0x11]  }
  0x16   : > { %v313_v17 = vshrl.u32 %v2753_v12, 16  ;;  %v315_v18 = vshll.u32 %v2753_v12, 16  ;;  %v322_v25 = vrot.slane %v320_v19, 1  ;;  %v576_v38 = vld [vmem:[%s2735_s27] sm:$0xe]  ;;  %v348_v40 = vshrl.u32 %v2759_v14, 16 }
  0x17   : > { %v334_v20 = vor.u32 %v332_v10, %v330_v15  ;;  %v342_v33 = vor.u32 %v340_v23, %v338_v16  ;;  %v346_v34 = vrot.slane %v344_v24, 1  ;;  %v352_v41 = vshll.u32 %v2778_v30, 16  ;;  %v2845_v57 = vld [vmem:[%s2735_s27 + $0x1c] sm:$0xff]   ;;  %v2848_v58 = vld [vmem:[%s2735_s27 + $0x24] sm:$0xff]   ;;  %v2607_v9 = vld [vmem:[%s3272_s1 + $0x70] sm:$0xff]  }
  0x18   : > { %v317_v22 = vrot.slane %v315_v18, 1  ;;  %v326_v37 = vor.u32 %v324_v29, %v322_v25  ;;  %v2047_v44 = vcombine.low %v576_v38, %v2747_v8  ;;  %v591_v50 = vrot.slane %v2756_v13, 1  ;;  %v2623_v63 = vld [vmem:[%s2735_s27 + $0x2c] ss:$0 sps:$4 sm:$0x11]  }
  0x19   : > { %v339_v26 = vsel %vm311_vm1, %v334_v20, %v338_v16  ;;  %v347_v39 = vsel %vm311_vm1, %v342_v33, %v346_v34  ;;  %v350_v45 = vor.u32 %v348_v40, %v346_v34  ;;  %v354_v46 = vrot.slane %v352_v41, 1  ;;  %v2908_v18 = vld [vmem:[%s2735_s27 + $0xc] sm:$0xff]  }
  0x1a   : > { %v318_v27 = vor.u32 %v317_v22, %v313_v17  ;;  %2314 = vmatmul.mubr.msk.bf16.vlgmr.msra.gmra.mrb[0].mxu1 %vm380_vm2, %v339_v26  ;;  %v331_v42 = vsel %vm311_vm1, %v326_v37, %v330_v15  ;;  %v590_v49 = vrot.slane %v2047_v44, 1  ;;  %v593_v54 = vrot.slane %v2738_v5, 1  ;;  %v2902_v15 = vld [vmem:[%s2735_s27 + $0x8] sm:$0xf] }
  0x1b   : > { %2326 = vmatpush3.bf16.msra.mxu1 %v2590_v21  ;;  %2317 = vmatprep.mubr.msk.bf16.mxu1 %vm2668_vm0, %v2667_v1  ;;  %v355_v51 = vsel %vm311_vm1, %v350_v45, %v354_v46  ;;  %v776_v61 = vrot.slane %v2845_v57, 1  ;;  %v778_v62 = vrot.slane %v2848_v58, 1  ;;  %v780_v3 = vrot.slane %v2623_v63, 1  ;;  %v2620_v46 = vld [vmem:[%s3272_s1 + $0xd0] sm:$0xff]  }
  0x1c   : > { %v323_v32 = vsel %vm311_vm1, %v318_v27, %v322_v25  ;;  %2327 = vmatprep.subr.bf16.mxu1 %v2667_v1  ;;  %v592_v52 = vsel %vm589_vm3, %v590_v49, %v591_v50  ;;  %v594_v59 = vsel %vm589_vm3, %v591_v50, %v593_v54  ;;  %v595_v4 = vrot.slane %v2741_v6, 1 }
  0x1d   : > { %2306 = vmatmul.mubr.msk.bf16.vlgmr.msra.gmra.mrb[0].mxu0 %vm380_vm2, %v323_v32  ;;  %v2868_v2 = vsel %vm589_vm3, %v776_v61, %v778_v62  ;;  %v2880_v8 = vsel %vm589_vm3, %v778_v62, %v780_v3  ;;  %v597_v11 = vrot.slane %v2759_v14, 1  ;;  %v599_v19 = vrot.slane %v2778_v30, 1  ;;  %v2622_v62 = vld [vmem:[%s3272_s1 + $0xb8] sm:$0xff]  }
  0x1e   : > { %2354 = vmatpush3.bf16.msra.mxu0 %v2595_v28  ;;  %2309 = vmatprep.mubr.msk.bf16.mxu0 %vm2668_vm0, %v2667_v1  ;;  %v596_v10 = vsel %vm589_vm3, %v593_v54, %v595_v4  ;;  %v927_v22 = vshrl.u32 %v2908_v18, 16  ;;  %v930_v23 = vshll.u32 %v2908_v18, 16  ;;  %v2922_v28 = vld [vmem:[%s2735_s27 + $0x14] sm:$0xff]   ;;  %v772_v37 = vrot.slane %v2908_v18, 1 }
  0x1f   : > { %2355 = vmatprep.subr.bf16.mxu0 %v2667_v1  ;;  %2328 = vmatpush3.bf16.msra.mxu1 %v2591_v31  ;;  %v598_v16 = vsel %vm589_vm3, %v595_v4, %v597_v11  ;;  %v600_v24 = vsel %vm589_vm3, %v597_v11, %v599_v19  ;;  %v936_v31 = vshrl.u32 %v2922_v28, 16  ;;  %v939_v32 = vshll.u32 %v2922_v28, 16  ;;  %v2619_v54 = vld [vmem:[%s3272_s1 + $0xb0] sm:$0xff]   ;;  %v1093_v19 = vld [vmem:[%s2735_s27 + $0x4] sm:$0xc] }
  0x20   : > { %2329 = vmatprep.subr.bf16.mxu1 %v2667_v1  ;;  %v929_v26 = vrot.slane %v927_v22, 1  ;;  %v932_v27 = vrot.slane %v930_v23, 2  ;;  %v945_v40 = vshrl.u32 %v2845_v57, 16  ;;  %v954_v50 = vshrl.u32 %v2848_v58, 16 }
  0x21   : > { %v938_v34 = vrot.slane %v936_v31, 1  ;;  %v2106_v22 = vcombine.low %v1093_v19, %v2902_v15  ;;  %v1110_v31 = vrot.slane %v2922_v28, 2 }
  0x22   : > { %2356 = vmatpush3.bf16.msra.mxu0 %v2597_v36  ;;  %2318 = vmatmul.mubr.msk.bf16.gmra.mrb[4].mxu1 %vm380_vm2, %v347_v39  ;;  %v933_v30 = vor.u32 %v932_v27, %v929_v26  ;;  %v2617_v39 = vld [vmem:[%s3272_s1 + $0xc8] sm:$0xff]   ;;  %v947_v44 = vrot.slane %v945_v40, 1 }
  0x23   : > { %2357 = vmatprep.subr.bf16.mxu0 %v2667_v1  ;;  %2330 = vmatpush3.bf16.msra.mxu1 %v2596_v35  ;;  %v941_v35 = vrot.slane %v939_v32, 2  ;;  %v2633_v26 = vld [vmem:[%s3272_s1 + $0x108] sm:$0xff]  }
  0x24   : > { %2321 = vmatprep.mubr.msk.bf16.mxu1 %vm2668_vm0, %v2667_v1  ;;  %2331 = vmatprep.subr.bf16.mxu1 %v2667_v1  ;;  %v2632_v32 = vld [vmem:[%s3272_s1 + $0xe8] sm:$0xff]  }
  0x25   : > { %2310 = vmatmul.mubr.msk.bf16.gmra.mrb[4].mxu0 %vm380_vm2, %v331_v42  ;;  %v942_v38 = vor.u32 %v941_v35, %v938_v34  ;;  %v2613_v42 = vld [vmem:[%s3272_s1 + $0xa0] sm:$0xff]   ;;  %v2635_v34 = vld [vmem:[%s3272_s1 + $0xf0] sm:$0xff]  }
  0x26   : > { %2358 = vmatpush3.bf16.msra.mxu0 %v2599_v43  ;;  %2361 = vmatprep.mubr.msk.bf16.mxu0 %vm2668_vm0, %v2667_v1 }
  0x27   : > { %2359 = vmatprep.subr.bf16.mxu0 %v2667_v1  ;;  %2332 = vmatpush3.bf16.msra.mxu1 %v2600_v47  ;;  %v943_v43 = vsel %vm917_vm4, %v933_v30, %v942_v38  ;;  %v774_v47 = vrot.slane %v2922_v28, 1 }
  0x28   : > { %2381 = vmatprep.subr.bf16.mxu1 %v2667_v1 }
  0x29   : > { %v777_v4 = vsel %vm589_vm3, %v774_v47, %v776_v61  ;;  %v1240_v61 = vld [vmem:[%s2735_s27 + $0x8] sm:$0xc] }
  0x2a   : > { %2360 = vmatpush3.bf16.msra.mxu0 %v2601_v48  ;;  %2322 = vmatmul.mubr.msk.bf16.gmra.mrb[8].mxu1 %vm380_vm2, %v355_v51  ;;  %v2616_v48 = vld [vmem:[%s3272_s1 + $0xa8] sm:$0xff]   ;;  %v957_v51 = vshll.u32 %v2848_v58, 16 }
  0x2b   : > { %2409 = vmatprep.subr.bf16.mxu0 %v2667_v1  ;;  %2333 = vmatprep.mubr.msk.bf16.mxu1 %vm2668_vm0, %v2667_v1 }
  0x2d   : > { %2362 = vmatmul.mubr.msk.bf16.vlgmr.msra.gmra.mrb[8].mxu0 %vm380_vm2, %v592_v52  ;;  %v2625_v52 = vld [vmem:[%s3272_s1 + $0xd8] sm:$0xff]  }
  0x2e   : > { %2410 = vmatpush3.bf16.msra.mxu0 %v2604_v53  ;;  %2365 = vmatprep.mubr.msk.bf16.mxu0 %vm2668_vm0, %v2667_v1  ;;  %v775_v53 = vsel %vm589_vm3, %v772_v37, %v774_v47 }
  0x2f   : > { %2411 = vmatprep.subr.bf16.mxu0 %v2667_v1 }
  0x32   : > { %2412 = vmatpush3.bf16.msra.mxu0 %v2606_v55  ;;  %2334 = vmatmul.mubr.msk.bf16.vlgmr.msra.gmra.mrb[12].mxu1 %vm380_vm2, %v2753_v12  ;;  %v2609_v12 = vld [vmem:[%s3272_s1 + $0x78] sm:$0xff]  }
  0x33   : > { %2413 = vmatprep.subr.bf16.mxu0 %v2667_v1  ;;  %2382 = vmatpush3.bf16.msra.mxu1 %v2603_v56  ;;  %v956_v56 = vrot.slane %v954_v50, 1 }
  0x34   : > { %2337 = vmatprep.mubr.msk.bf16.mxu1 %vm2668_vm0, %v2667_v1  ;;  %2383 = vmatprep.subr.bf16.mxu1 %v2667_v1 }
  0x35   : > { %2366 = vmatmul.mubr.msk.bf16.gmra.mrb[12].mxu0 %vm380_vm2, %v594_v59  ;;  %v959_v59 = vrot.slane %v957_v51, 2 }
  0x36   : > { %2369 = vmatprep.mubr.msk.bf16.mxu0 %vm2668_vm0, %v2667_v1  ;;  %2414 = vmatpush3.bf16.msra.mxu0 %v2608_v60  ;;  %v2984_v60 = vld [vmem:[%s2735_s27 + $0x2c] ss:$0 sps:$4 sm:$0x33]  }
  0x37   : > { %2415 = vmatprep.subr.bf16.mxu0 %v2667_v1  ;;  %2384 = vmatpush3.bf16.msra.mxu1 %v2605_v0  ;;  %v960_v63 = vor.u32 %v959_v59, %v956_v56  ;;  %v963_v0 = vshrl.u32 %v2984_v60, 16  ;;  %v966_v3 = vshll.u32 %v2984_v60, 16  ;;  %v1116_v47 = vrot.slane %v2984_v60, 2 }
  0x38   : > { %2385 = vmatprep.subr.bf16.mxu1 %v2667_v1 }
  0x3a   : > { %2416 = vmatpush3.bf16.msra.mxu0 %v2610_v7  ;;  %2338 = vmatmul.mubr.msk.bf16.gmra.mrb[16].mxu1 %vm380_vm2, %v2756_v13  ;;  %v723_v13 = vld [vmem:[%s2735_s27 + $0x4] sm:$0xe] }
  0x3b   : > { %2465 = vmatprep.subr.bf16.mxu0 %v2667_v1  ;;  %2341 = vmatprep.mubr.msk.bf16.mxu1 %vm2668_vm0, %v2667_v1  ;;  %v2065_v17 = vcombine.low %v723_v13, %v2902_v15 }
  0x3c   : > { %2386 = vmatpush3.bf16.msra.mxu1 %v2607_v9  ;;  %v965_v9 = vrot.slane %v963_v0, 1 }
  0x3d   : > { %2370 = vmatmul.mubr.msk.bf16.gmra.mrb[16].mxu0 %vm380_vm2, %v596_v10  ;;  %2387 = vmatprep.subr.bf16.mxu1 %v2667_v1  ;;  %v919_v20 = vshrl.u32 %v2065_v17, 16  ;;  %v922_v21 = vshll.u32 %v2065_v17, 16  ;;  %v771_v36 = vrot.slane %v2065_v17, 1  ;;  %v968_v10 = vrot.slane %v966_v3, 2  ;;  %v3019_v17 = vld [vmem:[%s2735_s27 + $0x10] sm:$0xff]  }
  0x3e   : > { %2373 = vmatprep.mubr.msk.bf16.mxu0 %vm2668_vm0, %v2667_v1  ;;  %v1447_v50 = vshll.u32 %v3019_v17, 16 }
  0x3f   : > { %v921_v25 = vrot.slane %v919_v20, 1  ;;  %v773_v41 = vsel %vm589_vm3, %v771_v36, %v772_v37  ;;  %v969_v11 = vor.u32 %v968_v10, %v965_v9  ;;  %v3087_v36 = vld [vmem:[%s2735_s27 + $0x28] sm:$0xff]   ;;  %v1112_v37 = vrot.slane %v2845_v57, 2 }
  0x40   : > { %2388 = vmatpush3.bf16.msra.mxu1 %v2609_v12  ;;  %v3012_v12 = vld [vmem:[%s2735_s27 + $0xc] sm:$0xf]  ;;  %v1449_v59 = vrot.slane %v1447_v50, 3 }
  0x41   : > { %2437 = vmatprep.subr.bf16.mxu1 %v2667_v1  ;;  %v970_v13 = vsel %vm917_vm4, %v960_v63, %v969_v11  ;;  %v1113_v40 = vsel %vm1106_vm5, %v1110_v31, %v1112_v37 }
  0x42   : > { %2342 = vmatmul.mubr.msk.bf16.gmra.mrb[20].mxu1 %vm380_vm2, %v2738_v5  ;;  %v924_v5 = vrot.slane %v922_v21, 2  ;;  %v1289_v21 = vrot.slane %v3019_v17, 2 }
  0x43   : > { %2345 = vmatprep.mubr.msk.bf16.mxu1 %vm2668_vm0, %v2667_v1 }
  0x44   : > { %v925_v29 = vor.u32 %v924_v5, %v921_v25  ;;  %v1107_v25 = vrot.slane %v2106_v22, 2  ;;  %v1108_v5 = vrot.slane %v2908_v18, 2  ;;  %v2629_v18 = vld [vmem:[%s3272_s1 + $0xe0] sm:$0xff]  }
  0x45   : > { %2374 = vmatmul.mubr.msk.bf16.gmra.mrb[20].mxu0 %vm380_vm2, %v598_v16  ;;  %v3016_v16 = vcombine.low %v1240_v61, %v3012_v12 }
  0x46   : > { %2377 = vmatprep.mubr.msk.bf16.mxu0 %vm2668_vm0, %v2667_v1  ;;  %v934_v33 = vsel %vm917_vm4, %v925_v29, %v933_v30  ;;  %v3058_v29 = vld [vmem:[%s2735_s27 + $0x20] sm:$0xff]   ;;  %v2636_v30 = vld [vmem:[%s3272_s1 + $0x110] sm:$0xff]   ;;  %v1111_v28 = vsel %vm1106_vm5, %v1108_v5, %v1110_v31 }
  0x47   : > { %v1288_v20 = vrot.slane %v3016_v16, 2 }
  0x49   : > { %v1290_v23 = vsel %vm1106_vm5, %v1288_v20, %v1289_v21 }
  0x4a   : > { %2346 = vmatmul.mubr.msk.bf16.gmra.mrb[24].mxu1 %vm380_vm2, %v2741_v6  ;;  %v2614_v6 = vld [vmem:[%s3272_s1 + $0xc0] sm:$0xff]  }
  0x4b   : > { %2349 = vmatprep.mubr.msk.bf16.mxu1 %vm2668_vm0, %v2667_v1 }
  0x4d   : > { %2378 = vmatmul.mubr.msk.bf16.gmra.mrb[24].mxu0 %vm380_vm2, %v600_v24  ;;  %v3037_v24 = vld [vmem:[%s2735_s27 + $0x18] sm:$0xff]  }
  0x4e   : > { %2417 = vmatprep.mubr.msk.bf16.mxu0 %vm2668_vm0, %v2667_v1  ;;  %v1291_v15 = vrot.slane %v3037_v24, 2  ;;  %v1453_v0 = vshrl.u32 %v3037_v24, 16  ;;  %v1456_v3 = vshll.u32 %v3037_v24, 16 }
  0x50   : > { %v1292_v27 = vsel %vm1106_vm5, %v1289_v21, %v1291_v15  ;;  %v1455_v9 = vrot.slane %v1453_v0, 2  ;;  %v1458_v10 = vrot.slane %v1456_v3, 3 }
  0x52   : > { %2350 = vmatmul.mubr.msk.bf16.gmra.mrb[28].mxu1 %vm380_vm2, %v2759_v14  ;;  %v948_v14 = vshll.u32 %v2845_v57, 16  ;;  %v1459_v61 = vor.u32 %v1458_v10, %v1455_v9 }
  0x53   : > { %2389 = vmatprep.mubr.msk.bf16.mxu1 %vm2668_vm0, %v2667_v1 }
  0x54   : > { %v950_v45 = vrot.slane %v948_v14, 2  ;;  %v2639_v14 = vld [vmem:[%s2735_s27 + $0x30] ss:$0 sps:$4 sm:$0x33]  }
  0x55   : > { %2418 = vmatmul.mubr.msk.bf16.vlgmr.msra.gmra.mrb[28].mxu0 %vm380_vm2, %v934_v33  ;;  %v1293_v33 = vrot.slane %v3058_v29, 2 }
  0x56   : > { %2466 = vmatpush3.bf16.msra.mxu0 %v2614_v6  ;;  %2421 = vmatprep.mubr.msk.bf16.mxu0 %vm2668_vm0, %v2667_v1  ;;  %v951_v49 = vor.u32 %v950_v45, %v947_v44  ;;  %v2640_v6 = vld [vmem:[%s3272_s1 + $0x118] sm:$0xff]  }
  0x57   : > { %2467 = vmatprep.subr.bf16.mxu0 %v2667_v1  ;;  %v1294_v35 = vsel %vm1106_vm5, %v1291_v15, %v1293_v33 }
  0x58   : > { %v952_v55 = vsel %vm917_vm4, %v942_v38, %v951_v49  ;;  %v961_v7 = vsel %vm917_vm4, %v951_v49, %v960_v63  ;;  %v2638_v38 = vld [vmem:[%s3272_s1 + $0xf8] sm:$0xff]   ;;  %v1444_v49 = vshrl.u32 %v3019_v17, 16 }
  0x5a   : > { %2468 = vmatpush3.bf16.msra.mxu0 %v2617_v39  ;;  %2390 = vmatmul.mubr.msk.bf16.vlgmr.msra.gmra.mrb[32].mxu1 %vm380_vm2, %v773_v41  ;;  %v1295_v39 = vrot.slane %v3087_v36, 2  ;;  %v1114_v41 = vrot.slane %v2848_v58, 2  ;;  %v1436_v58 = vshrl.u32 %v3016_v16, 16  ;;  %v1446_v56 = vrot.slane %v1444_v49, 2 }
  0x5b   : > { %2469 = vmatprep.subr.bf16.mxu0 %v2667_v1  ;;  %2438 = vmatpush3.bf16.msra.mxu1 %v2613_v42  ;;  %v1297_v42 = vrot.slane %v2639_v14, 2 }
  0x5c   : > { %2393 = vmatprep.mubr.msk.bf16.mxu1 %vm2668_vm0, %v2667_v1  ;;  %2439 = vmatprep.subr.bf16.mxu1 %v2667_v1  ;;  %v1296_v57 = vsel %vm1106_vm5, %v1293_v33, %v1295_v39  ;;  %v1115_v44 = vsel %vm1106_vm5, %v1112_v37, %v1114_v41  ;;  %v1450_v63 = vor.u32 %v1449_v59, %v1446_v56 }
  0x5d   : > { %2422 = vmatmul.mubr.msk.bf16.gmra.mrb[32].mxu0 %vm380_vm2, %v943_v43  ;;  %v1610_v43 = vld [vmem:[%s2735_s27 + $0x8] sm:$0x8]  ;;  %v1298_v45 = vsel %vm1106_vm5, %v1295_v39, %v1297_v42 }
  0x5e   : > { %2425 = vmatprep.mubr.msk.bf16.mxu0 %vm2668_vm0, %v2667_v1  ;;  %2470 = vmatpush3.bf16.msra.mxu0 %v2620_v46  ;;  %v2165_v46 = vcombine.low %v1610_v43, %v3012_v12  ;;  %v1462_v12 = vshrl.u32 %v3058_v29, 16 }
  0x5f   : > { %2471 = vmatprep.subr.bf16.mxu0 %v2667_v1  ;;  %2440 = vmatpush3.bf16.msra.mxu1 %v2616_v48  ;;  %v1439_v48 = vshll.u32 %v3016_v16, 16  ;;  %v1629_v16 = vrot.slane %v3058_v29, 3 }
  0x60   : > { %2441 = vmatprep.subr.bf16.mxu1 %v2667_v1  ;;  %v1624_v51 = vrot.slane %v2165_v46, 3  ;;  %v1464_v19 = vrot.slane %v1462_v12, 2 }
  0x62   : > { %2472 = vmatpush3.bf16.msra.mxu0 %v2625_v52  ;;  %2394 = vmatmul.mubr.msk.bf16.gmra.mrb[36].mxu1 %vm380_vm2, %v775_v53  ;;  %v1625_v52 = vrot.slane %v3019_v17, 3  ;;  %v1117_v53 = vsel %vm1106_vm5, %v1114_v41, %v1116_v47  ;;  %v1460_v17 = vsel %vm1434_vm7, %v1450_v63, %v1459_v61 }
  0x63   : > { %2521 = vmatprep.subr.bf16.mxu0 %v2667_v1  ;;  %2397 = vmatprep.mubr.msk.bf16.mxu1 %vm2668_vm0, %v2667_v1 }
  0x64   : > { %2442 = vmatpush3.bf16.msra.mxu1 %v2619_v54  ;;  %v1438_v54 = vrot.slane %v1436_v58, 2  ;;  %v1626_v60 = vsel %vm1623_vm6, %v1624_v51, %v1625_v52 }
  0x65   : > { %2426 = vmatmul.mubr.msk.bf16.gmra.mrb[36].mxu0 %vm380_vm2, %v952_v55  ;;  %2443 = vmatprep.subr.bf16.mxu1 %v2667_v1  ;;  %v1441_v55 = vrot.slane %v1439_v48, 3 }
  0x66   : > { %2429 = vmatprep.mubr.msk.bf16.mxu0 %vm2668_vm0, %v2667_v1 }
  0x68   : > { %2444 = vmatpush3.bf16.msra.mxu1 %v2622_v62  ;;  %v1442_v62 = vor.u32 %v1441_v55, %v1438_v54 }
  0x69   : > { %2493 = vmatprep.subr.bf16.mxu1 %v2667_v1 }
  0x6a   : > { %2398 = vmatmul.mubr.msk.bf16.gmra.mrb[40].mxu1 %vm380_vm2, %v777_v4  ;;  %v1627_v4 = vrot.slane %v3037_v24, 3  ;;  %v1631_v24 = vrot.slane %v3087_v36, 3 }
  0x6b   : > { %2401 = vmatprep.mubr.msk.bf16.mxu1 %vm2668_vm0, %v2667_v1 }
  0x6c   : > { %v1628_v11 = vsel %vm1623_vm6, %v1625_v52, %v1627_v4  ;;  %v1630_v21 = vsel %vm1623_vm6, %v1627_v4, %v1629_v16 }
  0x6d   : > { %2430 = vmatmul.mubr.msk.bf16.gmra.mrb[40].mxu0 %vm380_vm2, %v961_v7  ;;  %v1451_v7 = vsel %vm1434_vm7, %v1442_v62, %v1450_v63 }
  0x6e   : > { %2433 = vmatprep.mubr.msk.bf16.mxu0 %vm2668_vm0, %v2667_v1 }
  0x72   : > { %2402 = vmatmul.mubr.msk.bf16.gmra.mrb[44].mxu1 %vm380_vm2, %v2868_v2  ;;  %v2630_v2 = vld [vmem:[%s3272_s1 + $0x100] sm:$0xff]  }
  0x73   : > { %2405 = vmatprep.mubr.msk.bf16.mxu1 %vm2668_vm0, %v2667_v1 }
  0x75   : > { %2434 = vmatmul.mubr.msk.bf16.gmra.mrb[44].mxu0 %vm380_vm2, %v970_v13  ;;  %v1465_v13 = vshll.u32 %v3058_v29, 16 }
  0x76   : > { %2473 = vmatprep.mubr.msk.bf16.mxu0 %vm2668_vm0, %v2667_v1 }
  0x77   : > { %v1467_v20 = vrot.slane %v1465_v13, 3 }
  0x79   : > { %v1468_v22 = vor.u32 %v1467_v20, %v1464_v19 }
  0x7a   : > { %2406 = vmatmul.mubr.msk.bf16.gmra.mrb[48].mxu1 %vm380_vm2, %v2880_v8  ;;  %v1109_v8 = vsel %vm1106_vm5, %v1107_v25, %v1108_v5 }
  0x7b   : > { %2445 = vmatprep.mubr.msk.bf16.mxu1 %vm2668_vm0, %v2667_v1  ;;  %v1469_v25 = vsel %vm1434_vm7, %v1459_v61, %v1468_v22 }
  0x7d   : > { %2474 = vmatmul.mubr.msk.bf16.vlgmr.msra.gmra.mrb[48].mxu0 %vm380_vm2, %v1290_v23  ;;  %v1471_v23 = vshrl.u32 %v3087_v36, 16 }
  0x7e   : > { %2522 = vmatpush3.bf16.msra.mxu0 %v2630_v2  ;;  %2477 = vmatprep.mubr.msk.bf16.mxu0 %vm2668_vm0, %v2667_v1  ;;  %v1474_v2 = vshll.u32 %v3087_v36, 16 }
  0x7f   : > { %2523 = vmatprep.subr.bf16.mxu0 %v2667_v1  ;;  %v1473_v5 = vrot.slane %v1471_v23, 2 }
  0x80   : > { %v1476_v15 = vrot.slane %v1474_v2, 3 }
  0x82   : > { %2524 = vmatpush3.bf16.msra.mxu0 %v2633_v26  ;;  %2446 = vmatmul.mubr.msk.bf16.vlgmr.msra.gmra.mrb[52].mxu1 %vm380_vm2, %v1109_v8  ;;  %v2642_v26 = vld [vmem:[%s2735_s27 + $0x30] ss:$0 sps:$4 sm:$0x77]   ;;  %v1632_v8 = vsel %vm1623_vm6, %v1629_v16, %v1631_v24 }
  0x83   : > { %2525 = vmatprep.subr.bf16.mxu0 %v2667_v1  ;;  %2494 = vmatpush3.bf16.msra.mxu1 %v2629_v18  ;;  %v1477_v18 = vor.u32 %v1476_v15, %v1473_v5  ;;  %v1483_v29 = vshll.u32 %v2642_v26, 16 }
  0x84   : > { %2449 = vmatprep.mubr.msk.bf16.mxu1 %vm2668_vm0, %v2667_v1  ;;  %2495 = vmatprep.subr.bf16.mxu1 %v2667_v1 }
  0x85   : > { %2478 = vmatmul.mubr.msk.bf16.gmra.mrb[52].mxu0 %vm380_vm2, %v1292_v27  ;;  %v1480_v27 = vshrl.u32 %v2642_v26, 16  ;;  %v1478_v31 = vsel %vm1434_vm7, %v1468_v22, %v1477_v18  ;;  %v1485_v33 = vrot.slane %v1483_v29, 3 }
  0x86   : > { %2481 = vmatprep.mubr.msk.bf16.mxu0 %vm2668_vm0, %v2667_v1  ;;  %2526 = vmatpush3.bf16.msra.mxu0 %v2636_v30  ;;  %v1633_v30 = vrot.slane %v2642_v26, 3 }
  0x87   : > { %2527 = vmatprep.subr.bf16.mxu0 %v2667_v1  ;;  %2496 = vmatpush3.bf16.msra.mxu1 %v2632_v32  ;;  %v1482_v32 = vrot.slane %v1480_v27, 2 }
  0x88   : > { %2497 = vmatprep.subr.bf16.mxu1 %v2667_v1 }
  0x8a   : > { %2528 = vmatpush3.bf16.msra.mxu0 %v2640_v6  ;;  %2450 = vmatmul.mubr.msk.bf16.gmra.mrb[56].mxu1 %vm380_vm2, %v1111_v28  ;;  %v1634_v6 = vsel %vm1623_vm6, %v1631_v24, %v1633_v30  ;;  %v1486_v28 = vor.u32 %v1485_v33, %v1482_v32 }
  0x8b   : > { %2453 = vmatprep.mubr.msk.bf16.mxu1 %vm2668_vm0, %v2667_v1  ;;  %2498 = vmatpush3.bf16.msra.mxu1 %v2635_v34 }
  0x8c   : > { %2499 = vmatprep.subr.bf16.mxu1 %v2667_v1  ;;  %v1487_v34 = vsel %vm1434_vm7, %v1477_v18, %v1486_v28 }
  0x8d   : > { %2482 = vmatmul.mubr.msk.bf16.gmra.mrb[56].mxu0 %vm380_vm2, %v1294_v35 }
  0x8e   : > { %2485 = vmatprep.mubr.msk.bf16.mxu0 %vm2668_vm0, %v2667_v1 }
  0x8f   : > { %2500 = vmatpush3.bf16.msra.mxu1 %v2638_v38 }
  0x92   : > { %2454 = vmatmul.mubr.msk.bf16.gmra.mrb[60].mxu1 %vm380_vm2, %v1113_v40 }
  0x93   : > { %2457 = vmatprep.mubr.msk.bf16.mxu1 %vm2668_vm0, %v2667_v1 }
  0x95   : > { %2486 = vmatmul.mubr.msk.bf16.gmra.mrb[60].mxu0 %vm380_vm2, %v1296_v57 }
  0x96   : > { %2489 = vmatprep.mubr.msk.bf16.mxu0 %vm2668_vm0, %v2667_v1 }
  0x9a   : > { %2458 = vmatmul.mubr.msk.bf16.gmra.mrb[64].mxu1 %vm380_vm2, %v1115_v44 }
  0x9b   : > { %2461 = vmatprep.mubr.msk.bf16.mxu1 %vm2668_vm0, %v2667_v1 }
  0x9d   : > { %2490 = vmatmul.mubr.msk.bf16.gmra.mrb[64].mxu0 %vm380_vm2, %v1298_v45 }
  0x9e   : > { %2529 = vmatprep.mubr.msk.bf16.mxu0 %vm2668_vm0, %v2667_v1 }
  0xa2   : > { %2462 = vmatmul.mubr.msk.bf16.gmra.mrb[68].mxu1 %vm380_vm2, %v1117_v53 }
  0xa3   : > { %2501 = vmatprep.mubr.msk.bf16.mxu1 %vm2668_vm0, %v2667_v1 }
  0xa5   : > { %2530 = vmatmul.mubr.msk.bf16.vlgmr.msra.gmra.mrb[68].mxu0 %vm380_vm2, %v1626_v60 }
  0xa6   : > { %2533 = vmatprep.mubr.msk.bf16.mxu0 %vm2668_vm0, %v2667_v1 }
  0xaa   : > { %2502 = vmatmul.mubr.msk.bf16.vlgmr.msra.gmra.mrb[72].mxu1 %vm380_vm2, %v1451_v7 }
  0xab   : > { %2505 = vmatprep.mubr.msk.bf16.mxu1 %vm2668_vm0, %v2667_v1 }
  0xad   : > { %2534 = vmatmul.mubr.msk.bf16.gmra.mrb[72].mxu0 %vm380_vm2, %v1628_v11 }
  0xae   : > { %2537 = vmatprep.mubr.msk.bf16.mxu0 %vm2668_vm0, %v2667_v1 }
  0xb2   : > { %2506 = vmatmul.mubr.msk.bf16.gmra.mrb[76].mxu1 %vm380_vm2, %v1460_v17 }
  0xb3   : > { %2509 = vmatprep.mubr.msk.bf16.mxu1 %vm2668_vm0, %v2667_v1 }
  0xb5   : > { %2538 = vmatmul.mubr.msk.bf16.gmra.mrb[76].mxu0 %vm380_vm2, %v1630_v21 }
  0xb6   : > { %2541 = vmatprep.mubr.msk.bf16.mxu0 %vm2668_vm0, %v2667_v1 }
  0xba   : > { %2510 = vmatmul.mubr.msk.bf16.gmra.mrb[80].mxu1 %vm380_vm2, %v1469_v25 }
  0xbb   : > { %2513 = vmatprep.mubr.msk.bf16.mxu1 %vm2668_vm0, %v2667_v1 }
  0xbd   : > { %2542 = vmatmul.mubr.msk.bf16.gmra.mrb[80].mxu0 %vm380_vm2, %v1632_v8 }
  0xbe   : > { %2545 = vmatprep.mubr.msk.bf16.mxu0 %vm2668_vm0, %v2667_v1 }
  0xc2   : > { %2514 = vmatmul.mubr.msk.bf16.gmra.mrb[84].mxu1 %vm380_vm2, %v1478_v31 }
  0xc3   : > { %2517 = vmatprep.mubr.msk.bf16.mxu1 %vm2668_vm0, %v2667_v1  ;;  %vm1816_vm0 = vcmask 1044484  }
  0xc4   : > { %vm3231_vm1 = vmor %vm1815_vm15, %vm1816_vm0 }
  0xc5   : > { %2546 = vmatmul.mubr.msk.bf16.gmra.mrb[84].mxu0 %vm380_vm2, %v1634_v6 }
  0xca   : > { %2518 = vmatmul.mubr.msk.bf16.gmra.mrb[88].mxu1 %vm380_vm2, %v1487_v34 }
  0xed   : > { %v446_v35 = vpop.f32.mrb[0].mxu1 }
  0xee   : > { %v2315_v36 = vpop.f32.mrb[1].mxu1 }
  0xef   : > { %v449_v37 = vpop.f32.mrb[2].mxu1 }
  0xf0   : > { %v430_v38 = vpop.f32.mrb[0].mxu0  ;;  %v2316_v39 = vpop.f32.mrb[3].mxu1 }
  0xf1   : > { %v2307_v40 = vpop.f32.mrb[1].mxu0 }
  0xf2   : > { %v433_v57 = vpop.f32.mrb[2].mxu0 }
  0xf3   : > { %v2308_v14 = vpop.f32.mrb[3].mxu0 }
  0xf5   : > { %v454_v41 = vpop.f32.mrb[4].mxu1 }
  0xf6   : > { %v2319_v42 = vpop.f32.mrb[5].mxu1 }
  0xf7   : > { %v457_v43 = vpop.f32.mrb[6].mxu1 }
  0xf8   : > { %v438_v44 = vpop.f32.mrb[4].mxu0  ;;  %v2320_v1 = vpop.f32.mrb[7].mxu1 }
  0xf9   : > { %v2311_v45 = vpop.f32.mrb[5].mxu0 }
  0xfa   : > { %v441_v46 = vpop.f32.mrb[6].mxu0 }
  0xfb   : > { %v2312_v47 = vpop.f32.mrb[7].mxu0 }
  0xfd   : > { %v462_v58 = vpop.f32.mrb[8].mxu1 }
  0xfe   : > { %v2323_v48 = vpop.f32.mrb[9].mxu1 }
  0xff   : > { %v465_v49 = vpop.f32.mrb[10].mxu1 }
 0x100   : > { %v674_v50 = vpop.f32.mrb[8].mxu0  ;;  %v2324_v51 = vpop.f32.mrb[11].mxu1 }
 0x101   : > { %v2363_v52 = vpop.f32.mrb[9].mxu0 }
 0x102   : > { %v677_v53 = vpop.f32.mrb[10].mxu0 }
 0x103   : > { %v2364_v54 = vpop.f32.mrb[11].mxu0 }
 0x105   : > { %v537_v55 = vpop.f32.mrb[12].mxu1 }
 0x106   : > { %v538_v56 = vadd.f32 %v537_v55, %v430_v38  ;;  %v2335_v59 = vpop.f32.mrb[13].mxu1 }
 0x107   : > { %v540_v60 = vpop.f32.mrb[14].mxu1 }
 0x108   : > { %v682_v62 = vpop.f32.mrb[12].mxu0  ;;  %v713_v63 = vadd.f32 %v674_v50, %v538_v56  ;;  %v541_v0 = vadd.f32 %v540_v60, %v433_v57  ;;  %v2336_v3 = vpop.f32.mrb[15].mxu1 }
 0x109   : > { %v2367_v4 = vpop.f32.mrb[13].mxu0 }
 0x10a   : > { %v685_v7 = vpop.f32.mrb[14].mxu0  ;;  %v714_v9 = vadd.f32 %v677_v53, %v541_v0 }
 0x10b   : > { %v2368_v10 = vpop.f32.mrb[15].mxu0 }
 0x10d   : > { %v545_v11 = vpop.f32.mrb[16].mxu1 }
 0x10e   : > { %v546_v61 = vadd.f32 %v545_v11, %v438_v44  ;;  %v2339_v12 = vpop.f32.mrb[17].mxu1 }
 0x10f   : > { %v548_v13 = vpop.f32.mrb[18].mxu1 }
 0x110   : > { %v690_v16 = vpop.f32.mrb[16].mxu0  ;;  %v715_v17 = vadd.f32 %v682_v62, %v546_v61  ;;  %v549_v19 = vadd.f32 %v548_v13, %v441_v46  ;;  %v2340_v20 = vpop.f32.mrb[19].mxu1 }
 0x111   : > { %v2371_v21 = vpop.f32.mrb[17].mxu0 }
 0x112   : > { %v693_v22 = vpop.f32.mrb[18].mxu0  ;;  %v716_v23 = vadd.f32 %v685_v7, %v549_v19 }
 0x113   : > { %v2372_v2 = vpop.f32.mrb[19].mxu0 }
 0x115   : > { %v553_v24 = vpop.f32.mrb[20].mxu1 }
 0x116   : > { %v554_v25 = vadd.f32 %v553_v24, %v446_v35  ;;  %v2343_v5 = vpop.f32.mrb[21].mxu1 }
 0x117   : > { %v556_v15 = vpop.f32.mrb[22].mxu1 }
 0x118   : > { %v698_v26 = vpop.f32.mrb[20].mxu0  ;;  %v717_v8 = vadd.f32 %v690_v16, %v554_v25  ;;  %v557_v18 = vadd.f32 %v556_v15, %v449_v37  ;;  %v2344_v27 = vpop.f32.mrb[23].mxu1 }
 0x119   : > { %v2375_v29 = vpop.f32.mrb[21].mxu0 }
 0x11a   : > { %v701_v30 = vpop.f32.mrb[22].mxu0  ;;  %v718_v31 = vadd.f32 %v693_v22, %v557_v18 }
 0x11b   : > { %v2376_v32 = vpop.f32.mrb[23].mxu0 }
 0x11d   : > { %v561_v33 = vpop.f32.mrb[24].mxu1 }
 0x11e   : > { %v562_v6 = vadd.f32 %v561_v33, %v454_v41  ;;  %v2347_v28 = vpop.f32.mrb[25].mxu1 }
 0x11f   : > { %v564_v34 = vpop.f32.mrb[26].mxu1 }
 0x120   : > { %v706_v36 = vpop.f32.mrb[24].mxu0  ;;  %v719_v38 = vadd.f32 %v698_v26, %v562_v6  ;;  %v565_v39 = vadd.f32 %v564_v34, %v457_v43  ;;  %v2348_v40 = vpop.f32.mrb[27].mxu1 }
 0x121   : > { %v2379_v57 = vpop.f32.mrb[25].mxu0 }
 0x122   : > { %v709_v35 = vpop.f32.mrb[26].mxu0  ;;  %v720_v14 = vadd.f32 %v701_v30, %v565_v39 }
 0x123   : > { %v2380_v42 = vpop.f32.mrb[27].mxu0 }
 0x125   : > { %v569_v44 = vpop.f32.mrb[28].mxu1 }
 0x126   : > { %v570_v1 = vadd.f32 %v569_v44, %v462_v58  ;;  %v2351_v37 = vpop.f32.mrb[29].mxu1 }
 0x127   : > { %v572_v45 = vpop.f32.mrb[30].mxu1 }
 0x128   : > { %v1044_v46 = vpop.f32.mrb[28].mxu0  ;;  %v721_v47 = vadd.f32 %v706_v36, %v570_v1  ;;  %v573_v48 = vadd.f32 %v572_v45, %v465_v49  ;;  %v2352_v50 = vpop.f32.mrb[31].mxu1 }
 0x129   : > { %v2419_v51 = vpop.f32.mrb[29].mxu0 }
 0x12a   : > { %v1047_v41 = vpop.f32.mrb[30].mxu0  ;;  %v722_v52 = vadd.f32 %v709_v35, %v573_v48 }
 0x12b   : > { %v2420_v53 = vpop.f32.mrb[31].mxu0 }
 0x12d   : > { %v855_v54 = vpop.f32.mrb[32].mxu1 }
 0x12e   : > { %v894_v55 = vadd.f32 %v855_v54, %v713_v63  ;;  %v2391_v43 = vpop.f32.mrb[33].mxu1 }
 0x12f   : > { %v858_v56 = vpop.f32.mrb[34].mxu1 }
 0x130   : > { %v1052_v59 = vpop.f32.mrb[32].mxu0  ;;  %v1083_v60 = vadd.f32 %v1044_v46, %v894_v55  ;;  %v895_v62 = vadd.f32 %v858_v56, %v714_v9  ;;  %v2392_v0 = vpop.f32.mrb[35].mxu1 }
 0x131   : > { %v2423_v3 = vpop.f32.mrb[33].mxu0 }
 0x132   : > { %v1055_v58 = vpop.f32.mrb[34].mxu0  ;;  %v1084_v4 = vadd.f32 %v1047_v41, %v895_v62 }
 0x133   : > { %v2424_v7 = vpop.f32.mrb[35].mxu0 }
 0x135   : > { %v863_v10 = vpop.f32.mrb[36].mxu1 }
 0x136   : > { %v896_v11 = vadd.f32 %v863_v10, %v715_v17  ;;  %v2395_v49 = vpop.f32.mrb[37].mxu1 }
 0x137   : > { %v866_v61 = vpop.f32.mrb[38].mxu1 }
 0x138   : > { %v1060_v12 = vpop.f32.mrb[36].mxu0  ;;  %v1085_v13 = vadd.f32 %v1052_v59, %v896_v11  ;;  %v897_v16 = vadd.f32 %v866_v61, %v716_v23  ;;  %v2396_v19 = vpop.f32.mrb[39].mxu1 }
 0x139   : > { %v2427_v20 = vpop.f32.mrb[37].mxu0 }
 0x13a   : > { %v1063_v63 = vpop.f32.mrb[38].mxu0  ;;  %v1086_v21 = vadd.f32 %v1055_v58, %v897_v16 }
 0x13b   : > { %v2428_v22 = vpop.f32.mrb[39].mxu0 }
 0x13d   : > { %v871_v2 = vpop.f32.mrb[40].mxu1 }
 0x13e   : > { %v898_v24 = vadd.f32 %v871_v2, %v717_v8  ;;  %v2399_v9 = vpop.f32.mrb[41].mxu1 }
 0x13f   : > { %v874_v25 = vpop.f32.mrb[42].mxu1 }
 0x140   : > { %v1068_v5 = vpop.f32.mrb[40].mxu0  ;;  %v1087_v15 = vadd.f32 %v1060_v12, %v898_v24  ;;  %v899_v26 = vadd.f32 %v874_v25, %v718_v31  ;;  %v2400_v18 = vpop.f32.mrb[43].mxu1 }
 0x141   : > { %v2431_v27 = vpop.f32.mrb[41].mxu0 }
 0x142   : > { %v1071_v17 = vpop.f32.mrb[42].mxu0  ;;  %v1088_v29 = vadd.f32 %v1063_v63, %v899_v26 }
 0x143   : > { %v2432_v30 = vpop.f32.mrb[43].mxu0 }
 0x145   : > { %v879_v32 = vpop.f32.mrb[44].mxu1 }
 0x146   : > { %v900_v33 = vadd.f32 %v879_v32, %v719_v38  ;;  %v2403_v23 = vpop.f32.mrb[45].mxu1 }
 0x147   : > { %v882_v6 = vpop.f32.mrb[46].mxu1 }
 0x148   : > { %v1076_v28 = vpop.f32.mrb[44].mxu0  ;;  %v1089_v34 = vadd.f32 %v1068_v5, %v900_v33  ;;  %v901_v36 = vadd.f32 %v882_v6, %v720_v14  ;;  %v2404_v39 = vpop.f32.mrb[47].mxu1 }
 0x149   : > { %v2435_v40 = vpop.f32.mrb[45].mxu0 }
 0x14a   : > { %v1079_v8 = vpop.f32.mrb[46].mxu0  ;;  %v1090_v57 = vadd.f32 %v1071_v17, %v901_v36 }
 0x14b   : > { %v2436_v35 = vpop.f32.mrb[47].mxu0 }
 0x14d   : > { %v887_v42 = vpop.f32.mrb[48].mxu1 }
 0x14e   : > { %v902_v44 = vadd.f32 %v887_v42, %v721_v47  ;;  %v2407_v31 = vpop.f32.mrb[49].mxu1 }
 0x14f   : > { %v890_v1 = vpop.f32.mrb[50].mxu1 }
 0x150   : > { %v1372_v37 = vpop.f32.mrb[48].mxu0  ;;  %v1091_v45 = vadd.f32 %v1076_v28, %v902_v44  ;;  %v903_v46 = vadd.f32 %v890_v1, %v722_v52  ;;  %v2408_v48 = vpop.f32.mrb[51].mxu1 }
 0x151   : > { %v2475_v50 = vpop.f32.mrb[49].mxu0 }
 0x152   : > { %v1375_v38 = vpop.f32.mrb[50].mxu0  ;;  %v1092_v51 = vadd.f32 %v1079_v8, %v903_v46 }
 0x153   : > { %v2476_v41 = vpop.f32.mrb[51].mxu0 }
 0x155   : > { %v1191_v53 = vpop.f32.mrb[52].mxu1 }
 0x156   : > { %v1230_v54 = vadd.f32 %v1191_v53, %v1083_v60  ;;  %v2447_v14 = vpop.f32.mrb[53].mxu1 }
 0x157   : > { %v1194_v55 = vpop.f32.mrb[54].mxu1 }
 0x158   : > { %v1380_v43 = vpop.f32.mrb[52].mxu0  ;;  %v1411_v56 = vadd.f32 %v1372_v37, %v1230_v54  ;;  %v1231_v59 = vadd.f32 %v1194_v55, %v1084_v4  ;;  %v2448_v62 = vpop.f32.mrb[55].mxu1 }
 0x159   : > { %v2479_v0 = vpop.f32.mrb[53].mxu0 }
 0x15a   : > { %v1383_v47 = vpop.f32.mrb[54].mxu0  ;;  %v1412_v3 = vadd.f32 %v1375_v38, %v1231_v59 }
 0x15b   : > { %v2480_v58 = vpop.f32.mrb[55].mxu0 }
 0x15d   : > { %v1199_v7 = vpop.f32.mrb[56].mxu1 }
 0x15e   : > { %v1232_v10 = vadd.f32 %v1199_v7, %v1085_v13  ;;  %v2451_v52 = vpop.f32.mrb[57].mxu1 }
 0x15f   : > { %v1202_v11 = vpop.f32.mrb[58].mxu1 }
 0x160   : > { %v1388_v49 = vpop.f32.mrb[56].mxu0  ;;  %v3177_v61 = vadd.f32 %v1380_v43, %v1232_v10  ;;  %v1233_v12 = vadd.f32 %v1202_v11, %v1086_v21  ;;  %v2452_v16 = vpop.f32.mrb[59].mxu1 }
 0x161   : > { %v2483_v60 = vpop.f32.mrb[57].mxu0 }
 0x162   : > { %v1391_v19 = vpop.f32.mrb[58].mxu0  ;;  %v3179_v20 = vadd.f32 %v1383_v47, %v1233_v12 }
 0x163   : > { %v2484_v63 = vpop.f32.mrb[59].mxu0 }
 0x165   : > { %v1207_v4 = vpop.f32.mrb[60].mxu1 }
 0x166   : > { %v1234_v22 = vadd.f32 %v1207_v4, %v1087_v15  ;;  %v2455_v2 = vpop.f32.mrb[61].mxu1 }
 0x167   : > { %v1210_v24 = vpop.f32.mrb[62].mxu1 }
 0x168   : > { %v1396_v9 = vpop.f32.mrb[60].mxu0  ;;  %v3181_v25 = vadd.f32 %v1388_v49, %v1234_v22  ;;  %v1235_v13 = vadd.f32 %v1210_v24, %v1088_v29  ;;  %v2456_v5 = vpop.f32.mrb[63].mxu1 }
 0x169   : > { %v2487_v26 = vpop.f32.mrb[61].mxu0 }
 0x16a   : > { %v1399_v18 = vpop.f32.mrb[62].mxu0  ;;  %v3183_v27 = vadd.f32 %v1391_v19, %v1235_v13 }
 0x16b   : > { %v2488_v21 = vpop.f32.mrb[63].mxu0 }
 0x16d   : > { %v1215_v17 = vpop.f32.mrb[64].mxu1 }
 0x16e   : > { %v1236_v30 = vadd.f32 %v1215_v17, %v1089_v34  ;;  %v2459_v32 = vpop.f32.mrb[65].mxu1 }
 0x16f   : > { %v1218_v33 = vpop.f32.mrb[66].mxu1 }
 0x170   : > { %v1404_v23 = vpop.f32.mrb[64].mxu0  ;;  %v3185_v6 = vadd.f32 %v1396_v9, %v1236_v30  ;;  %v1237_v15 = vadd.f32 %v1218_v33, %v1090_v57  ;;  %v2460_v28 = vpop.f32.mrb[67].mxu1 }
 0x171   : > { %v2491_v36 = vpop.f32.mrb[65].mxu0 }
 0x172   : > { %v1407_v39 = vpop.f32.mrb[66].mxu0  ;;  %v3187_v40 = vadd.f32 %v1399_v18, %v1237_v15 }
 0x173   : > { %v2492_v29 = vpop.f32.mrb[67].mxu0 }
 0x175   : > { %v1223_v8 = vpop.f32.mrb[68].mxu1 }
 0x176   : > { %v1238_v35 = vadd.f32 %v1223_v8, %v1091_v45  ;;  %v2463_v42 = vpop.f32.mrb[69].mxu1  ;;  %v3196_v45 = vld [vmem:[%s3273_s2] ss:$0 sm:$0xff] }
 0x177   : > { %v1226_v44 = vpop.f32.mrb[70].mxu1 }
 0x178   : > { %v1708_v31 = vpop.f32.mrb[68].mxu0  ;;  %v3189_v1 = vadd.f32 %v1404_v23, %v1238_v35  ;;  %v1239_v34 = vadd.f32 %v1226_v44, %v1092_v51  ;;  %v2464_v37 = vpop.f32.mrb[71].mxu1 }
 0x179   : > { %v2531_v46 = vpop.f32.mrb[69].mxu0 }
 0x17a   : > { %v1711_v48 = vpop.f32.mrb[70].mxu0  ;;  %v3191_v50 = vadd.f32 %v1407_v39, %v1239_v34 }
 0x17b   : > { %v2532_v57 = vpop.f32.mrb[71].mxu0 }
 0x17d   : > { %v1561_v38 = vpop.f32.mrb[72].mxu1 }
 0x17e   : > { %v1600_v41 = vadd.f32 %v1561_v38, %v1411_v56  ;;  %v2503_v53 = vpop.f32.mrb[73].mxu1 }
 0x17f   : > { %v1564_v54 = vpop.f32.mrb[74].mxu1 }
 0x180   : > { %v1716_v14 = vpop.f32.mrb[72].mxu0  ;;  %v1747_v55 = vadd.f32 %v1708_v31, %v1600_v41  ;;  %v1601_v43 = vadd.f32 %v1564_v54, %v1412_v3  ;;  %v2504_v51 = vpop.f32.mrb[75].mxu1 }
 0x181   : > { %v2535_v59 = vpop.f32.mrb[73].mxu0 }
 0x182   : > { %v1719_v62 = vpop.f32.mrb[74].mxu0  ;;  %v1764_v0 = vadd.f32 %v3196_v45, %v1747_v55  ;;  %v1748_v47 = vadd.f32 %v1711_v48, %v1601_v43 }
 0x183   : > { %v2536_v58 = vpop.f32.mrb[75].mxu0 }
 0x184   : > { %v1774_v56 = vpack.c.bf16 %v1764_v0, %v1764_v0  ;;  %v1765_v3 = vadd.f32 %v3196_v45, %v1748_v47 }
 0x185   : > { %v1569_v7 = vpop.f32.mrb[76].mxu1 }
 0x186   : > { %1776 = vst.msk [vmem:[%s3203_s30] sm:$0xf] %vm1775_vm8, %v1774_v56  ;;  %v1602_v10 = vadd.f32 %v1569_v7, %v3177_v61  ;;  %v2507_v52 = vpop.f32.mrb[77].mxu1  ;;  %v2204_v4 = vpack.c.bf16 %v1765_v3, %v1765_v3 }
 0x187   : > { %v1572_v11 = vpop.f32.mrb[78].mxu1 }
 0x188   : > { %v1724_v49 = vpop.f32.mrb[76].mxu0  ;;  %v1749_v12 = vadd.f32 %v1716_v14, %v1602_v10  ;;  %v1603_v16 = vadd.f32 %v1572_v11, %v3179_v20  ;;  %v2508_v60 = vpop.f32.mrb[79].mxu1  ;;  %v2178_v5 = vrot.slane %v2204_v4, 9 }
 0x189   : > { %v2539_v19 = vpop.f32.mrb[77].mxu0 }
 0x18a   : > { %v1727_v63 = vpop.f32.mrb[78].mxu0  ;;  %v1766_v22 = vadd.f32 %v3196_v45, %v1749_v12  ;;  %v1750_v2 = vadd.f32 %v1719_v62, %v1603_v16 }
 0x18b   : > { %v2540_v24 = vpop.f32.mrb[79].mxu0 }
 0x18c   : > { %v2205_v9 = vpack.c.bf16 %v1766_v22, %v1766_v22  ;;  %v1767_v13 = vadd.f32 %v3196_v45, %v1750_v2 }
 0x18d   : > { %v1577_v20 = vpop.f32.mrb[80].mxu1 }
 0x18e   : > { %v1788_v26 = vrot.slane %v2205_v9, 5  ;;  %v2207_v18 = vpack.c.bf16 %v1767_v13, %v1767_v13  ;;  %v1604_v21 = vadd.f32 %v1577_v20, %v3181_v25  ;;  %v2511_v17 = vpop.f32.mrb[81].mxu1  ;;  %v2182_v15 = vrot.slane %v2205_v9, 10 }
 0x18f   : > { %v1580_v32 = vpop.f32.mrb[82].mxu1 }
 0x190   : > { %v1732_v33 = vpop.f32.mrb[80].mxu0  ;;  %v1789_v23 = vsel %vm3212_vm13, %v2178_v5, %v1788_v26  ;;  %v1804_v28 = vrot.slane %v2207_v18, 6  ;;  %v1751_v36 = vadd.f32 %v1724_v49, %v1604_v21  ;;  %v2512_v39 = vpop.f32.mrb[83].mxu1  ;;  %v1605_v25 = vadd.f32 %v1580_v32, %v3183_v27 }
 0x191   : > { %v2543_v29 = vpop.f32.mrb[81].mxu0  ;;  %2179 = vst.msk [vmem:[%s3203_s30 + $0x4] sm:$0xf] %vm1775_vm8, %v1789_v23  ;;  %v2186_v48 = vrot.slane %v2207_v18, 11 }
 0x192   : > { %v1735_v8 = vpop.f32.mrb[82].mxu0  ;;  %v1805_v35 = vsel %vm3217_vm14, %v2182_v15, %v1804_v28  ;;  %v1768_v42 = vadd.f32 %v3196_v45, %v1751_v36  ;;  %v1752_v31 = vadd.f32 %v1727_v63, %v1605_v25 }
 0x193   : > { %v2544_v44 = vpop.f32.mrb[83].mxu0  ;;  %2183 = vst.msk [vmem:[%s3203_s30 + $0x8] sm:$0xf] %vm1775_vm8, %v1805_v35 }
 0x194   : > { %v2209_v34 = vpack.c.bf16 %v1768_v42, %v1768_v42  ;;  %v1769_v27 = vadd.f32 %v3196_v45, %v1752_v31 }
 0x195   : > { %v1585_v46 = vpop.f32.mrb[84].mxu1 }
 0x196   : > { %v1820_v57 = vrot.slane %v2209_v34, 7  ;;  %v1606_v38 = vadd.f32 %v1585_v46, %v3185_v6  ;;  %v2515_v41 = vpop.f32.mrb[85].mxu1  ;;  %v1825_v53 = vpack.c.bf16 %v1769_v27, %v1769_v27 }
 0x197   : > { %v1588_v54 = vpop.f32.mrb[86].mxu1 }
 0x198   : > { %v1740_v14 = vpop.f32.mrb[84].mxu0  ;;  %v1821_v55 = vsel %vm3231_vm1, %v2186_v48, %v1820_v57  ;;  %v1753_v43 = vadd.f32 %v1732_v33, %v1606_v38  ;;  %v1607_v51 = vadd.f32 %v1588_v54, %v3187_v40  ;;  %v2516_v59 = vpop.f32.mrb[87].mxu1  ;;  %2188 = vst.msk [vmem:[%s3203_s30 + $0x10] sm:$0xf] %vm1775_vm8, %v1825_v53 }
 0x199   : > { %v2547_v62 = vpop.f32.mrb[85].mxu0  ;;  %2187 = vst.msk [vmem:[%s3203_s30 + $0xc] sm:$0xf] %vm1775_vm8, %v1821_v55 }
 0x19a   : > { %v1743_v0 = vpop.f32.mrb[86].mxu0  ;;  %v1770_v47 = vadd.f32 %v3196_v45, %v1753_v43  ;;  %v1754_v6 = vadd.f32 %v1735_v8, %v1607_v51 }
 0x19b   : > { %v2548_v58 = vpop.f32.mrb[87].mxu0 }
 0x19c   : > { %v2210_v56 = vpack.c.bf16 %v1770_v47, %v1770_v47  ;;  %v1771_v7 = vadd.f32 %v3196_v45, %v1754_v6 }
 0x19d   : > { %v1593_v3 = vpop.f32.mrb[88].mxu1 }
 0x19e   : > { %v2211_v10 = vpack.c.bf16 %v1771_v7, %v1771_v7  ;;  %v1608_v52 = vadd.f32 %v1593_v3, %v3189_v1  ;;  %v2519_v40 = vpop.f32.mrb[89].mxu1  ;;  %v2191_v49 = vrot.slane %v2210_v56, 9 }
 0x19f   : > { %v1596_v11 = vpop.f32.mrb[90].mxu1 }
 0x1a0   : > { %v1836_v12 = vrot.slane %v2211_v10, 5  ;;  %v1755_v16 = vadd.f32 %v1740_v14, %v1608_v52  ;;  %v1609_v60 = vadd.f32 %v1596_v11, %v3191_v50  ;;  %v2520_v19 = vpop.f32.mrb[91].mxu1  ;;  %v2195_v24 = vrot.slane %v2211_v10, 10 }
 0x1a2   : > { %v1837_v63 = vsel %vm3212_vm13, %v2191_v49, %v1836_v12  ;;  %v1772_v4 = vadd.f32 %v3196_v45, %v1755_v16  ;;  %v1756_v22 = vadd.f32 %v1743_v0, %v1609_v60 }
 0x1a3   : > { %2192 = vst.msk [vmem:[%s3203_s30 + $0x14] sm:$0xf] %vm1775_vm8, %v1837_v63 }
 0x1a4   : > { %v2213_v2 = vpack.c.bf16 %v1772_v4, %v1772_v4  ;;  %v1773_v1 = vadd.f32 %v3196_v45, %v1756_v22 }
 0x1a6   : > { %v1849_v9 = vrot.slane %v2213_v2, 6  ;;  %v2215_v13 = vpack.c.bf16 %v1773_v1, %v1773_v1  ;;  %v2199_v50 = vrot.slane %v2213_v2, 11 }
 0x1a8   : > { %v1850_v20 = vsel %vm3217_vm14, %v2195_v24, %v1849_v9  ;;  %v1862_v5 = vrot.slane %v2215_v13, 7 }
 0x1a9   : > { %2196 = vst.msk [vmem:[%s3203_s30 + $0x18] sm:$0xf] %vm1775_vm8, %v1850_v20 }
 0x1aa   : > { %v1863_v61 = vsel %vm3231_vm1, %v2199_v50, %v1862_v5 }
 0x1ab   : > { %2200 = vst.msk [vmem:[%s3203_s30 + $0x1c] sm:$0xf] %vm1775_vm8, %v1863_v61 }
 0x1ac PF: > { %s13_s14 = sadd.s32 1, %s2665_s14   ;;  %s3281_s12 = smov %s2661_s13 }
 0x1ad   : > { %p10_p5 = scmp.ge.s32.totalorder %s13_s14, 4   ;;  %s3282_s13 = smov %s3284_s15 }
 0x1af   :  { %12 = sbr.rel (!%p10_p5) target bundleno = 2 (0x2), region = 83 }

// kernel: upsample_block_forward.18
= control target key start
LH: loop header
LB: loop body
LE: loop exit
PB: predicated region body
PF: predicated region fallthrough
CT: control target
= control target key end

     0   :  { %s690_s15 = smov 0   ;;  %s692_s16 = smov 0   ;;  %s768_s0 = inlined_call_operand.vmem [shape: f32[128,64], index: 0, kind: input, shape index: {}]   ;;  %s769_s1 = inlined_call_operand.vmem [shape: bf16[64,32], index: 1, kind: input, shape index: {}]   ;;  %s770_s2 = inlined_call_operand.vmem [shape: f32[1,32], index: 2, kind: input, shape index: {}]   ;;  %s771_s3 = inlined_call_operand.vmem [shape: f32[128,32], index: 3, kind: input, shape index: {}]   ;;  %s772_s4 = inlined_call_operand.vmem [shape: f32[128,32], index: 4, kind: output, shape index: {}]  }
   0x1   :  { %s694_s17 = smov 0  }
   0x2 LB: > { %s26_s18 = sadd.s32 1, %s659_s16  ;;  %p563_p0 = scmp.ge.s32.totalorder %s663_s17, 1  ;;  %s663_s17 = sphi %s694_s17, %s14_s17   ;;  %s659_s16 = sphi %s692_s16, %s774_s16   ;;  %s655_s15 = sphi %s690_s15, %s773_s15  }
   0x3   : > { %p28_p1 = scmp.ge.s32.totalorder %s26_s18, 2  ;;  %p210_p2 = scmp.lt.s32.totalorder %s663_s17, 3 }
   0x5   : > { %s776_s18 = smov (%p28_p1, %s26_s18), 0  ;;  %p211_p3 = pnand %p563_p0, %p210_p2 }
   0x6   : > { %v637_v0 = vld [vmem:[%s769_s1] sm:$0xff] (!%p211_p3)   ;;  %s564_s21 = sshll.u32 (!%p211_p3), %s655_s15, 3  ;;  %v638_v1 = vld [vmem:[%s769_s1 + $0x8] sm:$0xff] (!%p211_p3)   ;;  %v639_v2 = vld [vmem:[%s769_s1 + $0x10] sm:$0xff] (!%p211_p3)   ;;  %vm337_vm0 = vcmask (!%p211_p3), 523264   ;;  %vm431_vm1 = vcmask (!%p211_p3), 261120  }
   0x7   : > { %214 = sbr.rel (%p211_p3) target bundleno = 244 (0xf4), region = 36  ;;  %p255_p4 = scmp.lt.s32.totalorder (!%p211_p3), %s564_s21, 15  ;;  %589 = vmatprep.subr.bf16.mxu0 (!%p211_p3), %v637_v0  ;;  %605 = vmatprep.subr.bf16.mxu1 (!%p211_p3), %v637_v0  ;;  %v640_v6 = vld [vmem:[%s769_s1 + $0x18] sm:$0xff] (!%p211_p3)   ;;  %v570_v16 = vld [vmem:[%s770_s2] ss:$0 sm:$0xff] (!%p211_p3) }
   0x8   : > { %590 = vmatpush3.bf16.msra.mxu0 (!%p211_p3), %v637_v0  ;;  %609 = vmatpush3.bf16.msra.mxu1 (!%p211_p3), %v637_v0 }
   0x9   : > { %591 = vmatprep.subr.bf16.mxu0 (!%p211_p3), %v638_v1  ;;  %606 = vmatprep.subr.bf16.mxu1 (!%p211_p3), %v638_v1 }
   0xc   : > { %592 = vmatpush3.bf16.msra.mxu0 (!%p211_p3), %v638_v1  ;;  %610 = vmatpush3.bf16.msra.mxu1 (!%p211_p3), %v638_v1 }
   0xd   : > { %593 = vmatprep.subr.bf16.mxu0 (!%p211_p3), %v639_v2  ;;  %607 = vmatprep.subr.bf16.mxu1 (!%p211_p3), %v639_v2 }
   0xe   : > { %s778_s21 = smov (!%p255_p4, %s564_s21), 15 }
   0xf   : > { %s717_s26 = sshll.u32 %s778_s21, 3 }
  0x10   : > { %s258_s29 = scalar_lea.vmem %s768_s0, %s717_s26  ;;  %594 = vmatpush3.bf16.msra.mxu0 %v639_v2  ;;  %611 = vmatpush3.bf16.msra.mxu1 %v639_v2  ;;  %s274_s8 = scalar_lea.vmem %s771_s3, %s717_s26 }
  0x11   : > { %v286_v3 = vld [vmem:[%s258_s29] sm:$0xff]  ;;  %v287_v4 = vld [vmem:[%s258_s29 + $0x8] sm:$0xff]  ;;  %v288_v10 = vld [vmem:[%s258_s29 + $0x10] sm:$0xff]  ;;  %595 = vmatprep.subr.bf16.mxu0 %v640_v6  ;;  %608 = vmatprep.subr.bf16.mxu1 %v640_v6  ;;  %s741_s13 = scalar_lea.vmem %s772_s4, %s717_s26 }
  0x12   : > { %v290_v5 = vld [vmem:[%s258_s29 + $0x20] sm:$0xff]  ;;  %v294_v7 = vpack.c.bf16 %v287_v4, %v286_v3  ;;  %v291_v8 = vld [vmem:[%s258_s29 + $0x28] sm:$0xff]  ;;  %v289_v11 = vld [vmem:[%s258_s29 + $0x18] sm:$0xff] }
  0x13   : > { %v296_v9 = vpack.c.bf16 %v291_v8, %v290_v5  ;;  %v292_v12 = vld [vmem:[%s258_s29 + $0x30] sm:$0xff]  ;;  %v293_v13 = vld [vmem:[%s258_s29 + $0x38] sm:$0xff]  ;;  %v295_v14 = vpack.c.bf16 %v289_v11, %v288_v10  ;;  %v415_v24 = vld [vmem:[%s274_s8] sm:$0xff] }
  0x14   : > { %597 = vmatprep.mubr.msk.bf16.mxu0 %vm337_vm0, %v294_v7  ;;  %v297_v15 = vpack.c.bf16 %v293_v13, %v292_v12  ;;  %596 = vmatpush3.bf16.msra.mxu0 %v640_v6  ;;  %v417_v18 = vld [vmem:[%s274_s8 + $0x10] sm:$0xff]  ;;  %v419_v26 = vld [vmem:[%s274_s8 + $0x20] sm:$0xff]  ;;  %v418_v30 = vld [vmem:[%s274_s8 + $0x18] sm:$0xff] }
  0x15   : > { %601 = vmatprep.mubr.msk.bf16.mxu1 %vm337_vm0, %v296_v9  ;;  %612 = vmatpush3.bf16.msra.mxu1 %v640_v6  ;;  %v421_v20 = vld [vmem:[%s274_s8 + $0x30] sm:$0xff]  ;;  %v422_v32 = vld [vmem:[%s274_s8 + $0x38] sm:$0xff]  ;;  %v416_v38 = vld [vmem:[%s274_s8 + $0x8] sm:$0xff] }
  0x16   : > { %v420_v40 = vld [vmem:[%s274_s8 + $0x28] sm:$0xff] }
  0x17   : > { %598 = vmatmul.mubr.msk.bf16.vlgmr.msra.gmra.mrb[0].mxu0 %vm337_vm0, %v295_v14 }
  0x18   : > { %602 = vmatmul.mubr.msk.bf16.vlgmr.msra.gmra.mrb[0].mxu1 %vm337_vm0, %v297_v15 }
  0xea   : > { %v599_v17 = vpop.f32.mrb[0].mxu0 }
  0xeb   : > { %v603_v19 = vpop.f32.mrb[0].mxu1  ;;  %v393_v21 = vadd.f32 %v599_v17, %v570_v16  ;;  %v384_v23 = vpop.f32.mrb[1].mxu0 }
  0xec   : > { %v409_v22 = vadd.f32 %v603_v19, %v570_v16  ;;  %v400_v25 = vpop.f32.mrb[1].mxu1  ;;  %v385_v27 = vadd.f32 %v570_v16, %v384_v23  ;;  %v600_v29 = vpop.f32.mrb[2].mxu0 }
  0xed   : > { %v401_v28 = vadd.f32 %v570_v16, %v400_v25  ;;  %v604_v31 = vpop.f32.mrb[2].mxu1  ;;  %v425_v33 = vadd.f32 %v417_v18, %v393_v21  ;;  %v396_v35 = vadd.f32 %v600_v29, %v570_v16  ;;  %v387_v37 = vpop.f32.mrb[3].mxu0 }
  0xee   : > { %v429_v34 = vadd.f32 %v421_v20, %v409_v22  ;;  %v412_v36 = vadd.f32 %v604_v31, %v570_v16  ;;  %v403_v39 = vpop.f32.mrb[3].mxu1  ;;  %v423_v41 = vadd.f32 %v415_v24, %v385_v27  ;;  %v388_v43 = vadd.f32 %v570_v16, %v387_v37 }
  0xef   : > { %v427_v42 = vadd.f32 %v419_v26, %v401_v28  ;;  %v404_v44 = vadd.f32 %v570_v16, %v403_v39  ;;  %434 = vst.msk [vmem:[%s741_s13 + $0x10] sm:$0xff] %vm431_vm1, %v425_v33  ;;  %v426_v45 = vadd.f32 %v418_v30, %v396_v35 }
  0xf0   : > { %438 = vst.msk [vmem:[%s741_s13 + $0x30] sm:$0xff] %vm431_vm1, %v429_v34  ;;  %v430_v46 = vadd.f32 %v422_v32, %v412_v36  ;;  %432 = vst.msk [vmem:[%s741_s13] sm:$0xff] %vm431_vm1, %v423_v41  ;;  %v424_v47 = vadd.f32 %v416_v38, %v388_v43 }
  0xf1   : > { %436 = vst.msk [vmem:[%s741_s13 + $0x20] sm:$0xff] %vm431_vm1, %v427_v42  ;;  %v428_v48 = vadd.f32 %v420_v40, %v404_v44  ;;  %435 = vst.msk [vmem:[%s741_s13 + $0x18] sm:$0xff] %vm431_vm1, %v426_v45 }
  0xf2   : > { %439 = vst.msk [vmem:[%s741_s13 + $0x38] sm:$0xff] %vm431_vm1, %v430_v46  ;;  %433 = vst.msk [vmem:[%s741_s13 + $0x8] sm:$0xff] %vm431_vm1, %v424_v47 }
  0xf3   : > { %437 = vst.msk [vmem:[%s741_s13 + $0x28] sm:$0xff] %vm431_vm1, %v428_v48 }
  0xf4 PF: > { %s14_s17 = sadd.s32 1, %s663_s17   ;;  %s773_s15 = smov %s659_s16 }
  0xf5   : > { %p11_p5 = scmp.ge.s32.totalorder %s14_s17, 4   ;;  %s774_s16 = smov %s776_s18 }
  0xf7   :  { %13 = sbr.rel (!%p11_p5) target bundleno = 2 (0x2), region = 75 }

// kernel: upsample_block_forward.19
= control target key start
LH: loop header
LB: loop body
LE: loop exit
PB: predicated region body
PF: predicated region fallthrough
CT: control target
= control target key end

     0   :  { %s1157_s18 = smov 0   ;;  %s1159_s19 = smov 0   ;;  %s1276_s0 = inlined_call_operand.vmem [shape: f32[2,64,32], index: 0, kind: input, shape index: {}]   ;;  %s1277_s1 = inlined_call_operand.vmem [shape: f32[1,32], index: 1, kind: input, shape index: {}]   ;;  %s1278_s2 = inlined_call_operand.vmem [shape: f32[1,32], index: 2, kind: input, shape index: {}]   ;;  %s1279_s3 = inlined_call_operand.vmem [shape: f32[32,32], index: 3, kind: input, shape index: {}]   ;;  %s1280_s4 = inlined_call_operand.vmem [shape: f32[32,32], index: 4, kind: input, shape index: {}]   ;;  %s1281_s5 = inlined_call_operand.vmem [shape: bf16[2,64,32], index: 5, kind: output, shape index: {}]  }
   0x1   :  { %s1161_s20 = smov 0  }
   0x2 LB: > { %s27_s21 = sadd.s32 1, %s1118_s19  ;;  %p912_p0 = scmp.ge.s32.totalorder %s1122_s20, 1  ;;  %s1122_s20 = sphi %s1161_s20, %s15_s20   ;;  %s1118_s19 = sphi %s1159_s19, %s1283_s19   ;;  %s1114_s18 = sphi %s1157_s18, %s1282_s18  }
   0x3   : > { %p29_p1 = scmp.ge.s32.totalorder %s27_s21, 2  ;;  %p222_p2 = scmp.lt.s32.totalorder %s1122_s20, 3 }
   0x5   : > { %s1285_s21 = smov (%p29_p1, %s27_s21), 0  ;;  %p223_p3 = pnand %p912_p0, %p222_p2 }
   0x6   : > { %v314_v0 = vld [vmem:[%s1279_s3] sm:$0xff] (!%p223_p3)  ;;  %v315_v1 = vld [vmem:[%s1279_s3 + $0x8] sm:$0xff] (!%p223_p3)  ;;  %v316_v2 = vld [vmem:[%s1279_s3 + $0x10] sm:$0xff] (!%p223_p3)  ;;  %v1124_v3 = vmov (!%p223_p3), 0.0|0.0   ;;  %vm1125_vm0 = vmmov (!%p223_p3), 0   ;;  %v1126_v6 = vmov (!%p223_p3), 0.0   ;;  %v470_v46 = vlaneseq (!%p223_p3) }
   0x7   : > { %226 = sbr.rel (%p223_p3) target bundleno = 989 (0x3dd), region = 40  ;;  %1015 = vmatprep.subr.bf16.mxu0 (!%p223_p3), %v1124_v3  ;;  %v1016_v4 = vpack.c.bf16 (!%p223_p3), %v315_v1, %v314_v0  ;;  %v317_v5 = vld [vmem:[%s1279_s3 + $0x18] sm:$0xff] (!%p223_p3)  ;;  %979 = vmatprep.mubr.msk.f32.mxu0 (!%p223_p3), %vm1125_vm0, %v1126_v6  ;;  %p262_p4 = scmp.lt.s32.totalorder (!%p223_p3), %s1114_s18, 1  ;;  %v393_v7 = vld [vmem:[%s1280_s4] sm:$0xff] (!%p223_p3)  ;;  %v394_v8 = vld [vmem:[%s1280_s4 + $0x8] sm:$0xff] (!%p223_p3)  ;;  %vm292_vm1 = vcmask (!%p223_p3), 261120  }
   0x8   : > { %1021 = vmatprep.subr.bf16.mxu1 (!%p223_p3), %v1124_v3  ;;  %v1022_v9 = vpack.c.bf16 (!%p223_p3), %v394_v8, %v393_v7  ;;  %990 = vmatprep.mubr.msk.f32.mxu1 (!%p223_p3), %vm1125_vm0, %v1126_v6  ;;  %v1019_v10 = vpack.c.bf16 (!%p223_p3), %v317_v5, %v316_v2  ;;  %v395_v40 = vld [vmem:[%s1280_s4 + $0x10] sm:$0xff] (!%p223_p3)  ;;  %v396_v41 = vld [vmem:[%s1280_s4 + $0x18] sm:$0xff] (!%p223_p3)  ;;  %v471_v47 = vshrl.u32 (!%p223_p3), %v470_v46, 7  ;;  %vm789_vm2 = vcmask (!%p223_p3), 257024  }
   0x9   : > { %1017 = vmatpush3.bf16.msra.mxu0 (!%p223_p3), %v1016_v4  ;;  %v1025_v42 = vpack.c.bf16 (!%p223_p3), %v396_v41, %v395_v40 }
   0xa   : > { %1018 = vmatprep.subr.bf16.mxu0 (!%p223_p3), %v1124_v3  ;;  %1023 = vmatpush3.bf16.msra.mxu1 (!%p223_p3), %v1022_v9  ;;  %v472_v48 = vsub.s32 (!%p223_p3), 0, %v471_v47 }
   0xb   : > { %1024 = vmatprep.subr.bf16.mxu1 (!%p223_p3), %v1124_v3 }
   0xd   : > { %1020 = vmatpush3.bf16.msra.mxu0 (!%p223_p3), %v1019_v10 }
   0xe   : > { %s1287_s18 = smov (!%p262_p4, %s1114_s18), 1  ;;  %1027 = vmatprep.subr.bf16.mxu0 %v1124_v3  ;;  %1026 = vmatpush3.bf16.msra.mxu1 %v1025_v42 }
   0xf   : > { %s941_s9 = sshll.u32 %s1287_s18, 6  ;;  %1033 = vmatprep.subr.bf16.mxu1 %v1124_v3  ;;  %s942_s25 = sshll.u32 %s1287_s18, 5 }
  0x10   : > { %s269_s12 = scalar_lea.vmem %s1276_s0, %s941_s9  ;;  %s283_s28 = scalar_lea.vmem %s1281_s5, %s942_s25 }
  0x11   : > { %v284_v11 = vld [vmem:[%s269_s12] sm:$0xff]  ;;  %v285_v12 = vld [vmem:[%s269_s12 + $0x8] sm:$0xff]  ;;  %v286_v13 = vld [vmem:[%s269_s12 + $0x10] sm:$0xff] }
  0x12   : > { %v287_v14 = vld [vmem:[%s269_s12 + $0x18] sm:$0xff]  ;;  %v293_v15 = vsel %vm292_vm1, %v284_v11, 0.0  ;;  %v294_v16 = vsel %vm292_vm1, %v285_v12, 0.0  ;;  %v296_v17 = vsel %vm292_vm1, %v286_v13, 0.0  ;;  %v288_v18 = vld [vmem:[%s269_s12 + $0x20] sm:$0xff]  ;;  %v289_v21 = vld [vmem:[%s269_s12 + $0x28] sm:$0xff] }
  0x13   : > { %v295_v19 = vadd.f32 %v294_v16, %v293_v15  ;;  %v298_v20 = vsel %vm292_vm1, %v287_v14, 0.0  ;;  %v300_v23 = vsel %vm292_vm1, %v288_v18, 0.0  ;;  %v290_v24 = vld [vmem:[%s269_s12 + $0x30] sm:$0xff]  ;;  %v302_v26 = vsel %vm292_vm1, %v289_v21, 0.0  ;;  %v291_v27 = vld [vmem:[%s269_s12 + $0x38] sm:$0xff] }
  0x14   : > { %v304_v29 = vsel %vm292_vm1, %v290_v24, 0.0  ;;  %v306_v31 = vsel %vm292_vm1, %v291_v27, 0.0 }
  0x15   : > { %v297_v22 = vadd.f32 %v296_v17, %v295_v19 }
  0x17   : > { %v299_v25 = vadd.f32 %v298_v20, %v297_v22 }
  0x19   : > { %v301_v28 = vadd.f32 %v300_v23, %v299_v25 }
  0x1b   : > { %v303_v30 = vadd.f32 %v302_v26, %v301_v28 }
  0x1d   : > { %v305_v32 = vadd.f32 %v304_v29, %v303_v30 }
  0x1f   : > { %v307_v33 = vadd.f32 %v306_v31, %v305_v32 }
  0x21   : > { %v308_v34 = vrot.slane %v307_v33, 4 }
  0x23   : > { %v309_v35 = vadd.f32 %v308_v34, %v307_v33  ;;  %v921_v33 = vld [vmem:[%s1277_s1] ss:$0 sm:$0xff] }
  0x25   : > { %v310_v36 = vrot.slane %v309_v35, 2 }
  0x27   : > { %v311_v37 = vadd.f32 %v310_v36, %v309_v35 }
  0x29   : > { %v312_v38 = vrot.slane %v311_v37, 1 }
  0x2b   : > { %v313_v39 = vadd.f32 %v312_v38, %v311_v37 }
  0x2d   : > { %980 = vmatmul.mubr.msk.f32.vlgmr.msra.gmra.mrb[0].mxu0 %vm292_vm1, %v313_v39 }
  0x2e   : > { %1029 = vmatpush3.bf16.msra.mxu0 %v1016_v4  ;;  %1001 = vmatprep.mubr.msk.f32.mxu0 %vm1125_vm0, %v1126_v6 }
  0x2f   : > { %1030 = vmatprep.subr.bf16.mxu0 %v1124_v3 }
  0x32   : > { %1032 = vmatpush3.bf16.msra.mxu0 %v1019_v10 }
 0x100   : > { %v387_v43 = vpop.f32.mrb[0].mxu0 }
 0x101   : > { %v392_v44 = vmul.f32 0.015625, %v387_v43  ;;  %v981_v45 = vpop.f32.mrb[1].mxu0 }
 0x103   : > { %991 = vmatmul.mubr.msk.f32.vlgmr.msra.gmra.mrb[0].mxu1 %vm292_vm1, %v392_v44 }
 0x104   : > { %1035 = vmatpush3.bf16.msra.mxu1 %v1022_v9  ;;  %1012 = vmatprep.mubr.msk.f32.mxu1 %vm1125_vm0, %v1126_v6 }
 0x105   : > { %1036 = vmatprep.subr.bf16.mxu1 %v1124_v3 }
 0x108   : > { %1038 = vmatpush3.bf16.msra.mxu1 %v1025_v42  ;;  %v922_v42 = vld [vmem:[%s1278_s2] ss:$0 sm:$0xff] }
 0x1d6   : > { %v466_v49 = vpop.f32.mrb[0].mxu1 }
 0x1d7   : > { %v473_v50 = vrot.slane %v466_v49, %v472_v48  ;;  %v992_v51 = vpop.f32.mrb[1].mxu1 }
 0x1d9   : > { %v474_v52 = vsub.f32 %v284_v11, %v473_v50  ;;  %v475_v53 = vsub.f32 %v285_v12, %v473_v50  ;;  %v476_v54 = vsub.f32 %v286_v13, %v473_v50  ;;  %v477_v55 = vsub.f32 %v287_v14, %v473_v50 }
 0x1da   : > { %v478_v56 = vsub.f32 %v288_v18, %v473_v50  ;;  %v479_v60 = vsub.f32 %v289_v21, %v473_v50  ;;  %v480_v1 = vsub.f32 %v290_v24, %v473_v50  ;;  %v481_v5 = vsub.f32 %v291_v27, %v473_v50 }
 0x1db   : > { %v482_v57 = vmul.f32 %v474_v52, %v474_v52  ;;  %v483_v58 = vmul.f32 %v475_v53, %v475_v53  ;;  %v484_v59 = vmul.f32 %v476_v54, %v476_v54  ;;  %v485_v61 = vmul.f32 %v477_v55, %v477_v55 }
 0x1dc   : > { %v486_v2 = vmul.f32 %v478_v56, %v478_v56  ;;  %v487_v6 = vmul.f32 %v479_v60, %v479_v60  ;;  %v488_v9 = vmul.f32 %v480_v1, %v480_v1  ;;  %v489_v12 = vmul.f32 %v481_v5, %v481_v5 }
 0x1dd   : > { %v490_v62 = vsel %vm292_vm1, %v482_v57, 0.0  ;;  %v491_v63 = vsel %vm292_vm1, %v483_v58, 0.0  ;;  %v493_v3 = vsel %vm292_vm1, %v484_v59, 0.0  ;;  %v495_v7 = vsel %vm292_vm1, %v485_v61, 0.0 }
 0x1de   : > { %v492_v0 = vadd.f32 %v491_v63, %v490_v62  ;;  %v497_v10 = vsel %vm292_vm1, %v486_v2, 0.0  ;;  %v499_v13 = vsel %vm292_vm1, %v487_v6, 0.0  ;;  %v501_v15 = vsel %vm292_vm1, %v488_v9, 0.0 }
 0x1df   : > { %v503_v17 = vsel %vm292_vm1, %v489_v12, 0.0 }
 0x1e0   : > { %v494_v4 = vadd.f32 %v493_v3, %v492_v0 }
 0x1e2   : > { %v496_v8 = vadd.f32 %v495_v7, %v494_v4 }
 0x1e4   : > { %v498_v11 = vadd.f32 %v497_v10, %v496_v8 }
 0x1e6   : > { %v500_v14 = vadd.f32 %v499_v13, %v498_v11 }
 0x1e8   : > { %v502_v16 = vadd.f32 %v501_v15, %v500_v14 }
 0x1ea   : > { %v504_v18 = vadd.f32 %v503_v17, %v502_v16 }
 0x1ec   : > { %v505_v19 = vrot.slane %v504_v18, 4 }
 0x1ee   : > { %v506_v20 = vadd.f32 %v505_v19, %v504_v18 }
 0x1f0   : > { %v507_v21 = vrot.slane %v506_v20, 2 }
 0x1f2   : > { %v508_v22 = vadd.f32 %v507_v21, %v506_v20 }
 0x1f4   : > { %v509_v23 = vrot.slane %v508_v22, 1 }
 0x1f6   : > { %v510_v24 = vadd.f32 %v509_v23, %v508_v22 }
 0x1f8   : > { %1002 = vmatmul.mubr.msk.f32.vlgmr.msra.gmra.mrb[2].mxu0 %vm292_vm1, %v510_v24 }
 0x2cb   : > { %v580_v25 = vpop.f32.mrb[2].mxu0 }
 0x2cc   : > { %v584_v26 = vmul.f32 0.015625, %v580_v25  ;;  %v1003_v27 = vpop.f32.mrb[3].mxu0 }
 0x2ce   : > { %1013 = vmatmul.mubr.msk.f32.vlgmr.msra.gmra.mrb[2].mxu1 %vm292_vm1, %v584_v26 }
 0x3a1   : > { %v654_v28 = vpop.f32.mrb[2].mxu1 }
 0x3a2   : > { %v655_v29 = vadd.f32 1e-05, %v654_v28  ;;  %v1014_v30 = vpop.f32.mrb[3].mxu1 }
 0x3a4   : > { %1066 = vrsqrt.f32 %v655_v29 }
 0x3ae   : > { %v1067_v31 = vpop.eup %1066 }
 0x3af   : > { %v662_v32 = vrot.slane %v1067_v31, %v472_v48 }
 0x3b1   : > { %v663_v34 = vmul.f32 %v662_v32, %v474_v52  ;;  %v664_v35 = vmul.f32 %v662_v32, %v475_v53  ;;  %v665_v36 = vmul.f32 %v662_v32, %v476_v54  ;;  %v666_v37 = vmul.f32 %v662_v32, %v477_v55 }
 0x3b2   : > { %v667_v38 = vmul.f32 %v662_v32, %v478_v56  ;;  %v668_v39 = vmul.f32 %v662_v32, %v479_v60  ;;  %v669_v40 = vmul.f32 %v662_v32, %v480_v1  ;;  %v670_v41 = vmul.f32 %v662_v32, %v481_v5 }
 0x3b3   : > { %v678_v43 = vmul.f32 %v921_v33, %v663_v34  ;;  %v679_v44 = vmul.f32 %v921_v33, %v664_v35  ;;  %v680_v45 = vmul.f32 %v921_v33, %v665_v36  ;;  %v681_v46 = vmul.f32 %v921_v33, %v666_v37 }
 0x3b4   : > { %v682_v47 = vmul.f32 %v921_v33, %v667_v38  ;;  %v683_v48 = vmul.f32 %v921_v33, %v668_v39  ;;  %v684_v49 = vmul.f32 %v921_v33, %v669_v40  ;;  %v685_v50 = vmul.f32 %v921_v33, %v670_v41 }
 0x3b5   : > { %v693_v51 = vadd.f32 %v922_v42, %v678_v43  ;;  %v694_v52 = vadd.f32 %v922_v42, %v679_v44  ;;  %v695_v53 = vadd.f32 %v922_v42, %v680_v45  ;;  %v696_v54 = vadd.f32 %v922_v42, %v681_v46 }
 0x3b6   : > { %v697_v55 = vadd.f32 %v922_v42, %v682_v47  ;;  %v698_v56 = vadd.f32 %v922_v42, %v683_v48  ;;  %v1247_v57 = vadd.f32 %v922_v42, %v684_v49  ;;  %v1249_v61 = vadd.f32 %v922_v42, %v685_v50 }
 0x3b7   : > { %v923_v58 = vmul.f32 -1.442695, %v693_v51  ;;  %v924_v59 = vmul.f32 -1.442695, %v694_v52  ;;  %v925_v60 = vmul.f32 -1.442695, %v695_v53 }
 0x3b8   : > { %v926_v62 = vmul.f32 -1.442695, %v696_v54  ;;  %v927_v63 = vmul.f32 -1.442695, %v697_v55  ;;  %v928_v0 = vmul.f32 -1.442695, %v698_v56 }
 0x3b9   : > { %1068 = vpow2.f32 %v923_v58  ;;  %v929_v1 = vmul.f32 -1.442695, %v1247_v57  ;;  %v930_v2 = vmul.f32 -1.442695, %v1249_v61 }
 0x3ba   : > { %1070 = vpow2.f32 %v924_v59 }
 0x3bb   : > { %1072 = vpow2.f32 %v925_v60 }
 0x3bc   : > { %1074 = vpow2.f32 %v926_v62 }
 0x3bd   : > { %1076 = vpow2.f32 %v927_v63 }
 0x3be   : > { %1078 = vpow2.f32 %v928_v0 }
 0x3bf   : > { %1080 = vpow2.f32 %v929_v1 }
 0x3c0   : > { %1082 = vpow2.f32 %v930_v2 }
 0x3c3   : > { %v1069_v3 = vpop.eup %1068 }
 0x3c4   : > { %v1071_v4 = vpop.eup %1070  ;;  %v725_v5 = vadd.f32 1.0, %v1069_v3 }
 0x3c5   : > { %v1073_v6 = vpop.eup %1072  ;;  %v726_v7 = vadd.f32 1.0, %v1071_v4 }
 0x3c6   : > { %v1075_v8 = vpop.eup %1074  ;;  %v727_v9 = vadd.f32 1.0, %v1073_v6  ;;  %1084 = vrcp.f32 %v725_v5 }
 0x3c7   : > { %v1077_v10 = vpop.eup %1076  ;;  %v728_v11 = vadd.f32 1.0, %v1075_v8  ;;  %1086 = vrcp.f32 %v726_v7 }
 0x3c8   : > { %v1079_v12 = vpop.eup %1078  ;;  %v729_v13 = vadd.f32 1.0, %v1077_v10  ;;  %1088 = vrcp.f32 %v727_v9 }
 0x3c9   : > { %v1081_v14 = vpop.eup %1080  ;;  %v730_v15 = vadd.f32 1.0, %v1079_v12  ;;  %1090 = vrcp.f32 %v728_v11 }
 0x3ca   : > { %v1083_v16 = vpop.eup %1082  ;;  %v731_v17 = vadd.f32 1.0, %v1081_v14  ;;  %1092 = vrcp.f32 %v729_v13 }
 0x3cb   : > { %v732_v18 = vadd.f32 1.0, %v1083_v16  ;;  %1094 = vrcp.f32 %v730_v15 }
 0x3cc   : > { %1096 = vrcp.f32 %v731_v17 }
 0x3cd   : > { %1098 = vrcp.f32 %v732_v18 }
 0x3d0   : > { %v1085_v19 = vpop.eup %1084 }
 0x3d1   : > { %v1087_v20 = vpop.eup %1086  ;;  %v749_v21 = vmul.f32 %v1085_v19, %v693_v51 }
 0x3d2   : > { %v1089_v22 = vpop.eup %1088  ;;  %v750_v23 = vmul.f32 %v1087_v20, %v694_v52 }
 0x3d3   : > { %v1091_v24 = vpop.eup %1090  ;;  %v751_v25 = vmul.f32 %v1089_v22, %v695_v53  ;;  %v943_v26 = vpack.c.bf16 %v749_v21, %v749_v21 }
 0x3d4   : > { %v1093_v27 = vpop.eup %1092  ;;  %v752_v28 = vmul.f32 %v1091_v24, %v696_v54  ;;  %v944_v29 = vpack.c.bf16 %v750_v23, %v750_v23 }
 0x3d5   : > { %v1095_v30 = vpop.eup %1094  ;;  %v753_v31 = vmul.f32 %v1093_v27, %v697_v55  ;;  %v945_v32 = vpack.c.bf16 %v751_v25, %v751_v25  ;;  %790 = vst.msk [vmem:[%s283_s28] sm:$0xf] %vm789_vm2, %v943_v26 }
 0x3d6   : > { %v1097_v33 = vpop.eup %1096  ;;  %v754_v34 = vmul.f32 %v1095_v30, %v698_v56  ;;  %v946_v35 = vpack.c.bf16 %v752_v28, %v752_v28  ;;  %791 = vst.msk [vmem:[%s283_s28 + $0x4] sm:$0xf] %vm789_vm2, %v944_v29 }
 0x3d7   : > { %v1099_v36 = vpop.eup %1098  ;;  %v755_v37 = vmul.f32 %v1097_v33, %v1247_v57  ;;  %v947_v38 = vpack.c.bf16 %v753_v31, %v753_v31  ;;  %792 = vst.msk [vmem:[%s283_s28 + $0x8] sm:$0xf] %vm789_vm2, %v945_v32 }
 0x3d8   : > { %v756_v39 = vmul.f32 %v1099_v36, %v1249_v61  ;;  %v948_v40 = vpack.c.bf16 %v754_v34, %v754_v34  ;;  %793 = vst.msk [vmem:[%s283_s28 + $0xc] sm:$0xf] %vm789_vm2, %v946_v35 }
 0x3d9   : > { %v949_v41 = vpack.c.bf16 %v755_v37, %v755_v37  ;;  %794 = vst.msk [vmem:[%s283_s28 + $0x10] sm:$0xf] %vm789_vm2, %v947_v38 }
 0x3da   : > { %v950_v42 = vpack.c.bf16 %v756_v39, %v756_v39  ;;  %795 = vst.msk [vmem:[%s283_s28 + $0x14] sm:$0xf] %vm789_vm2, %v948_v40 }
 0x3db   : > { %796 = vst.msk [vmem:[%s283_s28 + $0x18] sm:$0xf] %vm789_vm2, %v949_v41 }
 0x3dc   : > { %797 = vst.msk [vmem:[%s283_s28 + $0x1c] sm:$0xf] %vm789_vm2, %v950_v42 }
 0x3dd PF: > { %s15_s20 = sadd.s32 1, %s1122_s20   ;;  %s1282_s18 = smov %s1118_s19 }
 0x3de   : > { %p12_p5 = scmp.ge.s32.totalorder %s15_s20, 4   ;;  %s1283_s19 = smov %s1285_s21 }
 0x3e0   :  { %14 = sbr.rel (!%p12_p5) target bundleno = 2 (0x2), region = 76 }

// kernel: upsample_block_forward.17
= control target key start
LH: loop header
LB: loop body
LE: loop exit
PB: predicated region body
PF: predicated region fallthrough
CT: control target
= control target key end

     0   :  { %s2329_s12 = smov 0   ;;  %s2331_s13 = smov 0   ;;  %s2808_s0 = inlined_call_operand.vmem [shape: bf16[2,1,110,32], index: 0, kind: input, shape index: {}]   ;;  %s2809_s1 = inlined_call_operand.vmem [shape: bf16[9,32,32], index: 1, kind: input, shape index: {}]   ;;  %s2810_s2 = inlined_call_operand.vmem [shape: f32[1,32], index: 2, kind: input, shape index: {}]   ;;  %s2811_s3 = inlined_call_operand.vmem [shape: f32[2,8,8,32], index: 3, kind: output, shape index: {}]  }
   0x1   :  { %s2333_s14 = smov 0  }
   0x2 LB: > { %s32_s15 = sadd.s32 1, %s2301_s13  ;;  %p1793_p0 = scmp.ge.s32.totalorder %s2305_s14, 1  ;;  %s2305_s14 = sphi %s2333_s14, %s13_s14   ;;  %s2301_s13 = sphi %s2331_s13, %s2813_s13   ;;  %s2297_s12 = sphi %s2329_s12, %s2812_s12  }
   0x3   : > { %p34_p1 = scmp.ge.s32.totalorder %s32_s15, 2  ;;  %p183_p2 = scmp.lt.s32.totalorder %s2305_s14, 3 }
   0x5   : > { %s2815_s15 = smov (%p34_p1, %s32_s15), 0  ;;  %p184_p3 = pnand %p1793_p0, %p183_p2 }
   0x6   : > { %v2242_v0 = vld [vmem:[%s2809_s1 + $0x10] sm:$0xff] (!%p184_p3)   ;;  %v2307_v1 = vmov (!%p184_p3), 0.0   ;;  %v2243_v2 = vld [vmem:[%s2809_s1 + $0x18] sm:$0xff] (!%p184_p3)   ;;  %p225_p4 = scmp.lt.s32.totalorder (!%p184_p3), %s2297_s12, 1  ;;  %vm2308_vm0 = vmmov (!%p184_p3), 0   ;;  %vm360_vm2 = vcmask (!%p184_p3), 261120  }
   0x7   : > { %187 = sbr.rel (%p184_p3) target bundleno = 423 (0x1a7), region = 32  ;;  %1995 = vmatprep.subr.bf16.mxu0 (!%p184_p3), %v2307_v1  ;;  %2211 = vmatprep.subr.bf16.mxu1 (!%p184_p3), %v2307_v1  ;;  %vm303_vm1 = vsmask.f32 (!%p184_p3), 7424  ;;  %v2248_v21 = vld [vmem:[%s2809_s1 + $0x20] sm:$0xff] (!%p184_p3)   ;;  %v2252_v33 = vld [vmem:[%s2809_s1 + $0x28] sm:$0xff] (!%p184_p3)   ;;  %v2254_v48 = vld [vmem:[%s2809_s1 + $0x30] sm:$0xff] (!%p184_p3)  }
   0x8   : > { %1996 = vmatpush3.bf16.msra.mxu0 (!%p184_p3), %v2242_v0  ;;  %2213 = vmatpush3.bf16.msra.mxu1 (!%p184_p3), %v2242_v0  ;;  %v2249_v27 = vld [vmem:[%s2809_s1] sm:$0xff] (!%p184_p3)   ;;  %v2253_v36 = vld [vmem:[%s2809_s1 + $0x8] sm:$0xff] (!%p184_p3)   ;;  %vm553_vm3 = vcmask (!%p184_p3), 1046528   ;;  %v2257_v52 = vld [vmem:[%s2809_s1 + $0x38] sm:$0xff] (!%p184_p3)   ;;  %vm849_vm4 = vsmask.f32 (!%p184_p3), 6400 }
   0x9   : > { %1997 = vmatprep.subr.bf16.mxu0 (!%p184_p3), %v2307_v1  ;;  %2212 = vmatprep.subr.bf16.mxu1 (!%p184_p3), %v2307_v1  ;;  %v2256_v54 = vld [vmem:[%s2809_s1 + $0x40] sm:$0xff] (!%p184_p3)   ;;  %v2258_v56 = vld [vmem:[%s2809_s1 + $0x48] sm:$0xff] (!%p184_p3)   ;;  %vm1022_vm5 = vcmask (!%p184_p3), 1045504   ;;  %vm1318_vm6 = vsmask.f32 (!%p184_p3), 5376  ;;  %vm1491_vm7 = vcmask (!%p184_p3), 1044480  }
   0xa   : > { %1999 = vmatprep.mubr.msk.bf16.mxu0 (!%p184_p3), %vm2308_vm0, %v2307_v1  ;;  %2011 = vmatprep.mubr.msk.bf16.mxu1 (!%p184_p3), %vm2308_vm0, %v2307_v1  ;;  %vm1632_vm8 = vcmask (!%p184_p3), 261122   ;;  %vm1634_vm9 = vcmask (!%p184_p3), 254976   ;;  %vm1637_vm10 = vcmask (!%p184_p3), 261124   ;;  %vm1639_vm11 = vcmask (!%p184_p3), 257024  }
   0xb   : > { %vm1642_vm12 = vcmask (!%p184_p3), 261126   ;;  %vm1644_vm13 = vcmask (!%p184_p3), 259072  }
   0xc   : > { %1998 = vmatpush3.bf16.msra.mxu0 (!%p184_p3), %v2243_v2  ;;  %2214 = vmatpush3.bf16.msra.mxu1 (!%p184_p3), %v2243_v2 }
   0xd   : > { %2043 = vmatprep.subr.bf16.mxu0 (!%p184_p3), %v2307_v1  ;;  %2019 = vmatprep.subr.bf16.mxu1 (!%p184_p3), %v2307_v1 }
   0xe   : > { %s2817_s12 = smov (!%p225_p4, %s2297_s12), 1 }
   0xf   : > { %s2215_s20 = smul.u32 56, %s2817_s12 }
  0x11   : > { %s2369_s23 = scalar_lea.vmem %s2808_s0, %s2215_s20 }
  0x12   : > { %v255_v3 = vld [vmem:[%s2369_s23] sm:$0xf]  ;;  %v2373_v4 = vld [vmem:[%s2369_s23 + $0x4] sm:$0xf]  ;;  %v2379_v6 = vld [vmem:[%s2369_s23 + $0x8] sm:$0xff]  }
  0x13   : > { %v2376_v5 = vcombine.low %v255_v3, %v2373_v4  ;;  %v312_v9 = vshll.u32 %v2379_v6, 16  ;;  %v2385_v10 = vld [vmem:[%s2369_s23 + $0x18] sm:$0xff]   ;;  %v2388_v11 = vld [vmem:[%s2369_s23 + $0x20] sm:$0xff]   ;;  %v2391_v12 = vld [vmem:[%s2369_s23 + $0x10] sm:$0xff]   ;;  %v316_v22 = vshrl.u32 %v2379_v6, 16  ;;  %v555_v51 = vrot.slane %v2379_v6, 1 }
  0x14   : > { %v328_v15 = vshll.u32 %v2385_v10, 16  ;;  %v332_v16 = vshrl.u32 %v2385_v10, 16  ;;  %v336_v17 = vshll.u32 %v2388_v11, 16  ;;  %v2397_v18 = vld [vmem:[%s2369_s23 + $0x28] ss:$0 sps:$4 sm:$0x11]  }
  0x15   : > { %v305_v7 = vshrl.u32 %v2376_v5, 16  ;;  %v307_v8 = vshll.u32 %v2376_v5, 16  ;;  %v314_v14 = vrot.slane %v312_v9, 1  ;;  %v320_v23 = vshll.u32 %v2391_v12, 16  ;;  %v544_v41 = vld [vmem:[%s2369_s23] sm:$0xe] }
  0x16   : > { %v330_v20 = vrot.slane %v328_v15, 1  ;;  %v338_v24 = vrot.slane %v336_v17, 1  ;;  %v340_v28 = vshrl.u32 %v2388_v11, 16  ;;  %v344_v29 = vshll.u32 %v2397_v18, 16  ;;  %v2436_v42 = vld [vmem:[%s2369_s23 + $0x24] sm:$0xff]   ;;  %v2507_v2 = vld [vmem:[%s2369_s23 + $0xc] sm:$0xff]  }
  0x17   : > { %v309_v13 = vrot.slane %v307_v8, 1  ;;  %v318_v31 = vor.u32 %v316_v22, %v314_v14  ;;  %v322_v32 = vrot.slane %v320_v23, 1  ;;  %v324_v38 = vshrl.u32 %v2391_v12, 16  ;;  %v2268_v43 = vld [vmem:[%s2369_s23 + $0x2c] ss:$0 sps:$4 sm:$0x11]  }
  0x18   : > { %v334_v26 = vor.u32 %v332_v16, %v330_v20  ;;  %v342_v34 = vor.u32 %v340_v28, %v338_v24  ;;  %v346_v35 = vrot.slane %v344_v29, 1  ;;  %v1825_v45 = vcombine.low %v544_v41, %v2373_v4  ;;  %v675_v61 = vld [vmem:[%s2369_s23 + $0x4] sm:$0xe]  ;;  %v2502_v62 = vld [vmem:[%s2369_s23 + $0x8] sm:$0xf]  ;;  %v2261_v17 = vld [vmem:[%s2809_s1 + $0x50] sm:$0xff]  }
  0x19   : > { %v310_v19 = vor.u32 %v309_v13, %v305_v7  ;;  %v323_v37 = vsel %vm303_vm1, %v318_v31, %v322_v32  ;;  %v326_v40 = vor.u32 %v324_v38, %v322_v32  ;;  %v726_v46 = vrot.slane %v2436_v42, 1  ;;  %v2266_v23 = vld [vmem:[%s2809_s1 + $0x58] sm:$0xff]  }
  0x1a   : > { %v339_v30 = vsel %vm303_vm1, %v334_v26, %v338_v24  ;;  %v347_v39 = vsel %vm303_vm1, %v342_v34, %v346_v35  ;;  %v728_v47 = vrot.slane %v2268_v43, 1  ;;  %v554_v50 = vrot.slane %v1825_v45, 1  ;;  %v2547_v29 = vld [vmem:[%s2369_s23 + $0x1c] sm:$0xff]  }
  0x1b   : > { %v315_v25 = vsel %vm303_vm1, %v310_v19, %v314_v14  ;;  %2012 = vmatmul.mubr.msk.bf16.vlgmr.msra.gmra.mrb[0].mxu1 %vm360_vm2, %v339_v30  ;;  %v331_v44 = vsel %vm303_vm1, %v326_v40, %v330_v20  ;;  %v557_v55 = vrot.slane %v2391_v12, 1  ;;  %v559_v58 = vrot.slane %v2385_v10, 1 }
  0x1c   : > { %2000 = vmatmul.mubr.msk.bf16.vlgmr.msra.gmra.mrb[0].mxu0 %vm360_vm2, %v315_v25  ;;  %2020 = vmatpush3.bf16.msra.mxu1 %v2249_v27  ;;  %v2451_v49 = vsel %vm553_vm3, %v726_v46, %v728_v47  ;;  %v556_v53 = vsel %vm553_vm3, %v554_v50, %v555_v51  ;;  %v561_v60 = vrot.slane %v2388_v11, 1  ;;  %v1837_v0 = vcombine.low %v675_v61, %v2502_v62  ;;  %v2263_v25 = vld [vmem:[%s2809_s1 + $0x60] sm:$0xff]   ;;  %v2576_v47 = vld [vmem:[%s2369_s23 + $0x2c] ss:$0 sps:$4 sm:$0x33]  }
  0x1d   : > { %2044 = vmatpush3.bf16.msra.mxu0 %v2248_v21  ;;  %2003 = vmatprep.mubr.msk.bf16.mxu0 %vm2308_vm0, %v2307_v1  ;;  %v558_v57 = vsel %vm553_vm3, %v555_v51, %v557_v55  ;;  %v560_v59 = vsel %vm553_vm3, %v557_v55, %v559_v58  ;;  %v563_v3 = vrot.slane %v2397_v18, 1  ;;  %v862_v7 = vshll.u32 %v2507_v2, 16  ;;  %v2526_v18 = vld [vmem:[%s2369_s23 + $0x14] sm:$0xff]  }
  0x1e   : > { %2045 = vmatprep.subr.bf16.mxu0 %v2307_v1  ;;  %2015 = vmatprep.mubr.msk.bf16.mxu1 %vm2308_vm0, %v2307_v1  ;;  %v562_v63 = vsel %vm553_vm3, %v559_v58, %v561_v60  ;;  %v851_v4 = vshrl.u32 %v1837_v0, 16  ;;  %v719_v8 = vrot.slane %v1837_v0, 1  ;;  %v720_v9 = vrot.slane %v2507_v2, 1  ;;  %v1144_v58 = vld [vmem:[%s2369_s23 + $0x8] sm:$0xc] }
  0x1f   : > { %2021 = vmatprep.subr.bf16.mxu1 %v2307_v1  ;;  %v864_v15 = vrot.slane %v862_v7, 2  ;;  %v868_v20 = vshrl.u32 %v2526_v18, 16  ;;  %v871_v21 = vshll.u32 %v2526_v18, 16  ;;  %v722_v22 = vrot.slane %v2526_v18, 1 }
  0x20   : > { %2022 = vmatpush3.bf16.msra.mxu1 %v2253_v36  ;;  %v721_v16 = vsel %vm553_vm3, %v719_v8, %v720_v9  ;;  %v877_v31 = vshrl.u32 %v2547_v29, 16  ;;  %v880_v32 = vshll.u32 %v2547_v29, 16  ;;  %v724_v34 = vrot.slane %v2547_v29, 1  ;;  %v2274_v8 = vld [vmem:[%s2809_s1 + $0x80] sm:$0xff]  }
  0x21   : > { %2046 = vmatpush3.bf16.msra.mxu0 %v2252_v33  ;;  %2067 = vmatprep.subr.bf16.mxu1 %v2307_v1  ;;  %v870_v26 = vrot.slane %v868_v20, 1  ;;  %v873_v27 = vrot.slane %v871_v21, 2  ;;  %v723_v28 = vsel %vm553_vm3, %v720_v9, %v722_v22  ;;  %v2267_v33 = vld [vmem:[%s2809_s1 + $0x68] sm:$0xff]   ;;  %v886_v40 = vshrl.u32 %v2436_v42, 16  ;;  %v2630_v9 = vld [vmem:[%s2369_s23 + $0x18] sm:$0xff]  }
  0x22   : > { %2091 = vmatprep.subr.bf16.mxu0 %v2307_v1  ;;  %v879_v36 = vrot.slane %v877_v31, 1  ;;  %v725_v38 = vsel %vm553_vm3, %v722_v22, %v724_v34  ;;  %v889_v41 = vshll.u32 %v2436_v42, 16  ;;  %v895_v51 = vshrl.u32 %v2576_v47, 16  ;;  %v2660_v20 = vld [vmem:[%s2369_s23 + $0x28] sm:$0xff]  }
  0x23   : > { %2016 = vmatmul.mubr.msk.bf16.gmra.mrb[4].mxu1 %vm360_vm2, %v347_v39  ;;  %v874_v30 = vor.u32 %v873_v27, %v870_v26  ;;  %v1024_v61 = vrot.slane %v2507_v2, 2  ;;  %v1195_v22 = vrot.slane %v2660_v20, 2 }
  0x24   : > { %2004 = vmatmul.mubr.msk.bf16.gmra.mrb[4].mxu0 %vm360_vm2, %v323_v37  ;;  %2023 = vmatprep.mubr.msk.bf16.mxu1 %vm2308_vm0, %v2307_v1  ;;  %v882_v37 = vrot.slane %v880_v32, 2  ;;  %v891_v45 = vrot.slane %v889_v41, 2 }
  0x25   : > { %2007 = vmatprep.mubr.msk.bf16.mxu0 %vm2308_vm0, %v2307_v1 }
  0x26   : > { %v883_v39 = vor.u32 %v882_v37, %v879_v36 }
  0x28   : > { %v884_v43 = vsel %vm849_vm4, %v874_v30, %v883_v39 }
  0x2b   : > { %2024 = vmatmul.mubr.msk.bf16.vlgmr.msra.gmra.mrb[8].mxu1 %vm360_vm2, %v2376_v5  ;;  %v854_v5 = vshll.u32 %v1837_v0, 16  ;;  %v2607_v0 = vld [vmem:[%s2369_s23 + $0x10] sm:$0xff]  }
  0x2c   : > { %2008 = vmatmul.mubr.msk.bf16.gmra.mrb[8].mxu0 %vm360_vm2, %v331_v44  ;;  %2068 = vmatpush3.bf16.msra.mxu1 %v2254_v48  ;;  %v888_v44 = vrot.slane %v886_v40, 1  ;;  %v727_v48 = vsel %vm553_vm3, %v724_v34, %v726_v46  ;;  %v1331_v26 = vshll.u32 %v2607_v0, 16 }
  0x2d   : > { %2047 = vmatprep.mubr.msk.bf16.mxu0 %vm2308_vm0, %v2307_v1  ;;  %2027 = vmatprep.mubr.msk.bf16.mxu1 %vm2308_vm0, %v2307_v1  ;;  %v856_v13 = vrot.slane %v854_v5, 2  ;;  %v1026_v5 = vrot.slane %v2526_v18, 2 }
  0x2e   : > { %2069 = vmatprep.subr.bf16.mxu1 %v2307_v1  ;;  %v892_v50 = vor.u32 %v891_v45, %v888_v44 }
  0x30   : > { %2070 = vmatpush3.bf16.msra.mxu1 %v2257_v52  ;;  %v898_v52 = vshll.u32 %v2576_v47, 16  ;;  %v893_v46 = vsel %vm849_vm4, %v883_v39, %v892_v50  ;;  %v1340_v39 = vshll.u32 %v2630_v9, 16 }
  0x31   : > { %2115 = vmatprep.subr.bf16.mxu1 %v2307_v1 }
  0x32   : > { %v900_v55 = vrot.slane %v898_v52, 2  ;;  %v1342_v45 = vrot.slane %v1340_v39, 3 }
  0x33   : > { %2028 = vmatmul.mubr.msk.bf16.gmra.mrb[12].mxu1 %vm360_vm2, %v2379_v6  ;;  %v859_v6 = vshrl.u32 %v2507_v2, 16 }
  0x34   : > { %2048 = vmatmul.mubr.msk.bf16.vlgmr.msra.gmra.mrb[12].mxu0 %vm360_vm2, %v556_v53  ;;  %2031 = vmatprep.mubr.msk.bf16.mxu1 %vm2308_vm0, %v2307_v1  ;;  %v1013_v53 = vld [vmem:[%s2369_s23 + $0x4] sm:$0xc] }
  0x35   : > { %2092 = vmatpush3.bf16.msra.mxu0 %v2256_v54  ;;  %2051 = vmatprep.mubr.msk.bf16.mxu0 %vm2308_vm0, %v2307_v1  ;;  %v861_v14 = vrot.slane %v859_v6, 1  ;;  %v897_v54 = vrot.slane %v895_v51, 1  ;;  %v2277_v6 = vld [vmem:[%s2809_s1 + $0x78] sm:$0xff]  }
  0x36   : > { %2093 = vmatprep.subr.bf16.mxu0 %v2307_v1 }
  0x37   : > { %v865_v19 = vor.u32 %v864_v15, %v861_v14  ;;  %v1028_v14 = vrot.slane %v2547_v29, 2 }
  0x39   : > { %2094 = vmatpush3.bf16.msra.mxu0 %v2258_v56  ;;  %v875_v35 = vsel %vm849_vm4, %v865_v19, %v874_v30  ;;  %v1866_v56 = vcombine.low %v1013_v53, %v2502_v62 }
  0x3a   : > { %2139 = vmatprep.subr.bf16.mxu0 %v2307_v1 }
  0x3b   : > { %2032 = vmatmul.mubr.msk.bf16.gmra.mrb[16].mxu1 %vm360_vm2, %v2391_v12  ;;  %v853_v12 = vrot.slane %v851_v4, 1  ;;  %v1189_v4 = vrot.slane %v2607_v0, 2 }
  0x3c   : > { %2052 = vmatmul.mubr.msk.bf16.gmra.mrb[16].mxu0 %vm360_vm2, %v558_v57  ;;  %2035 = vmatprep.mubr.msk.bf16.mxu1 %vm2308_vm0, %v2307_v1  ;;  %v901_v57 = vor.u32 %v900_v55, %v897_v54 }
  0x3d   : > { %2055 = vmatprep.mubr.msk.bf16.mxu0 %vm2308_vm0, %v2307_v1 }
  0x3e   : > { %v902_v62 = vsel %vm849_vm4, %v892_v50, %v901_v57 }
  0x43   : > { %2036 = vmatmul.mubr.msk.bf16.gmra.mrb[20].mxu1 %vm360_vm2, %v2385_v10  ;;  %v564_v10 = vsel %vm553_vm3, %v561_v60, %v563_v3  ;;  %v1023_v60 = vrot.slane %v1866_v56, 2  ;;  %v1495_v56 = vrot.slane %v2630_v9, 3 }
  0x44   : > { %2056 = vmatmul.mubr.msk.bf16.gmra.mrb[20].mxu0 %vm360_vm2, %v560_v59  ;;  %2039 = vmatprep.mubr.msk.bf16.mxu1 %vm2308_vm0, %v2307_v1  ;;  %v2599_v59 = vld [vmem:[%s2369_s23 + $0xc] sm:$0xf] }
  0x45   : > { %2059 = vmatprep.mubr.msk.bf16.mxu0 %vm2308_vm0, %v2307_v1  ;;  %v1025_v3 = vsel %vm1022_vm5, %v1023_v60, %v1024_v61 }
  0x4b   : > { %2040 = vmatmul.mubr.msk.bf16.gmra.mrb[24].mxu1 %vm360_vm2, %v2388_v11  ;;  %v857_v11 = vor.u32 %v856_v13, %v853_v12  ;;  %v1191_v12 = vrot.slane %v2630_v9, 2  ;;  %v2278_v13 = vld [vmem:[%s2809_s1 + $0x88] sm:$0xff]  }
  0x4c   : > { %2060 = vmatmul.mubr.msk.bf16.gmra.mrb[24].mxu0 %vm360_vm2, %v562_v63  ;;  %2071 = vmatprep.mubr.msk.bf16.mxu1 %vm2308_vm0, %v2307_v1  ;;  %v1878_v63 = vcombine.low %v1144_v58, %v2599_v59  ;;  %v1355_v58 = vshrl.u32 %v2660_v20, 16 }
  0x4d   : > { %2063 = vmatprep.mubr.msk.bf16.mxu0 %vm2308_vm0, %v2307_v1  ;;  %v866_v24 = vsel %vm849_vm4, %v857_v11, %v865_v19  ;;  %v1192_v15 = vsel %vm1022_vm5, %v1189_v4, %v1191_v12  ;;  %v1030_v11 = vrot.slane %v2436_v42, 2 }
  0x4e   : > { %v1188_v2 = vrot.slane %v1878_v63, 2  ;;  %v1320_v42 = vshrl.u32 %v1878_v63, 16 }
  0x4f   : > { %v1031_v21 = vsel %vm1022_vm5, %v1028_v14, %v1030_v11 }
  0x50   : > { %v1190_v7 = vsel %vm1022_vm5, %v1188_v2, %v1189_v4  ;;  %v1322_v30 = vrot.slane %v1320_v42, 2 }
  0x53   : > { %2072 = vmatmul.mubr.msk.bf16.vlgmr.msra.gmra.mrb[28].mxu1 %vm360_vm2, %v721_v16  ;;  %v2647_v16 = vld [vmem:[%s2369_s23 + $0x20] sm:$0xff]  }
  0x54   : > { %2064 = vmatmul.mubr.msk.bf16.gmra.mrb[28].mxu0 %vm360_vm2, %v564_v10  ;;  %2116 = vmatpush3.bf16.msra.mxu1 %v2261_v17  ;;  %v1027_v10 = vsel %vm1022_vm5, %v1024_v61, %v1026_v5  ;;  %v1029_v17 = vsel %vm1022_vm5, %v1026_v5, %v1028_v14  ;;  %v1193_v18 = vrot.slane %v2647_v16, 2  ;;  %v1346_v51 = vshrl.u32 %v2647_v16, 16 }
  0x55   : > { %2095 = vmatprep.mubr.msk.bf16.mxu0 %vm2308_vm0, %v2307_v1  ;;  %2075 = vmatprep.mubr.msk.bf16.mxu1 %vm2308_vm0, %v2307_v1  ;;  %v1349_v52 = vshll.u32 %v2647_v16, 16 }
  0x56   : > { %2117 = vmatprep.subr.bf16.mxu1 %v2307_v1  ;;  %v1194_v19 = vsel %vm1022_vm5, %v1191_v12, %v1193_v18  ;;  %v1196_v27 = vsel %vm1022_vm5, %v1193_v18, %v1195_v22  ;;  %v1348_v54 = vrot.slane %v1346_v51, 2 }
  0x57   : > { %v1351_v55 = vrot.slane %v1349_v52, 3 }
  0x58   : > { %2118 = vmatpush3.bf16.msra.mxu1 %v2266_v23  ;;  %v1032_v23 = vrot.slane %v2576_v47, 2 }
  0x59   : > { %2163 = vmatprep.subr.bf16.mxu1 %v2307_v1  ;;  %v1352_v57 = vor.u32 %v1351_v55, %v1348_v54 }
  0x5a   : > { %v1033_v29 = vsel %vm1022_vm5, %v1030_v11, %v1032_v23 }
  0x5b   : > { %2076 = vmatmul.mubr.msk.bf16.gmra.mrb[32].mxu1 %vm360_vm2, %v723_v28  ;;  %v2280_v28 = vld [vmem:[%s2369_s23 + $0x30] ss:$0 sps:$4 sm:$0x33]  }
  0x5c   : > { %2096 = vmatmul.mubr.msk.bf16.vlgmr.msra.gmra.mrb[32].mxu0 %vm360_vm2, %v866_v24  ;;  %2079 = vmatprep.mubr.msk.bf16.mxu1 %vm2308_vm0, %v2307_v1  ;;  %v1323_v24 = vshll.u32 %v1878_v63, 16  ;;  %v1197_v34 = vrot.slane %v2280_v28, 2 }
  0x5d   : > { %2140 = vmatpush3.bf16.msra.mxu0 %v2263_v25  ;;  %2099 = vmatprep.mubr.msk.bf16.mxu0 %vm2308_vm0, %v2307_v1  ;;  %v1328_v25 = vshrl.u32 %v2607_v0, 16 }
  0x5e   : > { %2141 = vmatprep.subr.bf16.mxu0 %v2307_v1  ;;  %v1325_v31 = vrot.slane %v1323_v24, 3  ;;  %v1198_v40 = vsel %vm1022_vm5, %v1195_v22, %v1197_v34 }
  0x5f   : > { %v1330_v32 = vrot.slane %v1328_v25, 2 }
  0x60   : > { %v1326_v36 = vor.u32 %v1325_v31, %v1322_v30 }
  0x61   : > { %2142 = vmatpush3.bf16.msra.mxu0 %v2267_v33  ;;  %v1333_v33 = vrot.slane %v1331_v26, 3 }
  0x62   : > { %2187 = vmatprep.subr.bf16.mxu0 %v2307_v1 }
  0x63   : > { %2080 = vmatmul.mubr.msk.bf16.gmra.mrb[36].mxu1 %vm360_vm2, %v725_v38  ;;  %v1334_v37 = vor.u32 %v1333_v33, %v1330_v32  ;;  %v1337_v38 = vshrl.u32 %v2630_v9, 16  ;;  %v1499_v9 = vrot.slane %v2660_v20, 3 }
  0x64   : > { %2100 = vmatmul.mubr.msk.bf16.gmra.mrb[36].mxu0 %vm360_vm2, %v875_v35  ;;  %2083 = vmatprep.mubr.msk.bf16.mxu1 %vm2308_vm0, %v2307_v1  ;;  %v1482_v35 = vld [vmem:[%s2369_s23 + $0x8] sm:$0x8] }
  0x65   : > { %2103 = vmatprep.mubr.msk.bf16.mxu0 %vm2308_vm0, %v2307_v1  ;;  %v1907_v41 = vcombine.low %v1482_v35, %v2599_v59  ;;  %v1339_v44 = vrot.slane %v1337_v38, 2  ;;  %v1358_v59 = vshll.u32 %v2660_v20, 16 }
  0x67   : > { %v1492_v47 = vrot.slane %v1907_v41, 3  ;;  %v1343_v50 = vor.u32 %v1342_v45, %v1339_v44  ;;  %v1360_v63 = vrot.slane %v1358_v59, 3 }
  0x69   : > { %v1353_v61 = vsel %vm1318_vm6, %v1343_v50, %v1352_v57 }
  0x6b   : > { %2084 = vmatmul.mubr.msk.bf16.gmra.mrb[40].mxu1 %vm360_vm2, %v727_v48  ;;  %v1493_v48 = vrot.slane %v2607_v0, 3  ;;  %v2282_v0 = vld [vmem:[%s2369_s23 + $0x30] ss:$0 sps:$4 sm:$0x77]   ;;  %s1931_s23 = sshll.u32 %s2817_s12, 6 }
  0x6c   : > { %2104 = vmatmul.mubr.msk.bf16.gmra.mrb[40].mxu0 %vm360_vm2, %v884_v43  ;;  %2087 = vmatprep.mubr.msk.bf16.mxu1 %vm2308_vm0, %v2307_v1  ;;  %v1335_v43 = vsel %vm1318_vm6, %v1326_v36, %v1334_v37  ;;  %v1364_v2 = vshrl.u32 %v2282_v0, 16  ;;  %v1367_v4 = vshll.u32 %v2282_v0, 16  ;;  %v1501_v14 = vrot.slane %v2282_v0, 3  ;;  %s2754_s11 = scalar_lea.vmem %s2811_s3, %s1931_s23 }
  0x6d   : > { %2107 = vmatprep.mubr.msk.bf16.mxu0 %vm2308_vm0, %v2307_v1  ;;  %v1494_v53 = vsel %vm1491_vm7, %v1492_v47, %v1493_v48  ;;  %v1496_v60 = vsel %vm1491_vm7, %v1493_v48, %v1495_v56 }
  0x73   : > { %2088 = vmatmul.mubr.msk.bf16.gmra.mrb[44].mxu1 %vm360_vm2, %v2451_v49  ;;  %v2271_v49 = vld [vmem:[%s2809_s1 + $0x70] sm:$0xff]  }
  0x74   : > { %2108 = vmatmul.mubr.msk.bf16.gmra.mrb[44].mxu0 %vm360_vm2, %v893_v46  ;;  %2119 = vmatprep.mubr.msk.bf16.mxu1 %vm2308_vm0, %v2307_v1  ;;  %v1344_v46 = vsel %vm1318_vm6, %v1334_v37, %v1343_v50 }
  0x75   : > { %2111 = vmatprep.mubr.msk.bf16.mxu0 %vm2308_vm0, %v2307_v1 }
  0x7b   : > { %2120 = vmatmul.mubr.msk.bf16.vlgmr.msra.gmra.mrb[48].mxu1 %vm360_vm2, %v1025_v3  ;;  %v1497_v3 = vrot.slane %v2647_v16, 3 }
  0x7c   : > { %2112 = vmatmul.mubr.msk.bf16.gmra.mrb[48].mxu0 %vm360_vm2, %v902_v62  ;;  %2164 = vmatpush3.bf16.msra.mxu1 %v2271_v49  ;;  %v1357_v62 = vrot.slane %v1355_v58, 2 }
  0x7d   : > { %2143 = vmatprep.mubr.msk.bf16.mxu0 %vm2308_vm0, %v2307_v1  ;;  %2123 = vmatprep.mubr.msk.bf16.mxu1 %vm2308_vm0, %v2307_v1  ;;  %v1498_v5 = vsel %vm1491_vm7, %v1495_v56, %v1497_v3  ;;  %v1500_v12 = vsel %vm1491_vm7, %v1497_v3, %v1499_v9 }
  0x7e   : > { %2165 = vmatprep.subr.bf16.mxu1 %v2307_v1  ;;  %v1361_v49 = vor.u32 %v1360_v63, %v1357_v62 }
  0x80   : > { %2166 = vmatpush3.bf16.msra.mxu1 %v2277_v6  ;;  %v1362_v6 = vsel %vm1318_vm6, %v1352_v57, %v1361_v49 }
  0x83   : > { %2124 = vmatmul.mubr.msk.bf16.gmra.mrb[52].mxu1 %vm360_vm2, %v1027_v10 }
  0x84   : > { %2144 = vmatmul.mubr.msk.bf16.vlgmr.msra.gmra.mrb[52].mxu0 %vm360_vm2, %v1190_v7  ;;  %2127 = vmatprep.mubr.msk.bf16.mxu1 %vm2308_vm0, %v2307_v1  ;;  %v1366_v7 = vrot.slane %v1364_v2, 2 }
  0x85   : > { %2188 = vmatpush3.bf16.msra.mxu0 %v2274_v8  ;;  %2147 = vmatprep.mubr.msk.bf16.mxu0 %vm2308_vm0, %v2307_v1  ;;  %v1369_v8 = vrot.slane %v1367_v4, 3 }
  0x86   : > { %2189 = vmatprep.subr.bf16.mxu0 %v2307_v1 }
  0x87   : > { %v1370_v10 = vor.u32 %v1369_v8, %v1366_v7 }
  0x89   : > { %2190 = vmatpush3.bf16.msra.mxu0 %v2278_v13  ;;  %v1371_v13 = vsel %vm1318_vm6, %v1361_v49, %v1370_v10 }
  0x8b   : > { %2128 = vmatmul.mubr.msk.bf16.gmra.mrb[56].mxu1 %vm360_vm2, %v1029_v17 }
  0x8c   : > { %2148 = vmatmul.mubr.msk.bf16.gmra.mrb[56].mxu0 %vm360_vm2, %v1192_v15  ;;  %2131 = vmatprep.mubr.msk.bf16.mxu1 %vm2308_vm0, %v2307_v1  ;;  %v1502_v15 = vsel %vm1491_vm7, %v1499_v9, %v1501_v14 }
  0x8d   : > { %2151 = vmatprep.mubr.msk.bf16.mxu0 %vm2308_vm0, %v2307_v1 }
  0x93   : > { %2132 = vmatmul.mubr.msk.bf16.gmra.mrb[60].mxu1 %vm360_vm2, %v1031_v21 }
  0x94   : > { %2152 = vmatmul.mubr.msk.bf16.gmra.mrb[60].mxu0 %vm360_vm2, %v1194_v19  ;;  %2135 = vmatprep.mubr.msk.bf16.mxu1 %vm2308_vm0, %v2307_v1 }
  0x95   : > { %2155 = vmatprep.mubr.msk.bf16.mxu0 %vm2308_vm0, %v2307_v1 }
  0x9b   : > { %2136 = vmatmul.mubr.msk.bf16.gmra.mrb[64].mxu1 %vm360_vm2, %v1033_v29 }
  0x9c   : > { %2156 = vmatmul.mubr.msk.bf16.gmra.mrb[64].mxu0 %vm360_vm2, %v1196_v27  ;;  %2167 = vmatprep.mubr.msk.bf16.mxu1 %vm2308_vm0, %v2307_v1 }
  0x9d   : > { %2159 = vmatprep.mubr.msk.bf16.mxu0 %vm2308_vm0, %v2307_v1 }
  0xa3   : > { %2168 = vmatmul.mubr.msk.bf16.vlgmr.msra.gmra.mrb[68].mxu1 %vm360_vm2, %v1335_v43 }
  0xa4   : > { %2160 = vmatmul.mubr.msk.bf16.gmra.mrb[68].mxu0 %vm360_vm2, %v1198_v40  ;;  %2171 = vmatprep.mubr.msk.bf16.mxu1 %vm2308_vm0, %v2307_v1 }
  0xa5   : > { %2191 = vmatprep.mubr.msk.bf16.mxu0 %vm2308_vm0, %v2307_v1 }
  0xab   : > { %2172 = vmatmul.mubr.msk.bf16.gmra.mrb[72].mxu1 %vm360_vm2, %v1344_v46 }
  0xac   : > { %2192 = vmatmul.mubr.msk.bf16.vlgmr.msra.gmra.mrb[72].mxu0 %vm360_vm2, %v1494_v53  ;;  %2175 = vmatprep.mubr.msk.bf16.mxu1 %vm2308_vm0, %v2307_v1 }
  0xad   : > { %2195 = vmatprep.mubr.msk.bf16.mxu0 %vm2308_vm0, %v2307_v1 }
  0xb3   : > { %2176 = vmatmul.mubr.msk.bf16.gmra.mrb[76].mxu1 %vm360_vm2, %v1353_v61 }
  0xb4   : > { %2196 = vmatmul.mubr.msk.bf16.gmra.mrb[76].mxu0 %vm360_vm2, %v1496_v60  ;;  %2179 = vmatprep.mubr.msk.bf16.mxu1 %vm2308_vm0, %v2307_v1 }
  0xb5   : > { %2199 = vmatprep.mubr.msk.bf16.mxu0 %vm2308_vm0, %v2307_v1 }
  0xbb   : > { %2180 = vmatmul.mubr.msk.bf16.gmra.mrb[80].mxu1 %vm360_vm2, %v1362_v6 }
  0xbc   : > { %2200 = vmatmul.mubr.msk.bf16.gmra.mrb[80].mxu0 %vm360_vm2, %v1498_v5  ;;  %2183 = vmatprep.mubr.msk.bf16.mxu1 %vm2308_vm0, %v2307_v1 }
  0xbd   : > { %2203 = vmatprep.mubr.msk.bf16.mxu0 %vm2308_vm0, %v2307_v1 }
  0xc3   : > { %2184 = vmatmul.mubr.msk.bf16.gmra.mrb[84].mxu1 %vm360_vm2, %v1371_v13 }
  0xc4   : > { %2204 = vmatmul.mubr.msk.bf16.gmra.mrb[84].mxu0 %vm360_vm2, %v1500_v12 }
  0xc5   : > { %2207 = vmatprep.mubr.msk.bf16.mxu0 %vm2308_vm0, %v2307_v1 }
  0xcc   : > { %2208 = vmatmul.mubr.msk.bf16.gmra.mrb[88].mxu0 %vm360_vm2, %v1502_v15 }
  0xee   : > { %v434_v11 = vpop.f32.mrb[0].mxu1 }
  0xef   : > { %v410_v16 = vpop.f32.mrb[0].mxu0  ;;  %v2013_v20 = vpop.f32.mrb[1].mxu1 }
  0xf0   : > { %v2001_v17 = vpop.f32.mrb[1].mxu0  ;;  %v437_v21 = vpop.f32.mrb[2].mxu1 }
  0xf1   : > { %v413_v18 = vpop.f32.mrb[2].mxu0  ;;  %v2014_v22 = vpop.f32.mrb[3].mxu1 }
  0xf2   : > { %v2002_v19 = vpop.f32.mrb[3].mxu0 }
  0xf6   : > { %v442_v25 = vpop.f32.mrb[4].mxu1 }
  0xf7   : > { %v418_v23 = vpop.f32.mrb[4].mxu0  ;;  %v2017_v26 = vpop.f32.mrb[5].mxu1 }
  0xf8   : > { %v2005_v42 = vpop.f32.mrb[5].mxu0  ;;  %v445_v27 = vpop.f32.mrb[6].mxu1 }
  0xf9   : > { %v421_v24 = vpop.f32.mrb[6].mxu0  ;;  %v2018_v28 = vpop.f32.mrb[7].mxu1 }
  0xfa   : > { %v2006_v1 = vpop.f32.mrb[7].mxu0 }
  0xfe   : > { %v505_v31 = vpop.f32.mrb[8].mxu1 }
  0xff   : > { %v426_v29 = vpop.f32.mrb[8].mxu0  ;;  %v506_v33 = vadd.f32 %v505_v31, %v410_v16  ;;  %v2025_v34 = vpop.f32.mrb[9].mxu1 }
 0x100   : > { %v2009_v30 = vpop.f32.mrb[9].mxu0  ;;  %v508_v36 = vpop.f32.mrb[10].mxu1 }
 0x101   : > { %v429_v32 = vpop.f32.mrb[10].mxu0  ;;  %v509_v37 = vadd.f32 %v508_v36, %v413_v18  ;;  %v2026_v38 = vpop.f32.mrb[11].mxu1 }
 0x102   : > { %v2010_v35 = vpop.f32.mrb[11].mxu0 }
 0x106   : > { %v513_v43 = vpop.f32.mrb[12].mxu1 }
 0x107   : > { %v626_v39 = vpop.f32.mrb[12].mxu0  ;;  %v514_v45 = vadd.f32 %v513_v43, %v418_v23  ;;  %v2029_v47 = vpop.f32.mrb[13].mxu1 }
 0x108   : > { %v665_v40 = vadd.f32 %v626_v39, %v506_v33  ;;  %v2049_v41 = vpop.f32.mrb[13].mxu0  ;;  %v516_v51 = vpop.f32.mrb[14].mxu1 }
 0x109   : > { %v629_v44 = vpop.f32.mrb[14].mxu0  ;;  %v517_v52 = vadd.f32 %v516_v51, %v421_v24  ;;  %v2030_v53 = vpop.f32.mrb[15].mxu1 }
 0x10a   : > { %v666_v48 = vadd.f32 %v629_v44, %v509_v37  ;;  %v2050_v50 = vpop.f32.mrb[15].mxu0 }
 0x10e   : > { %v521_v56 = vpop.f32.mrb[16].mxu1 }
 0x10f   : > { %v634_v46 = vpop.f32.mrb[16].mxu0  ;;  %v522_v58 = vadd.f32 %v521_v56, %v426_v29  ;;  %v2033_v59 = vpop.f32.mrb[17].mxu1 }
 0x110   : > { %v667_v54 = vadd.f32 %v634_v46, %v514_v45  ;;  %v2053_v55 = vpop.f32.mrb[17].mxu0  ;;  %v524_v62 = vpop.f32.mrb[18].mxu1 }
 0x111   : > { %v637_v57 = vpop.f32.mrb[18].mxu0  ;;  %v525_v63 = vadd.f32 %v524_v62, %v429_v32  ;;  %v2034_v0 = vpop.f32.mrb[19].mxu1 }
 0x112   : > { %v668_v60 = vadd.f32 %v637_v57, %v517_v52  ;;  %v2054_v61 = vpop.f32.mrb[19].mxu0 }
 0x116   : > { %v529_v4 = vpop.f32.mrb[20].mxu1 }
 0x117   : > { %v642_v3 = vpop.f32.mrb[20].mxu0  ;;  %v530_v6 = vadd.f32 %v529_v4, %v434_v11  ;;  %v2037_v7 = vpop.f32.mrb[21].mxu1 }
 0x118   : > { %v669_v49 = vadd.f32 %v642_v3, %v522_v58  ;;  %v2057_v2 = vpop.f32.mrb[21].mxu0  ;;  %v532_v10 = vpop.f32.mrb[22].mxu1 }
 0x119   : > { %v645_v5 = vpop.f32.mrb[22].mxu0  ;;  %v533_v12 = vadd.f32 %v532_v10, %v437_v21  ;;  %v2038_v13 = vpop.f32.mrb[23].mxu1 }
 0x11a   : > { %v670_v8 = vadd.f32 %v645_v5, %v525_v63  ;;  %v2058_v9 = vpop.f32.mrb[23].mxu0 }
 0x11e   : > { %v537_v17 = vpop.f32.mrb[24].mxu1 }
 0x11f   : > { %v650_v14 = vpop.f32.mrb[24].mxu0  ;;  %v538_v19 = vadd.f32 %v537_v17, %v442_v25  ;;  %v2041_v20 = vpop.f32.mrb[25].mxu1 }
 0x120   : > { %v671_v15 = vadd.f32 %v650_v14, %v530_v6  ;;  %v2061_v16 = vpop.f32.mrb[25].mxu0  ;;  %v540_v42 = vpop.f32.mrb[26].mxu1 }
 0x121   : > { %v653_v18 = vpop.f32.mrb[26].mxu0  ;;  %v541_v24 = vadd.f32 %v540_v42, %v445_v27  ;;  %v2042_v1 = vpop.f32.mrb[27].mxu1 }
 0x122   : > { %v672_v22 = vadd.f32 %v653_v18, %v533_v12  ;;  %v2062_v23 = vpop.f32.mrb[27].mxu0 }
 0x126   : > { %v791_v29 = vpop.f32.mrb[28].mxu1 }
 0x127   : > { %v658_v26 = vpop.f32.mrb[28].mxu0  ;;  %v830_v31 = vadd.f32 %v791_v29, %v665_v40  ;;  %v2073_v21 = vpop.f32.mrb[29].mxu1 }
 0x128   : > { %v673_v11 = vadd.f32 %v658_v26, %v538_v19  ;;  %v2065_v28 = vpop.f32.mrb[29].mxu0  ;;  %v794_v34 = vpop.f32.mrb[30].mxu1 }
 0x129   : > { %v661_v30 = vpop.f32.mrb[30].mxu0  ;;  %v831_v35 = vadd.f32 %v794_v34, %v666_v48  ;;  %v2074_v36 = vpop.f32.mrb[31].mxu1 }
 0x12a   : > { %v674_v32 = vadd.f32 %v661_v30, %v541_v24  ;;  %v2066_v33 = vpop.f32.mrb[31].mxu0 }
 0x12e   : > { %v799_v39 = vpop.f32.mrb[32].mxu1 }
 0x12f   : > { %v964_v37 = vpop.f32.mrb[32].mxu0  ;;  %v832_v43 = vadd.f32 %v799_v39, %v667_v54  ;;  %v2077_v27 = vpop.f32.mrb[33].mxu1 }
 0x130   : > { %v1003_v25 = vadd.f32 %v964_v37, %v830_v31  ;;  %v2097_v38 = vpop.f32.mrb[33].mxu0  ;;  %v802_v47 = vpop.f32.mrb[34].mxu1 }
 0x131   : > { %v967_v41 = vpop.f32.mrb[34].mxu0  ;;  %v833_v50 = vadd.f32 %v802_v47, %v668_v60  ;;  %v2078_v51 = vpop.f32.mrb[35].mxu1 }
 0x132   : > { %v1004_v44 = vadd.f32 %v967_v41, %v831_v35  ;;  %v2098_v45 = vpop.f32.mrb[35].mxu0 }
 0x136   : > { %v807_v46 = vpop.f32.mrb[36].mxu1 }
 0x137   : > { %v972_v52 = vpop.f32.mrb[36].mxu0  ;;  %v834_v56 = vadd.f32 %v807_v46, %v669_v49  ;;  %v2081_v48 = vpop.f32.mrb[37].mxu1 }
 0x138   : > { %v1005_v40 = vadd.f32 %v972_v52, %v832_v43  ;;  %v2101_v53 = vpop.f32.mrb[37].mxu0  ;;  %v810_v59 = vpop.f32.mrb[38].mxu1 }
 0x139   : > { %v975_v55 = vpop.f32.mrb[38].mxu0  ;;  %v835_v61 = vadd.f32 %v810_v59, %v670_v8  ;;  %v2082_v62 = vpop.f32.mrb[39].mxu1 }
 0x13a   : > { %v1006_v57 = vadd.f32 %v975_v55, %v833_v50  ;;  %v2102_v58 = vpop.f32.mrb[39].mxu0 }
 0x13e   : > { %v815_v3 = vpop.f32.mrb[40].mxu1 }
 0x13f   : > { %v980_v63 = vpop.f32.mrb[40].mxu0  ;;  %v836_v4 = vadd.f32 %v815_v3, %v671_v15  ;;  %v2085_v60 = vpop.f32.mrb[41].mxu1 }
 0x140   : > { %v1007_v54 = vadd.f32 %v980_v63, %v834_v56  ;;  %v2105_v0 = vpop.f32.mrb[41].mxu0  ;;  %v818_v7 = vpop.f32.mrb[42].mxu1 }
 0x141   : > { %v983_v2 = vpop.f32.mrb[42].mxu0  ;;  %v837_v9 = vadd.f32 %v818_v7, %v672_v22  ;;  %v2086_v10 = vpop.f32.mrb[43].mxu1 }
 0x142   : > { %v1008_v5 = vadd.f32 %v983_v2, %v835_v61  ;;  %v2106_v6 = vpop.f32.mrb[43].mxu0 }
 0x146   : > { %v823_v14 = vpop.f32.mrb[44].mxu1 }
 0x147   : > { %v988_v12 = vpop.f32.mrb[44].mxu0  ;;  %v838_v17 = vadd.f32 %v823_v14, %v673_v11  ;;  %v2089_v8 = vpop.f32.mrb[45].mxu1 }
 0x148   : > { %v1009_v49 = vadd.f32 %v988_v12, %v836_v4  ;;  %v2109_v13 = vpop.f32.mrb[45].mxu0  ;;  %v826_v20 = vpop.f32.mrb[46].mxu1 }
 0x149   : > { %v991_v16 = vpop.f32.mrb[46].mxu0  ;;  %v839_v23 = vadd.f32 %v826_v20, %v674_v32  ;;  %v2090_v42 = vpop.f32.mrb[47].mxu1 }
 0x14a   : > { %v1010_v18 = vadd.f32 %v991_v16, %v837_v9  ;;  %v2110_v19 = vpop.f32.mrb[47].mxu0 }
 0x14e   : > { %v1095_v26 = vpop.f32.mrb[48].mxu1 }
 0x14f   : > { %v996_v24 = vpop.f32.mrb[48].mxu0  ;;  %v1134_v29 = vadd.f32 %v1095_v26, %v1003_v25  ;;  %v2121_v22 = vpop.f32.mrb[49].mxu1 }
 0x150   : > { %v1011_v15 = vadd.f32 %v996_v24, %v838_v17  ;;  %v2113_v1 = vpop.f32.mrb[49].mxu0  ;;  %v1098_v21 = vpop.f32.mrb[50].mxu1 }
 0x151   : > { %v999_v28 = vpop.f32.mrb[50].mxu0  ;;  %v1135_v33 = vadd.f32 %v1098_v21, %v1004_v44  ;;  %v2122_v34 = vpop.f32.mrb[51].mxu1 }
 0x152   : > { %v1012_v30 = vadd.f32 %v999_v28, %v839_v23  ;;  %v2114_v31 = vpop.f32.mrb[51].mxu0 }
 0x156   : > { %v1103_v37 = vpop.f32.mrb[52].mxu1 }
 0x157   : > { %v1260_v35 = vpop.f32.mrb[52].mxu0  ;;  %v1136_v39 = vadd.f32 %v1103_v37, %v1005_v40  ;;  %v2125_v32 = vpop.f32.mrb[53].mxu1 }
 0x158   : > { %v1299_v11 = vadd.f32 %v1260_v35, %v1134_v29  ;;  %v2145_v36 = vpop.f32.mrb[53].mxu0  ;;  %v1106_v27 = vpop.f32.mrb[54].mxu1 }
 0x159   : > { %v1263_v38 = vpop.f32.mrb[54].mxu0  ;;  %v1137_v45 = vadd.f32 %v1106_v27, %v1006_v57  ;;  %v2126_v47 = vpop.f32.mrb[55].mxu1 }
 0x15a   : > { %v1300_v41 = vadd.f32 %v1263_v38, %v1135_v33  ;;  %v2146_v43 = vpop.f32.mrb[55].mxu0 }
 0x15e   : > { %v1111_v52 = vpop.f32.mrb[56].mxu1 }
 0x15f   : > { %v1268_v50 = vpop.f32.mrb[56].mxu0  ;;  %v1138_v46 = vadd.f32 %v1111_v52, %v1007_v54  ;;  %v2129_v44 = vpop.f32.mrb[57].mxu1 }
 0x160   : > { %v1301_v25 = vadd.f32 %v1268_v50, %v1136_v39  ;;  %v2149_v51 = vpop.f32.mrb[57].mxu0  ;;  %v1114_v48 = vpop.f32.mrb[58].mxu1 }
 0x161   : > { %v1271_v53 = vpop.f32.mrb[58].mxu0  ;;  %v1139_v58 = vadd.f32 %v1114_v48, %v1008_v5  ;;  %v2130_v59 = vpop.f32.mrb[59].mxu1 }
 0x162   : > { %v1302_v55 = vadd.f32 %v1271_v53, %v1137_v45  ;;  %v2150_v56 = vpop.f32.mrb[59].mxu0 }
 0x166   : > { %v1119_v63 = vpop.f32.mrb[60].mxu1 }
 0x167   : > { %v1276_v61 = vpop.f32.mrb[60].mxu0  ;;  %v1140_v3 = vadd.f32 %v1119_v63, %v1009_v49  ;;  %v2133_v57 = vpop.f32.mrb[61].mxu1 }
 0x168   : > { %v1303_v40 = vadd.f32 %v1276_v61, %v1138_v46  ;;  %v2153_v62 = vpop.f32.mrb[61].mxu0  ;;  %v1122_v60 = vpop.f32.mrb[62].mxu1 }
 0x169   : > { %v1279_v0 = vpop.f32.mrb[62].mxu0  ;;  %v1141_v6 = vadd.f32 %v1122_v60, %v1010_v18  ;;  %v2134_v7 = vpop.f32.mrb[63].mxu1 }
 0x16a   : > { %v2735_v2 = vadd.f32 %v1279_v0, %v1139_v58  ;;  %v2154_v4 = vpop.f32.mrb[63].mxu0 }
 0x16e   : > { %v1127_v12 = vpop.f32.mrb[64].mxu1 }
 0x16f   : > { %v1284_v54 = vpop.f32.mrb[64].mxu0  ;;  %v1142_v13 = vadd.f32 %v1127_v12, %v1011_v15  ;;  %v2137_v14 = vpop.f32.mrb[65].mxu1 }
 0x170   : > { %v2737_v9 = vadd.f32 %v1284_v54, %v1140_v3  ;;  %v2157_v10 = vpop.f32.mrb[65].mxu0  ;;  %v1130_v49 = vpop.f32.mrb[66].mxu1 }
 0x171   : > { %v1287_v5 = vpop.f32.mrb[66].mxu0  ;;  %v1143_v8 = vadd.f32 %v1130_v49, %v1012_v30  ;;  %v2138_v19 = vpop.f32.mrb[67].mxu1  ;;  %v2749_v30 = vld [vmem:[%s2810_s2] ss:$0 sm:$0xff] }
 0x172   : > { %v2739_v16 = vadd.f32 %v1287_v5, %v1141_v6  ;;  %v2158_v17 = vpop.f32.mrb[67].mxu0 }
 0x176   : > { %v1433_v42 = vpop.f32.mrb[68].mxu1 }
 0x177   : > { %v1292_v20 = vpop.f32.mrb[68].mxu0  ;;  %v1472_v1 = vadd.f32 %v1433_v42, %v1299_v11  ;;  %v2169_v26 = vpop.f32.mrb[69].mxu1 }
 0x178   : > { %v2741_v23 = vadd.f32 %v1292_v20, %v1142_v13  ;;  %v2161_v18 = vpop.f32.mrb[69].mxu0  ;;  %v1436_v15 = vpop.f32.mrb[70].mxu1 }
 0x179   : > { %v1295_v24 = vpop.f32.mrb[70].mxu0  ;;  %v1473_v22 = vadd.f32 %v1436_v15, %v1300_v41  ;;  %v2170_v31 = vpop.f32.mrb[71].mxu1 }
 0x17a   : > { %v2743_v28 = vadd.f32 %v1295_v24, %v1143_v8  ;;  %v2162_v29 = vpop.f32.mrb[71].mxu0 }
 0x17e   : > { %v1441_v35 = vpop.f32.mrb[72].mxu1 }
 0x17f   : > { %v1564_v21 = vpop.f32.mrb[72].mxu0  ;;  %v1474_v36 = vadd.f32 %v1441_v35, %v1301_v25  ;;  %v2173_v38 = vpop.f32.mrb[73].mxu1 }
 0x180   : > { %v1603_v33 = vadd.f32 %v1564_v21, %v1472_v1  ;;  %v2193_v34 = vpop.f32.mrb[73].mxu0  ;;  %v1444_v41 = vpop.f32.mrb[74].mxu1 }
 0x181   : > { %v1567_v11 = vpop.f32.mrb[74].mxu0  ;;  %v1475_v43 = vadd.f32 %v1444_v41, %v1302_v55  ;;  %v2174_v45 = vpop.f32.mrb[75].mxu1 }
 0x182   : > { %v1620_v37 = vadd.f32 %v2749_v30, %v1603_v33  ;;  %v1604_v39 = vadd.f32 %v1567_v11, %v1473_v22  ;;  %v2194_v32 = vpop.f32.mrb[75].mxu0 }
 0x184   : > { %1630 = vst.msk [vmem:[%s2754_s11] sm:$0xff] %vm360_vm2, %v1620_v37  ;;  %v1621_v27 = vadd.f32 %v2749_v30, %v1604_v39 }
 0x186   : > { %1916 = vst.msk [vmem:[%s2754_s11 + $0x6] sm:$0xfc] %vm1632_vm8, %v1621_v27  ;;  %v1449_v51 = vpop.f32.mrb[76].mxu1 }
 0x187   : > { %v1572_v47 = vpop.f32.mrb[76].mxu0  ;;  %v1476_v53 = vadd.f32 %v1449_v51, %v1303_v40  ;;  %v2177_v44 = vpop.f32.mrb[77].mxu1 }
 0x188   : > { %v1605_v50 = vadd.f32 %v1572_v47, %v1474_v36  ;;  %v2197_v25 = vpop.f32.mrb[77].mxu0  ;;  %v1452_v48 = vpop.f32.mrb[78].mxu1 }
 0x189   : > { %v1575_v52 = vpop.f32.mrb[78].mxu0  ;;  %v1477_v58 = vadd.f32 %v1452_v48, %v2735_v2  ;;  %v2178_v61 = vpop.f32.mrb[79].mxu1 }
 0x18a   : > { %v1622_v46 = vadd.f32 %v2749_v30, %v1605_v50  ;;  %v1606_v55 = vadd.f32 %v1575_v52, %v1475_v43  ;;  %v2198_v56 = vpop.f32.mrb[79].mxu0 }
 0x18c   : > { %1917 = vst.msk [vmem:[%s2754_s11 + $0xe] sm:$0x3] %vm1634_vm9, %v1622_v46  ;;  %v1623_v59 = vadd.f32 %v2749_v30, %v1606_v55 }
 0x18d   : > { %1918 = vst.msk [vmem:[%s2754_s11 + $0xc] sm:$0xf0] %vm1637_vm10, %v1622_v46 }
 0x18e   : > { %1919 = vst.msk [vmem:[%s2754_s11 + $0x14] sm:$0xf] %vm1639_vm11, %v1623_v59  ;;  %v1457_v0 = vpop.f32.mrb[80].mxu1 }
 0x18f   : > { %1920 = vst.msk [vmem:[%s2754_s11 + $0x12] sm:$0xc0] %vm1642_vm12, %v1623_v59  ;;  %v1580_v40 = vpop.f32.mrb[80].mxu0  ;;  %v1478_v57 = vadd.f32 %v1457_v0, %v2737_v9  ;;  %v2181_v2 = vpop.f32.mrb[81].mxu1 }
 0x190   : > { %v1607_v62 = vadd.f32 %v1580_v40, %v1476_v53  ;;  %v2201_v63 = vpop.f32.mrb[81].mxu0  ;;  %v1460_v7 = vpop.f32.mrb[82].mxu1 }
 0x191   : > { %v1583_v3 = vpop.f32.mrb[82].mxu0  ;;  %v1479_v54 = vadd.f32 %v1460_v7, %v2739_v16  ;;  %v2182_v12 = vpop.f32.mrb[83].mxu1 }
 0x192   : > { %v1624_v4 = vadd.f32 %v2749_v30, %v1607_v62  ;;  %v1608_v60 = vadd.f32 %v1583_v3, %v1477_v58  ;;  %v2202_v6 = vpop.f32.mrb[83].mxu0 }
 0x194   : > { %1921 = vst.msk [vmem:[%s2754_s11 + $0x1a] sm:$0x3f] %vm1644_vm13, %v1624_v4  ;;  %v1625_v10 = vadd.f32 %v2749_v30, %v1608_v60 }
 0x196   : > { %1922 = vst.msk [vmem:[%s2754_s11 + $0x20] sm:$0xff] %vm360_vm2, %v1625_v10  ;;  %v1465_v14 = vpop.f32.mrb[84].mxu1 }
 0x197   : > { %v1588_v5 = vpop.f32.mrb[84].mxu0  ;;  %v1480_v49 = vadd.f32 %v1465_v14, %v2741_v23  ;;  %v2185_v19 = vpop.f32.mrb[85].mxu1 }
 0x198   : > { %v1609_v9 = vadd.f32 %v1588_v5, %v1478_v57  ;;  %v2205_v13 = vpop.f32.mrb[85].mxu0  ;;  %v1468_v18 = vpop.f32.mrb[86].mxu1 }
 0x199   : > { %v1591_v17 = vpop.f32.mrb[86].mxu0  ;;  %v1481_v42 = vadd.f32 %v1468_v18, %v2743_v28  ;;  %v2186_v1 = vpop.f32.mrb[87].mxu1 }
 0x19a   : > { %v1626_v8 = vadd.f32 %v2749_v30, %v1609_v9  ;;  %v1610_v20 = vadd.f32 %v1591_v17, %v1479_v54  ;;  %v2206_v16 = vpop.f32.mrb[87].mxu0 }
 0x19c   : > { %1923 = vst.msk [vmem:[%s2754_s11 + $0x26] sm:$0xfc] %vm1632_vm8, %v1626_v8  ;;  %v1627_v24 = vadd.f32 %v2749_v30, %v1610_v20 }
 0x19e   : > { %1924 = vst.msk [vmem:[%s2754_s11 + $0x2e] sm:$0x3] %vm1634_vm9, %v1627_v24 }
 0x19f   : > { %1925 = vst.msk [vmem:[%s2754_s11 + $0x2c] sm:$0xf0] %vm1637_vm10, %v1627_v24  ;;  %v1596_v23 = vpop.f32.mrb[88].mxu0 }
 0x1a0   : > { %v1611_v26 = vadd.f32 %v1596_v23, %v1480_v49  ;;  %v2209_v29 = vpop.f32.mrb[89].mxu0 }
 0x1a1   : > { %v1599_v15 = vpop.f32.mrb[90].mxu0 }
 0x1a2   : > { %v1628_v22 = vadd.f32 %v2749_v30, %v1611_v26  ;;  %v1612_v31 = vadd.f32 %v1599_v15, %v1481_v42  ;;  %v2210_v21 = vpop.f32.mrb[91].mxu0 }
 0x1a4   : > { %1926 = vst.msk [vmem:[%s2754_s11 + $0x34] sm:$0xf] %vm1639_vm11, %v1628_v22  ;;  %v1629_v28 = vadd.f32 %v2749_v30, %v1612_v31 }
 0x1a5   : > { %1927 = vst.msk [vmem:[%s2754_s11 + $0x32] sm:$0xc0] %vm1642_vm12, %v1628_v22 }
 0x1a6   : > { %1928 = vst.msk [vmem:[%s2754_s11 + $0x3a] sm:$0x3f] %vm1644_vm13, %v1629_v28 }
 0x1a7 PF: > { %s13_s14 = sadd.s32 1, %s2305_s14   ;;  %s2812_s12 = smov %s2301_s13 }
 0x1a8   : > { %p10_p5 = scmp.ge.s32.totalorder %s13_s14, 4   ;;  %s2813_s13 = smov %s2815_s15 }
 0x1aa   :  { %12 = sbr.rel (!%p10_p5) target bundleno = 2 (0x2), region = 83 }

// kernel: upsample_block_forward.20
= control target key start
LH: loop header
LB: loop body
LE: loop exit
PB: predicated region body
PF: predicated region fallthrough
CT: control target
= control target key end

     0   :  { %s2419_s12 = smov 0   ;;  %s2421_s13 = smov 0   ;;  %s2916_s0 = inlined_call_operand.vmem [shape: bf16[2,1,110,32], index: 0, kind: input, shape index: {}]   ;;  %s2917_s1 = inlined_call_operand.vmem [shape: bf16[9,32,32], index: 1, kind: input, shape index: {}]   ;;  %s2918_s2 = inlined_call_operand.vmem [shape: f32[1,32], index: 2, kind: input, shape index: {}]   ;;  %s2919_s3 = inlined_call_operand.vmem [shape: bf16[2,8,8,32], index: 3, kind: output, shape index: {}]  }
   0x1   :  { %s2423_s14 = smov 0  }
   0x2 LB: > { %s32_s15 = sadd.s32 1, %s2391_s13  ;;  %p1859_p0 = scmp.ge.s32.totalorder %s2395_s14, 1  ;;  %s2395_s14 = sphi %s2423_s14, %s13_s14   ;;  %s2391_s13 = sphi %s2421_s13, %s2927_s13   ;;  %s2387_s12 = sphi %s2419_s12, %s2926_s12  }
   0x3   : > { %p34_p1 = scmp.ge.s32.totalorder %s32_s15, 2  ;;  %p183_p2 = scmp.lt.s32.totalorder %s2395_s14, 3 }
   0x5   : > { %s2929_s15 = smov (%p34_p1, %s32_s15), 0  ;;  %p184_p3 = pnand %p1859_p0, %p183_p2 }
   0x6   : > { %v2332_v0 = vld [vmem:[%s2917_s1 + $0x10] sm:$0xff] (!%p184_p3)   ;;  %v2397_v1 = vmov (!%p184_p3), 0.0   ;;  %v2333_v2 = vld [vmem:[%s2917_s1 + $0x18] sm:$0xff] (!%p184_p3)   ;;  %p225_p4 = scmp.lt.s32.totalorder (!%p184_p3), %s2387_s12, 1  ;;  %vm2398_vm0 = vmmov (!%p184_p3), 0   ;;  %vm360_vm2 = vcmask (!%p184_p3), 261120  }
   0x7   : > { %187 = sbr.rel (%p184_p3) target bundleno = 428 (0x1ac), region = 32  ;;  %2085 = vmatprep.subr.bf16.mxu0 (!%p184_p3), %v2397_v1  ;;  %2301 = vmatprep.subr.bf16.mxu1 (!%p184_p3), %v2397_v1  ;;  %vm303_vm1 = vsmask.f32 (!%p184_p3), 7424  ;;  %v2338_v21 = vld [vmem:[%s2917_s1 + $0x20] sm:$0xff] (!%p184_p3)   ;;  %v2342_v33 = vld [vmem:[%s2917_s1 + $0x28] sm:$0xff] (!%p184_p3)   ;;  %v2344_v48 = vld [vmem:[%s2917_s1 + $0x30] sm:$0xff] (!%p184_p3)  }
   0x8   : > { %2086 = vmatpush3.bf16.msra.mxu0 (!%p184_p3), %v2332_v0  ;;  %2303 = vmatpush3.bf16.msra.mxu1 (!%p184_p3), %v2332_v0  ;;  %v2339_v27 = vld [vmem:[%s2917_s1] sm:$0xff] (!%p184_p3)   ;;  %v2343_v36 = vld [vmem:[%s2917_s1 + $0x8] sm:$0xff] (!%p184_p3)   ;;  %vm553_vm3 = vcmask (!%p184_p3), 1046528   ;;  %v2347_v52 = vld [vmem:[%s2917_s1 + $0x38] sm:$0xff] (!%p184_p3)   ;;  %vm849_vm4 = vsmask.f32 (!%p184_p3), 6400 }
   0x9   : > { %2087 = vmatprep.subr.bf16.mxu0 (!%p184_p3), %v2397_v1  ;;  %2302 = vmatprep.subr.bf16.mxu1 (!%p184_p3), %v2397_v1  ;;  %v2346_v54 = vld [vmem:[%s2917_s1 + $0x40] sm:$0xff] (!%p184_p3)   ;;  %v2348_v56 = vld [vmem:[%s2917_s1 + $0x48] sm:$0xff] (!%p184_p3)   ;;  %vm1022_vm5 = vcmask (!%p184_p3), 1045504   ;;  %vm1318_vm6 = vsmask.f32 (!%p184_p3), 5376  ;;  %vm1491_vm7 = vcmask (!%p184_p3), 1044480  }
   0xa   : > { %2089 = vmatprep.mubr.msk.bf16.mxu0 (!%p184_p3), %vm2398_vm0, %v2397_v1  ;;  %2101 = vmatprep.mubr.msk.bf16.mxu1 (!%p184_p3), %vm2398_vm0, %v2397_v1  ;;  %vm1631_vm8 = vcmask (!%p184_p3), 257024   ;;  %vm1639_vm9 = vcmask (!%p184_p3), 1042432   ;;  %vm1640_vm10 = vcmask (!%p184_p3), 1046532   ;;  %vm1655_vm11 = vcmask (!%p184_p3), 1041408  }
   0xb   : > { %vm1656_vm12 = vcmask (!%p184_p3), 1045508   ;;  %vm2858_vm13 = vmor (!%p184_p3), %vm1639_vm9, %vm1640_vm10  ;;  %vm1671_vm15 = vcmask (!%p184_p3), 1040384  }
   0xc   : > { %2088 = vmatpush3.bf16.msra.mxu0 (!%p184_p3), %v2333_v2  ;;  %2304 = vmatpush3.bf16.msra.mxu1 (!%p184_p3), %v2333_v2  ;;  %vm2862_vm14 = vmor (!%p184_p3), %vm1655_vm11, %vm1656_vm12 }
   0xd   : > { %2133 = vmatprep.subr.bf16.mxu0 (!%p184_p3), %v2397_v1  ;;  %2109 = vmatprep.subr.bf16.mxu1 (!%p184_p3), %v2397_v1 }
   0xe   : > { %s2931_s12 = smov (!%p225_p4, %s2387_s12), 1 }
   0xf   : > { %s2305_s20 = smul.u32 56, %s2931_s12  ;;  %s2009_s8 = sshll.u32 %s2931_s12, 5 }
  0x10   : > { %s2847_s11 = scalar_lea.vmem %s2919_s3, %s2009_s8 }
  0x11   : > { %s2459_s23 = scalar_lea.vmem %s2916_s0, %s2305_s20 }
  0x12   : > { %v255_v3 = vld [vmem:[%s2459_s23] sm:$0xf]  ;;  %v2463_v4 = vld [vmem:[%s2459_s23 + $0x4] sm:$0xf]  ;;  %v2469_v6 = vld [vmem:[%s2459_s23 + $0x8] sm:$0xff]  }
  0x13   : > { %v2466_v5 = vcombine.low %v255_v3, %v2463_v4  ;;  %v312_v9 = vshll.u32 %v2469_v6, 16  ;;  %v2475_v10 = vld [vmem:[%s2459_s23 + $0x18] sm:$0xff]   ;;  %v2478_v11 = vld [vmem:[%s2459_s23 + $0x20] sm:$0xff]   ;;  %v2481_v12 = vld [vmem:[%s2459_s23 + $0x10] sm:$0xff]   ;;  %v316_v22 = vshrl.u32 %v2469_v6, 16  ;;  %v555_v51 = vrot.slane %v2469_v6, 1 }
  0x14   : > { %v328_v15 = vshll.u32 %v2475_v10, 16  ;;  %v332_v16 = vshrl.u32 %v2475_v10, 16  ;;  %v336_v17 = vshll.u32 %v2478_v11, 16  ;;  %v2487_v18 = vld [vmem:[%s2459_s23 + $0x28] ss:$0 sps:$4 sm:$0x11]  }
  0x15   : > { %v305_v7 = vshrl.u32 %v2466_v5, 16  ;;  %v307_v8 = vshll.u32 %v2466_v5, 16  ;;  %v314_v14 = vrot.slane %v312_v9, 1  ;;  %v320_v23 = vshll.u32 %v2481_v12, 16  ;;  %v544_v41 = vld [vmem:[%s2459_s23] sm:$0xe] }
  0x16   : > { %v330_v20 = vrot.slane %v328_v15, 1  ;;  %v338_v24 = vrot.slane %v336_v17, 1  ;;  %v340_v28 = vshrl.u32 %v2478_v11, 16  ;;  %v344_v29 = vshll.u32 %v2487_v18, 16  ;;  %v2526_v42 = vld [vmem:[%s2459_s23 + $0x24] sm:$0xff]   ;;  %v2597_v2 = vld [vmem:[%s2459_s23 + $0xc] sm:$0xff]  }
  0x17   : > { %v309_v13 = vrot.slane %v307_v8, 1  ;;  %v318_v31 = vor.u32 %v316_v22, %v314_v14  ;;  %v322_v32 = vrot.slane %v320_v23, 1  ;;  %v324_v38 = vshrl.u32 %v2481_v12, 16  ;;  %v2358_v43 = vld [vmem:[%s2459_s23 + $0x2c] ss:$0 sps:$4 sm:$0x11]  }
  0x18   : > { %v334_v26 = vor.u32 %v332_v16, %v330_v20  ;;  %v342_v34 = vor.u32 %v340_v28, %v338_v24  ;;  %v346_v35 = vrot.slane %v344_v29, 1  ;;  %v1891_v45 = vcombine.low %v544_v41, %v2463_v4  ;;  %v675_v61 = vld [vmem:[%s2459_s23 + $0x4] sm:$0xe]  ;;  %v2592_v62 = vld [vmem:[%s2459_s23 + $0x8] sm:$0xf]  ;;  %v2351_v17 = vld [vmem:[%s2917_s1 + $0x50] sm:$0xff]  }
  0x19   : > { %v310_v19 = vor.u32 %v309_v13, %v305_v7  ;;  %v323_v37 = vsel %vm303_vm1, %v318_v31, %v322_v32  ;;  %v326_v40 = vor.u32 %v324_v38, %v322_v32  ;;  %v726_v46 = vrot.slane %v2526_v42, 1  ;;  %v2356_v23 = vld [vmem:[%s2917_s1 + $0x58] sm:$0xff]  }
  0x1a   : > { %v339_v30 = vsel %vm303_vm1, %v334_v26, %v338_v24  ;;  %v347_v39 = vsel %vm303_vm1, %v342_v34, %v346_v35  ;;  %v728_v47 = vrot.slane %v2358_v43, 1  ;;  %v554_v50 = vrot.slane %v1891_v45, 1  ;;  %v2637_v29 = vld [vmem:[%s2459_s23 + $0x1c] sm:$0xff]  }
  0x1b   : > { %v315_v25 = vsel %vm303_vm1, %v310_v19, %v314_v14  ;;  %2102 = vmatmul.mubr.msk.bf16.vlgmr.msra.gmra.mrb[0].mxu1 %vm360_vm2, %v339_v30  ;;  %v331_v44 = vsel %vm303_vm1, %v326_v40, %v330_v20  ;;  %v557_v55 = vrot.slane %v2481_v12, 1  ;;  %v559_v58 = vrot.slane %v2475_v10, 1 }
  0x1c   : > { %2090 = vmatmul.mubr.msk.bf16.vlgmr.msra.gmra.mrb[0].mxu0 %vm360_vm2, %v315_v25  ;;  %2110 = vmatpush3.bf16.msra.mxu1 %v2339_v27  ;;  %v2541_v49 = vsel %vm553_vm3, %v726_v46, %v728_v47  ;;  %v556_v53 = vsel %vm553_vm3, %v554_v50, %v555_v51  ;;  %v561_v60 = vrot.slane %v2478_v11, 1  ;;  %v1903_v0 = vcombine.low %v675_v61, %v2592_v62  ;;  %v2353_v25 = vld [vmem:[%s2917_s1 + $0x60] sm:$0xff]   ;;  %v2666_v47 = vld [vmem:[%s2459_s23 + $0x2c] ss:$0 sps:$4 sm:$0x33]  }
  0x1d   : > { %2134 = vmatpush3.bf16.msra.mxu0 %v2338_v21  ;;  %2093 = vmatprep.mubr.msk.bf16.mxu0 %vm2398_vm0, %v2397_v1  ;;  %v558_v57 = vsel %vm553_vm3, %v555_v51, %v557_v55  ;;  %v560_v59 = vsel %vm553_vm3, %v557_v55, %v559_v58  ;;  %v563_v3 = vrot.slane %v2487_v18, 1  ;;  %v862_v7 = vshll.u32 %v2597_v2, 16  ;;  %v2616_v18 = vld [vmem:[%s2459_s23 + $0x14] sm:$0xff]  }
  0x1e   : > { %2135 = vmatprep.subr.bf16.mxu0 %v2397_v1  ;;  %2105 = vmatprep.mubr.msk.bf16.mxu1 %vm2398_vm0, %v2397_v1  ;;  %v562_v63 = vsel %vm553_vm3, %v559_v58, %v561_v60  ;;  %v851_v4 = vshrl.u32 %v1903_v0, 16  ;;  %v719_v8 = vrot.slane %v1903_v0, 1  ;;  %v720_v9 = vrot.slane %v2597_v2, 1  ;;  %v1144_v58 = vld [vmem:[%s2459_s23 + $0x8] sm:$0xc] }
  0x1f   : > { %2111 = vmatprep.subr.bf16.mxu1 %v2397_v1  ;;  %v864_v15 = vrot.slane %v862_v7, 2  ;;  %v868_v20 = vshrl.u32 %v2616_v18, 16  ;;  %v871_v21 = vshll.u32 %v2616_v18, 16  ;;  %v722_v22 = vrot.slane %v2616_v18, 1 }
  0x20   : > { %2112 = vmatpush3.bf16.msra.mxu1 %v2343_v36  ;;  %v721_v16 = vsel %vm553_vm3, %v719_v8, %v720_v9  ;;  %v877_v31 = vshrl.u32 %v2637_v29, 16  ;;  %v880_v32 = vshll.u32 %v2637_v29, 16  ;;  %v724_v34 = vrot.slane %v2637_v29, 1  ;;  %v2364_v8 = vld [vmem:[%s2917_s1 + $0x80] sm:$0xff]  }
  0x21   : > { %2136 = vmatpush3.bf16.msra.mxu0 %v2342_v33  ;;  %2157 = vmatprep.subr.bf16.mxu1 %v2397_v1  ;;  %v870_v26 = vrot.slane %v868_v20, 1  ;;  %v873_v27 = vrot.slane %v871_v21, 2  ;;  %v723_v28 = vsel %vm553_vm3, %v720_v9, %v722_v22  ;;  %v2357_v33 = vld [vmem:[%s2917_s1 + $0x68] sm:$0xff]   ;;  %v886_v40 = vshrl.u32 %v2526_v42, 16  ;;  %v2720_v9 = vld [vmem:[%s2459_s23 + $0x18] sm:$0xff]  }
  0x22   : > { %2181 = vmatprep.subr.bf16.mxu0 %v2397_v1  ;;  %v879_v36 = vrot.slane %v877_v31, 1  ;;  %v725_v38 = vsel %vm553_vm3, %v722_v22, %v724_v34  ;;  %v889_v41 = vshll.u32 %v2526_v42, 16  ;;  %v895_v51 = vshrl.u32 %v2666_v47, 16  ;;  %v2750_v20 = vld [vmem:[%s2459_s23 + $0x28] sm:$0xff]  }
  0x23   : > { %2106 = vmatmul.mubr.msk.bf16.gmra.mrb[4].mxu1 %vm360_vm2, %v347_v39  ;;  %v874_v30 = vor.u32 %v873_v27, %v870_v26  ;;  %v1024_v61 = vrot.slane %v2597_v2, 2  ;;  %v1195_v22 = vrot.slane %v2750_v20, 2 }
  0x24   : > { %2094 = vmatmul.mubr.msk.bf16.gmra.mrb[4].mxu0 %vm360_vm2, %v323_v37  ;;  %2113 = vmatprep.mubr.msk.bf16.mxu1 %vm2398_vm0, %v2397_v1  ;;  %v882_v37 = vrot.slane %v880_v32, 2  ;;  %v891_v45 = vrot.slane %v889_v41, 2 }
  0x25   : > { %2097 = vmatprep.mubr.msk.bf16.mxu0 %vm2398_vm0, %v2397_v1 }
  0x26   : > { %v883_v39 = vor.u32 %v882_v37, %v879_v36 }
  0x28   : > { %v884_v43 = vsel %vm849_vm4, %v874_v30, %v883_v39 }
  0x2b   : > { %2114 = vmatmul.mubr.msk.bf16.vlgmr.msra.gmra.mrb[8].mxu1 %vm360_vm2, %v2466_v5  ;;  %v854_v5 = vshll.u32 %v1903_v0, 16  ;;  %v2697_v0 = vld [vmem:[%s2459_s23 + $0x10] sm:$0xff]  }
  0x2c   : > { %2098 = vmatmul.mubr.msk.bf16.gmra.mrb[8].mxu0 %vm360_vm2, %v331_v44  ;;  %2158 = vmatpush3.bf16.msra.mxu1 %v2344_v48  ;;  %v888_v44 = vrot.slane %v886_v40, 1  ;;  %v727_v48 = vsel %vm553_vm3, %v724_v34, %v726_v46  ;;  %v1331_v26 = vshll.u32 %v2697_v0, 16 }
  0x2d   : > { %2137 = vmatprep.mubr.msk.bf16.mxu0 %vm2398_vm0, %v2397_v1  ;;  %2117 = vmatprep.mubr.msk.bf16.mxu1 %vm2398_vm0, %v2397_v1  ;;  %v856_v13 = vrot.slane %v854_v5, 2  ;;  %v1026_v5 = vrot.slane %v2616_v18, 2 }
  0x2e   : > { %2159 = vmatprep.subr.bf16.mxu1 %v2397_v1  ;;  %v892_v50 = vor.u32 %v891_v45, %v888_v44 }
  0x30   : > { %2160 = vmatpush3.bf16.msra.mxu1 %v2347_v52  ;;  %v898_v52 = vshll.u32 %v2666_v47, 16  ;;  %v893_v46 = vsel %vm849_vm4, %v883_v39, %v892_v50  ;;  %v1340_v39 = vshll.u32 %v2720_v9, 16 }
  0x31   : > { %2205 = vmatprep.subr.bf16.mxu1 %v2397_v1 }
  0x32   : > { %v900_v55 = vrot.slane %v898_v52, 2  ;;  %v1342_v45 = vrot.slane %v1340_v39, 3 }
  0x33   : > { %2118 = vmatmul.mubr.msk.bf16.gmra.mrb[12].mxu1 %vm360_vm2, %v2469_v6  ;;  %v859_v6 = vshrl.u32 %v2597_v2, 16 }
  0x34   : > { %2138 = vmatmul.mubr.msk.bf16.vlgmr.msra.gmra.mrb[12].mxu0 %vm360_vm2, %v556_v53  ;;  %2121 = vmatprep.mubr.msk.bf16.mxu1 %vm2398_vm0, %v2397_v1  ;;  %v1013_v53 = vld [vmem:[%s2459_s23 + $0x4] sm:$0xc] }
  0x35   : > { %2182 = vmatpush3.bf16.msra.mxu0 %v2346_v54  ;;  %2141 = vmatprep.mubr.msk.bf16.mxu0 %vm2398_vm0, %v2397_v1  ;;  %v861_v14 = vrot.slane %v859_v6, 1  ;;  %v897_v54 = vrot.slane %v895_v51, 1  ;;  %v2367_v6 = vld [vmem:[%s2917_s1 + $0x78] sm:$0xff]  }
  0x36   : > { %2183 = vmatprep.subr.bf16.mxu0 %v2397_v1 }
  0x37   : > { %v865_v19 = vor.u32 %v864_v15, %v861_v14  ;;  %v1028_v14 = vrot.slane %v2637_v29, 2 }
  0x39   : > { %2184 = vmatpush3.bf16.msra.mxu0 %v2348_v56  ;;  %v875_v35 = vsel %vm849_vm4, %v865_v19, %v874_v30  ;;  %v1932_v56 = vcombine.low %v1013_v53, %v2592_v62 }
  0x3a   : > { %2229 = vmatprep.subr.bf16.mxu0 %v2397_v1 }
  0x3b   : > { %2122 = vmatmul.mubr.msk.bf16.gmra.mrb[16].mxu1 %vm360_vm2, %v2481_v12  ;;  %v853_v12 = vrot.slane %v851_v4, 1  ;;  %v1189_v4 = vrot.slane %v2697_v0, 2 }
  0x3c   : > { %2142 = vmatmul.mubr.msk.bf16.gmra.mrb[16].mxu0 %vm360_vm2, %v558_v57  ;;  %2125 = vmatprep.mubr.msk.bf16.mxu1 %vm2398_vm0, %v2397_v1  ;;  %v901_v57 = vor.u32 %v900_v55, %v897_v54 }
  0x3d   : > { %2145 = vmatprep.mubr.msk.bf16.mxu0 %vm2398_vm0, %v2397_v1 }
  0x3e   : > { %v902_v62 = vsel %vm849_vm4, %v892_v50, %v901_v57 }
  0x43   : > { %2126 = vmatmul.mubr.msk.bf16.gmra.mrb[20].mxu1 %vm360_vm2, %v2475_v10  ;;  %v564_v10 = vsel %vm553_vm3, %v561_v60, %v563_v3  ;;  %v1023_v60 = vrot.slane %v1932_v56, 2  ;;  %v1495_v56 = vrot.slane %v2720_v9, 3 }
  0x44   : > { %2146 = vmatmul.mubr.msk.bf16.gmra.mrb[20].mxu0 %vm360_vm2, %v560_v59  ;;  %2129 = vmatprep.mubr.msk.bf16.mxu1 %vm2398_vm0, %v2397_v1  ;;  %v2689_v59 = vld [vmem:[%s2459_s23 + $0xc] sm:$0xf] }
  0x45   : > { %2149 = vmatprep.mubr.msk.bf16.mxu0 %vm2398_vm0, %v2397_v1  ;;  %v1025_v3 = vsel %vm1022_vm5, %v1023_v60, %v1024_v61 }
  0x4b   : > { %2130 = vmatmul.mubr.msk.bf16.gmra.mrb[24].mxu1 %vm360_vm2, %v2478_v11  ;;  %v857_v11 = vor.u32 %v856_v13, %v853_v12  ;;  %v1191_v12 = vrot.slane %v2720_v9, 2  ;;  %v2368_v13 = vld [vmem:[%s2917_s1 + $0x88] sm:$0xff]  }
  0x4c   : > { %2150 = vmatmul.mubr.msk.bf16.gmra.mrb[24].mxu0 %vm360_vm2, %v562_v63  ;;  %2161 = vmatprep.mubr.msk.bf16.mxu1 %vm2398_vm0, %v2397_v1  ;;  %v1944_v63 = vcombine.low %v1144_v58, %v2689_v59  ;;  %v1355_v58 = vshrl.u32 %v2750_v20, 16 }
  0x4d   : > { %2153 = vmatprep.mubr.msk.bf16.mxu0 %vm2398_vm0, %v2397_v1  ;;  %v866_v24 = vsel %vm849_vm4, %v857_v11, %v865_v19  ;;  %v1192_v15 = vsel %vm1022_vm5, %v1189_v4, %v1191_v12  ;;  %v1030_v11 = vrot.slane %v2526_v42, 2 }
  0x4e   : > { %v1188_v2 = vrot.slane %v1944_v63, 2  ;;  %v1320_v42 = vshrl.u32 %v1944_v63, 16 }
  0x4f   : > { %v1031_v21 = vsel %vm1022_vm5, %v1028_v14, %v1030_v11 }
  0x50   : > { %v1190_v7 = vsel %vm1022_vm5, %v1188_v2, %v1189_v4  ;;  %v1322_v30 = vrot.slane %v1320_v42, 2 }
  0x53   : > { %2162 = vmatmul.mubr.msk.bf16.vlgmr.msra.gmra.mrb[28].mxu1 %vm360_vm2, %v721_v16  ;;  %v2737_v16 = vld [vmem:[%s2459_s23 + $0x20] sm:$0xff]  }
  0x54   : > { %2154 = vmatmul.mubr.msk.bf16.gmra.mrb[28].mxu0 %vm360_vm2, %v564_v10  ;;  %2206 = vmatpush3.bf16.msra.mxu1 %v2351_v17  ;;  %v1027_v10 = vsel %vm1022_vm5, %v1024_v61, %v1026_v5  ;;  %v1029_v17 = vsel %vm1022_vm5, %v1026_v5, %v1028_v14  ;;  %v1193_v18 = vrot.slane %v2737_v16, 2  ;;  %v1346_v51 = vshrl.u32 %v2737_v16, 16 }
  0x55   : > { %2185 = vmatprep.mubr.msk.bf16.mxu0 %vm2398_vm0, %v2397_v1  ;;  %2165 = vmatprep.mubr.msk.bf16.mxu1 %vm2398_vm0, %v2397_v1  ;;  %v1349_v52 = vshll.u32 %v2737_v16, 16 }
  0x56   : > { %2207 = vmatprep.subr.bf16.mxu1 %v2397_v1  ;;  %v1194_v19 = vsel %vm1022_vm5, %v1191_v12, %v1193_v18  ;;  %v1196_v27 = vsel %vm1022_vm5, %v1193_v18, %v1195_v22  ;;  %v1348_v54 = vrot.slane %v1346_v51, 2 }
  0x57   : > { %v1351_v55 = vrot.slane %v1349_v52, 3 }
  0x58   : > { %2208 = vmatpush3.bf16.msra.mxu1 %v2356_v23  ;;  %v1032_v23 = vrot.slane %v2666_v47, 2 }
  0x59   : > { %2253 = vmatprep.subr.bf16.mxu1 %v2397_v1  ;;  %v1352_v57 = vor.u32 %v1351_v55, %v1348_v54 }
  0x5a   : > { %v1033_v29 = vsel %vm1022_vm5, %v1030_v11, %v1032_v23 }
  0x5b   : > { %2166 = vmatmul.mubr.msk.bf16.gmra.mrb[32].mxu1 %vm360_vm2, %v723_v28  ;;  %v2370_v28 = vld [vmem:[%s2459_s23 + $0x30] ss:$0 sps:$4 sm:$0x33]  }
  0x5c   : > { %2186 = vmatmul.mubr.msk.bf16.vlgmr.msra.gmra.mrb[32].mxu0 %vm360_vm2, %v866_v24  ;;  %2169 = vmatprep.mubr.msk.bf16.mxu1 %vm2398_vm0, %v2397_v1  ;;  %v1323_v24 = vshll.u32 %v1944_v63, 16  ;;  %v1197_v34 = vrot.slane %v2370_v28, 2 }
  0x5d   : > { %2230 = vmatpush3.bf16.msra.mxu0 %v2353_v25  ;;  %2189 = vmatprep.mubr.msk.bf16.mxu0 %vm2398_vm0, %v2397_v1  ;;  %v1328_v25 = vshrl.u32 %v2697_v0, 16 }
  0x5e   : > { %2231 = vmatprep.subr.bf16.mxu0 %v2397_v1  ;;  %v1325_v31 = vrot.slane %v1323_v24, 3  ;;  %v1198_v40 = vsel %vm1022_vm5, %v1195_v22, %v1197_v34 }
  0x5f   : > { %v1330_v32 = vrot.slane %v1328_v25, 2 }
  0x60   : > { %v1326_v36 = vor.u32 %v1325_v31, %v1322_v30 }
  0x61   : > { %2232 = vmatpush3.bf16.msra.mxu0 %v2357_v33  ;;  %v1333_v33 = vrot.slane %v1331_v26, 3 }
  0x62   : > { %2277 = vmatprep.subr.bf16.mxu0 %v2397_v1 }
  0x63   : > { %2170 = vmatmul.mubr.msk.bf16.gmra.mrb[36].mxu1 %vm360_vm2, %v725_v38  ;;  %v1334_v37 = vor.u32 %v1333_v33, %v1330_v32  ;;  %v1337_v38 = vshrl.u32 %v2720_v9, 16  ;;  %v1499_v9 = vrot.slane %v2750_v20, 3 }
  0x64   : > { %2190 = vmatmul.mubr.msk.bf16.gmra.mrb[36].mxu0 %vm360_vm2, %v875_v35  ;;  %2173 = vmatprep.mubr.msk.bf16.mxu1 %vm2398_vm0, %v2397_v1  ;;  %v1482_v35 = vld [vmem:[%s2459_s23 + $0x8] sm:$0x8] }
  0x65   : > { %2193 = vmatprep.mubr.msk.bf16.mxu0 %vm2398_vm0, %v2397_v1  ;;  %v1973_v41 = vcombine.low %v1482_v35, %v2689_v59  ;;  %v1339_v44 = vrot.slane %v1337_v38, 2  ;;  %v1358_v59 = vshll.u32 %v2750_v20, 16 }
  0x67   : > { %v1492_v47 = vrot.slane %v1973_v41, 3  ;;  %v1343_v50 = vor.u32 %v1342_v45, %v1339_v44  ;;  %v1360_v63 = vrot.slane %v1358_v59, 3 }
  0x69   : > { %v1353_v61 = vsel %vm1318_vm6, %v1343_v50, %v1352_v57 }
  0x6b   : > { %2174 = vmatmul.mubr.msk.bf16.gmra.mrb[40].mxu1 %vm360_vm2, %v727_v48  ;;  %v1493_v48 = vrot.slane %v2697_v0, 3  ;;  %v2372_v0 = vld [vmem:[%s2459_s23 + $0x30] ss:$0 sps:$4 sm:$0x77]  }
  0x6c   : > { %2194 = vmatmul.mubr.msk.bf16.gmra.mrb[40].mxu0 %vm360_vm2, %v884_v43  ;;  %2177 = vmatprep.mubr.msk.bf16.mxu1 %vm2398_vm0, %v2397_v1  ;;  %v1335_v43 = vsel %vm1318_vm6, %v1326_v36, %v1334_v37  ;;  %v1364_v2 = vshrl.u32 %v2372_v0, 16  ;;  %v1367_v4 = vshll.u32 %v2372_v0, 16  ;;  %v1501_v14 = vrot.slane %v2372_v0, 3 }
  0x6d   : > { %2197 = vmatprep.mubr.msk.bf16.mxu0 %vm2398_vm0, %v2397_v1  ;;  %v1494_v53 = vsel %vm1491_vm7, %v1492_v47, %v1493_v48  ;;  %v1496_v60 = vsel %vm1491_vm7, %v1493_v48, %v1495_v56 }
  0x73   : > { %2178 = vmatmul.mubr.msk.bf16.gmra.mrb[44].mxu1 %vm360_vm2, %v2541_v49  ;;  %v2361_v49 = vld [vmem:[%s2917_s1 + $0x70] sm:$0xff]  }
  0x74   : > { %2198 = vmatmul.mubr.msk.bf16.gmra.mrb[44].mxu0 %vm360_vm2, %v893_v46  ;;  %2209 = vmatprep.mubr.msk.bf16.mxu1 %vm2398_vm0, %v2397_v1  ;;  %v1344_v46 = vsel %vm1318_vm6, %v1334_v37, %v1343_v50 }
  0x75   : > { %2201 = vmatprep.mubr.msk.bf16.mxu0 %vm2398_vm0, %v2397_v1 }
  0x7b   : > { %2210 = vmatmul.mubr.msk.bf16.vlgmr.msra.gmra.mrb[48].mxu1 %vm360_vm2, %v1025_v3  ;;  %v1497_v3 = vrot.slane %v2737_v16, 3 }
  0x7c   : > { %2202 = vmatmul.mubr.msk.bf16.gmra.mrb[48].mxu0 %vm360_vm2, %v902_v62  ;;  %2254 = vmatpush3.bf16.msra.mxu1 %v2361_v49  ;;  %v1357_v62 = vrot.slane %v1355_v58, 2 }
  0x7d   : > { %2233 = vmatprep.mubr.msk.bf16.mxu0 %vm2398_vm0, %v2397_v1  ;;  %2213 = vmatprep.mubr.msk.bf16.mxu1 %vm2398_vm0, %v2397_v1  ;;  %v1498_v5 = vsel %vm1491_vm7, %v1495_v56, %v1497_v3  ;;  %v1500_v12 = vsel %vm1491_vm7, %v1497_v3, %v1499_v9 }
  0x7e   : > { %2255 = vmatprep.subr.bf16.mxu1 %v2397_v1  ;;  %v1361_v49 = vor.u32 %v1360_v63, %v1357_v62 }
  0x80   : > { %2256 = vmatpush3.bf16.msra.mxu1 %v2367_v6  ;;  %v1362_v6 = vsel %vm1318_vm6, %v1352_v57, %v1361_v49 }
  0x83   : > { %2214 = vmatmul.mubr.msk.bf16.gmra.mrb[52].mxu1 %vm360_vm2, %v1027_v10 }
  0x84   : > { %2234 = vmatmul.mubr.msk.bf16.vlgmr.msra.gmra.mrb[52].mxu0 %vm360_vm2, %v1190_v7  ;;  %2217 = vmatprep.mubr.msk.bf16.mxu1 %vm2398_vm0, %v2397_v1  ;;  %v1366_v7 = vrot.slane %v1364_v2, 2 }
  0x85   : > { %2278 = vmatpush3.bf16.msra.mxu0 %v2364_v8  ;;  %2237 = vmatprep.mubr.msk.bf16.mxu0 %vm2398_vm0, %v2397_v1  ;;  %v1369_v8 = vrot.slane %v1367_v4, 3 }
  0x86   : > { %2279 = vmatprep.subr.bf16.mxu0 %v2397_v1 }
  0x87   : > { %v1370_v10 = vor.u32 %v1369_v8, %v1366_v7 }
  0x89   : > { %2280 = vmatpush3.bf16.msra.mxu0 %v2368_v13  ;;  %v1371_v13 = vsel %vm1318_vm6, %v1361_v49, %v1370_v10 }
  0x8b   : > { %2218 = vmatmul.mubr.msk.bf16.gmra.mrb[56].mxu1 %vm360_vm2, %v1029_v17 }
  0x8c   : > { %2238 = vmatmul.mubr.msk.bf16.gmra.mrb[56].mxu0 %vm360_vm2, %v1192_v15  ;;  %2221 = vmatprep.mubr.msk.bf16.mxu1 %vm2398_vm0, %v2397_v1  ;;  %v1502_v15 = vsel %vm1491_vm7, %v1499_v9, %v1501_v14 }
  0x8d   : > { %2241 = vmatprep.mubr.msk.bf16.mxu0 %vm2398_vm0, %v2397_v1 }
  0x93   : > { %2222 = vmatmul.mubr.msk.bf16.gmra.mrb[60].mxu1 %vm360_vm2, %v1031_v21 }
  0x94   : > { %2242 = vmatmul.mubr.msk.bf16.gmra.mrb[60].mxu0 %vm360_vm2, %v1194_v19  ;;  %2225 = vmatprep.mubr.msk.bf16.mxu1 %vm2398_vm0, %v2397_v1 }
  0x95   : > { %2245 = vmatprep.mubr.msk.bf16.mxu0 %vm2398_vm0, %v2397_v1 }
  0x9b   : > { %2226 = vmatmul.mubr.msk.bf16.gmra.mrb[64].mxu1 %vm360_vm2, %v1033_v29 }
  0x9c   : > { %2246 = vmatmul.mubr.msk.bf16.gmra.mrb[64].mxu0 %vm360_vm2, %v1196_v27  ;;  %2257 = vmatprep.mubr.msk.bf16.mxu1 %vm2398_vm0, %v2397_v1 }
  0x9d   : > { %2249 = vmatprep.mubr.msk.bf16.mxu0 %vm2398_vm0, %v2397_v1 }
  0xa3   : > { %2258 = vmatmul.mubr.msk.bf16.vlgmr.msra.gmra.mrb[68].mxu1 %vm360_vm2, %v1335_v43 }
  0xa4   : > { %2250 = vmatmul.mubr.msk.bf16.gmra.mrb[68].mxu0 %vm360_vm2, %v1198_v40  ;;  %2261 = vmatprep.mubr.msk.bf16.mxu1 %vm2398_vm0, %v2397_v1 }
  0xa5   : > { %2281 = vmatprep.mubr.msk.bf16.mxu0 %vm2398_vm0, %v2397_v1 }
  0xab   : > { %2262 = vmatmul.mubr.msk.bf16.gmra.mrb[72].mxu1 %vm360_vm2, %v1344_v46 }
  0xac   : > { %2282 = vmatmul.mubr.msk.bf16.vlgmr.msra.gmra.mrb[72].mxu0 %vm360_vm2, %v1494_v53  ;;  %2265 = vmatprep.mubr.msk.bf16.mxu1 %vm2398_vm0, %v2397_v1 }
  0xad   : > { %2285 = vmatprep.mubr.msk.bf16.mxu0 %vm2398_vm0, %v2397_v1 }
  0xb3   : > { %2266 = vmatmul.mubr.msk.bf16.gmra.mrb[76].mxu1 %vm360_vm2, %v1353_v61 }
  0xb4   : > { %2286 = vmatmul.mubr.msk.bf16.gmra.mrb[76].mxu0 %vm360_vm2, %v1496_v60  ;;  %2269 = vmatprep.mubr.msk.bf16.mxu1 %vm2398_vm0, %v2397_v1 }
  0xb5   : > { %2289 = vmatprep.mubr.msk.bf16.mxu0 %vm2398_vm0, %v2397_v1 }
  0xbb   : > { %2270 = vmatmul.mubr.msk.bf16.gmra.mrb[80].mxu1 %vm360_vm2, %v1362_v6 }
  0xbc   : > { %2290 = vmatmul.mubr.msk.bf16.gmra.mrb[80].mxu0 %vm360_vm2, %v1498_v5  ;;  %2273 = vmatprep.mubr.msk.bf16.mxu1 %vm2398_vm0, %v2397_v1 }
  0xbd   : > { %2293 = vmatprep.mubr.msk.bf16.mxu0 %vm2398_vm0, %v2397_v1 }
  0xc3   : > { %2274 = vmatmul.mubr.msk.bf16.gmra.mrb[84].mxu1 %vm360_vm2, %v1371_v13 }
  0xc4   : > { %2294 = vmatmul.mubr.msk.bf16.gmra.mrb[84].mxu0 %vm360_vm2, %v1500_v12 }
  0xc5   : > { %2297 = vmatprep.mubr.msk.bf16.mxu0 %vm2398_vm0, %v2397_v1  ;;  %vm1672_vm0 = vcmask 1044484  }
  0xc6   : > { %vm2879_vm1 = vmor %vm1671_vm15, %vm1672_vm0 }
  0xcc   : > { %2298 = vmatmul.mubr.msk.bf16.gmra.mrb[88].mxu0 %vm360_vm2, %v1502_v15 }
  0xee   : > { %v434_v11 = vpop.f32.mrb[0].mxu1 }
  0xef   : > { %v410_v16 = vpop.f32.mrb[0].mxu0  ;;  %v2103_v20 = vpop.f32.mrb[1].mxu1 }
  0xf0   : > { %v2091_v17 = vpop.f32.mrb[1].mxu0  ;;  %v437_v21 = vpop.f32.mrb[2].mxu1 }
  0xf1   : > { %v413_v18 = vpop.f32.mrb[2].mxu0  ;;  %v2104_v22 = vpop.f32.mrb[3].mxu1 }
  0xf2   : > { %v2092_v19 = vpop.f32.mrb[3].mxu0 }
  0xf6   : > { %v442_v25 = vpop.f32.mrb[4].mxu1 }
  0xf7   : > { %v418_v23 = vpop.f32.mrb[4].mxu0  ;;  %v2107_v26 = vpop.f32.mrb[5].mxu1 }
  0xf8   : > { %v2095_v42 = vpop.f32.mrb[5].mxu0  ;;  %v445_v27 = vpop.f32.mrb[6].mxu1 }
  0xf9   : > { %v421_v24 = vpop.f32.mrb[6].mxu0  ;;  %v2108_v28 = vpop.f32.mrb[7].mxu1 }
  0xfa   : > { %v2096_v1 = vpop.f32.mrb[7].mxu0 }
  0xfe   : > { %v505_v31 = vpop.f32.mrb[8].mxu1 }
  0xff   : > { %v426_v29 = vpop.f32.mrb[8].mxu0  ;;  %v506_v33 = vadd.f32 %v505_v31, %v410_v16  ;;  %v2115_v34 = vpop.f32.mrb[9].mxu1 }
 0x100   : > { %v2099_v30 = vpop.f32.mrb[9].mxu0  ;;  %v508_v36 = vpop.f32.mrb[10].mxu1 }
 0x101   : > { %v429_v32 = vpop.f32.mrb[10].mxu0  ;;  %v509_v37 = vadd.f32 %v508_v36, %v413_v18  ;;  %v2116_v38 = vpop.f32.mrb[11].mxu1 }
 0x102   : > { %v2100_v35 = vpop.f32.mrb[11].mxu0 }
 0x106   : > { %v513_v43 = vpop.f32.mrb[12].mxu1 }
 0x107   : > { %v626_v39 = vpop.f32.mrb[12].mxu0  ;;  %v514_v45 = vadd.f32 %v513_v43, %v418_v23  ;;  %v2119_v47 = vpop.f32.mrb[13].mxu1 }
 0x108   : > { %v665_v40 = vadd.f32 %v626_v39, %v506_v33  ;;  %v2139_v41 = vpop.f32.mrb[13].mxu0  ;;  %v516_v51 = vpop.f32.mrb[14].mxu1 }
 0x109   : > { %v629_v44 = vpop.f32.mrb[14].mxu0  ;;  %v517_v52 = vadd.f32 %v516_v51, %v421_v24  ;;  %v2120_v53 = vpop.f32.mrb[15].mxu1 }
 0x10a   : > { %v666_v48 = vadd.f32 %v629_v44, %v509_v37  ;;  %v2140_v50 = vpop.f32.mrb[15].mxu0 }
 0x10e   : > { %v521_v56 = vpop.f32.mrb[16].mxu1 }
 0x10f   : > { %v634_v46 = vpop.f32.mrb[16].mxu0  ;;  %v522_v58 = vadd.f32 %v521_v56, %v426_v29  ;;  %v2123_v59 = vpop.f32.mrb[17].mxu1 }
 0x110   : > { %v667_v54 = vadd.f32 %v634_v46, %v514_v45  ;;  %v2143_v55 = vpop.f32.mrb[17].mxu0  ;;  %v524_v62 = vpop.f32.mrb[18].mxu1 }
 0x111   : > { %v637_v57 = vpop.f32.mrb[18].mxu0  ;;  %v525_v63 = vadd.f32 %v524_v62, %v429_v32  ;;  %v2124_v0 = vpop.f32.mrb[19].mxu1 }
 0x112   : > { %v668_v60 = vadd.f32 %v637_v57, %v517_v52  ;;  %v2144_v61 = vpop.f32.mrb[19].mxu0 }
 0x116   : > { %v529_v4 = vpop.f32.mrb[20].mxu1 }
 0x117   : > { %v642_v3 = vpop.f32.mrb[20].mxu0  ;;  %v530_v6 = vadd.f32 %v529_v4, %v434_v11  ;;  %v2127_v7 = vpop.f32.mrb[21].mxu1 }
 0x118   : > { %v669_v49 = vadd.f32 %v642_v3, %v522_v58  ;;  %v2147_v2 = vpop.f32.mrb[21].mxu0  ;;  %v532_v10 = vpop.f32.mrb[22].mxu1 }
 0x119   : > { %v645_v5 = vpop.f32.mrb[22].mxu0  ;;  %v533_v12 = vadd.f32 %v532_v10, %v437_v21  ;;  %v2128_v13 = vpop.f32.mrb[23].mxu1 }
 0x11a   : > { %v670_v8 = vadd.f32 %v645_v5, %v525_v63  ;;  %v2148_v9 = vpop.f32.mrb[23].mxu0 }
 0x11e   : > { %v537_v17 = vpop.f32.mrb[24].mxu1 }
 0x11f   : > { %v650_v14 = vpop.f32.mrb[24].mxu0  ;;  %v538_v19 = vadd.f32 %v537_v17, %v442_v25  ;;  %v2131_v20 = vpop.f32.mrb[25].mxu1 }
 0x120   : > { %v671_v15 = vadd.f32 %v650_v14, %v530_v6  ;;  %v2151_v16 = vpop.f32.mrb[25].mxu0  ;;  %v540_v42 = vpop.f32.mrb[26].mxu1 }
 0x121   : > { %v653_v18 = vpop.f32.mrb[26].mxu0  ;;  %v541_v24 = vadd.f32 %v540_v42, %v445_v27  ;;  %v2132_v1 = vpop.f32.mrb[27].mxu1 }
 0x122   : > { %v672_v22 = vadd.f32 %v653_v18, %v533_v12  ;;  %v2152_v23 = vpop.f32.mrb[27].mxu0 }
 0x126   : > { %v791_v29 = vpop.f32.mrb[28].mxu1 }
 0x127   : > { %v658_v26 = vpop.f32.mrb[28].mxu0  ;;  %v830_v31 = vadd.f32 %v791_v29, %v665_v40  ;;  %v2163_v21 = vpop.f32.mrb[29].mxu1 }
 0x128   : > { %v673_v11 = vadd.f32 %v658_v26, %v538_v19  ;;  %v2155_v28 = vpop.f32.mrb[29].mxu0  ;;  %v794_v34 = vpop.f32.mrb[30].mxu1 }
 0x129   : > { %v661_v30 = vpop.f32.mrb[30].mxu0  ;;  %v831_v35 = vadd.f32 %v794_v34, %v666_v48  ;;  %v2164_v36 = vpop.f32.mrb[31].mxu1 }
 0x12a   : > { %v674_v32 = vadd.f32 %v661_v30, %v541_v24  ;;  %v2156_v33 = vpop.f32.mrb[31].mxu0 }
 0x12e   : > { %v799_v39 = vpop.f32.mrb[32].mxu1 }
 0x12f   : > { %v964_v37 = vpop.f32.mrb[32].mxu0  ;;  %v832_v43 = vadd.f32 %v799_v39, %v667_v54  ;;  %v2167_v27 = vpop.f32.mrb[33].mxu1 }
 0x130   : > { %v1003_v25 = vadd.f32 %v964_v37, %v830_v31  ;;  %v2187_v38 = vpop.f32.mrb[33].mxu0  ;;  %v802_v47 = vpop.f32.mrb[34].mxu1 }
 0x131   : > { %v967_v41 = vpop.f32.mrb[34].mxu0  ;;  %v833_v50 = vadd.f32 %v802_v47, %v668_v60  ;;  %v2168_v51 = vpop.f32.mrb[35].mxu1 }
 0x132   : > { %v1004_v44 = vadd.f32 %v967_v41, %v831_v35  ;;  %v2188_v45 = vpop.f32.mrb[35].mxu0 }
 0x136   : > { %v807_v46 = vpop.f32.mrb[36].mxu1 }
 0x137   : > { %v972_v52 = vpop.f32.mrb[36].mxu0  ;;  %v834_v56 = vadd.f32 %v807_v46, %v669_v49  ;;  %v2171_v48 = vpop.f32.mrb[37].mxu1 }
 0x138   : > { %v1005_v40 = vadd.f32 %v972_v52, %v832_v43  ;;  %v2191_v53 = vpop.f32.mrb[37].mxu0  ;;  %v810_v59 = vpop.f32.mrb[38].mxu1 }
 0x139   : > { %v975_v55 = vpop.f32.mrb[38].mxu0  ;;  %v835_v61 = vadd.f32 %v810_v59, %v670_v8  ;;  %v2172_v62 = vpop.f32.mrb[39].mxu1 }
 0x13a   : > { %v1006_v57 = vadd.f32 %v975_v55, %v833_v50  ;;  %v2192_v58 = vpop.f32.mrb[39].mxu0 }
 0x13e   : > { %v815_v3 = vpop.f32.mrb[40].mxu1 }
 0x13f   : > { %v980_v63 = vpop.f32.mrb[40].mxu0  ;;  %v836_v4 = vadd.f32 %v815_v3, %v671_v15  ;;  %v2175_v60 = vpop.f32.mrb[41].mxu1 }
 0x140   : > { %v1007_v54 = vadd.f32 %v980_v63, %v834_v56  ;;  %v2195_v0 = vpop.f32.mrb[41].mxu0  ;;  %v818_v7 = vpop.f32.mrb[42].mxu1 }
 0x141   : > { %v983_v2 = vpop.f32.mrb[42].mxu0  ;;  %v837_v9 = vadd.f32 %v818_v7, %v672_v22  ;;  %v2176_v10 = vpop.f32.mrb[43].mxu1 }
 0x142   : > { %v1008_v5 = vadd.f32 %v983_v2, %v835_v61  ;;  %v2196_v6 = vpop.f32.mrb[43].mxu0 }
 0x146   : > { %v823_v14 = vpop.f32.mrb[44].mxu1 }
 0x147   : > { %v988_v12 = vpop.f32.mrb[44].mxu0  ;;  %v838_v17 = vadd.f32 %v823_v14, %v673_v11  ;;  %v2179_v8 = vpop.f32.mrb[45].mxu1 }
 0x148   : > { %v1009_v49 = vadd.f32 %v988_v12, %v836_v4  ;;  %v2199_v13 = vpop.f32.mrb[45].mxu0  ;;  %v826_v20 = vpop.f32.mrb[46].mxu1 }
 0x149   : > { %v991_v16 = vpop.f32.mrb[46].mxu0  ;;  %v839_v23 = vadd.f32 %v826_v20, %v674_v32  ;;  %v2180_v42 = vpop.f32.mrb[47].mxu1 }
 0x14a   : > { %v1010_v18 = vadd.f32 %v991_v16, %v837_v9  ;;  %v2200_v19 = vpop.f32.mrb[47].mxu0 }
 0x14e   : > { %v1095_v26 = vpop.f32.mrb[48].mxu1 }
 0x14f   : > { %v996_v24 = vpop.f32.mrb[48].mxu0  ;;  %v1134_v29 = vadd.f32 %v1095_v26, %v1003_v25  ;;  %v2211_v22 = vpop.f32.mrb[49].mxu1 }
 0x150   : > { %v1011_v15 = vadd.f32 %v996_v24, %v838_v17  ;;  %v2203_v1 = vpop.f32.mrb[49].mxu0  ;;  %v1098_v21 = vpop.f32.mrb[50].mxu1 }
 0x151   : > { %v999_v28 = vpop.f32.mrb[50].mxu0  ;;  %v1135_v33 = vadd.f32 %v1098_v21, %v1004_v44  ;;  %v2212_v34 = vpop.f32.mrb[51].mxu1 }
 0x152   : > { %v1012_v30 = vadd.f32 %v999_v28, %v839_v23  ;;  %v2204_v31 = vpop.f32.mrb[51].mxu0 }
 0x156   : > { %v1103_v37 = vpop.f32.mrb[52].mxu1 }
 0x157   : > { %v1260_v35 = vpop.f32.mrb[52].mxu0  ;;  %v1136_v39 = vadd.f32 %v1103_v37, %v1005_v40  ;;  %v2215_v32 = vpop.f32.mrb[53].mxu1 }
 0x158   : > { %v1299_v11 = vadd.f32 %v1260_v35, %v1134_v29  ;;  %v2235_v36 = vpop.f32.mrb[53].mxu0  ;;  %v1106_v27 = vpop.f32.mrb[54].mxu1 }
 0x159   : > { %v1263_v38 = vpop.f32.mrb[54].mxu0  ;;  %v1137_v45 = vadd.f32 %v1106_v27, %v1006_v57  ;;  %v2216_v47 = vpop.f32.mrb[55].mxu1 }
 0x15a   : > { %v1300_v41 = vadd.f32 %v1263_v38, %v1135_v33  ;;  %v2236_v43 = vpop.f32.mrb[55].mxu0 }
 0x15e   : > { %v1111_v52 = vpop.f32.mrb[56].mxu1 }
 0x15f   : > { %v1268_v50 = vpop.f32.mrb[56].mxu0  ;;  %v1138_v46 = vadd.f32 %v1111_v52, %v1007_v54  ;;  %v2219_v44 = vpop.f32.mrb[57].mxu1 }
 0x160   : > { %v1301_v25 = vadd.f32 %v1268_v50, %v1136_v39  ;;  %v2239_v51 = vpop.f32.mrb[57].mxu0  ;;  %v1114_v48 = vpop.f32.mrb[58].mxu1 }
 0x161   : > { %v1271_v53 = vpop.f32.mrb[58].mxu0  ;;  %v1139_v58 = vadd.f32 %v1114_v48, %v1008_v5  ;;  %v2220_v59 = vpop.f32.mrb[59].mxu1 }
 0x162   : > { %v1302_v55 = vadd.f32 %v1271_v53, %v1137_v45  ;;  %v2240_v56 = vpop.f32.mrb[59].mxu0 }
 0x166   : > { %v1119_v63 = vpop.f32.mrb[60].mxu1 }
 0x167   : > { %v1276_v61 = vpop.f32.mrb[60].mxu0  ;;  %v1140_v57 = vadd.f32 %v1119_v63, %v1009_v49  ;;  %v2223_v3 = vpop.f32.mrb[61].mxu1 }
 0x168   : > { %v2825_v40 = vadd.f32 %v1276_v61, %v1138_v46  ;;  %v2243_v62 = vpop.f32.mrb[61].mxu0  ;;  %v1122_v60 = vpop.f32.mrb[62].mxu1 }
 0x169   : > { %v1279_v0 = vpop.f32.mrb[62].mxu0  ;;  %v1141_v6 = vadd.f32 %v1122_v60, %v1010_v18  ;;  %v2224_v54 = vpop.f32.mrb[63].mxu1 }
 0x16a   : > { %v2827_v2 = vadd.f32 %v1279_v0, %v1139_v58  ;;  %v2244_v4 = vpop.f32.mrb[63].mxu0 }
 0x16e   : > { %v1127_v5 = vpop.f32.mrb[64].mxu1 }
 0x16f   : > { %v1284_v7 = vpop.f32.mrb[64].mxu0  ;;  %v1142_v13 = vadd.f32 %v1127_v5, %v1011_v15  ;;  %v2227_v14 = vpop.f32.mrb[65].mxu1 }
 0x170   : > { %v2829_v9 = vadd.f32 %v1284_v7, %v1140_v57  ;;  %v2247_v10 = vpop.f32.mrb[65].mxu0  ;;  %v1130_v8 = vpop.f32.mrb[66].mxu1 }
 0x171   : > { %v1287_v12 = vpop.f32.mrb[66].mxu0  ;;  %v1143_v49 = vadd.f32 %v1130_v8, %v1012_v30  ;;  %v2228_v19 = vpop.f32.mrb[67].mxu1  ;;  %v2840_v30 = vld [vmem:[%s2918_s2] ss:$0 sm:$0xff] }
 0x172   : > { %v2831_v16 = vadd.f32 %v1287_v12, %v1141_v6  ;;  %v2248_v17 = vpop.f32.mrb[67].mxu0 }
 0x176   : > { %v1433_v42 = vpop.f32.mrb[68].mxu1 }
 0x177   : > { %v1292_v20 = vpop.f32.mrb[68].mxu0  ;;  %v1472_v1 = vadd.f32 %v1433_v42, %v1299_v11  ;;  %v2259_v26 = vpop.f32.mrb[69].mxu1 }
 0x178   : > { %v2833_v23 = vadd.f32 %v1292_v20, %v1142_v13  ;;  %v2251_v18 = vpop.f32.mrb[69].mxu0  ;;  %v1436_v15 = vpop.f32.mrb[70].mxu1 }
 0x179   : > { %v1295_v24 = vpop.f32.mrb[70].mxu0  ;;  %v1473_v22 = vadd.f32 %v1436_v15, %v1300_v41  ;;  %v2260_v31 = vpop.f32.mrb[71].mxu1 }
 0x17a   : > { %v2835_v28 = vadd.f32 %v1295_v24, %v1143_v49  ;;  %v2252_v29 = vpop.f32.mrb[71].mxu0 }
 0x17e   : > { %v1441_v35 = vpop.f32.mrb[72].mxu1 }
 0x17f   : > { %v1564_v21 = vpop.f32.mrb[72].mxu0  ;;  %v1474_v37 = vadd.f32 %v1441_v35, %v1301_v25  ;;  %v2263_v38 = vpop.f32.mrb[73].mxu1 }
 0x180   : > { %v1603_v33 = vadd.f32 %v1564_v21, %v1472_v1  ;;  %v2283_v34 = vpop.f32.mrb[73].mxu0  ;;  %v1444_v41 = vpop.f32.mrb[74].mxu1 }
 0x181   : > { %v1567_v36 = vpop.f32.mrb[74].mxu0  ;;  %v1475_v27 = vadd.f32 %v1444_v41, %v1302_v55  ;;  %v2264_v45 = vpop.f32.mrb[75].mxu1 }
 0x182   : > { %v1620_v11 = vadd.f32 %v2840_v30, %v1603_v33  ;;  %v1604_v39 = vadd.f32 %v1567_v36, %v1473_v22  ;;  %v2284_v32 = vpop.f32.mrb[75].mxu0 }
 0x184   : > { %v1630_v43 = vpack.c.bf16 %v1620_v11, %v1620_v11  ;;  %v1621_v47 = vadd.f32 %v2840_v30, %v1604_v39 }
 0x186   : > { %1632 = vst.msk [vmem:[%s2847_s11] sm:$0xf] %vm1631_vm8, %v1630_v43  ;;  %v1449_v52 = vpop.f32.mrb[76].mxu1  ;;  %v2010_v46 = vpack.c.bf16 %v1621_v47, %v1621_v47 }
 0x187   : > { %v1572_v50 = vpop.f32.mrb[76].mxu0  ;;  %v1476_v44 = vadd.f32 %v1449_v52, %v2825_v40  ;;  %v2267_v48 = vpop.f32.mrb[77].mxu1 }
 0x188   : > { %v1605_v25 = vadd.f32 %v1572_v50, %v1474_v37  ;;  %v2287_v51 = vpop.f32.mrb[77].mxu0  ;;  %v1452_v59 = vpop.f32.mrb[78].mxu1  ;;  %v1984_v40 = vrot.slane %v2010_v46, 9 }
 0x189   : > { %v1575_v53 = vpop.f32.mrb[78].mxu0  ;;  %v1477_v62 = vadd.f32 %v1452_v59, %v2827_v2  ;;  %v2268_v0 = vpop.f32.mrb[79].mxu1 }
 0x18a   : > { %v1622_v56 = vadd.f32 %v2840_v30, %v1605_v25  ;;  %v1606_v58 = vadd.f32 %v1575_v53, %v1475_v27  ;;  %v2288_v55 = vpop.f32.mrb[79].mxu0 }
 0x18c   : > { %v2011_v61 = vpack.c.bf16 %v1622_v56, %v1622_v56  ;;  %v1623_v63 = vadd.f32 %v2840_v30, %v1606_v58 }
 0x18e   : > { %v1644_v3 = vrot.slane %v2011_v61, 5  ;;  %v2013_v4 = vpack.c.bf16 %v1623_v63, %v1623_v63  ;;  %v1988_v54 = vrot.slane %v2011_v61, 10  ;;  %v1457_v12 = vpop.f32.mrb[80].mxu1 }
 0x18f   : > { %v1580_v6 = vpop.f32.mrb[80].mxu0  ;;  %v1478_v17 = vadd.f32 %v1457_v12, %v2829_v9  ;;  %v2271_v49 = vpop.f32.mrb[81].mxu1 }
 0x190   : > { %v1645_v2 = vsel %vm2858_vm13, %v1984_v40, %v1644_v3  ;;  %v1660_v7 = vrot.slane %v2013_v4, 6  ;;  %v1607_v10 = vadd.f32 %v1580_v6, %v1476_v44  ;;  %v2291_v5 = vpop.f32.mrb[81].mxu0  ;;  %v1460_v18 = vpop.f32.mrb[82].mxu1  ;;  %v1992_v9 = vrot.slane %v2013_v4, 11 }
 0x191   : > { %1985 = vst.msk [vmem:[%s2847_s11 + $0x4] sm:$0xf] %vm1631_vm8, %v1645_v2  ;;  %v1583_v13 = vpop.f32.mrb[82].mxu0  ;;  %v1479_v24 = vadd.f32 %v1460_v18, %v2831_v16  ;;  %v2272_v26 = vpop.f32.mrb[83].mxu1 }
 0x192   : > { %v1661_v14 = vsel %vm2862_vm14, %v1988_v54, %v1660_v7  ;;  %v1624_v8 = vadd.f32 %v2840_v30, %v1607_v10  ;;  %v1608_v19 = vadd.f32 %v1583_v13, %v1477_v62  ;;  %v2292_v20 = vpop.f32.mrb[83].mxu0 }
 0x193   : > { %1989 = vst.msk [vmem:[%s2847_s11 + $0x8] sm:$0xf] %vm1631_vm8, %v1661_v14 }
 0x194   : > { %v2015_v42 = vpack.c.bf16 %v1624_v8, %v1624_v8  ;;  %v1625_v1 = vadd.f32 %v2840_v30, %v1608_v19 }
 0x196   : > { %v1676_v15 = vrot.slane %v2015_v42, 7  ;;  %v1681_v22 = vpack.c.bf16 %v1625_v1, %v1625_v1  ;;  %v1465_v16 = vpop.f32.mrb[84].mxu1 }
 0x197   : > { %v1588_v31 = vpop.f32.mrb[84].mxu0  ;;  %v1480_v36 = vadd.f32 %v1465_v16, %v2833_v23  ;;  %v2275_v11 = vpop.f32.mrb[85].mxu1 }
 0x198   : > { %v1677_v21 = vsel %vm2879_vm1, %v1992_v9, %v1676_v15  ;;  %1994 = vst.msk [vmem:[%s2847_s11 + $0x10] sm:$0xf] %vm1631_vm8, %v1681_v22  ;;  %v1609_v33 = vadd.f32 %v1588_v31, %v1478_v17  ;;  %v2295_v34 = vpop.f32.mrb[85].mxu0  ;;  %v1468_v32 = vpop.f32.mrb[86].mxu1 }
 0x199   : > { %1993 = vst.msk [vmem:[%s2847_s11 + $0xc] sm:$0xf] %vm1631_vm8, %v1677_v21  ;;  %v1591_v35 = vpop.f32.mrb[86].mxu0  ;;  %v1481_v43 = vadd.f32 %v1468_v32, %v2835_v28  ;;  %v2276_v45 = vpop.f32.mrb[87].mxu1 }
 0x19a   : > { %v1626_v37 = vadd.f32 %v2840_v30, %v1609_v33  ;;  %v1610_v38 = vadd.f32 %v1591_v35, %v1479_v24  ;;  %v2296_v39 = vpop.f32.mrb[87].mxu0 }
 0x19c   : > { %v2016_v41 = vpack.c.bf16 %v1626_v37, %v1626_v37  ;;  %v1627_v27 = vadd.f32 %v2840_v30, %v1610_v38 }
 0x19e   : > { %v2017_v47 = vpack.c.bf16 %v1627_v27, %v1627_v27  ;;  %v1997_v25 = vrot.slane %v2016_v41, 9 }
 0x19f   : > { %v1596_v50 = vpop.f32.mrb[88].mxu0 }
 0x1a0   : > { %v1692_v51 = vrot.slane %v2017_v47, 5  ;;  %v1611_v52 = vadd.f32 %v1596_v50, %v1480_v36  ;;  %v2299_v23 = vpop.f32.mrb[89].mxu0  ;;  %v2001_v55 = vrot.slane %v2017_v47, 10 }
 0x1a1   : > { %v1599_v53 = vpop.f32.mrb[90].mxu0 }
 0x1a2   : > { %v1693_v46 = vsel %vm2858_vm13, %v1997_v25, %v1692_v51  ;;  %v1628_v44 = vadd.f32 %v2840_v30, %v1611_v52  ;;  %v1612_v56 = vadd.f32 %v1599_v53, %v1481_v43  ;;  %v2300_v48 = vpop.f32.mrb[91].mxu0 }
 0x1a3   : > { %1998 = vst.msk [vmem:[%s2847_s11 + $0x14] sm:$0xf] %vm1631_vm8, %v1693_v46 }
 0x1a4   : > { %v2019_v28 = vpack.c.bf16 %v1628_v44, %v1628_v44  ;;  %v1629_v58 = vadd.f32 %v2840_v30, %v1612_v56 }
 0x1a6   : > { %v1705_v59 = vrot.slane %v2019_v28, 6  ;;  %v2021_v61 = vpack.c.bf16 %v1629_v58, %v1629_v58  ;;  %v2005_v63 = vrot.slane %v2019_v28, 11 }
 0x1a8   : > { %v1706_v62 = vsel %vm2862_vm14, %v2001_v55, %v1705_v59  ;;  %v1718_v0 = vrot.slane %v2021_v61, 7 }
 0x1a9   : > { %2002 = vst.msk [vmem:[%s2847_s11 + $0x18] sm:$0xf] %vm1631_vm8, %v1706_v62 }
 0x1aa   : > { %v1719_v57 = vsel %vm2879_vm1, %v2005_v63, %v1718_v0 }
 0x1ab   : > { %2006 = vst.msk [vmem:[%s2847_s11 + $0x1c] sm:$0xf] %vm1631_vm8, %v1719_v57 }
 0x1ac PF: > { %s13_s14 = sadd.s32 1, %s2395_s14   ;;  %s2926_s12 = smov %s2391_s13 }
 0x1ad   : > { %p10_p5 = scmp.ge.s32.totalorder %s13_s14, 4   ;;  %s2927_s13 = smov %s2929_s15 }
 0x1af   :  { %12 = sbr.rel (!%p10_p5) target bundleno = 2 (0x2), region = 83 }

// kernel: upsample_block_forward.27
= control target key start
LH: loop header
LB: loop body
LE: loop exit
PB: predicated region body
PF: predicated region fallthrough
CT: control target
= control target key end

     0   :  { %8 = vsyncpa [#allocation3], 0  ;;  %s5636_s0 = inlined_call_operand.vmem [shape: bf16[2,1,198,32], index: 0, kind: input, shape index: {}]   ;;  %s5637_s1 = inlined_call_operand.vmem [shape: bf16[2,6,32,32], index: 1, kind: input, shape index: {}]   ;;  %s5638_s2 = inlined_call_operand.vmem [shape: f32[1,32], index: 2, kind: input, shape index: {}]   ;;  %s5639_s3 = inlined_call_operand.hbm [shape: f32[2,8,2,16,32], index: 3, kind: output, shape index: {}]  }
   0x1   :  { %10 = vsyncpa [#allocation3 + $0x1], 0  ;;  %s4308_s12 = smov 0   ;;  %s4310_s13 = smov 0  }
   0x2   :  { %s4312_s14 = smov 0   ;;  %s4314_s15 = smov 0  }
   0x3   :  { %s4316_s16 = smov 0   ;;  %s4318_s17 = smov 0  }
   0x4 LB: > { %s3179_s18 = sadd.s32 4294967295, %s4281_s17   ;;  %s3180_s19 = sadd.s32 4294967294, %s4281_s17   ;;  %s4281_s17 = sphi %s4318_s17, %s16_s17   ;;  %s4277_s16 = sphi %s4316_s16, %s5646_s16   ;;  %s4273_s15 = sphi %s4314_s15, %s5645_s15   ;;  %s4269_s14 = sphi %s4312_s14, %s5644_s14   ;;  %s4265_s13 = sphi %s4310_s13, %s5643_s13   ;;  %s4261_s12 = sphi %s4308_s12, %s5642_s12  }
   0x5   : > { %s35_s20 = sadd.s32 1, %s4277_s16  ;;  %s126_s21 = sadd.s32 1, %s4269_s14 }
   0x6   : > { %p37_p0 = scmp.ge.s32.totalorder %s35_s20, 2  ;;  %p136_p1 = scmp.ne.s32.totalorder %s4269_s14, %s4265_s13 }
   0x7   : > { %p137_p2 = scmp.eq.s32.totalorder %s3179_s18, 1  ;;  %p142_p3 = scmp.ne.s32.totalorder %s4265_s13, %s4261_s12 }
   0x8   : > { %s5648_s20 = smov (%p37_p0, %s35_s20), 0  ;;  %p143_p5 = scmp.eq.s32.totalorder %s3180_s19, 1 }
   0x9   : > { %p4348_p4 = por %p137_p2, %p136_p1  ;;  %s119_s23 = ssub.s32 %s4277_s16, %s5648_s20 }
   0xa   : > { %p3185_p6 = scmp.ge.s32.totalorder %s4281_s17, 1  ;;  %p124_p7 = scmp.eq.s32.totalorder %s119_s23, 0 }
   0xb   : > { %p4355_p8 = por %p143_p5, %p142_p3  ;;  %p186_p9 = scmp.lt.s32.totalorder %s4281_s17, 3 }
   0xc   : > { %s4361_s25 = scalar_select %p124_p7, %s4269_s14, %s126_s21  }
   0xd   : > { %p187_p10 = pnand %p3185_p6, %p186_p9 }
   0xe   : > { %v4132_v0 = vld [vmem:[%s5637_s1 + $0x10] sm:$0xff] (!%p187_p10)   ;;  %v4283_v1 = vmov (!%p187_p10), 0.0   ;;  %v4133_v2 = vld [vmem:[%s5637_s1] sm:$0xff] (!%p187_p10)   ;;  %v4134_v3 = vld [vmem:[%s5637_s1 + $0x18] sm:$0xff] (!%p187_p10)   ;;  %vm4284_vm0 = vmmov (!%p187_p10), 0   ;;  %p221_p11 = scmp.lt.s32.totalorder (!%p187_p10), %s4273_s15, 1 }
   0xf   : > { %190 = sbr.rel (%p187_p10) target bundleno = 696 (0x2b8), region = 32  ;;  %3592 = vmatprep.subr.bf16.mxu0 (!%p187_p10), %v4283_v1  ;;  %3632 = vmatprep.subr.bf16.mxu1 (!%p187_p10), %v4283_v1  ;;  %v4135_v4 = vld [vmem:[%s5637_s1 + $0x8] sm:$0xff] (!%p187_p10)   ;;  %vm405_vm1 = vcmask (!%p187_p10), 261120   ;;  %v4140_v5 = vld [vmem:[%s5637_s1 + $0x30] sm:$0xff] (!%p187_p10)   ;;  %vm316_vm2 = vsmask.f32 (!%p187_p10), 7424 }
  0x10   : > { %3593 = vmatpush3.bf16.msra.mxu0 (!%p187_p10), %v4132_v0  ;;  %3636 = vmatprep.mubr.msk.bf16.mxu1 (!%p187_p10), %vm4284_vm0, %v4283_v1  ;;  %v4146_v16 = vld [vmem:[%s5637_s1 + $0x38] sm:$0xff] (!%p187_p10)   ;;  %v4139_v20 = vld [vmem:[%s5637_s1 + $0x20] sm:$0xff] (!%p187_p10)   ;;  %vm682_vm3 = vcmask (!%p187_p10), 1046528   ;;  %v4145_v26 = vld [vmem:[%s5637_s1 + $0x28] sm:$0xff] (!%p187_p10)   ;;  %vm1387_vm4 = vcmask (!%p187_p10), 1045504   ;;  %vm2818_vm6 = vcmask (!%p187_p10), 1044480  }
  0x11   : > { %3633 = vmatpush3.bf16.msra.mxu1 (!%p187_p10), %v4133_v2  ;;  %3594 = vmatprep.subr.bf16.mxu0 (!%p187_p10), %v4283_v1  ;;  %vm1126_vm5 = vsmask.f32 (!%p187_p10), 6400  ;;  %s218_s30 = sand.u32 (!%p187_p10), 1, %s4265_s13   ;;  %vm2557_vm7 = vsmask.f32 (!%p187_p10), 5376  ;;  %vm1596_vm8 = vcmask (!%p187_p10), 261122  }
  0x12   : > { %3634 = vmatprep.subr.bf16.mxu1 (!%p187_p10), %v4283_v1  ;;  %3596 = vmatprep.mubr.msk.bf16.mxu0 (!%p187_p10), %vm4284_vm0, %v4283_v1  ;;  %s3186_s4 = sshll.u32 (!%p187_p10), %s218_s30, 8  ;;  %vm1599_vm9 = vcmask (!%p187_p10), 254976   ;;  %vm1602_vm10 = vcmask (!%p187_p10), 261124   ;;  %vm1605_vm11 = vcmask (!%p187_p10), 257024   ;;  %vm1608_vm12 = vcmask (!%p187_p10), 261126   ;;  %s3459_s9 = sshll.u32 (!%p187_p10), %s4273_s15, 12 }
  0x13   : > { %vm1611_vm13 = vcmask (!%p187_p10), 259072   ;;  %s5579_s21 = scalar_lea.hbm (!%p187_p10), %s5639_s3, %s3459_s9  ;;  %s4285_s26 = smov (!%p187_p10), [#allocation2]  }
  0x14   : > { %3595 = vmatpush3.bf16.msra.mxu0 (!%p187_p10), %v4134_v3  ;;  %s4207_s27 = sshll.u32 (!%p187_p10), %s4285_s26, 4  ;;  %s4208_s27 = int_to_ptr.vmem [resolvable:$false] %s4207_s27 }
  0x15   : > { %3635 = vmatpush3.bf16.msra.mxu1 (!%p187_p10), %v4135_v4  ;;  %3672 = vmatprep.subr.bf16.mxu0 (!%p187_p10), %v4283_v1  ;;  %s4209_s28 = scalar_lea.vmem (!%p187_p10), %s4208_s27, 8192 }
  0x16   : > { %s222_s7 = scalar_select %p221_p11, %s4273_s15, 1  ;;  %3712 = vmatprep.subr.bf16.mxu1 %v4283_v1 }
  0x17   : > { %s5590_s15 = scalar_lea.sflag [#allocation3], %s218_s30 }
  0x18   : > { %s4072_s8 = smul.u32 100, %s222_s7  ;;  %s5249_s7 = scalar_lea.vmem [#allocation2], %s3186_s4 }
  0x19   : > { %s3066_s10 = sshll.u32 %s5249_s7, 4  ;;  %s5581_s10 = int_to_ptr.vmem [resolvable:$true] %s3066_s10 }
  0x1a   : > { %s4389_s11 = scalar_lea.vmem %s5636_s0, %s4072_s8  ;;  %s4203_s23 = scalar_lea.vmem %s5581_s10, 4096 }
  0x1b   : > { %v240_v6 = vld [vmem:[%s4389_s11] sm:$0xf]  ;;  %v241_v7 = vld [vmem:[%s4389_s11 + $0x4] sm:$0xf]  ;;  %v4138_v10 = vld [vmem:[%s4389_s11 + $0x8] sm:$0xff]   ;;  %p4204_p12 = scmp.ne.s32.totalorder %s5581_s10, %s4203_s23  ;;  %p4210_p1 = scmp.lt.s32.totalorder %s5581_s10, %s4208_s27 }
  0x1c   : > { %v673_v8 = vld [vmem:[%s4389_s11] sm:$0xe]  ;;  %v3192_v9 = vcombine.low %v240_v6, %v241_v7  ;;  %v325_v14 = vshll.u32 %v4138_v10, 16  ;;  %v4141_v15 = vld [vmem:[%s4389_s11 + $0x10] sm:$0xff]   ;;  %v329_v21 = vshrl.u32 %v4138_v10, 16  ;;  %v684_v24 = vrot.slane %v4138_v10, 1  ;;  %p4211_p2 = scmp.lt.s32.totalorder %s4209_s28, %s4203_s23 }
  0x1d   : > { %v3228_v11 = vcombine.low %v673_v8, %v241_v7  ;;  %v333_v23 = vshll.u32 %v4141_v15, 16  ;;  %v4142_v29 = vld [vmem:[%s4389_s11 + $0x18] sm:$0xff]   ;;  %v337_v32 = vshrl.u32 %v4141_v15, 16  ;;  %v4428_v34 = vld [vmem:[%s4389_s11 + $0x20] sm:$0xff]   ;;  %v686_v35 = vrot.slane %v4141_v15, 1  ;;  %v4435_v39 = vld [vmem:[%s4389_s11 + $0x28] sm:$0xff]   ;;  %p4205_p13 = pnand %p4204_p12, %p4348_p4 }
  0x1e   : > { %3637 = vmatmul.mubr.msk.bf16.vlgmr.msra.gmra.mrb[0].mxu1 %vm405_vm1, %v3192_v9  ;;  %v318_v12 = vshrl.u32 %v3192_v9, 16  ;;  %v320_v13 = vshll.u32 %v3192_v9, 16  ;;  %v327_v18 = vrot.slane %v325_v14, 1  ;;  %v341_v33 = vshll.u32 %v4142_v29, 16  ;;  %v4443_v43 = vld [vmem:[%s4389_s11 + $0x30] sm:$0xff]   ;;  %v4452_v46 = vld [vmem:[%s4389_s11 + $0x38] sm:$0xff]   ;;  %p4212_p3 = por %p4211_p2, %p4210_p1 }
  0x1f   : > { %3713 = vmatpush3.bf16.msra.mxu1 %v4140_v5  ;;  %3640 = vmatprep.mubr.msk.bf16.mxu1 %vm4284_vm0, %v4283_v1  ;;  %v683_v19 = vrot.slane %v3228_v11, 1  ;;  %v335_v28 = vrot.slane %v333_v23, 1  ;;  %v688_v36 = vrot.slane %v4142_v29, 1  ;;  %v4438_v40 = vsel %vm682_vm3, %v684_v24, %v686_v35  ;;  %v4456_v48 = vld [vmem:[%s4389_s11 + $0x48] ss:$0 sps:$4 sm:$0x11]   ;;  %p4206_p0 = pneg %p4205_p13 }
  0x20   : > { %v322_v17 = vrot.slane %v320_v13, 1  ;;  %3714 = vmatprep.subr.bf16.mxu1 %v4283_v1  ;;  %v331_v27 = vor.u32 %v329_v21, %v327_v18  ;;  %v343_v38 = vrot.slane %v341_v33, 1  ;;  %v345_v41 = vshrl.u32 %v4142_v29, 16  ;;  %v4463_v51 = vld [vmem:[%s4389_s11 + $0x40] sm:$0xff]   ;;  %v864_v52 = vld [vmem:[%s4389_s11 + $0x8] sm:$0xe] }
  0x21   : > { %v4420_v30 = vsel %vm682_vm3, %v683_v19, %v684_v24  ;;  %v339_v37 = vor.u32 %v337_v32, %v335_v28  ;;  %v349_v42 = vshll.u32 %v4428_v34, 16  ;;  %v4446_v44 = vsel %vm682_vm3, %v686_v35, %v688_v36  ;;  %v865_v53 = vld [vmem:[%s4389_s11 + $0xc] sm:$0xf]  ;;  %v4488_v4 = vld [vmem:[%s4389_s11 + $0x10] sm:$0xff]   ;;  %v1378_v6 = vld [vmem:[%s4389_s11 + $0x8] sm:$0xc]  ;;  %p4213_p5 = pnand %p4212_p3, %p4206_p0 }
  0x22   : > { %v323_v22 = vor.u32 %v322_v17, %v318_v12  ;;  %v336_v31 = vsel %vm316_vm2, %v331_v27, %v335_v28  ;;  %v690_v45 = vrot.slane %v4428_v34, 1  ;;  %v692_v47 = vrot.slane %v4435_v39, 1  ;;  %v4498_v9 = vld [vmem:[%s4389_s11 + $0x18] sm:$0xff]  }
  0x23   : > { %3715 = vmatpush3.bf16.msra.mxu1 %v4146_v16  ;;  %v344_v50 = vsel %vm316_vm2, %v339_v37, %v343_v38  ;;  %v694_v55 = vrot.slane %v4443_v43, 1  ;;  %v357_v56 = vshll.u32 %v4435_v39, 16  ;;  %v696_v57 = vrot.slane %v4452_v46, 1 }
  0x24   : > { %v328_v25 = vsel %vm316_vm2, %v323_v22, %v327_v18  ;;  %3792 = vmatprep.subr.bf16.mxu1 %v4283_v1  ;;  %v4459_v49 = vsel %vm682_vm3, %v688_v36, %v690_v45  ;;  %v4468_v54 = vsel %vm682_vm3, %v690_v45, %v692_v47  ;;  %v698_v59 = vrot.slane %v4463_v51, 1 }
  0x25   : > { %3597 = vmatmul.mubr.msk.bf16.vlgmr.msra.gmra.mrb[0].mxu0 %vm405_vm1, %v328_v25  ;;  %v4474_v58 = vsel %vm682_vm3, %v692_v47, %v694_v55  ;;  %v353_v60 = vshrl.u32 %v4428_v34, 16  ;;  %v361_v61 = vshrl.u32 %v4435_v39, 16  ;;  %v4481_v62 = vsel %vm682_vm3, %v694_v55, %v696_v57  ;;  %v4518_v25 = vld [vmem:[%s4389_s11 + $0x20] sm:$0xff]  }
  0x26   : > { %3673 = vmatpush3.bf16.msra.mxu0 %v4139_v20  ;;  %3600 = vmatprep.mubr.msk.bf16.mxu0 %vm4284_vm0, %v4283_v1  ;;  %v700_v63 = vrot.slane %v4456_v48, 1  ;;  %v347_v0 = vor.u32 %v345_v41, %v343_v38  ;;  %v351_v2 = vrot.slane %v349_v42, 1  ;;  %v365_v3 = vshll.u32 %v4443_v43, 16 }
  0x27   : > { %3641 = vmatmul.mubr.msk.bf16.gmra.mrb[4].mxu1 %vm405_vm1, %v4138_v10  ;;  %3674 = vmatprep.subr.bf16.mxu0 %v4283_v1  ;;  %v4491_v5 = vsel %vm682_vm3, %v696_v57, %v698_v59  ;;  %v359_v7 = vrot.slane %v357_v56, 1  ;;  %v4495_v8 = vcombine.low %v864_v52, %v865_v53  ;;  %v3285_v11 = vcombine.low %v1378_v6, %v865_v53  ;;  %v4544_v57 = vld [vmem:[%s4389_s11 + $0x28] sm:$0xff]  }
  0x28   : > { %3644 = vmatprep.mubr.msk.bf16.mxu1 %vm4284_vm0, %v4283_v1  ;;  %v4501_v10 = vsel %vm682_vm3, %v698_v59, %v700_v63  ;;  %v1389_v12 = vrot.slane %v4488_v4, 2  ;;  %v369_v13 = vshrl.u32 %v4443_v43, 16  ;;  %v352_v17 = vsel %vm316_vm2, %v347_v0, %v351_v2 }
  0x29   : > { %v1388_v14 = vrot.slane %v3285_v11, 2  ;;  %v1131_v16 = vshll.u32 %v4495_v8, 16  ;;  %v1136_v18 = vshrl.u32 %v4488_v4, 16  ;;  %v1139_v19 = vshll.u32 %v4488_v4, 16 }
  0x2a   : > { %3675 = vmatpush3.bf16.msra.mxu0 %v4145_v26  ;;  %v1391_v20 = vrot.slane %v4498_v9, 2  ;;  %v1145_v24 = vshrl.u32 %v4498_v9, 16  ;;  %v367_v32 = vrot.slane %v365_v3, 1  ;;  %v1393_v38 = vrot.slane %v4518_v25, 2 }
  0x2b   : > { %3752 = vmatprep.subr.bf16.mxu0 %v4283_v1  ;;  %v4514_v21 = vsel %vm1387_vm4, %v1388_v14, %v1389_v12  ;;  %v1133_v23 = vrot.slane %v1131_v16, 2  ;;  %v1138_v26 = vrot.slane %v1136_v18, 1  ;;  %v1141_v27 = vrot.slane %v1139_v19, 2 }
  0x2c   : > { %v4521_v28 = vsel %vm1387_vm4, %v1389_v12, %v1391_v20  ;;  %v1147_v35 = vrot.slane %v1145_v24, 1  ;;  %v1154_v41 = vshrl.u32 %v4518_v25, 16  ;;  %v373_v42 = vshll.u32 %v4452_v46, 16 }
  0x2d   : > { %3601 = vmatmul.mubr.msk.bf16.gmra.mrb[4].mxu0 %vm405_vm1, %v336_v31  ;;  %v355_v31 = vor.u32 %v353_v60, %v351_v2  ;;  %v1142_v36 = vor.u32 %v1141_v27, %v1138_v26  ;;  %v1157_v45 = vshll.u32 %v4518_v25, 16  ;;  %v4539_v52 = vsel %vm1387_vm4, %v1391_v20, %v1393_v38 }
  0x2e   : > { %3604 = vmatprep.mubr.msk.bf16.mxu0 %vm4284_vm0, %v4283_v1  ;;  %v1156_v53 = vrot.slane %v1154_v41, 1  ;;  %v377_v55 = vshrl.u32 %v4452_v46, 16  ;;  %v363_v63 = vor.u32 %v361_v61, %v359_v7  ;;  %v381_v2 = vshll.u32 %v4463_v51, 16 }
  0x2f   : > { %3645 = vmatmul.mubr.msk.bf16.gmra.mrb[8].mxu1 %vm405_vm1, %v4141_v15  ;;  %v1128_v15 = vshrl.u32 %v4495_v8, 16  ;;  %v1159_v56 = vrot.slane %v1157_v45, 2  ;;  %v1395_v3 = vrot.slane %v4544_v57, 2  ;;  %v1163_v6 = vshrl.u32 %v4544_v57, 16 }
  0x30   : > { %3648 = vmatprep.mubr.msk.bf16.mxu1 %vm4284_vm0, %v4283_v1  ;;  %v1166_v11 = vshll.u32 %v4544_v57, 16  ;;  %v368_v14 = vsel %vm316_vm2, %v363_v63, %v367_v32  ;;  %v375_v18 = vrot.slane %v373_v42, 1  ;;  %v389_v42 = vshll.u32 %v4456_v48, 16 }
  0x31   : > { %v1130_v22 = vrot.slane %v1128_v15, 1  ;;  %v1160_v60 = vor.u32 %v1159_v56, %v1156_v53  ;;  %v4564_v61 = vsel %vm1387_vm4, %v1393_v38, %v1395_v3  ;;  %v4568_v15 = vld [vmem:[%s4389_s11 + $0x30] sm:$0xff]  }
  0x32   : > { %v1168_v12 = vrot.slane %v1166_v11, 2  ;;  %v1397_v19 = vrot.slane %v4568_v15, 2  ;;  %v1172_v20 = vshrl.u32 %v4568_v15, 16 }
  0x33   : > { %v1134_v33 = vor.u32 %v1133_v23, %v1130_v22  ;;  %v1175_v22 = vshll.u32 %v4568_v15, 16 }
  0x34   : > { %v4584_v23 = vsel %vm1387_vm4, %v1395_v3, %v1397_v19  ;;  %v936_v3 = vrot.slane %v4495_v8, 1 }
  0x35   : > { %3605 = vmatmul.mubr.msk.bf16.gmra.mrb[8].mxu0 %vm405_vm1, %v344_v50  ;;  %v4536_v47 = vsel %vm1126_vm5, %v1134_v33, %v1142_v36  ;;  %v1177_v24 = vrot.slane %v1175_v22, 2  ;;  %v4160_v22 = vld [vmem:[%s5637_s1 + $0x58] sm:$0xff]  }
  0x36   : > { %3608 = vmatprep.mubr.msk.bf16.mxu0 %vm4284_vm0, %v4283_v1 }
  0x37   : > { %3649 = vmatmul.mubr.msk.bf16.gmra.mrb[12].mxu1 %vm405_vm1, %v4142_v29  ;;  %v1148_v29 = vshll.u32 %v4498_v9, 16 }
  0x38   : > { %3652 = vmatprep.mubr.msk.bf16.mxu1 %vm4284_vm0, %v4283_v1 }
  0x39   : > { %v1150_v37 = vrot.slane %v1148_v29, 2  ;;  %v4588_v29 = vld [vmem:[%s4389_s11 + $0x38] sm:$0xff]  }
  0x3a   : > { %v1399_v33 = vrot.slane %v4588_v29, 2 }
  0x3b   : > { %v1151_v50 = vor.u32 %v1150_v37, %v1147_v35  ;;  %v1181_v35 = vshrl.u32 %v4588_v29, 16 }
  0x3c   : > { %v4604_v37 = vsel %vm1387_vm4, %v1397_v19, %v1399_v33 }
  0x3d   : > { %3609 = vmatmul.mubr.msk.bf16.gmra.mrb[12].mxu0 %vm405_vm1, %v352_v17  ;;  %v4547_v59 = vsel %vm1126_vm5, %v1142_v36, %v1151_v50  ;;  %v4551_v0 = vsel %vm1126_vm5, %v1151_v50, %v1160_v60  ;;  %v1184_v36 = vshll.u32 %v4588_v29, 16  ;;  %v1183_v38 = vrot.slane %v1181_v35, 1 }
  0x3e   : > { %3612 = vmatprep.mubr.msk.bf16.mxu0 %vm4284_vm0, %v4283_v1  ;;  %v385_v50 = vshrl.u32 %v4463_v51, 16  ;;  %v941_v35 = vrot.slane %v4518_v25, 1 }
  0x3f   : > { %3653 = vmatmul.mubr.msk.bf16.gmra.mrb[16].mxu1 %vm405_vm1, %v4428_v34  ;;  %v360_v34 = vsel %vm316_vm2, %v355_v31, %v359_v7  ;;  %v1165_v7 = vrot.slane %v1163_v6, 1  ;;  %v1186_v41 = vrot.slane %v1184_v36, 2  ;;  %v943_v36 = vrot.slane %v4544_v57, 1 }
  0x40   : > { %3656 = vmatprep.mubr.msk.bf16.mxu1 %vm4284_vm0, %v4283_v1 }
  0x41   : > { %v1169_v16 = vor.u32 %v1168_v12, %v1165_v7  ;;  %v1187_v53 = vor.u32 %v1186_v41, %v1183_v38  ;;  %v944_v25 = vsel %vm682_vm3, %v941_v35, %v943_v36  ;;  %v4164_v41 = vld [vmem:[%s4389_s11 + $0x50] ss:$0 sps:$4 sm:$0x11]  }
  0x43   : > { %v4571_v17 = vsel %vm1126_vm5, %v1160_v60, %v1169_v16 }
  0x45   : > { %3613 = vmatmul.mubr.msk.bf16.gmra.mrb[16].mxu0 %vm405_vm1, %v360_v34 }
  0x46   : > { %3616 = vmatprep.mubr.msk.bf16.mxu0 %vm4284_vm0, %v4283_v1 }
  0x47   : > { %3657 = vmatmul.mubr.msk.bf16.gmra.mrb[20].mxu1 %vm405_vm1, %v4435_v39  ;;  %v371_v39 = vor.u32 %v369_v13, %v367_v32  ;;  %v1174_v13 = vrot.slane %v1172_v20, 1  ;;  %v379_v32 = vor.u32 %v377_v55, %v375_v18  ;;  %v4610_v55 = vld [vmem:[%s4389_s11 + $0x40] sm:$0xff]   ;;  %v939_v20 = vrot.slane %v4498_v9, 1 }
  0x48   : > { %3660 = vmatprep.mubr.msk.bf16.mxu1 %vm4284_vm0, %v4283_v1  ;;  %v1401_v48 = vrot.slane %v4610_v55, 2  ;;  %v1190_v60 = vshrl.u32 %v4610_v55, 16  ;;  %v1193_v63 = vshll.u32 %v4610_v55, 16 }
  0x49   : > { %v376_v26 = vsel %vm316_vm2, %v371_v39, %v375_v18  ;;  %v1178_v27 = vor.u32 %v1177_v24, %v1174_v13 }
  0x4a   : > { %v4628_v6 = vsel %vm1387_vm4, %v1399_v33, %v1401_v48  ;;  %v1192_v11 = vrot.slane %v1190_v60, 1  ;;  %v1195_v7 = vrot.slane %v1193_v63, 2  ;;  %v4159_v33 = vld [vmem:[%s5637_s1 + $0x48] sm:$0xff]  }
  0x4b   : > { %v4591_v31 = vsel %vm1126_vm5, %v1169_v16, %v1178_v27  ;;  %v4613_v56 = vsel %vm1126_vm5, %v1178_v27, %v1187_v53  ;;  %v4153_v27 = vld [vmem:[%s5637_s1 + $0x40] sm:$0xff]  }
  0x4d   : > { %3617 = vmatmul.mubr.msk.bf16.gmra.mrb[20].mxu0 %vm405_vm1, %v368_v14  ;;  %v1196_v14 = vor.u32 %v1195_v7, %v1192_v11 }
  0x4e   : > { %3620 = vmatprep.mubr.msk.bf16.mxu0 %vm4284_vm0, %v4283_v1 }
  0x4f   : > { %3661 = vmatmul.mubr.msk.bf16.gmra.mrb[24].mxu1 %vm405_vm1, %v4443_v43  ;;  %v383_v43 = vrot.slane %v381_v2, 1  ;;  %v937_v2 = vrot.slane %v4488_v4, 1  ;;  %v4636_v4 = vld [vmem:[%s4389_s11 + $0x48] sm:$0xff]   ;;  %v4639_v39 = vsel %vm1126_vm5, %v1187_v53, %v1196_v14 }
  0x50   : > { %3664 = vmatprep.mubr.msk.bf16.mxu1 %vm4284_vm0, %v4283_v1  ;;  %v1403_v8 = vrot.slane %v4636_v4, 2  ;;  %v1199_v18 = vshrl.u32 %v4636_v4, 16  ;;  %v1202_v19 = vshll.u32 %v4636_v4, 16 }
  0x51   : > { %v384_v45 = vsel %vm316_vm2, %v379_v32, %v383_v43  ;;  %v387_v34 = vor.u32 %v385_v50, %v383_v43  ;;  %v938_v16 = vsel %vm682_vm3, %v936_v3, %v937_v2  ;;  %v940_v9 = vsel %vm682_vm3, %v937_v2, %v939_v20 }
  0x52   : > { %v4657_v13 = vsel %vm1387_vm4, %v1401_v48, %v1403_v8  ;;  %v1201_v24 = vrot.slane %v1199_v18, 1 }
  0x55   : > { %3621 = vmatmul.mubr.msk.bf16.gmra.mrb[24].mxu0 %vm405_vm1, %v376_v26  ;;  %v1204_v26 = vrot.slane %v1202_v19, 2 }
  0x56   : > { %3624 = vmatprep.mubr.msk.bf16.mxu0 %vm4284_vm0, %v4283_v1 }
  0x57   : > { %3665 = vmatmul.mubr.msk.bf16.gmra.mrb[28].mxu1 %vm405_vm1, %v4452_v46  ;;  %v391_v46 = vrot.slane %v389_v42, 1  ;;  %v4663_v43 = vor.u32 %v1204_v26, %v1201_v24 }
  0x58   : > { %3668 = vmatprep.mubr.msk.bf16.mxu1 %vm4284_vm0, %v4283_v1 }
  0x59   : > { %v392_v12 = vsel %vm316_vm2, %v387_v34, %v391_v46  ;;  %v4668_v32 = vsel %vm1126_vm5, %v1196_v14, %v4663_v43 }
  0x5d   : > { %3625 = vmatmul.mubr.msk.bf16.gmra.mrb[28].mxu0 %vm405_vm1, %v384_v45 }
  0x5e   : > { %3628 = vmatprep.mubr.msk.bf16.mxu0 %vm4284_vm0, %v4283_v1 }
  0x5f   : > { %3669 = vmatmul.mubr.msk.bf16.gmra.mrb[32].mxu1 %vm405_vm1, %v4463_v51  ;;  %v4154_v51 = vld [vmem:[%s5637_s1 + $0x50] sm:$0xff]  }
  0x60   : > { %3716 = vmatprep.mubr.msk.bf16.mxu1 %vm4284_vm0, %v4283_v1 }
  0x65   : > { %3629 = vmatmul.mubr.msk.bf16.gmra.mrb[32].mxu0 %vm405_vm1, %v392_v12  ;;  %v4851_v12 = vld [vmem:[%s4389_s11 + $0x18] sm:$0xff]  }
  0x66   : > { %3676 = vmatprep.mubr.msk.bf16.mxu0 %vm4284_vm0, %v4283_v1  ;;  %v1724_v18 = vshrl.u32 %v4851_v12, 16  ;;  %v1727_v19 = vshll.u32 %v4851_v12, 16 }
  0x67   : > { %3717 = vmatmul.mubr.msk.bf16.vlgmr.msra.gmra.mrb[36].mxu1 %vm405_vm1, %v938_v16 }
  0x68   : > { %3793 = vmatpush3.bf16.msra.mxu1 %v4154_v51  ;;  %3720 = vmatprep.mubr.msk.bf16.mxu1 %vm4284_vm0, %v4283_v1 }
  0x69   : > { %3794 = vmatprep.subr.bf16.mxu1 %v4283_v1 }
  0x6c   : > { %3795 = vmatpush3.bf16.msra.mxu1 %v4160_v22  ;;  %v1945_v22 = vrot.slane %v4851_v12, 1 }
  0x6d   : > { %3677 = vmatmul.mubr.msk.bf16.vlgmr.msra.gmra.mrb[36].mxu0 %vm405_vm1, %v4420_v30  ;;  %3872 = vmatprep.subr.bf16.mxu1 %v4283_v1  ;;  %v942_v30 = vsel %vm682_vm3, %v939_v20, %v941_v35  ;;  %v1729_v35 = vrot.slane %v1727_v19, 2 }
  0x6e   : > { %3753 = vmatpush3.bf16.msra.mxu0 %v4153_v27  ;;  %3680 = vmatprep.mubr.msk.bf16.mxu0 %vm4284_vm0, %v4283_v1 }
  0x6f   : > { %3721 = vmatmul.mubr.msk.bf16.gmra.mrb[40].mxu1 %vm405_vm1, %v940_v9  ;;  %3754 = vmatprep.subr.bf16.mxu0 %v4283_v1  ;;  %v4173_v9 = vld [vmem:[%s5637_s1 + $0x80] sm:$0xff]  }
  0x70   : > { %3724 = vmatprep.mubr.msk.bf16.mxu1 %vm4284_vm0, %v4283_v1 }
  0x72   : > { %3755 = vmatpush3.bf16.msra.mxu0 %v4159_v33  ;;  %v1726_v33 = vrot.slane %v1724_v18, 1 }
  0x73   : > { %3832 = vmatprep.subr.bf16.mxu0 %v4283_v1 }
  0x75   : > { %3681 = vmatmul.mubr.msk.bf16.gmra.mrb[40].mxu0 %vm405_vm1, %v4438_v40  ;;  %v945_v40 = vrot.slane %v4568_v15, 1 }
  0x76   : > { %3684 = vmatprep.mubr.msk.bf16.mxu0 %vm4284_vm0, %v4283_v1 }
  0x77   : > { %3725 = vmatmul.mubr.msk.bf16.gmra.mrb[44].mxu1 %vm405_vm1, %v942_v30  ;;  %v946_v38 = vsel %vm682_vm3, %v943_v36, %v945_v40  ;;  %v4877_v30 = vld [vmem:[%s4389_s11 + $0x20] sm:$0xff]  }
  0x78   : > { %3728 = vmatprep.mubr.msk.bf16.mxu1 %vm4284_vm0, %v4283_v1 }
  0x7d   : > { %3685 = vmatmul.mubr.msk.bf16.gmra.mrb[44].mxu0 %vm405_vm1, %v4446_v44  ;;  %v947_v44 = vrot.slane %v4588_v29, 1 }
  0x7e   : > { %3688 = vmatprep.mubr.msk.bf16.mxu0 %vm4284_vm0, %v4283_v1 }
  0x7f   : > { %3729 = vmatmul.mubr.msk.bf16.gmra.mrb[48].mxu1 %vm405_vm1, %v944_v25  ;;  %v948_v57 = vsel %vm682_vm3, %v945_v40, %v947_v44 }
  0x80   : > { %3732 = vmatprep.mubr.msk.bf16.mxu1 %vm4284_vm0, %v4283_v1 }
  0x85   : > { %3689 = vmatmul.mubr.msk.bf16.gmra.mrb[48].mxu0 %vm405_vm1, %v4459_v49  ;;  %v949_v49 = vrot.slane %v4610_v55, 1 }
  0x86   : > { %3692 = vmatprep.mubr.msk.bf16.mxu0 %vm4284_vm0, %v4283_v1 }
  0x87   : > { %3733 = vmatmul.mubr.msk.bf16.gmra.mrb[52].mxu1 %vm405_vm1, %v946_v38  ;;  %v950_v15 = vsel %vm682_vm3, %v947_v44, %v949_v49 }
  0x88   : > { %3736 = vmatprep.mubr.msk.bf16.mxu1 %vm4284_vm0, %v4283_v1 }
  0x8d   : > { %3693 = vmatmul.mubr.msk.bf16.gmra.mrb[52].mxu0 %vm405_vm1, %v4468_v54  ;;  %v951_v54 = vrot.slane %v4636_v4, 1  ;;  %v4174_v4 = vld [vmem:[%s5637_s1 + $0x90] sm:$0xff]  }
  0x8e   : > { %3696 = vmatprep.mubr.msk.bf16.mxu0 %vm4284_vm0, %v4283_v1 }
  0x8f   : > { %3737 = vmatmul.mubr.msk.bf16.gmra.mrb[56].mxu1 %vm405_vm1, %v948_v57  ;;  %v952_v29 = vsel %vm682_vm3, %v949_v49, %v951_v54  ;;  %v1730_v49 = vor.u32 %v1729_v35, %v1726_v33  ;;  %v4937_v35 = vld [vmem:[%s4389_s11 + $0x38] sm:$0xff]  }
  0x90   : > { %3740 = vmatprep.mubr.msk.bf16.mxu1 %vm4284_vm0, %v4283_v1 }
  0x95   : > { %3697 = vmatmul.mubr.msk.bf16.gmra.mrb[56].mxu0 %vm405_vm1, %v4474_v58  ;;  %v953_v58 = vrot.slane %v4164_v41, 1 }
  0x96   : > { %3700 = vmatprep.mubr.msk.bf16.mxu0 %vm4284_vm0, %v4283_v1 }
  0x97   : > { %3741 = vmatmul.mubr.msk.bf16.gmra.mrb[60].mxu1 %vm405_vm1, %v950_v15  ;;  %v954_v42 = vsel %vm682_vm3, %v951_v54, %v953_v58  ;;  %v1733_v15 = vshrl.u32 %v4877_v30, 16  ;;  %v1736_v54 = vshll.u32 %v4877_v30, 16  ;;  %v1947_v58 = vrot.slane %v4877_v30, 1 }
  0x98   : > { %3744 = vmatprep.mubr.msk.bf16.mxu1 %vm4284_vm0, %v4283_v1 }
  0x9d   : > { %3701 = vmatmul.mubr.msk.bf16.gmra.mrb[60].mxu0 %vm405_vm1, %v4481_v62  ;;  %v4167_v62 = vld [vmem:[%s5637_s1 + $0x60] sm:$0xff]  }
  0x9e   : > { %3704 = vmatprep.mubr.msk.bf16.mxu0 %vm4284_vm0, %v4283_v1 }
  0x9f   : > { %3745 = vmatmul.mubr.msk.bf16.gmra.mrb[64].mxu1 %vm405_vm1, %v952_v29  ;;  %v4179_v29 = vld [vmem:[%s5637_s1 + $0x88] sm:$0xff]  }
  0xa0   : > { %3748 = vmatprep.mubr.msk.bf16.mxu1 %vm4284_vm0, %v4283_v1 }
  0xa5   : > { %3705 = vmatmul.mubr.msk.bf16.gmra.mrb[64].mxu0 %vm405_vm1, %v4491_v5  ;;  %v4169_v5 = vld [vmem:[%s5637_s1 + $0x68] sm:$0xff]  }
  0xa6   : > { %3708 = vmatprep.mubr.msk.bf16.mxu0 %vm4284_vm0, %v4283_v1 }
  0xa7   : > { %3749 = vmatmul.mubr.msk.bf16.gmra.mrb[68].mxu1 %vm405_vm1, %v954_v42 }
  0xa8   : > { %3796 = vmatprep.mubr.msk.bf16.mxu1 %vm4284_vm0, %v4283_v1 }
  0xad   : > { %3709 = vmatmul.mubr.msk.bf16.gmra.mrb[68].mxu0 %vm405_vm1, %v4501_v10  ;;  %v4166_v10 = vld [vmem:[%s5637_s1 + $0x70] sm:$0xff]  }
  0xae   : > { %3756 = vmatprep.mubr.msk.bf16.mxu0 %vm4284_vm0, %v4283_v1 }
  0xaf   : > { %3797 = vmatmul.mubr.msk.bf16.vlgmr.msra.gmra.mrb[72].mxu1 %vm405_vm1, %v4514_v21  ;;  %v4168_v21 = vld [vmem:[%s5637_s1 + $0x78] sm:$0xff]  }
  0xb0   : > { %3873 = vmatpush3.bf16.msra.mxu1 %v4167_v62  ;;  %3800 = vmatprep.mubr.msk.bf16.mxu1 %vm4284_vm0, %v4283_v1 }
  0xb1   : > { %3874 = vmatprep.subr.bf16.mxu1 %v4283_v1 }
  0xb4   : > { %3875 = vmatpush3.bf16.msra.mxu1 %v4169_v5 }
  0xb5   : > { %3757 = vmatmul.mubr.msk.bf16.vlgmr.msra.gmra.mrb[72].mxu0 %vm405_vm1, %v4536_v47  ;;  %3952 = vmatprep.subr.bf16.mxu1 %v4283_v1 }
  0xb6   : > { %3833 = vmatpush3.bf16.msra.mxu0 %v4166_v10  ;;  %3760 = vmatprep.mubr.msk.bf16.mxu0 %vm4284_vm0, %v4283_v1 }
  0xb7   : > { %3801 = vmatmul.mubr.msk.bf16.gmra.mrb[76].mxu1 %vm405_vm1, %v4521_v28  ;;  %3834 = vmatprep.subr.bf16.mxu0 %v4283_v1  ;;  %v4170_v28 = vld [vmem:[%s4389_s11 + $0x50] ss:$0 sps:$4 sm:$0x33]  }
  0xb8   : > { %3804 = vmatprep.mubr.msk.bf16.mxu1 %vm4284_vm0, %v4283_v1  ;;  %v1208_v47 = vshrl.u32 %v4170_v28, 16 }
  0xba   : > { %3835 = vmatpush3.bf16.msra.mxu0 %v4168_v21 }
  0xbb   : > { %3912 = vmatprep.subr.bf16.mxu0 %v4283_v1 }
  0xbd   : > { %3761 = vmatmul.mubr.msk.bf16.gmra.mrb[76].mxu0 %vm405_vm1, %v4547_v59  ;;  %v1628_v59 = vld [vmem:[%s4389_s11 + $0x8] sm:$0xe] }
  0xbe   : > { %3764 = vmatprep.mubr.msk.bf16.mxu0 %vm4284_vm0, %v4283_v1 }
  0xbf   : > { %3805 = vmatmul.mubr.msk.bf16.gmra.mrb[80].mxu1 %vm405_vm1, %v4539_v52  ;;  %v1211_v52 = vshll.u32 %v4170_v28, 16 }
  0xc0   : > { %3808 = vmatprep.mubr.msk.bf16.mxu1 %vm4284_vm0, %v4283_v1 }
  0xc5   : > { %3765 = vmatmul.mubr.msk.bf16.gmra.mrb[80].mxu0 %vm405_vm1, %v4551_v0  ;;  %v4827_v0 = vld [vmem:[%s4389_s11 + $0xc] sm:$0xf] }
  0xc6   : > { %3768 = vmatprep.mubr.msk.bf16.mxu0 %vm4284_vm0, %v4283_v1 }
  0xc7   : > { %3809 = vmatmul.mubr.msk.bf16.gmra.mrb[84].mxu1 %vm405_vm1, %v4564_v61  ;;  %v1405_v61 = vrot.slane %v4170_v28, 2  ;;  %v1735_v28 = vrot.slane %v1733_v15, 1 }
  0xc8   : > { %3812 = vmatprep.mubr.msk.bf16.mxu1 %vm4284_vm0, %v4283_v1 }
  0xc9   : > { %v1406_v45 = vsel %vm1387_vm4, %v1403_v8, %v1405_v61 }
  0xcd   : > { %3769 = vmatmul.mubr.msk.bf16.gmra.mrb[84].mxu0 %vm405_vm1, %v4571_v17  ;;  %v1210_v17 = vrot.slane %v1208_v47, 1  ;;  %v1738_v47 = vrot.slane %v1736_v54, 2  ;;  %v1760_v54 = vshrl.u32 %v4937_v35, 16 }
  0xce   : > { %3772 = vmatprep.mubr.msk.bf16.mxu0 %vm4284_vm0, %v4283_v1 }
  0xcf   : > { %3813 = vmatmul.mubr.msk.bf16.gmra.mrb[88].mxu1 %vm405_vm1, %v4584_v23  ;;  %v1213_v23 = vrot.slane %v1211_v52, 2  ;;  %v4900_v52 = vld [vmem:[%s4389_s11 + $0x28] sm:$0xff]  }
  0xd0   : > { %3816 = vmatprep.mubr.msk.bf16.mxu1 %vm4284_vm0, %v4283_v1 }
  0xd1   : > { %v1214_v50 = vor.u32 %v1213_v23, %v1210_v17 }
  0xd3   : > { %v1215_v60 = vsel %vm1126_vm5, %v4663_v43, %v1214_v50  ;;  %v1739_v50 = vor.u32 %v1738_v47, %v1735_v28  ;;  %v1762_v47 = vrot.slane %v1760_v54, 1 }
  0xd5   : > { %3773 = vmatmul.mubr.msk.bf16.gmra.mrb[88].mxu0 %vm405_vm1, %v4591_v31  ;;  %v3326_v31 = vcombine.low %v1628_v59, %v4827_v0 }
  0xd6   : > { %3776 = vmatprep.mubr.msk.bf16.mxu0 %vm4284_vm0, %v4283_v1 }
  0xd7   : > { %3817 = vmatmul.mubr.msk.bf16.gmra.mrb[92].mxu1 %vm405_vm1, %v4604_v37  ;;  %v4833_v37 = vld [vmem:[%s4389_s11 + $0x10] sm:$0xff]   ;;  %v1707_v53 = vshrl.u32 %v3326_v31, 16  ;;  %v1710_v55 = vshll.u32 %v3326_v31, 16  ;;  %v1942_v34 = vrot.slane %v3326_v31, 1  ;;  %v1948_v31 = vsel %vm682_vm3, %v1945_v22, %v1947_v58 }
  0xd8   : > { %3820 = vmatprep.mubr.msk.bf16.mxu1 %vm4284_vm0, %v4283_v1  ;;  %v1718_v46 = vshll.u32 %v4833_v37, 16  ;;  %v1943_v48 = vrot.slane %v4833_v37, 1 }
  0xd9   : > { %v1709_v3 = vrot.slane %v1707_v53, 1  ;;  %v1742_v53 = vshrl.u32 %v4900_v52, 16 }
  0xda   : > { %v1720_v7 = vrot.slane %v1718_v46, 2  ;;  %v1944_v51 = vsel %vm682_vm3, %v1942_v34, %v1943_v48  ;;  %v1946_v44 = vsel %vm682_vm3, %v1943_v48, %v1945_v22  ;;  %v1949_v46 = vrot.slane %v4900_v52, 1 }
  0xdd   : > { %3777 = vmatmul.mubr.msk.bf16.gmra.mrb[92].mxu0 %vm405_vm1, %v4613_v56  ;;  %v1715_v56 = vshrl.u32 %v4833_v37, 16 }
  0xde   : > { %3780 = vmatprep.mubr.msk.bf16.mxu0 %vm4284_vm0, %v4283_v1 }
  0xdf   : > { %3821 = vmatmul.mubr.msk.bf16.gmra.mrb[96].mxu1 %vm405_vm1, %v4628_v6  ;;  %v1712_v6 = vrot.slane %v1710_v55, 2  ;;  %v1717_v11 = vrot.slane %v1715_v56, 1  ;;  %v1745_v55 = vshll.u32 %v4900_v52, 16 }
  0xe0   : > { %3824 = vmatprep.mubr.msk.bf16.mxu1 %vm4284_vm0, %v4283_v1 }
  0xe1   : > { %v1721_v8 = vor.u32 %v1720_v7, %v1717_v11  ;;  %v4919_v11 = vld [vmem:[%s4389_s11 + $0x30] sm:$0xff]  }
  0xe2   : > { %v1751_v18 = vshrl.u32 %v4919_v11, 16  ;;  %v1754_v19 = vshll.u32 %v4919_v11, 16  ;;  %v1951_v22 = vrot.slane %v4919_v11, 1 }
  0xe3   : > { %v1731_v10 = vsel %vm1126_vm5, %v1721_v8, %v1730_v49 }
  0xe4   : > { %v1756_v33 = vrot.slane %v1754_v19, 2 }
  0xe5   : > { %3781 = vmatmul.mubr.msk.bf16.gmra.mrb[96].mxu0 %vm405_vm1, %v4639_v39  ;;  %v1713_v39 = vor.u32 %v1712_v6, %v1709_v3  ;;  %v1744_v3 = vrot.slane %v1742_v53, 1  ;;  %v1747_v6 = vrot.slane %v1745_v55, 2 }
  0xe6   : > { %3784 = vmatprep.mubr.msk.bf16.mxu0 %vm4284_vm0, %v4283_v1 }
  0xe7   : > { %3825 = vmatmul.mubr.msk.bf16.gmra.mrb[100].mxu1 %vm405_vm1, %v4657_v13  ;;  %v4180_v13 = vld [vmem:[%s5637_s1 + $0x98] sm:$0xff]   ;;  %v1722_v43 = vsel %vm1126_vm5, %v1713_v39, %v1721_v8  ;;  %v1748_v8 = vor.u32 %v1747_v6, %v1744_v3  ;;  %v4972_v6 = vld [vmem:[%s4389_s11 + $0x48] sm:$0xff]  }
  0xe8   : > { %3828 = vmatprep.mubr.msk.bf16.mxu1 %vm4284_vm0, %v4283_v1 }
  0xed   : > { %3785 = vmatmul.mubr.msk.bf16.gmra.mrb[100].mxu0 %vm405_vm1, %v4668_v32 }
  0xee   : > { %3788 = vmatprep.mubr.msk.bf16.mxu0 %vm4284_vm0, %v4283_v1 }
  0xef   : > { %3829 = vmatmul.mubr.msk.bf16.gmra.mrb[104].mxu1 %vm405_vm1, %v1406_v45 }
  0xf0   : > { %3876 = vmatprep.mubr.msk.bf16.mxu1 %vm4284_vm0, %v4283_v1 }
  0xf1   : > { %v602_v63 = vpop.f32.mrb[0].mxu1 }
  0xf2   : > { %v3638_v2 = vpop.f32.mrb[1].mxu1 }
  0xf3   : > { %v605_v14 = vpop.f32.mrb[2].mxu1 }
  0xf4   : > { %v3639_v16 = vpop.f32.mrb[3].mxu1 }
  0xf5   : > { %3789 = vmatmul.mubr.msk.bf16.gmra.mrb[104].mxu0 %vm405_vm1, %v1215_v60 }
  0xf6   : > { %3836 = vmatprep.mubr.msk.bf16.mxu0 %vm4284_vm0, %v4283_v1 }
  0xf7   : > { %3877 = vmatmul.mubr.msk.bf16.vlgmr.msra.gmra.mrb[108].mxu1 %vm405_vm1, %v1944_v51 }
  0xf8   : > { %v467_v20 = vpop.f32.mrb[0].mxu0  ;;  %3953 = vmatpush3.bf16.msra.mxu1 %v4174_v4  ;;  %3880 = vmatprep.mubr.msk.bf16.mxu1 %vm4284_vm0, %v4283_v1  ;;  %v1950_v4 = vsel %vm682_vm3, %v1947_v58, %v1949_v46  ;;  %v1953_v58 = vrot.slane %v4937_v35, 1 }
  0xf9   : > { %v4869_v24 = vadd.f32 %v602_v63, %v467_v20  ;;  %v3598_v26 = vpop.f32.mrb[1].mxu0  ;;  %3954 = vmatprep.subr.bf16.mxu1 %v4283_v1  ;;  %v1740_v63 = vsel %vm1126_vm5, %v1730_v49, %v1739_v50 }
  0xfa   : > { %v470_v27 = vpop.f32.mrb[2].mxu0  ;;  %v610_v32 = vpop.f32.mrb[4].mxu1  ;;  %v1954_v53 = vsel %vm682_vm3, %v1951_v22, %v1953_v58 }
  0xfb   : > { %v4879_v36 = vadd.f32 %v605_v14, %v470_v27  ;;  %v3599_v25 = vpop.f32.mrb[3].mxu0  ;;  %v3642_v40 = vpop.f32.mrb[5].mxu1 }
  0xfc   : > { %v613_v38 = vpop.f32.mrb[6].mxu1  ;;  %3955 = vmatpush3.bf16.msra.mxu1 %v4180_v13 }
  0xfd   : > { %3837 = vmatmul.mubr.msk.bf16.vlgmr.msra.gmra.mrb[108].mxu0 %vm405_vm1, %v1722_v43  ;;  %v3643_v57 = vpop.f32.mrb[7].mxu1  ;;  %4032 = vmatprep.subr.bf16.mxu1 %v4283_v1  ;;  %v1749_v43 = vsel %vm1126_vm5, %v1739_v50, %v1748_v8 }
  0xfe   : > { %3913 = vmatpush3.bf16.msra.mxu0 %v4173_v9  ;;  %3840 = vmatprep.mubr.msk.bf16.mxu0 %vm4284_vm0, %v4283_v1  ;;  %v1952_v57 = vsel %vm682_vm3, %v1949_v46, %v1951_v22 }
  0xff   : > { %3881 = vmatmul.mubr.msk.bf16.gmra.mrb[112].mxu1 %vm405_vm1, %v1946_v44  ;;  %3914 = vmatprep.subr.bf16.mxu0 %v4283_v1 }
 0x100   : > { %v475_v41 = vpop.f32.mrb[4].mxu0  ;;  %3884 = vmatprep.mubr.msk.bf16.mxu1 %vm4284_vm0, %v4283_v1 }
 0x101   : > { %v4896_v42 = vadd.f32 %v610_v32, %v475_v41  ;;  %v3602_v62 = vpop.f32.mrb[5].mxu0  ;;  %v1753_v32 = vrot.slane %v1751_v18, 1 }
 0x102   : > { %v478_v5 = vpop.f32.mrb[6].mxu0  ;;  %v618_v21 = vpop.f32.mrb[8].mxu1  ;;  %3915 = vmatpush3.bf16.msra.mxu0 %v4179_v29  ;;  %v1763_v29 = vshll.u32 %v4937_v35, 16 }
 0x103   : > { %v4902_v59 = vadd.f32 %v613_v38, %v478_v5  ;;  %v3603_v61 = vpop.f32.mrb[7].mxu0  ;;  %v3646_v17 = vpop.f32.mrb[9].mxu1  ;;  %3992 = vmatprep.subr.bf16.mxu0 %v4283_v1  ;;  %v1757_v15 = vor.u32 %v1756_v33, %v1753_v32  ;;  %v1957_v33 = vrot.slane %v4972_v6, 1 }
 0x104   : > { %v621_v23 = vpop.f32.mrb[10].mxu1  ;;  %v1765_v61 = vrot.slane %v1763_v29, 2  ;;  %v4955_v17 = vld [vmem:[%s4389_s11 + $0x40] sm:$0xff]   ;;  %v4991_v29 = vld [vmem:[%s4389_s11 + $0x50] ss:$0 sps:$4 sm:$0x33]  }
 0x105   : > { %3841 = vmatmul.mubr.msk.bf16.gmra.mrb[112].mxu0 %vm405_vm1, %v1731_v10  ;;  %v3647_v45 = vpop.f32.mrb[11].mxu1  ;;  %v1769_v46 = vshrl.u32 %v4955_v17, 16 }
 0x106   : > { %3844 = vmatprep.mubr.msk.bf16.mxu0 %vm4284_vm0, %v4283_v1 }
 0x107   : > { %3885 = vmatmul.mubr.msk.bf16.gmra.mrb[116].mxu1 %vm405_vm1, %v1948_v31 }
 0x108   : > { %v483_v56 = vpop.f32.mrb[8].mxu0  ;;  %3888 = vmatprep.mubr.msk.bf16.mxu1 %vm4284_vm0, %v4283_v1 }
 0x109   : > { %v4915_v34 = vadd.f32 %v618_v21, %v483_v56  ;;  %v3606_v48 = vpop.f32.mrb[9].mxu0  ;;  %v1758_v21 = vsel %vm1126_vm5, %v1748_v8, %v1757_v15  ;;  %v1766_v56 = vor.u32 %v1765_v61, %v1762_v47 }
 0x10a   : > { %v486_v60 = vpop.f32.mrb[10].mxu0  ;;  %v626_v2 = vpop.f32.mrb[12].mxu1  ;;  %v1772_v48 = vshll.u32 %v4955_v17, 16 }
 0x10b   : > { %v4921_v7 = vadd.f32 %v621_v23, %v486_v60  ;;  %v3607_v14 = vpop.f32.mrb[11].mxu0  ;;  %v3650_v16 = vpop.f32.mrb[13].mxu1 }
 0x10c   : > { %v629_v51 = vpop.f32.mrb[14].mxu1  ;;  %v1767_v16 = vsel %vm1126_vm5, %v1757_v15, %v1766_v56 }
 0x10d   : > { %3845 = vmatmul.mubr.msk.bf16.gmra.mrb[116].mxu0 %vm405_vm1, %v1740_v63  ;;  %v3651_v39 = vpop.f32.mrb[15].mxu1  ;;  %v1955_v63 = vrot.slane %v4955_v17, 1 }
 0x10e   : > { %3848 = vmatprep.mubr.msk.bf16.mxu0 %vm4284_vm0, %v4283_v1  ;;  %v1774_v39 = vrot.slane %v1772_v48, 2  ;;  %v5009_v48 = vld [vmem:[%s4389_s11 + $0x14] sm:$0xf] }
 0x10f   : > { %3889 = vmatmul.mubr.msk.bf16.gmra.mrb[120].mxu1 %vm405_vm1, %v1950_v4  ;;  %v1771_v4 = vrot.slane %v1769_v46, 1  ;;  %v1956_v22 = vsel %vm682_vm3, %v1953_v58, %v1955_v63  ;;  %v2295_v46 = vld [vmem:[%s4389_s11 + $0x10] sm:$0xc] }
 0x110   : > { %v491_v20 = vpop.f32.mrb[12].mxu0  ;;  %3892 = vmatprep.mubr.msk.bf16.mxu1 %vm4284_vm0, %v4283_v1 }
 0x111   : > { %v4933_v13 = vadd.f32 %v626_v2, %v491_v20  ;;  %v3610_v26 = vpop.f32.mrb[13].mxu0 }
 0x112   : > { %v494_v27 = vpop.f32.mrb[14].mxu0  ;;  %v634_v9 = vpop.f32.mrb[16].mxu1 }
 0x113   : > { %v4939_v25 = vadd.f32 %v629_v51, %v494_v27  ;;  %v3611_v40 = vpop.f32.mrb[15].mxu0  ;;  %v3654_v38 = vpop.f32.mrb[17].mxu1  ;;  %v1778_v27 = vshrl.u32 %v4972_v6, 16 }
 0x114   : > { %v637_v44 = vpop.f32.mrb[18].mxu1 }
 0x115   : > { %3849 = vmatmul.mubr.msk.bf16.gmra.mrb[120].mxu0 %vm405_vm1, %v1749_v43  ;;  %v3655_v49 = vpop.f32.mrb[19].mxu1  ;;  %v1775_v43 = vor.u32 %v1774_v39, %v1771_v4 }
 0x116   : > { %3852 = vmatprep.mubr.msk.bf16.mxu0 %vm4284_vm0, %v4283_v1 }
 0x117   : > { %3893 = vmatmul.mubr.msk.bf16.gmra.mrb[124].mxu1 %vm405_vm1, %v1952_v57  ;;  %v1776_v49 = vsel %vm1126_vm5, %v1766_v56, %v1775_v43 }
 0x118   : > { %v499_v41 = vpop.f32.mrb[16].mxu0  ;;  %3896 = vmatprep.mubr.msk.bf16.mxu1 %vm4284_vm0, %v4283_v1 }
 0x119   : > { %v4951_v62 = vadd.f32 %v634_v9, %v499_v41  ;;  %v3614_v5 = vpop.f32.mrb[17].mxu0  ;;  %v1781_v9 = vshll.u32 %v4972_v6, 16 }
 0x11a   : > { %v502_v10 = vpop.f32.mrb[18].mxu0  ;;  %v642_v28 = vpop.f32.mrb[20].mxu1 }
 0x11b   : > { %v4957_v23 = vadd.f32 %v637_v44, %v502_v10  ;;  %v3615_v31 = vpop.f32.mrb[19].mxu0  ;;  %v3658_v45 = vpop.f32.mrb[21].mxu1  ;;  %v1780_v44 = vrot.slane %v1778_v27, 1  ;;  %v1783_v54 = vrot.slane %v1781_v9, 2 }
 0x11c   : > { %v645_v50 = vpop.f32.mrb[22].mxu1  ;;  %v1787_v31 = vshrl.u32 %v4991_v29, 16  ;;  %v1790_v45 = vshll.u32 %v4991_v29, 16 }
 0x11d   : > { %3853 = vmatmul.mubr.msk.bf16.gmra.mrb[124].mxu0 %vm405_vm1, %v1758_v21  ;;  %v3659_v55 = vpop.f32.mrb[23].mxu1  ;;  %v1958_v21 = vsel %vm682_vm3, %v1955_v63, %v1957_v33  ;;  %v1784_v61 = vor.u32 %v1783_v54, %v1780_v44 }
 0x11e   : > { %3856 = vmatprep.mubr.msk.bf16.mxu0 %vm4284_vm0, %v4283_v1 }
 0x11f   : > { %3897 = vmatmul.mubr.msk.bf16.gmra.mrb[128].mxu1 %vm405_vm1, %v1954_v53  ;;  %v1785_v63 = vsel %vm1126_vm5, %v1775_v43, %v1784_v61  ;;  %v2105_v43 = vld [vmem:[%s4389_s11 + $0x8] sm:$0xc] }
 0x120   : > { %v507_v60 = vpop.f32.mrb[20].mxu0  ;;  %3900 = vmatprep.mubr.msk.bf16.mxu1 %vm4284_vm0, %v4283_v1  ;;  %v3363_v54 = vcombine.low %v2105_v43, %v4827_v0 }
 0x121   : > { %v4969_v2 = vadd.f32 %v642_v28, %v507_v60  ;;  %v3618_v3 = vpop.f32.mrb[21].mxu0  ;;  %v4184_v28 = vld [vmem:[%s4389_s11 + $0x50] ss:$0 sps:$4 sm:$0x11]  }
 0x122   : > { %v510_v14 = vpop.f32.mrb[22].mxu0  ;;  %v650_v51 = vpop.f32.mrb[24].mxu1  ;;  %v1959_v53 = vrot.slane %v4184_v28, 1  ;;  %v2114_v0 = vrot.slane %v3363_v54, 2 }
 0x123   : > { %v4975_v8 = vadd.f32 %v645_v50, %v510_v14  ;;  %v3619_v18 = vpop.f32.mrb[23].mxu0  ;;  %v3662_v19 = vpop.f32.mrb[25].mxu1  ;;  %v1789_v14 = vrot.slane %v1787_v31, 1  ;;  %v5041_v31 = vld [vmem:[%s4389_s11 + $0x20] sm:$0xff]  }
 0x124   : > { %v653_v20 = vpop.f32.mrb[26].mxu1  ;;  %v1960_v19 = vsel %vm682_vm3, %v1957_v33, %v1959_v53  ;;  %v2370_v53 = vrot.slane %v5041_v31, 2 }
 0x125   : > { %3857 = vmatmul.mubr.msk.bf16.gmra.mrb[128].mxu0 %vm405_vm1, %v1767_v16  ;;  %v3663_v26 = vpop.f32.mrb[27].mxu1  ;;  %v1792_v16 = vrot.slane %v1790_v45, 2 }
 0x126   : > { %3860 = vmatprep.mubr.msk.bf16.mxu0 %vm4284_vm0, %v4283_v1 }
 0x127   : > { %3901 = vmatmul.mubr.msk.bf16.gmra.mrb[132].mxu1 %vm405_vm1, %v1956_v22  ;;  %v5019_v22 = vld [vmem:[%s4389_s11 + $0x18] sm:$0xff]   ;;  %v1793_v27 = vor.u32 %v1792_v16, %v1789_v14 }
 0x128   : > { %v515_v32 = vpop.f32.mrb[24].mxu0  ;;  %3904 = vmatprep.mubr.msk.bf16.mxu1 %vm4284_vm0, %v4283_v1  ;;  %v2368_v33 = vrot.slane %v5019_v22, 2 }
 0x129   : > { %v4987_v40 = vadd.f32 %v650_v51, %v515_v32  ;;  %v3622_v38 = vpop.f32.mrb[25].mxu0 }
 0x12a   : > { %v518_v57 = vpop.f32.mrb[26].mxu0  ;;  %v658_v15 = vpop.f32.mrb[28].mxu1 }
 0x12b   : > { %v4993_v41 = vadd.f32 %v653_v20, %v518_v57  ;;  %v3623_v58 = vpop.f32.mrb[27].mxu0  ;;  %v3666_v5 = vpop.f32.mrb[29].mxu1  ;;  %v5016_v20 = vcombine.low %v2295_v46, %v5009_v48 }
 0x12c   : > { %v661_v10 = vpop.f32.mrb[30].mxu1 }
 0x12d   : > { %3861 = vmatmul.mubr.msk.bf16.gmra.mrb[132].mxu0 %vm405_vm1, %v1776_v49  ;;  %v3667_v47 = vpop.f32.mrb[31].mxu1  ;;  %v2367_v32 = vrot.slane %v5016_v20, 2  ;;  %v1794_v49 = vsel %vm1126_vm5, %v1784_v61, %v1793_v27  ;;  %v2115_v61 = vrot.slane %v4833_v37, 2 }
 0x12e   : > { %3864 = vmatprep.mubr.msk.bf16.mxu0 %vm4284_vm0, %v4283_v1  ;;  %v4190_v47 = vld [vmem:[%s5637_s1 + $0xb0] sm:$0xff]  }
 0x12f   : > { %3905 = vmatmul.mubr.msk.bf16.gmra.mrb[136].mxu1 %vm405_vm1, %v1958_v21  ;;  %v2369_v28 = vsel %vm1387_vm4, %v2367_v32, %v2368_v33 }
 0x130   : > { %v523_v50 = vpop.f32.mrb[28].mxu0  ;;  %3908 = vmatprep.mubr.msk.bf16.mxu1 %vm4284_vm0, %v4283_v1 }
 0x131   : > { %v5005_v55 = vadd.f32 %v658_v15, %v523_v50  ;;  %v3626_v56 = vpop.f32.mrb[29].mxu0 }
 0x132   : > { %v526_v60 = vpop.f32.mrb[30].mxu0  ;;  %v666_v3 = vpop.f32.mrb[32].mxu1  ;;  %v4196_v56 = vld [vmem:[%s5637_s1 + $0xb8] sm:$0xff]  }
 0x133   : > { %v5012_v51 = vadd.f32 %v661_v10, %v526_v60  ;;  %v3627_v4 = vpop.f32.mrb[31].mxu0  ;;  %v3670_v39 = vpop.f32.mrb[33].mxu1 }
 0x134   : > { %v669_v18 = vpop.f32.mrb[34].mxu1 }
 0x135   : > { %3865 = vmatmul.mubr.msk.bf16.gmra.mrb[136].mxu0 %vm405_vm1, %v1785_v63  ;;  %v3671_v26 = vpop.f32.mrb[35].mxu1  ;;  %v2116_v63 = vsel %vm1387_vm4, %v2114_v0, %v2115_v61 }
 0x136   : > { %3868 = vmatprep.mubr.msk.bf16.mxu0 %vm4284_vm0, %v4283_v1  ;;  %v5065_v26 = vld [vmem:[%s4389_s11 + $0x28] sm:$0xff]  }
 0x137   : > { %3909 = vmatmul.mubr.msk.bf16.gmra.mrb[140].mxu1 %vm405_vm1, %v1960_v19 }
 0x138   : > { %v531_v9 = vpop.f32.mrb[32].mxu0  ;;  %3956 = vmatprep.mubr.msk.bf16.mxu1 %vm4284_vm0, %v4283_v1 }
 0x139   : > { %v5030_v38 = vadd.f32 %v666_v3, %v531_v9  ;;  %v3630_v44 = vpop.f32.mrb[33].mxu0  ;;  %v4189_v3 = vld [vmem:[%s5637_s1 + $0xa0] sm:$0xff]   ;;  %v4195_v9 = vld [vmem:[%s5637_s1 + $0xa8] sm:$0xff]  }
 0x13a   : > { %v534_v57 = vpop.f32.mrb[34].mxu0  ;;  %v1028_v15 = vpop.f32.mrb[36].mxu1 }
 0x13b   : > { %v5034_v58 = vadd.f32 %v669_v18, %v534_v57  ;;  %v3631_v5 = vpop.f32.mrb[35].mxu0  ;;  %v3718_v10 = vpop.f32.mrb[37].mxu1 }
 0x13c   : > { %v1031_v21 = vpop.f32.mrb[38].mxu1 }
 0x13d   : > { %3869 = vmatmul.mubr.msk.bf16.gmra.mrb[140].mxu0 %vm405_vm1, %v1794_v49  ;;  %v3719_v45 = vpop.f32.mrb[39].mxu1 }
 0x13e   : > { %3916 = vmatprep.mubr.msk.bf16.mxu0 %vm4284_vm0, %v4283_v1  ;;  %v5088_v45 = vld [vmem:[%s4389_s11 + $0x30] sm:$0xff]  }
 0x13f   : > { %3957 = vmatmul.mubr.msk.bf16.vlgmr.msra.gmra.mrb[144].mxu1 %vm405_vm1, %v2369_v28 }
 0x140   : > { %v775_v50 = vpop.f32.mrb[36].mxu0  ;;  %4033 = vmatpush3.bf16.msra.mxu1 %v4190_v47  ;;  %3960 = vmatprep.mubr.msk.bf16.mxu1 %vm4284_vm0, %v4283_v1 }
 0x141   : > { %v846_v46 = vadd.f32 %v775_v50, %v4869_v24  ;;  %v3678_v60 = vpop.f32.mrb[37].mxu0  ;;  %4034 = vmatprep.subr.bf16.mxu1 %v4283_v1  ;;  %v2371_v24 = vsel %vm1387_vm4, %v2368_v33, %v2370_v53  ;;  %v2372_v33 = vrot.slane %v5065_v26, 2  ;;  %v2374_v50 = vrot.slane %v5088_v45, 2 }
 0x142   : > { %v778_v37 = vpop.f32.mrb[38].mxu0  ;;  %v1036_v14 = vpop.f32.mrb[40].mxu1 }
 0x143   : > { %v847_v16 = vadd.f32 %v778_v37, %v4879_v36  ;;  %v3679_v4 = vpop.f32.mrb[39].mxu0  ;;  %v3722_v39 = vpop.f32.mrb[41].mxu1  ;;  %v5061_v18 = vadd.f32 %v1028_v15, %v846_v46  ;;  %v2117_v36 = vrot.slane %v4851_v12, 2  ;;  %v2373_v47 = vsel %vm1387_vm4, %v2370_v53, %v2372_v33 }
 0x144   : > { %v1039_v19 = vpop.f32.mrb[42].mxu1  ;;  %4035 = vmatpush3.bf16.msra.mxu1 %v4196_v56  ;;  %v2375_v4 = vsel %vm1387_vm4, %v2372_v33, %v2374_v50  ;;  %v5107_v39 = vld [vmem:[%s4389_s11 + $0x38] sm:$0xff]  }
 0x145   : > { %3917 = vmatmul.mubr.msk.bf16.vlgmr.msra.gmra.mrb[144].mxu0 %vm405_vm1, %v2116_v63  ;;  %v3723_v27 = vpop.f32.mrb[43].mxu1  ;;  %v5068_v43 = vadd.f32 %v1031_v21, %v847_v16  ;;  %v2118_v12 = vsel %vm1387_vm4, %v2115_v61, %v2117_v36  ;;  %v2119_v61 = vrot.slane %v4877_v30, 2 }
 0x146   : > { %3993 = vmatpush3.bf16.msra.mxu0 %v4189_v3  ;;  %3920 = vmatprep.mubr.msk.bf16.mxu0 %vm4284_vm0, %v4283_v1  ;;  %v2376_v27 = vrot.slane %v5107_v39, 2 }
 0x147   : > { %3961 = vmatmul.mubr.msk.bf16.gmra.mrb[148].mxu1 %vm405_vm1, %v2371_v24  ;;  %3994 = vmatprep.subr.bf16.mxu0 %v4283_v1  ;;  %v2120_v60 = vsel %vm1387_vm4, %v2117_v36, %v2119_v61  ;;  %v2121_v24 = vrot.slane %v4900_v52, 2 }
 0x148   : > { %v783_v32 = vpop.f32.mrb[40].mxu0  ;;  %3964 = vmatprep.mubr.msk.bf16.mxu1 %vm4284_vm0, %v4283_v1 }
 0x149   : > { %v848_v44 = vadd.f32 %v783_v32, %v4896_v42  ;;  %v3682_v57 = vpop.f32.mrb[41].mxu0  ;;  %v2122_v33 = vsel %vm1387_vm4, %v2119_v61, %v2121_v24 }
 0x14a   : > { %v786_v49 = vpop.f32.mrb[42].mxu0  ;;  %v1044_v15 = vpop.f32.mrb[44].mxu1  ;;  %3995 = vmatpush3.bf16.msra.mxu0 %v4195_v9 }
 0x14b   : > { %v849_v54 = vadd.f32 %v786_v49, %v4902_v59  ;;  %v3683_v5 = vpop.f32.mrb[43].mxu0  ;;  %v3726_v10 = vpop.f32.mrb[45].mxu1  ;;  %v5084_v21 = vadd.f32 %v1036_v14, %v848_v44 }
 0x14c   : > { %v1047_v28 = vpop.f32.mrb[46].mxu1  ;;  %v5126_v5 = vld [vmem:[%s4389_s11 + $0x40] sm:$0xff]  }
 0x14d   : > { %3921 = vmatmul.mubr.msk.bf16.gmra.mrb[148].mxu0 %vm405_vm1, %v2118_v12  ;;  %v3727_v42 = vpop.f32.mrb[47].mxu1  ;;  %v5091_v0 = vadd.f32 %v1039_v19, %v849_v54  ;;  %v2377_v54 = vsel %vm1387_vm4, %v2374_v50, %v2376_v27 }
 0x14e   : > { %3924 = vmatprep.mubr.msk.bf16.mxu0 %vm4284_vm0, %v4283_v1 }
 0x14f   : > { %3965 = vmatmul.mubr.msk.bf16.gmra.mrb[152].mxu1 %vm405_vm1, %v2373_v47  ;;  %v2378_v47 = vrot.slane %v5126_v5, 2 }
 0x150   : > { %v791_v59 = vpop.f32.mrb[44].mxu0  ;;  %3968 = vmatprep.mubr.msk.bf16.mxu1 %vm4284_vm0, %v4283_v1 }
 0x151   : > { %v850_v53 = vadd.f32 %v791_v59, %v4915_v34  ;;  %v3686_v56 = vpop.f32.mrb[45].mxu0 }
 0x152   : > { %v794_v46 = vpop.f32.mrb[46].mxu0  ;;  %v1052_v37 = vpop.f32.mrb[48].mxu1 }
 0x153   : > { %v851_v63 = vadd.f32 %v794_v46, %v4921_v7  ;;  %v3687_v3 = vpop.f32.mrb[47].mxu0  ;;  %v3730_v30 = vpop.f32.mrb[49].mxu1  ;;  %v5103_v14 = vadd.f32 %v1044_v15, %v850_v53 }
 0x154   : > { %v1055_v16 = vpop.f32.mrb[50].mxu1  ;;  %v5145_v3 = vld [vmem:[%s4389_s11 + $0x48] sm:$0xff]  }
 0x155   : > { %3925 = vmatmul.mubr.msk.bf16.gmra.mrb[152].mxu0 %vm405_vm1, %v2120_v60  ;;  %v3731_v19 = vpop.f32.mrb[51].mxu1  ;;  %v5110_v34 = vadd.f32 %v1047_v28, %v851_v63  ;;  %v2123_v28 = vrot.slane %v4919_v11, 2  ;;  %v2379_v63 = vsel %vm1387_vm4, %v2376_v27, %v2378_v47 }
 0x156   : > { %3928 = vmatprep.mubr.msk.bf16.mxu0 %vm4284_vm0, %v4283_v1 }
 0x157   : > { %3969 = vmatmul.mubr.msk.bf16.gmra.mrb[156].mxu1 %vm405_vm1, %v2375_v4  ;;  %v2124_v50 = vsel %vm1387_vm4, %v2121_v24, %v2123_v28  ;;  %v2380_v4 = vrot.slane %v5145_v3, 2 }
 0x158   : > { %v799_v7 = vpop.f32.mrb[48].mxu0  ;;  %3972 = vmatprep.mubr.msk.bf16.mxu1 %vm4284_vm0, %v4283_v1 }
 0x159   : > { %v852_v36 = vadd.f32 %v799_v7, %v4933_v13  ;;  %v3690_v9 = vpop.f32.mrb[49].mxu0 }
 0x15a   : > { %v802_v32 = vpop.f32.mrb[50].mxu0  ;;  %v1060_v44 = vpop.f32.mrb[52].mxu1 }
 0x15b   : > { %v853_v57 = vadd.f32 %v802_v32, %v4939_v25  ;;  %v3691_v49 = vpop.f32.mrb[51].mxu0  ;;  %v3734_v52 = vpop.f32.mrb[53].mxu1  ;;  %v5122_v12 = vadd.f32 %v1052_v37, %v852_v36 }
 0x15c   : > { %v1063_v15 = vpop.f32.mrb[54].mxu1  ;;  %v5164_v49 = vld [vmem:[%s4389_s11 + $0x50] sm:$0xff]  }
 0x15d   : > { %3929 = vmatmul.mubr.msk.bf16.gmra.mrb[156].mxu0 %vm405_vm1, %v2122_v33  ;;  %v3735_v10 = vpop.f32.mrb[55].mxu1  ;;  %v5129_v13 = vadd.f32 %v1055_v16, %v853_v57  ;;  %v2125_v16 = vrot.slane %v4937_v35, 2  ;;  %v2381_v57 = vsel %vm1387_vm4, %v2378_v47, %v2380_v4 }
 0x15e   : > { %3932 = vmatprep.mubr.msk.bf16.mxu0 %vm4284_vm0, %v4283_v1 }
 0x15f   : > { %3973 = vmatmul.mubr.msk.bf16.gmra.mrb[160].mxu1 %vm405_vm1, %v2377_v54  ;;  %v2126_v27 = vsel %vm1387_vm4, %v2123_v28, %v2125_v16  ;;  %v2382_v54 = vrot.slane %v5164_v49, 2 }
 0x160   : > { %v807_v25 = vpop.f32.mrb[52].mxu0  ;;  %3976 = vmatprep.mubr.msk.bf16.mxu1 %vm4284_vm0, %v4283_v1 }
 0x161   : > { %v854_v42 = vadd.f32 %v807_v25, %v4951_v62  ;;  %v3694_v61 = vpop.f32.mrb[53].mxu0 }
 0x162   : > { %v810_v59 = vpop.f32.mrb[54].mxu0  ;;  %v1068_v53 = vpop.f32.mrb[56].mxu1 }
 0x163   : > { %v855_v56 = vadd.f32 %v810_v59, %v4957_v23  ;;  %v3695_v46 = vpop.f32.mrb[55].mxu0  ;;  %v3738_v11 = vpop.f32.mrb[57].mxu1  ;;  %v5141_v60 = vadd.f32 %v1060_v44, %v854_v42 }
 0x164   : > { %v1071_v37 = vpop.f32.mrb[58].mxu1  ;;  %v4200_v46 = vld [vmem:[%s4389_s11 + $0x58] ss:$0 sps:$4 sm:$0x33]  }
 0x165   : > { %3933 = vmatmul.mubr.msk.bf16.gmra.mrb[160].mxu0 %vm405_vm1, %v2124_v50  ;;  %v3739_v30 = vpop.f32.mrb[59].mxu1  ;;  %v5148_v62 = vadd.f32 %v1063_v15, %v855_v56  ;;  %v2127_v15 = vrot.slane %v4955_v17, 2  ;;  %v2383_v56 = vsel %vm1387_vm4, %v2380_v4, %v2382_v54 }
 0x166   : > { %3936 = vmatprep.mubr.msk.bf16.mxu0 %vm4284_vm0, %v4283_v1 }
 0x167   : > { %3977 = vmatmul.mubr.msk.bf16.gmra.mrb[164].mxu1 %vm405_vm1, %v2379_v63  ;;  %v2128_v47 = vsel %vm1387_vm4, %v2125_v16, %v2127_v15  ;;  %v2384_v63 = vrot.slane %v4200_v46, 2 }
 0x168   : > { %v815_v23 = vpop.f32.mrb[56].mxu0  ;;  %3980 = vmatprep.mubr.msk.bf16.mxu1 %vm4284_vm0, %v4283_v1 }
 0x169   : > { %v856_v19 = vadd.f32 %v815_v23, %v4969_v2  ;;  %v3698_v24 = vpop.f32.mrb[57].mxu0  ;;  %v2809_v23 = vld [vmem:[%s4389_s11 + $0x10] sm:$0x8] }
 0x16a   : > { %v818_v7 = vpop.f32.mrb[58].mxu0  ;;  %v1076_v36 = vpop.f32.mrb[60].mxu1 }
 0x16b   : > { %v857_v9 = vadd.f32 %v818_v7, %v4975_v8  ;;  %v3699_v32 = vpop.f32.mrb[59].mxu0  ;;  %v3742_v35 = vpop.f32.mrb[61].mxu1  ;;  %v5160_v33 = vadd.f32 %v1068_v53, %v856_v19 }
 0x16c   : > { %v1079_v44 = vpop.f32.mrb[62].mxu1  ;;  %v2385_v32 = vsel %vm1387_vm4, %v2382_v54, %v2384_v63  ;;  %v3420_v35 = vcombine.low %v2809_v23, %v5009_v48  ;;  %v2820_v54 = vrot.slane %v5019_v22, 3 }
 0x16d   : > { %3937 = vmatmul.mubr.msk.bf16.gmra.mrb[164].mxu0 %vm405_vm1, %v2126_v27  ;;  %v3743_v52 = vpop.f32.mrb[63].mxu1  ;;  %v5167_v2 = vadd.f32 %v1071_v37, %v857_v9  ;;  %v2129_v37 = vrot.slane %v4972_v6, 2 }
 0x16e   : > { %3940 = vmatprep.mubr.msk.bf16.mxu0 %vm4284_vm0, %v4283_v1  ;;  %v2562_v52 = vshll.u32 %v5016_v20, 16 }
 0x16f   : > { %3981 = vmatmul.mubr.msk.bf16.gmra.mrb[168].mxu1 %vm405_vm1, %v2381_v57  ;;  %v2130_v19 = vsel %vm1387_vm4, %v2127_v15, %v2129_v37  ;;  %v2567_v15 = vshrl.u32 %v5019_v22, 16 }
 0x170   : > { %v823_v8 = vpop.f32.mrb[60].mxu0  ;;  %3984 = vmatprep.mubr.msk.bf16.mxu1 %vm4284_vm0, %v4283_v1 }
 0x171   : > { %v858_v10 = vadd.f32 %v823_v8, %v4987_v40  ;;  %v3702_v28 = vpop.f32.mrb[61].mxu0  ;;  %v2570_v8 = vshll.u32 %v5019_v22, 16 }
 0x172   : > { %v826_v25 = vpop.f32.mrb[62].mxu0  ;;  %v1084_v42 = vpop.f32.mrb[64].mxu1 }
 0x173   : > { %v859_v61 = vadd.f32 %v826_v25, %v4993_v41  ;;  %v3703_v59 = vpop.f32.mrb[63].mxu0  ;;  %v3746_v17 = vpop.f32.mrb[65].mxu1  ;;  %v5179_v50 = vadd.f32 %v1076_v36, %v858_v10 }
 0x174   : > { %v1087_v53 = vpop.f32.mrb[66].mxu1  ;;  %v2569_v59 = vrot.slane %v2567_v15, 2  ;;  %v2572_v17 = vrot.slane %v2570_v8, 3 }
 0x175   : > { %3941 = vmatmul.mubr.msk.bf16.gmra.mrb[168].mxu0 %vm405_vm1, %v2128_v47  ;;  %v3747_v11 = vpop.f32.mrb[67].mxu1  ;;  %v5184_v40 = vadd.f32 %v1079_v44, %v859_v61  ;;  %v2131_v44 = vrot.slane %v4991_v29, 2  ;;  %v2819_v29 = vrot.slane %v3420_v35, 3  ;;  %v2564_v61 = vrot.slane %v2562_v52, 3 }
 0x176   : > { %3944 = vmatprep.mubr.msk.bf16.mxu0 %vm4284_vm0, %v4283_v1 }
 0x177   : > { %3985 = vmatmul.mubr.msk.bf16.gmra.mrb[172].mxu1 %vm405_vm1, %v2383_v56  ;;  %v2132_v25 = vsel %vm1387_vm4, %v2129_v37, %v2131_v44 }
 0x178   : > { %v831_v41 = vpop.f32.mrb[64].mxu0  ;;  %3988 = vmatprep.mubr.msk.bf16.mxu1 %vm4284_vm0, %v4283_v1 }
 0x179   : > { %v860_v30 = vadd.f32 %v831_v41, %v5005_v55  ;;  %v3706_v16 = vpop.f32.mrb[65].mxu0 }
 0x17a   : > { %v834_v4 = vpop.f32.mrb[66].mxu0  ;;  %v1092_v24 = vpop.f32.mrb[68].mxu1  ;;  %v2579_v16 = vshll.u32 %v5041_v31, 16 }
 0x17b   : > { %v861_v7 = vadd.f32 %v834_v4, %v5012_v51  ;;  %v3707_v27 = vpop.f32.mrb[67].mxu0  ;;  %v3750_v36 = vpop.f32.mrb[69].mxu1  ;;  %v5196_v6 = vadd.f32 %v1084_v42, %v860_v30  ;;  %v2559_v51 = vshrl.u32 %v5016_v20, 16  ;;  %v2573_v30 = vor.u32 %v2572_v17, %v2569_v59 }
 0x17c   : > { %v1095_v9 = vpop.f32.mrb[70].mxu1  ;;  %v2822_v4 = vrot.slane %v5041_v31, 3  ;;  %v2581_v35 = vrot.slane %v2579_v16, 3  ;;  %v2594_v16 = vshrl.u32 %v5088_v45, 16 }
 0x17d   : > { %3945 = vmatmul.mubr.msk.bf16.gmra.mrb[172].mxu0 %vm405_vm1, %v2130_v19  ;;  %v3751_v55 = vpop.f32.mrb[71].mxu1  ;;  %v5202_v57 = vadd.f32 %v1087_v53, %v861_v7  ;;  %v2561_v42 = vrot.slane %v2559_v51, 2  ;;  %v5238_v7 = vld [vmem:[%s5638_s2] ss:$0 sm:$0xff] }
 0x17e   : > { %3948 = vmatprep.mubr.msk.bf16.mxu0 %vm4284_vm0, %v4283_v1 }
 0x17f   : > { %3989 = vmatmul.mubr.msk.bf16.gmra.mrb[176].mxu1 %vm405_vm1, %v2385_v32  ;;  %v2565_v63 = vor.u32 %v2564_v61, %v2561_v42 }
 0x180   : > { %v839_v48 = vpop.f32.mrb[68].mxu0  ;;  %4036 = vmatprep.mubr.msk.bf16.mxu1 %vm4284_vm0, %v4283_v1 }
 0x181   : > { %v862_v10 = vadd.f32 %v839_v48, %v5030_v38  ;;  %v3710_v28 = vpop.f32.mrb[69].mxu0  ;;  %v2821_v38 = vsel %vm2818_vm6, %v2819_v29, %v2820_v54  ;;  %v2574_v36 = vsel %vm2557_vm7, %v2565_v63, %v2573_v30 }
 0x182   : > { %v842_v20 = vpop.f32.mrb[70].mxu0  ;;  %v1480_v47 = vpop.f32.mrb[72].mxu1  ;;  %v2588_v28 = vshll.u32 %v5065_v26, 16 }
 0x183   : > { %v863_v53 = vadd.f32 %v842_v20, %v5034_v58  ;;  %v3711_v56 = vpop.f32.mrb[71].mxu0  ;;  %v3798_v46 = vpop.f32.mrb[73].mxu1  ;;  %v5217_v11 = vadd.f32 %v1092_v24, %v862_v10  ;;  %v2576_v58 = vshrl.u32 %v5041_v31, 16  ;;  %v2585_v10 = vshrl.u32 %v5065_v26, 16 }
 0x184   : > { %v1483_v22 = vpop.f32.mrb[74].mxu1 }
 0x185   : > { %3949 = vmatmul.mubr.msk.bf16.gmra.mrb[176].mxu0 %vm405_vm1, %v2132_v25  ;;  %v3799_v37 = vpop.f32.mrb[75].mxu1  ;;  %v5221_v41 = vadd.f32 %v1095_v9, %v863_v53  ;;  %v2578_v32 = vrot.slane %v2576_v58, 2  ;;  %v2824_v25 = vrot.slane %v5065_v26, 3  ;;  %v2587_v17 = vrot.slane %v2585_v10, 2 }
 0x186   : > { %3996 = vmatprep.mubr.msk.bf16.mxu0 %vm4284_vm0, %v4283_v1  ;;  %v2590_v53 = vrot.slane %v2588_v28, 3 }
 0x187   : > { %4037 = vmatmul.mubr.msk.bf16.vlgmr.msra.gmra.mrb[180].mxu1 %vm405_vm1, %v2821_v38  ;;  %v2582_v29 = vor.u32 %v2581_v35, %v2578_v32  ;;  %v2825_v26 = vsel %vm2818_vm6, %v2822_v4, %v2824_v25  ;;  %v2596_v35 = vrot.slane %v2594_v16, 2 }
 0x188   : > { %v1289_v23 = vpop.f32.mrb[72].mxu0  ;;  %4040 = vmatprep.mubr.msk.bf16.mxu1 %vm4284_vm0, %v4283_v1  ;;  %v2591_v58 = vor.u32 %v2590_v53, %v2587_v17 }
 0x189   : > { %v1360_v19 = vadd.f32 %v1289_v23, %v5061_v18  ;;  %v3758_v24 = vpop.f32.mrb[73].mxu0  ;;  %v2823_v18 = vsel %vm2818_vm6, %v2820_v54, %v2822_v4  ;;  %v2583_v61 = vsel %vm2557_vm7, %v2573_v30, %v2582_v29 }
 0x18a   : > { %v1292_v27 = vpop.f32.mrb[74].mxu0  ;;  %v1488_v9 = vpop.f32.mrb[76].mxu1 }
 0x18b   : > { %v1551_v55 = vadd.f32 %v1480_v47, %v1360_v19  ;;  %v1361_v44 = vadd.f32 %v1292_v27, %v5068_v43  ;;  %v3759_v31 = vpop.f32.mrb[75].mxu0  ;;  %v3802_v51 = vpop.f32.mrb[77].mxu1  ;;  %v2826_v19 = vrot.slane %v5088_v45, 3 }
 0x18c   : > { %v1491_v52 = vpop.f32.mrb[78].mxu1 }
 0x18d   : > { %v1575_v15 = vadd.f32 %v5238_v7, %v1551_v55  ;;  %v1552_v8 = vadd.f32 %v1483_v22, %v1361_v44  ;;  %3997 = vmatmul.mubr.msk.bf16.vlgmr.msra.gmra.mrb[180].mxu0 %vm405_vm1, %v2574_v36  ;;  %v3803_v48 = vpop.f32.mrb[79].mxu1 }
 0x18e   : > { %4000 = vmatprep.mubr.msk.bf16.mxu0 %vm4284_vm0, %v4283_v1 }
 0x18f   : > { %1593 = vst.msk [vmem:[%s5249_s7] sm:$0xff] %vm405_vm1, %v1575_v15  ;;  %v1576_v43 = vadd.f32 %v5238_v7, %v1552_v8  ;;  %4041 = vmatmul.mubr.msk.bf16.gmra.mrb[184].mxu1 %vm405_vm1, %v2823_v18  ;;  %v2827_v18 = vsel %vm2818_vm6, %v2824_v25, %v2826_v19 }
 0x190   : > { %v1297_v54 = vpop.f32.mrb[76].mxu0  ;;  %4044 = vmatprep.mubr.msk.bf16.mxu1 %vm4284_vm0, %v4283_v1 }
 0x191   : > { %1594 = vst.msk [vmem:[%s5249_s7 + $0x8] sm:$0xff] %vm405_vm1, %v1576_v43  ;;  %v1362_v20 = vadd.f32 %v1297_v54, %v5084_v21  ;;  %v3762_v47 = vpop.f32.mrb[77].mxu0  ;;  %v2828_v43 = vrot.slane %v5107_v39, 3 }
 0x192   : > { %v1300_v42 = vpop.f32.mrb[78].mxu0  ;;  %v1496_v59 = vpop.f32.mrb[80].mxu1 }
 0x193   : > { %v1553_v56 = vadd.f32 %v1488_v9, %v1362_v20  ;;  %v1363_v46 = vadd.f32 %v1300_v42, %v5091_v0  ;;  %v3763_v22 = vpop.f32.mrb[79].mxu0  ;;  %v3806_v38 = vpop.f32.mrb[81].mxu1  ;;  %v2597_v0 = vshll.u32 %v5088_v45, 16  ;;  %v2592_v9 = vsel %vm2557_vm7, %v2582_v29, %v2591_v58 }
 0x194   : > { %v1499_v37 = vpop.f32.mrb[82].mxu1  ;;  %v2606_v29 = vshll.u32 %v5107_v39, 16  ;;  %v2829_v22 = vsel %vm2818_vm6, %v2826_v19, %v2828_v43 }
 0x195   : > { %v1577_v21 = vadd.f32 %v5238_v7, %v1553_v56  ;;  %v1554_v63 = vadd.f32 %v1491_v52, %v1363_v46  ;;  %4001 = vmatmul.mubr.msk.bf16.gmra.mrb[184].mxu0 %vm405_vm1, %v2583_v61  ;;  %v3807_v30 = vpop.f32.mrb[83].mxu1  ;;  %v2599_v55 = vrot.slane %v2597_v0, 3 }
 0x196   : > { %4004 = vmatprep.mubr.msk.bf16.mxu0 %vm4284_vm0, %v4283_v1 }
 0x197   : > { %3298 = vst.msk [vmem:[%s5249_s7 + $0x1e] sm:$0xfc] %vm1596_vm8, %v1577_v21  ;;  %v1578_v23 = vadd.f32 %v5238_v7, %v1554_v63  ;;  %4045 = vmatmul.mubr.msk.bf16.gmra.mrb[188].mxu1 %vm405_vm1, %v2825_v26  ;;  %v2600_v48 = vor.u32 %v2599_v55, %v2596_v35  ;;  %v2615_v21 = vshll.u32 %v5126_v5, 16 }
 0x198   : > { %v1305_v4 = vpop.f32.mrb[80].mxu0  ;;  %4048 = vmatprep.mubr.msk.bf16.mxu1 %vm4284_vm0, %v4283_v1 }
 0x199   : > { %3299 = vst.msk [vmem:[%s5249_s7 + $0x26] sm:$0xff] %vm405_vm1, %v1578_v23  ;;  %v1364_v24 = vadd.f32 %v1305_v4, %v5103_v14  ;;  %v3766_v27 = vpop.f32.mrb[81].mxu0  ;;  %v2601_v47 = vsel %vm2557_vm7, %v2591_v58, %v2600_v48  ;;  %v2830_v58 = vrot.slane %v5126_v5, 3 }
 0x19a   : > { %v1308_v36 = vpop.f32.mrb[82].mxu0  ;;  %v1504_v32 = vpop.f32.mrb[84].mxu1  ;;  %v2617_v27 = vrot.slane %v2615_v21, 3  ;;  %v4201_v21 = vld [vmem:[%s4389_s11 + $0x58] ss:$0 sps:$4 sm:$0x77]  }
 0x19b   : > { %v1555_v44 = vadd.f32 %v1496_v59, %v1364_v24  ;;  %v1365_v31 = vadd.f32 %v1308_v36, %v5110_v34  ;;  %v3767_v51 = vpop.f32.mrb[83].mxu0  ;;  %v3810_v52 = vpop.f32.mrb[85].mxu1  ;;  %v2603_v34 = vshrl.u32 %v5107_v39, 16  ;;  %v2608_v59 = vrot.slane %v2606_v29, 3 }
 0x19c   : > { %v1507_v45 = vpop.f32.mrb[86].mxu1  ;;  %v2621_v52 = vshrl.u32 %v5145_v3, 16 }
 0x19d   : > { %v1579_v14 = vadd.f32 %v5238_v7, %v1555_v44  ;;  %v1556_v15 = vadd.f32 %v1499_v37, %v1365_v31  ;;  %4005 = vmatmul.mubr.msk.bf16.gmra.mrb[188].mxu0 %vm405_vm1, %v2592_v9  ;;  %v3811_v8 = vpop.f32.mrb[87].mxu1  ;;  %v2605_v61 = vrot.slane %v2603_v34, 2 }
 0x19e   : > { %4008 = vmatprep.mubr.msk.bf16.mxu0 %vm4284_vm0, %v4283_v1 }
 0x19f   : > { %3300 = vst.msk [vmem:[%s5249_s7 + $0x2e] sm:$0x3] %vm1599_vm9, %v1579_v14  ;;  %v1580_v10 = vadd.f32 %v5238_v7, %v1556_v15  ;;  %4049 = vmatmul.mubr.msk.bf16.gmra.mrb[192].mxu1 %vm405_vm1, %v2827_v18  ;;  %v2609_v26 = vor.u32 %v2608_v59, %v2605_v61  ;;  %v2630_v59 = vshrl.u32 %v5164_v49, 16 }
 0x1a0   : > { %3301 = vst.msk [vmem:[%s5249_s7 + $0x3c] sm:$0xf0] %vm1602_vm10, %v1579_v14  ;;  %v1313_v28 = vpop.f32.mrb[84].mxu0  ;;  %4052 = vmatprep.mubr.msk.bf16.mxu1 %vm4284_vm0, %v4283_v1  ;;  %v2832_v14 = vrot.slane %v5145_v3, 3 }
 0x1a1   : > { %3302 = vst.msk [vmem:[%s5249_s7 + $0x44] sm:$0xff] %vm405_vm1, %v1580_v10  ;;  %v1366_v54 = vadd.f32 %v1313_v28, %v5122_v12  ;;  %v3770_v25 = vpop.f32.mrb[85].mxu0  ;;  %v2610_v4 = vsel %vm2557_vm7, %v2600_v48, %v2609_v26  ;;  %v2623_v10 = vrot.slane %v2621_v52, 2 }
 0x1a2   : > { %v1316_v20 = vpop.f32.mrb[86].mxu0  ;;  %v1512_v42 = vpop.f32.mrb[88].mxu1 }
 0x1a3   : > { %v1557_v17 = vadd.f32 %v1504_v32, %v1366_v54  ;;  %v1367_v53 = vadd.f32 %v1316_v20, %v5129_v13  ;;  %v3771_v56 = vpop.f32.mrb[87].mxu0  ;;  %v3814_v46 = vpop.f32.mrb[89].mxu1  ;;  %v2612_v13 = vshrl.u32 %v5126_v5, 16  ;;  %v2831_v5 = vsel %vm2818_vm6, %v2828_v43, %v2830_v58 }
 0x1a4   : > { %v1515_v39 = vpop.f32.mrb[90].mxu1  ;;  %v2834_v46 = vrot.slane %v5164_v49, 3 }
 0x1a5   : > { %v1581_v12 = vadd.f32 %v5238_v7, %v1557_v17  ;;  %v1558_v38 = vadd.f32 %v1507_v45, %v1367_v53  ;;  %4009 = vmatmul.mubr.msk.bf16.gmra.mrb[192].mxu0 %vm405_vm1, %v2601_v47  ;;  %v3815_v37 = vpop.f32.mrb[91].mxu1  ;;  %v2614_v24 = vrot.slane %v2612_v13, 2 }
 0x1a6   : > { %4012 = vmatprep.mubr.msk.bf16.mxu0 %vm4284_vm0, %v4283_v1 }
 0x1a7   : > { %3303 = vst.msk [vmem:[%s5249_s7 + $0x4c] sm:$0xf] %vm1605_vm11, %v1581_v12  ;;  %v1582_v63 = vadd.f32 %v5238_v7, %v1558_v38  ;;  %4053 = vmatmul.mubr.msk.bf16.gmra.mrb[196].mxu1 %vm405_vm1, %v2829_v22  ;;  %v2618_v51 = vor.u32 %v2617_v27, %v2614_v24  ;;  %v2639_v24 = vshrl.u32 %v4201_v21, 16  ;;  %v2642_v27 = vshll.u32 %v4201_v21, 16 }
 0x1a8   : > { %3304 = vst.msk [vmem:[%s5249_s7 + $0x5a] sm:$0xc0] %vm1608_vm12, %v1581_v12  ;;  %v1321_v30 = vpop.f32.mrb[88].mxu0  ;;  %4056 = vmatprep.mubr.msk.bf16.mxu1 %vm4284_vm0, %v4283_v1  ;;  %v2632_v12 = vrot.slane %v2630_v59, 2 }
 0x1a9   : > { %3305 = vst.msk [vmem:[%s5249_s7 + $0x62] sm:$0xff] %vm405_vm1, %v1582_v63  ;;  %v1368_v16 = vadd.f32 %v1321_v30, %v5141_v60  ;;  %v3774_v0 = vpop.f32.mrb[89].mxu0  ;;  %v2619_v34 = vsel %vm2557_vm7, %v2609_v26, %v2618_v51 }
 0x1aa   : > { %v1324_v23 = vpop.f32.mrb[90].mxu0  ;;  %v1520_v19 = vpop.f32.mrb[92].mxu1 }
 0x1ab   : > { %v1559_v36 = vadd.f32 %v1512_v42, %v1368_v16  ;;  %v1369_v9 = vadd.f32 %v1324_v23, %v5148_v62  ;;  %v3775_v32 = vpop.f32.mrb[91].mxu0  ;;  %v3818_v35 = vpop.f32.mrb[93].mxu1  ;;  %v2624_v62 = vshll.u32 %v5145_v3, 16  ;;  %v2833_v3 = vsel %vm2818_vm6, %v2830_v58, %v2832_v14 }
 0x1ac   : > { %v1523_v55 = vpop.f32.mrb[94].mxu1 }
 0x1ad   : > { %v1583_v60 = vadd.f32 %v5238_v7, %v1559_v36  ;;  %v1560_v44 = vadd.f32 %v1515_v39, %v1369_v9  ;;  %4013 = vmatmul.mubr.msk.bf16.gmra.mrb[196].mxu0 %vm405_vm1, %v2610_v4  ;;  %v3819_v31 = vpop.f32.mrb[95].mxu1  ;;  %v2626_v28 = vrot.slane %v2624_v62, 3  ;;  %v2836_v9 = vrot.slane %v4201_v21, 3 }
 0x1ae   : > { %4016 = vmatprep.mubr.msk.bf16.mxu0 %vm4284_vm0, %v4283_v1  ;;  %v2644_v31 = vrot.slane %v2642_v27, 3 }
 0x1af   : > { %3306 = vst.msk [vmem:[%s5249_s7 + $0x6a] sm:$0x3f] %vm1611_vm13, %v1583_v60  ;;  %v1584_v45 = vadd.f32 %v5238_v7, %v1560_v44  ;;  %4057 = vmatmul.mubr.msk.bf16.gmra.mrb[200].mxu1 %vm405_vm1, %v2831_v5  ;;  %v2627_v17 = vor.u32 %v2626_v28, %v2623_v10  ;;  %v2641_v44 = vrot.slane %v2639_v24, 2 }
 0x1b0   : > { %v1329_v18 = vpop.f32.mrb[92].mxu0  ;;  %4060 = vmatprep.mubr.msk.bf16.mxu1 %vm4284_vm0, %v4283_v1 }
 0x1b1   : > { %3307 = vst.msk [vmem:[%s5249_s7 + $0x80] sm:$0xff] %vm405_vm1, %v1584_v45  ;;  %v1370_v15 = vadd.f32 %v1329_v18, %v5160_v33  ;;  %v3778_v8 = vpop.f32.mrb[93].mxu0  ;;  %v2628_v37 = vsel %vm2557_vm7, %v2618_v51, %v2627_v17 }
 0x1b2   : > { %v1332_v48 = vpop.f32.mrb[94].mxu0  ;;  %v1528_v29 = vpop.f32.mrb[96].mxu1 }
 0x1b3   : > { %v1561_v43 = vadd.f32 %v1520_v19, %v1370_v15  ;;  %v1371_v54 = vadd.f32 %v1332_v48, %v5167_v2  ;;  %v3779_v25 = vpop.f32.mrb[95].mxu0  ;;  %v3822_v20 = vpop.f32.mrb[97].mxu1  ;;  %v2633_v2 = vshll.u32 %v5164_v49, 16  ;;  %v2835_v49 = vsel %vm2818_vm6, %v2832_v14, %v2834_v46 }
 0x1b4   : > { %v1531_v47 = vpop.f32.mrb[98].mxu1  ;;  %v2837_v14 = vsel %vm2818_vm6, %v2834_v46, %v2836_v9  ;;  %v2645_v48 = vor.u32 %v2644_v31, %v2641_v44 }
 0x1b5   : > { %v1585_v42 = vadd.f32 %v5238_v7, %v1561_v43  ;;  %v1562_v33 = vadd.f32 %v1523_v55, %v1371_v54  ;;  %4017 = vmatmul.mubr.msk.bf16.gmra.mrb[200].mxu0 %vm405_vm1, %v2619_v34  ;;  %v3823_v61 = vpop.f32.mrb[99].mxu1  ;;  %v2635_v13 = vrot.slane %v2633_v2, 3 }
 0x1b6   : > { %4020 = vmatprep.mubr.msk.bf16.mxu0 %vm4284_vm0, %v4283_v1 }
 0x1b7   : > { %3308 = vst.msk [vmem:[%s5249_s7 + $0x88] sm:$0xff] %vm405_vm1, %v1585_v42  ;;  %v1586_v53 = vadd.f32 %v5238_v7, %v1562_v33  ;;  %4061 = vmatmul.mubr.msk.bf16.gmra.mrb[204].mxu1 %vm405_vm1, %v2833_v3  ;;  %v2636_v19 = vor.u32 %v2635_v13, %v2632_v12 }
 0x1b8   : > { %v1337_v56 = vpop.f32.mrb[96].mxu0  ;;  %4064 = vmatprep.mubr.msk.bf16.mxu1 %vm4284_vm0, %v4283_v1 }
 0x1b9   : > { %3309 = vst.msk [vmem:[%s5249_s7 + $0x9e] sm:$0xfc] %vm1596_vm8, %v1586_v53  ;;  %v1372_v39 = vadd.f32 %v1337_v56, %v5179_v50  ;;  %v3782_v22 = vpop.f32.mrb[97].mxu0  ;;  %v2637_v5 = vsel %vm2557_vm7, %v2627_v17, %v2636_v19 }
 0x1ba   : > { %v1340_v38 = vpop.f32.mrb[98].mxu0  ;;  %v1536_v26 = vpop.f32.mrb[100].mxu1 }
 0x1bb   : > { %v1563_v63 = vadd.f32 %v1528_v29, %v1372_v39  ;;  %v1373_v30 = vadd.f32 %v1340_v38, %v5184_v40  ;;  %v3783_v58 = vpop.f32.mrb[99].mxu0  ;;  %v3826_v16 = vpop.f32.mrb[101].mxu1 }
 0x1bc   : > { %v1539_v0 = vpop.f32.mrb[102].mxu1 }
 0x1bd   : > { %v1587_v50 = vadd.f32 %v5238_v7, %v1563_v63  ;;  %v1564_v23 = vadd.f32 %v1531_v47, %v1373_v30  ;;  %4021 = vmatmul.mubr.msk.bf16.gmra.mrb[204].mxu0 %vm405_vm1, %v2628_v37  ;;  %v3827_v4 = vpop.f32.mrb[103].mxu1 }
 0x1be   : > { %4024 = vmatprep.mubr.msk.bf16.mxu0 %vm4284_vm0, %v4283_v1 }
 0x1bf   : > { %3310 = vst.msk [vmem:[%s5249_s7 + $0xa6] sm:$0xff] %vm405_vm1, %v1587_v50  ;;  %v1588_v40 = vadd.f32 %v5238_v7, %v1564_v23  ;;  %4065 = vmatmul.mubr.msk.bf16.gmra.mrb[208].mxu1 %vm405_vm1, %v2835_v49 }
 0x1c0   : > { %v1345_v36 = vpop.f32.mrb[100].mxu0  ;;  %4068 = vmatprep.mubr.msk.bf16.mxu1 %vm4284_vm0, %v4283_v1 }
 0x1c1   : > { %3311 = vst.msk [vmem:[%s5249_s7 + $0xae] sm:$0x3] %vm1599_vm9, %v1588_v40  ;;  %v1374_v32 = vadd.f32 %v1345_v36, %v5196_v6  ;;  %v3786_v35 = vpop.f32.mrb[101].mxu0 }
 0x1c2   : > { %3312 = vst.msk [vmem:[%s5249_s7 + $0xbc] sm:$0xf0] %vm1602_vm10, %v1588_v40  ;;  %v1348_v55 = vpop.f32.mrb[102].mxu0  ;;  %v1544_v60 = vpop.f32.mrb[104].mxu1 }
 0x1c3   : > { %v1565_v51 = vadd.f32 %v1536_v26, %v1374_v32  ;;  %v1375_v52 = vadd.f32 %v1348_v55, %v5202_v57  ;;  %v3787_v62 = vpop.f32.mrb[103].mxu0  ;;  %v3830_v45 = vpop.f32.mrb[105].mxu1 }
 0x1c4   : > { %v1547_v18 = vpop.f32.mrb[106].mxu1 }
 0x1c5   : > { %v1589_v6 = vadd.f32 %v5238_v7, %v1565_v51  ;;  %v1566_v15 = vadd.f32 %v1539_v0, %v1375_v52  ;;  %4025 = vmatmul.mubr.msk.bf16.gmra.mrb[208].mxu0 %vm405_vm1, %v2637_v5  ;;  %v3831_v8 = vpop.f32.mrb[107].mxu1 }
 0x1c6   : > { %4028 = vmatprep.mubr.msk.bf16.mxu0 %vm4284_vm0, %v4283_v1  ;;  %v2646_v1 = vsel %vm2557_vm7, %v2636_v19, %v2645_v48 }
 0x1c7   : > { %3313 = vst.msk [vmem:[%s5249_s7 + $0xc4] sm:$0xff] %vm405_vm1, %v1589_v6  ;;  %v1590_v57 = vadd.f32 %v5238_v7, %v1566_v15  ;;  %4069 = vmatmul.mubr.msk.bf16.gmra.mrb[212].mxu1 %vm405_vm1, %v2837_v14 }
 0x1c8   : > { %v1353_v34 = vpop.f32.mrb[104].mxu0 }
 0x1c9   : > { %3314 = vst.msk [vmem:[%s5249_s7 + $0xcc] sm:$0xf] %vm1605_vm11, %v1590_v57  ;;  %v1376_v29 = vadd.f32 %v1353_v34, %v5217_v11  ;;  %v3790_v10 = vpop.f32.mrb[105].mxu0 }
 0x1ca   : > { %3315 = vst.msk [vmem:[%s5249_s7 + $0xda] sm:$0xc0] %vm1608_vm12, %v1590_v57  ;;  %v1356_v28 = vpop.f32.mrb[106].mxu0  ;;  %v2034_v43 = vpop.f32.mrb[108].mxu1 }
 0x1cb   : > { %v1567_v54 = vadd.f32 %v1544_v60, %v1376_v29  ;;  %v1377_v25 = vadd.f32 %v1356_v28, %v5221_v41  ;;  %v3791_v20 = vpop.f32.mrb[107].mxu0  ;;  %v3878_v47 = vpop.f32.mrb[109].mxu1 }
 0x1cc   : > { %v2037_v3 = vpop.f32.mrb[110].mxu1 }
 0x1cd   : > { %v1591_v42 = vadd.f32 %v5238_v7, %v1567_v54  ;;  %v1568_v33 = vadd.f32 %v1547_v18, %v1377_v25  ;;  %4029 = vmatmul.mubr.msk.bf16.gmra.mrb[212].mxu0 %vm405_vm1, %v2646_v1  ;;  %v3879_v61 = vpop.f32.mrb[111].mxu1 }
 0x1cf   : > { %3316 = vst.msk [vmem:[%s5249_s7 + $0xe2] sm:$0xff] %vm405_vm1, %v1591_v42  ;;  %v1592_v11 = vadd.f32 %v5238_v7, %v1568_v33 }
 0x1d0   : > { %v1868_v59 = vpop.f32.mrb[108].mxu0 }
 0x1d1   : > { %3317 = vst.msk [vmem:[%s5249_s7 + $0xea] sm:$0x3f] %vm1611_vm13, %v1592_v11  ;;  %v5404_v17 = vadd.f32 %v2034_v43, %v1868_v59  ;;  %v3838_v2 = vpop.f32.mrb[109].mxu0 }
 0x1d2   : > { %v1871_v41 = vpop.f32.mrb[110].mxu0  ;;  %v2042_v53 = vpop.f32.mrb[112].mxu1 }
 0x1d3   : > { %v5406_v56 = vadd.f32 %v2037_v3, %v1871_v41  ;;  %v3839_v46 = vpop.f32.mrb[111].mxu0  ;;  %v3882_v39 = vpop.f32.mrb[113].mxu1 }
 0x1d4   : > { %v2045_v22 = vpop.f32.mrb[114].mxu1 }
 0x1d5   : > { %v3883_v12 = vpop.f32.mrb[115].mxu1 }
 0x1d8   : > { %v1876_v38 = vpop.f32.mrb[112].mxu0 }
 0x1d9   : > { %v5408_v37 = vadd.f32 %v2042_v53, %v1876_v38  ;;  %v3842_v26 = vpop.f32.mrb[113].mxu0 }
 0x1da   : > { %v1879_v13 = vpop.f32.mrb[114].mxu0  ;;  %v2050_v21 = vpop.f32.mrb[116].mxu1 }
 0x1db   : > { %v5410_v63 = vadd.f32 %v2045_v22, %v1879_v13  ;;  %v3843_v30 = vpop.f32.mrb[115].mxu0  ;;  %v3886_v58 = vpop.f32.mrb[117].mxu1 }
 0x1dc   : > { %v2053_v16 = vpop.f32.mrb[118].mxu1 }
 0x1dd   : > { %v3887_v0 = vpop.f32.mrb[119].mxu1 }
 0x1e0   : > { %v1884_v49 = vpop.f32.mrb[116].mxu0 }
 0x1e1   : > { %v5412_v50 = vadd.f32 %v2050_v21, %v1884_v49  ;;  %v3846_v23 = vpop.f32.mrb[117].mxu0 }
 0x1e2   : > { %v1887_v4 = vpop.f32.mrb[118].mxu0  ;;  %v2058_v19 = vpop.f32.mrb[120].mxu1 }
 0x1e3   : > { %v5414_v24 = vadd.f32 %v2053_v16, %v1887_v4  ;;  %v3847_v27 = vpop.f32.mrb[119].mxu0  ;;  %v3890_v40 = vpop.f32.mrb[121].mxu1 }
 0x1e4   : > { %v2061_v36 = vpop.f32.mrb[122].mxu1 }
 0x1e5   : > { %v3891_v9 = vpop.f32.mrb[123].mxu1 }
 0x1e8   : > { %v1892_v32 = vpop.f32.mrb[120].mxu0 }
 0x1e9   : > { %v5416_v35 = vadd.f32 %v2058_v19, %v1892_v32  ;;  %v3850_v55 = vpop.f32.mrb[121].mxu0 }
 0x1ea   : > { %v1895_v5 = vpop.f32.mrb[122].mxu0  ;;  %v2066_v60 = vpop.f32.mrb[124].mxu1 }
 0x1eb   : > { %v5418_v44 = vadd.f32 %v2061_v36, %v1895_v5  ;;  %v3851_v31 = vpop.f32.mrb[123].mxu0  ;;  %v3894_v51 = vpop.f32.mrb[125].mxu1 }
 0x1ec   : > { %v2069_v52 = vpop.f32.mrb[126].mxu1 }
 0x1ed   : > { %v3895_v62 = vpop.f32.mrb[127].mxu1 }
 0x1f0   : > { %v1900_v45 = vpop.f32.mrb[124].mxu0 }
 0x1f1   : > { %v5420_v18 = vadd.f32 %v2066_v60, %v1900_v45  ;;  %v3854_v14 = vpop.f32.mrb[125].mxu0 }
 0x1f2   : > { %v1903_v6 = vpop.f32.mrb[126].mxu0  ;;  %v2074_v15 = vpop.f32.mrb[128].mxu1 }
 0x1f3   : > { %v5422_v8 = vadd.f32 %v2069_v52, %v1903_v6  ;;  %v3855_v48 = vpop.f32.mrb[127].mxu0  ;;  %v3898_v57 = vpop.f32.mrb[129].mxu1 }
 0x1f4   : > { %v2077_v34 = vpop.f32.mrb[130].mxu1 }
 0x1f5   : > { %v3899_v29 = vpop.f32.mrb[131].mxu1 }
 0x1f8   : > { %v1908_v10 = vpop.f32.mrb[128].mxu0 }
 0x1f9   : > { %v5424_v28 = vadd.f32 %v2074_v15, %v1908_v10  ;;  %v3858_v1 = vpop.f32.mrb[129].mxu0 }
 0x1fa   : > { %v1911_v43 = vpop.f32.mrb[130].mxu0  ;;  %v2082_v54 = vpop.f32.mrb[132].mxu1 }
 0x1fb   : > { %v5426_v25 = vadd.f32 %v2077_v34, %v1911_v43  ;;  %v3859_v20 = vpop.f32.mrb[131].mxu0  ;;  %v3902_v47 = vpop.f32.mrb[133].mxu1 }
 0x1fc   : > { %v2085_v3 = vpop.f32.mrb[134].mxu1 }
 0x1fd   : > { %v3903_v42 = vpop.f32.mrb[135].mxu1 }
 0x200   : > { %v1916_v33 = vpop.f32.mrb[132].mxu0 }
 0x201   : > { %v5428_v61 = vadd.f32 %v2082_v54, %v1916_v33  ;;  %v3862_v11 = vpop.f32.mrb[133].mxu0 }
 0x202   : > { %v1919_v59 = vpop.f32.mrb[134].mxu0  ;;  %v2090_v2 = vpop.f32.mrb[136].mxu1 }
 0x203   : > { %v5430_v41 = vadd.f32 %v2085_v3, %v1919_v59  ;;  %v3863_v53 = vpop.f32.mrb[135].mxu0  ;;  %v3906_v46 = vpop.f32.mrb[137].mxu1 }
 0x204   : > { %v2093_v39 = vpop.f32.mrb[138].mxu1 }
 0x205   : > { %v3907_v22 = vpop.f32.mrb[139].mxu1 }
 0x208   : > { %v1924_v12 = vpop.f32.mrb[136].mxu0 }
 0x209   : > { %v5432_v38 = vadd.f32 %v2090_v2, %v1924_v12  ;;  %v3866_v26 = vpop.f32.mrb[137].mxu0 }
 0x20a   : > { %v1927_v13 = vpop.f32.mrb[138].mxu0  ;;  %v2098_v21 = vpop.f32.mrb[140].mxu1 }
 0x20b   : > { %v5434_v30 = vadd.f32 %v2093_v39, %v1927_v13  ;;  %v3867_v58 = vpop.f32.mrb[139].mxu0  ;;  %v3910_v16 = vpop.f32.mrb[141].mxu1 }
 0x20c   : > { %v2101_v0 = vpop.f32.mrb[142].mxu1 }
 0x20d   : > { %v3911_v49 = vpop.f32.mrb[143].mxu1 }
 0x210   : > { %v1932_v23 = vpop.f32.mrb[140].mxu0 }
 0x211   : > { %v5436_v4 = vadd.f32 %v2098_v21, %v1932_v23  ;;  %v3870_v19 = vpop.f32.mrb[141].mxu0 }
 0x212   : > { %v1935_v27 = vpop.f32.mrb[142].mxu0  ;;  %v2459_v40 = vpop.f32.mrb[144].mxu1 }
 0x213   : > { %v5438_v36 = vadd.f32 %v2101_v0, %v1935_v27  ;;  %v3871_v9 = vpop.f32.mrb[143].mxu0  ;;  %v3958_v32 = vpop.f32.mrb[145].mxu1 }
 0x214   : > { %v2462_v55 = vpop.f32.mrb[146].mxu1 }
 0x215   : > { %v3959_v5 = vpop.f32.mrb[147].mxu1 }
 0x218   : > { %v2206_v60 = vpop.f32.mrb[144].mxu0 }
 0x219   : > { %v2277_v31 = vadd.f32 %v2206_v60, %v5404_v17  ;;  %v3918_v51 = vpop.f32.mrb[145].mxu0 }
 0x21a   : > { %v2209_v52 = vpop.f32.mrb[146].mxu0  ;;  %v2467_v62 = vpop.f32.mrb[148].mxu1 }
 0x21b   : > { %v2278_v45 = vadd.f32 %v2209_v52, %v5406_v56  ;;  %v3919_v14 = vpop.f32.mrb[147].mxu0  ;;  %v3962_v6 = vpop.f32.mrb[149].mxu1  ;;  %v5442_v15 = vadd.f32 %v2459_v40, %v2277_v31 }
 0x21c   : > { %v2470_v48 = vpop.f32.mrb[150].mxu1 }
 0x21d   : > { %v3963_v57 = vpop.f32.mrb[151].mxu1  ;;  %v5444_v34 = vadd.f32 %v2462_v55, %v2278_v45 }
 0x220   : > { %v2214_v29 = vpop.f32.mrb[148].mxu0 }
 0x221   : > { %v2279_v10 = vadd.f32 %v2214_v29, %v5408_v37  ;;  %v3922_v1 = vpop.f32.mrb[149].mxu0 }
 0x222   : > { %v2217_v43 = vpop.f32.mrb[150].mxu0  ;;  %v2475_v54 = vpop.f32.mrb[152].mxu1 }
 0x223   : > { %v2280_v17 = vadd.f32 %v2217_v43, %v5410_v63  ;;  %v3923_v20 = vpop.f32.mrb[151].mxu0  ;;  %v3966_v47 = vpop.f32.mrb[153].mxu1  ;;  %v5448_v3 = vadd.f32 %v2467_v62, %v2279_v10 }
 0x224   : > { %v2478_v56 = vpop.f32.mrb[154].mxu1 }
 0x225   : > { %v3967_v42 = vpop.f32.mrb[155].mxu1  ;;  %v5450_v33 = vadd.f32 %v2470_v48, %v2280_v17 }
 0x228   : > { %v2222_v11 = vpop.f32.mrb[152].mxu0 }
 0x229   : > { %v2281_v59 = vadd.f32 %v2222_v11, %v5412_v50  ;;  %v3926_v2 = vpop.f32.mrb[153].mxu0 }
 0x22a   : > { %v2225_v53 = vpop.f32.mrb[154].mxu0  ;;  %v2483_v46 = vpop.f32.mrb[156].mxu1 }
 0x22b   : > { %v2282_v37 = vadd.f32 %v2225_v53, %v5414_v24  ;;  %v3927_v39 = vpop.f32.mrb[155].mxu0  ;;  %v3970_v22 = vpop.f32.mrb[157].mxu1  ;;  %v5454_v12 = vadd.f32 %v2475_v54, %v2281_v59 }
 0x22c   : > { %v2486_v63 = vpop.f32.mrb[158].mxu1 }
 0x22d   : > { %v3971_v26 = vpop.f32.mrb[159].mxu1  ;;  %v5456_v13 = vadd.f32 %v2478_v56, %v2282_v37 }
 0x230   : > { %v2230_v21 = vpop.f32.mrb[156].mxu0 }
 0x231   : > { %v2283_v58 = vadd.f32 %v2230_v21, %v5416_v35  ;;  %v3930_v16 = vpop.f32.mrb[157].mxu0 }
 0x232   : > { %v2233_v0 = vpop.f32.mrb[158].mxu0  ;;  %v2491_v49 = vpop.f32.mrb[160].mxu1 }
 0x233   : > { %v2284_v50 = vadd.f32 %v2233_v0, %v5418_v44  ;;  %v3931_v23 = vpop.f32.mrb[159].mxu0  ;;  %v3974_v19 = vpop.f32.mrb[161].mxu1  ;;  %v5460_v27 = vadd.f32 %v2483_v46, %v2283_v58 }
 0x234   : > { %v2494_v24 = vpop.f32.mrb[162].mxu1 }
 0x235   : > { %v3975_v40 = vpop.f32.mrb[163].mxu1  ;;  %v5462_v9 = vadd.f32 %v2486_v63, %v2284_v50 }
 0x238   : > { %v2238_v32 = vpop.f32.mrb[160].mxu0 }
 0x239   : > { %v2285_v55 = vadd.f32 %v2238_v32, %v5420_v18  ;;  %v3934_v5 = vpop.f32.mrb[161].mxu0 }
 0x23a   : > { %v2241_v60 = vpop.f32.mrb[162].mxu0  ;;  %v2499_v31 = vpop.f32.mrb[164].mxu1 }
 0x23b   : > { %v2286_v35 = vadd.f32 %v2241_v60, %v5422_v8  ;;  %v3935_v51 = vpop.f32.mrb[163].mxu0  ;;  %v3978_v52 = vpop.f32.mrb[165].mxu1  ;;  %v5466_v62 = vadd.f32 %v2491_v49, %v2285_v55 }
 0x23c   : > { %v2502_v44 = vpop.f32.mrb[166].mxu1 }
 0x23d   : > { %v3979_v45 = vpop.f32.mrb[167].mxu1  ;;  %v5468_v14 = vadd.f32 %v2494_v24, %v2286_v35 }
 0x240   : > { %v2246_v6 = vpop.f32.mrb[164].mxu0 }
 0x241   : > { %v2287_v48 = vadd.f32 %v2246_v6, %v5424_v28  ;;  %v3938_v57 = vpop.f32.mrb[165].mxu0 }
 0x242   : > { %v2249_v29 = vpop.f32.mrb[166].mxu0  ;;  %v2507_v10 = vpop.f32.mrb[168].mxu1 }
 0x243   : > { %v2288_v18 = vadd.f32 %v2249_v29, %v5426_v25  ;;  %v3939_v1 = vpop.f32.mrb[167].mxu0  ;;  %v3982_v43 = vpop.f32.mrb[169].mxu1  ;;  %v5472_v54 = vadd.f32 %v2499_v31, %v2287_v48 }
 0x244   : > { %v2510_v8 = vpop.f32.mrb[170].mxu1 }
 0x245   : > { %v3983_v17 = vpop.f32.mrb[171].mxu1  ;;  %v5474_v20 = vadd.f32 %v2502_v44, %v2288_v18 }
 0x248   : > { %v2254_v47 = vpop.f32.mrb[168].mxu0 }
 0x249   : > { %v2289_v56 = vadd.f32 %v2254_v47, %v5428_v61  ;;  %v3942_v42 = vpop.f32.mrb[169].mxu0 }
 0x24a   : > { %v2257_v11 = vpop.f32.mrb[170].mxu0  ;;  %v2515_v59 = vpop.f32.mrb[172].mxu1 }
 0x24b   : > { %v2290_v28 = vadd.f32 %v2257_v11, %v5430_v41  ;;  %v3943_v2 = vpop.f32.mrb[171].mxu0  ;;  %v3986_v53 = vpop.f32.mrb[173].mxu1  ;;  %v5478_v46 = vadd.f32 %v2507_v10, %v2289_v56 }
 0x24c   : > { %v2518_v25 = vpop.f32.mrb[174].mxu1 }
 0x24d   : > { %v3987_v37 = vpop.f32.mrb[175].mxu1  ;;  %v5480_v39 = vadd.f32 %v2510_v8, %v2290_v28 }
 0x250   : > { %v2262_v22 = vpop.f32.mrb[172].mxu0 }
 0x251   : > { %v2291_v63 = vadd.f32 %v2262_v22, %v5432_v38  ;;  %v3946_v26 = vpop.f32.mrb[173].mxu0 }
 0x252   : > { %v2265_v21 = vpop.f32.mrb[174].mxu0  ;;  %v2523_v58 = vpop.f32.mrb[176].mxu1 }
 0x253   : > { %v2292_v61 = vadd.f32 %v2265_v21, %v5434_v30  ;;  %v3947_v16 = vpop.f32.mrb[175].mxu0  ;;  %v3990_v0 = vpop.f32.mrb[177].mxu1  ;;  %v5484_v49 = vadd.f32 %v2515_v59, %v2291_v63 }
 0x254   : > { %v2526_v41 = vpop.f32.mrb[178].mxu1 }
 0x255   : > { %v3991_v50 = vpop.f32.mrb[179].mxu1  ;;  %v5486_v23 = vadd.f32 %v2518_v25, %v2292_v61 }
 0x258   : > { %v2270_v19 = vpop.f32.mrb[176].mxu0 }
 0x259   : > { %v2293_v24 = vadd.f32 %v2270_v19, %v5436_v4  ;;  %v3950_v40 = vpop.f32.mrb[177].mxu0 }
 0x25a   : > { %v2273_v32 = vpop.f32.mrb[178].mxu0  ;;  %v2911_v55 = vpop.f32.mrb[180].mxu1 }
 0x25b   : > { %v2294_v38 = vadd.f32 %v2273_v32, %v5438_v36  ;;  %v3951_v5 = vpop.f32.mrb[179].mxu0  ;;  %v4038_v60 = vpop.f32.mrb[181].mxu1  ;;  %v5490_v31 = vadd.f32 %v2523_v58, %v2293_v24 }
 0x25c   : > { %v2914_v30 = vpop.f32.mrb[182].mxu1 }
 0x25d   : > { %v4039_v35 = vpop.f32.mrb[183].mxu1  ;;  %v5492_v51 = vadd.f32 %v2526_v41, %v2294_v38 }
 0x260   : > { %v2720_v52 = vpop.f32.mrb[180].mxu0 }
 0x261   : > { %v2791_v44 = vadd.f32 %v2720_v52, %v5442_v15  ;;  %v3998_v45 = vpop.f32.mrb[181].mxu0 }
 0x262   : > { %v2723_v4 = vpop.f32.mrb[182].mxu0  ;;  %v2919_v6 = vpop.f32.mrb[184].mxu1 }
 0x263   : > { %v2982_v48 = vadd.f32 %v2911_v55, %v2791_v44  ;;  %v2792_v57 = vadd.f32 %v2723_v4, %v5444_v34  ;;  %v3999_v36 = vpop.f32.mrb[183].mxu0  ;;  %v4042_v29 = vpop.f32.mrb[185].mxu1 }
 0x264   : > { %v2922_v10 = vpop.f32.mrb[186].mxu1 }
 0x265   : > { %v3000_v18 = vadd.f32 %v5238_v7, %v2982_v48  ;;  %v2983_v1 = vadd.f32 %v2914_v30, %v2792_v57  ;;  %v4043_v43 = vpop.f32.mrb[187].mxu1 }
 0x267   : > { %3432 = vst.msk [vmem:[%s5249_s7 + $0x10] sm:$0xff] %vm405_vm1, %v3000_v18  ;;  %v3001_v8 = vadd.f32 %v5238_v7, %v2983_v1 }
 0x268   : > { %v2728_v17 = vpop.f32.mrb[184].mxu0 }
 0x269   : > { %3433 = vst.msk [vmem:[%s5249_s7 + $0x18] sm:$0xff] %vm405_vm1, %v3001_v8  ;;  %v2793_v15 = vadd.f32 %v2728_v17, %v5448_v3  ;;  %v4002_v47 = vpop.f32.mrb[185].mxu0 }
 0x26a   : > { %v2731_v34 = vpop.f32.mrb[186].mxu0  ;;  %v2927_v56 = vpop.f32.mrb[188].mxu1 }
 0x26b   : > { %v2984_v42 = vadd.f32 %v2919_v6, %v2793_v15  ;;  %v2794_v11 = vadd.f32 %v2731_v34, %v5450_v33  ;;  %v4003_v59 = vpop.f32.mrb[187].mxu0  ;;  %v4046_v28 = vpop.f32.mrb[189].mxu1 }
 0x26c   : > { %v2930_v2 = vpop.f32.mrb[190].mxu1 }
 0x26d   : > { %v3002_v53 = vadd.f32 %v5238_v7, %v2984_v42  ;;  %v2985_v25 = vadd.f32 %v2922_v10, %v2794_v11  ;;  %v4047_v37 = vpop.f32.mrb[191].mxu1 }
 0x26f   : > { %3434 = vst.msk [vmem:[%s5249_s7 + $0x2e] sm:$0xfc] %vm1596_vm8, %v3002_v53  ;;  %v3003_v22 = vadd.f32 %v5238_v7, %v2985_v25 }
 0x270   : > { %v2736_v3 = vpop.f32.mrb[188].mxu0 }
 0x271   : > { %3435 = vst.msk [vmem:[%s5249_s7 + $0x36] sm:$0xff] %vm405_vm1, %v3003_v22  ;;  %v2795_v63 = vadd.f32 %v2736_v3, %v5454_v12  ;;  %v4006_v33 = vpop.f32.mrb[189].mxu0 }
 0x272   : > { %v2739_v26 = vpop.f32.mrb[190].mxu0  ;;  %v2935_v21 = vpop.f32.mrb[192].mxu1 }
 0x273   : > { %v2986_v58 = vadd.f32 %v2927_v56, %v2795_v63  ;;  %v2796_v61 = vadd.f32 %v2739_v26, %v5456_v13  ;;  %v4007_v16 = vpop.f32.mrb[191].mxu0  ;;  %v4050_v0 = vpop.f32.mrb[193].mxu1 }
 0x274   : > { %v2938_v41 = vpop.f32.mrb[194].mxu1 }
 0x275   : > { %v3004_v50 = vadd.f32 %v5238_v7, %v2986_v58  ;;  %v2987_v19 = vadd.f32 %v2930_v2, %v2796_v61  ;;  %v4051_v24 = vpop.f32.mrb[195].mxu1 }
 0x277   : > { %3436 = vst.msk [vmem:[%s5249_s7 + $0x3e] sm:$0x3] %vm1599_vm9, %v3004_v50  ;;  %v3005_v12 = vadd.f32 %v5238_v7, %v2987_v19 }
 0x278   : > { %3437 = vst.msk [vmem:[%s5249_s7 + $0x4c] sm:$0xf0] %vm1602_vm10, %v3004_v50  ;;  %v2744_v40 = vpop.f32.mrb[192].mxu0 }
 0x279   : > { %3438 = vst.msk [vmem:[%s5249_s7 + $0x54] sm:$0xff] %vm405_vm1, %v3005_v12  ;;  %v2797_v13 = vadd.f32 %v2744_v40, %v5460_v27  ;;  %v4010_v32 = vpop.f32.mrb[193].mxu0 }
 0x27a   : > { %v2747_v55 = vpop.f32.mrb[194].mxu0  ;;  %v2943_v38 = vpop.f32.mrb[196].mxu1 }
 0x27b   : > { %v2988_v5 = vadd.f32 %v2935_v21, %v2797_v13  ;;  %v2798_v60 = vadd.f32 %v2747_v55, %v5462_v9  ;;  %v4011_v30 = vpop.f32.mrb[195].mxu0  ;;  %v4054_v35 = vpop.f32.mrb[197].mxu1 }
 0x27c   : > { %v2946_v52 = vpop.f32.mrb[198].mxu1 }
 0x27d   : > { %v3006_v44 = vadd.f32 %v5238_v7, %v2988_v5  ;;  %v2989_v45 = vadd.f32 %v2938_v41, %v2798_v60  ;;  %v4055_v4 = vpop.f32.mrb[199].mxu1 }
 0x27f   : > { %3439 = vst.msk [vmem:[%s5249_s7 + $0x5c] sm:$0xf] %vm1605_vm11, %v3006_v44  ;;  %v3007_v27 = vadd.f32 %v5238_v7, %v2989_v45  ;;  %v5535_v7 = vld [vmem:[%s5638_s2] ss:$0 sm:$0xff] }
 0x280   : > { %3440 = vst.msk [vmem:[%s5249_s7 + $0x6a] sm:$0xc0] %vm1608_vm12, %v3006_v44  ;;  %v2752_v6 = vpop.f32.mrb[196].mxu0 }
 0x281   : > { %3441 = vst.msk [vmem:[%s5249_s7 + $0x72] sm:$0xff] %vm405_vm1, %v3007_v27  ;;  %v2799_v48 = vadd.f32 %v2752_v6, %v5466_v62  ;;  %v4014_v9 = vpop.f32.mrb[197].mxu0 }
 0x282   : > { %v2755_v57 = vpop.f32.mrb[198].mxu0  ;;  %v2951_v36 = vpop.f32.mrb[200].mxu1 }
 0x283   : > { %v2990_v29 = vadd.f32 %v2943_v38, %v2799_v48  ;;  %v2800_v10 = vadd.f32 %v2755_v57, %v5468_v14  ;;  %v4015_v18 = vpop.f32.mrb[199].mxu0  ;;  %v4058_v1 = vpop.f32.mrb[201].mxu1 }
 0x284   : > { %v2954_v43 = vpop.f32.mrb[202].mxu1 }
 0x285   : > { %v3008_v8 = vadd.f32 %v5535_v7, %v2990_v29  ;;  %v2991_v17 = vadd.f32 %v2946_v52, %v2800_v10  ;;  %v4059_v15 = vpop.f32.mrb[203].mxu1 }
 0x287   : > { %3442 = vst.msk [vmem:[%s5249_s7 + $0x7a] sm:$0x3f] %vm1611_vm13, %v3008_v8  ;;  %v3009_v62 = vadd.f32 %v5535_v7, %v2991_v17 }
 0x288   : > { %v2760_v47 = vpop.f32.mrb[200].mxu0 }
 0x289   : > { %3443 = vst.msk [vmem:[%s5249_s7 + $0x90] sm:$0xff] %vm405_vm1, %v3009_v62  ;;  %v2801_v14 = vadd.f32 %v2760_v47, %v5472_v54  ;;  %v4018_v34 = vpop.f32.mrb[201].mxu0 }
 0x28a   : > { %v2763_v56 = vpop.f32.mrb[202].mxu0  ;;  %v2959_v42 = vpop.f32.mrb[204].mxu1 }
 0x28b   : > { %v2992_v11 = vadd.f32 %v2951_v36, %v2801_v14  ;;  %v2802_v59 = vadd.f32 %v2763_v56, %v5474_v20  ;;  %v4019_v28 = vpop.f32.mrb[203].mxu0  ;;  %v4062_v2 = vpop.f32.mrb[205].mxu1 }
 0x28c   : > { %v2962_v53 = vpop.f32.mrb[206].mxu1 }
 0x28d   : > { %v3010_v25 = vadd.f32 %v5535_v7, %v2992_v11  ;;  %v2993_v37 = vadd.f32 %v2954_v43, %v2802_v59  ;;  %v4063_v22 = vpop.f32.mrb[207].mxu1 }
 0x28f   : > { %3444 = vst.msk [vmem:[%s5249_s7 + $0x98] sm:$0xff] %vm405_vm1, %v3010_v25  ;;  %v3011_v3 = vadd.f32 %v5535_v7, %v2993_v37 }
 0x290   : > { %v2768_v63 = vpop.f32.mrb[204].mxu0 }
 0x291   : > { %3445 = vst.msk [vmem:[%s5249_s7 + $0xae] sm:$0xfc] %vm1596_vm8, %v3011_v3  ;;  %v2803_v54 = vadd.f32 %v2768_v63, %v5478_v46  ;;  %v4022_v20 = vpop.f32.mrb[205].mxu0 }
 0x292   : > { %v2771_v33 = vpop.f32.mrb[206].mxu0  ;;  %v2967_v26 = vpop.f32.mrb[208].mxu1 }
 0x293   : > { %v2994_v21 = vadd.f32 %v2959_v42, %v2803_v54  ;;  %v2804_v58 = vadd.f32 %v2771_v33, %v5480_v39  ;;  %v4023_v61 = vpop.f32.mrb[207].mxu0  ;;  %v4066_v16 = vpop.f32.mrb[209].mxu1 }
 0x294   : > { %v2970_v0 = vpop.f32.mrb[210].mxu1 }
 0x295   : > { %v3012_v41 = vadd.f32 %v5535_v7, %v2994_v21  ;;  %v2995_v50 = vadd.f32 %v2962_v53, %v2804_v58  ;;  %v4067_v19 = vpop.f32.mrb[211].mxu1 }
 0x297   : > { %3446 = vst.msk [vmem:[%s5249_s7 + $0xb6] sm:$0xff] %vm405_vm1, %v3012_v41  ;;  %v3013_v24 = vadd.f32 %v5535_v7, %v2995_v50 }
 0x298   : > { %v2776_v46 = vpop.f32.mrb[208].mxu0 }
 0x299   : > { %3447 = vst.msk [vmem:[%s5249_s7 + $0xbe] sm:$0x3] %vm1599_vm9, %v3013_v24  ;;  %v2805_v39 = vadd.f32 %v2776_v46, %v5484_v49  ;;  %v4026_v12 = vpop.f32.mrb[209].mxu0 }
 0x29a   : > { %3448 = vst.msk [vmem:[%s5249_s7 + $0xcc] sm:$0xf0] %vm1602_vm10, %v3013_v24  ;;  %v2779_v40 = vpop.f32.mrb[210].mxu0  ;;  %v2975_v13 = vpop.f32.mrb[212].mxu1 }
 0x29b   : > { %v2996_v32 = vadd.f32 %v2967_v26, %v2805_v39  ;;  %v2806_v55 = vadd.f32 %v2779_v40, %v5486_v23  ;;  %v4027_v38 = vpop.f32.mrb[211].mxu0  ;;  %v4070_v5 = vpop.f32.mrb[213].mxu1 }
 0x29c   : > { %v2978_v60 = vpop.f32.mrb[214].mxu1 }
 0x29d   : > { %v3014_v30 = vadd.f32 %v5535_v7, %v2996_v32  ;;  %v2997_v35 = vadd.f32 %v2970_v0, %v2806_v55  ;;  %v4071_v52 = vpop.f32.mrb[215].mxu1 }
 0x29f   : > { %3449 = vst.msk [vmem:[%s5249_s7 + $0xd4] sm:$0xff] %vm405_vm1, %v3014_v30  ;;  %v3015_v49 = vadd.f32 %v5535_v7, %v2997_v35 }
 0x2a0   : > { %v2784_v44 = vpop.f32.mrb[212].mxu0 }
 0x2a1   : > { %3450 = vst.msk [vmem:[%s5249_s7 + $0xdc] sm:$0xf] %vm1605_vm11, %v3015_v49  ;;  %v2807_v23 = vadd.f32 %v2784_v44, %v5490_v31  ;;  %v4030_v45 = vpop.f32.mrb[213].mxu0 }
 0x2a2   : > { %3451 = vst.msk [vmem:[%s5249_s7 + $0xea] sm:$0xc0] %vm1608_vm12, %v3015_v49  ;;  %v2787_v4 = vpop.f32.mrb[214].mxu0 }
 0x2a3   : > { %v2998_v27 = vadd.f32 %v2975_v13, %v2807_v23  ;;  %v2808_v6 = vadd.f32 %v2787_v4, %v5492_v51  ;;  %v4031_v48 = vpop.f32.mrb[215].mxu0 }
 0x2a5   : > { %v3016_v9 = vadd.f32 %v5535_v7, %v2998_v27  ;;  %v2999_v57 = vadd.f32 %v2978_v60, %v2808_v6 }
 0x2a7   : > { %3452 = vst.msk [vmem:[%s5249_s7 + $0xf2] sm:$0xff] %vm405_vm1, %v3016_v9  ;;  %v3017_v31 = vadd.f32 %v5535_v7, %v2999_v57 }
 0x2a9   : > { %3453 = vst.msk [vmem:[%s5249_s7 + $0xfa] sm:$0x3f] %vm1611_vm13, %v3017_v31 }
 0x2aa   : > { %4216 = shalt.err (!%p4213_p5)
}
 0x2ab   : > { %s4217_s29 = scalar_lea.hbm %s5579_s21, 4096  ;;  %s4221_s5 = scalar_lea.hbm %s5639_s3, 8192 }
 0x2ac   : > { %p4218_p6 = scmp.ne.s32.totalorder %s5579_s21, %s4217_s29  ;;  %p4222_p10 = scmp.lt.u32.totalorder %s5579_s21, %s5639_s3 }
 0x2ad   : > { %p4223_p11 = scmp.lt.u32.totalorder %s4221_s5, %s4217_s29  ;;  %p4225_p13 = scmp.lt.u32.totalorder %s4217_s29, %s5579_s21 }
 0x2ae   : > { %p4219_p7 = pnand %p4218_p6, %p4348_p4 }
 0x2af   : > { %p4224_p12 = por %p4223_p11, %p4222_p10 }
 0x2b0   : > { %p4220_p9 = pneg %p4219_p7 }
 0x2b1   : > { %p4226_p0 = por %p4225_p13, %p4224_p12 }
 0x2b3   : > { %p4227_p1 = pnand %p4226_p0, %p4220_p9 }
 0x2b5   : > { %4230 = shalt.err (!%p4227_p1)
}
 0x2b6   : > { %s4286_s11 = smov 128   ;;  %s4287_s8 = smov 8  }
 0x2b7   : > { %4073 = dma.vmem_to_hbm [thread:$0]  (%p4348_p4), %s5581_s10, 4096, %s5579_s21, %s5590_s15, %s4286_s11, %s4286_s11, %s4287_s8  }
 0x2b8 PF: > { %p4079_p2 = scmp.ge.s32.totalorder %s4281_s17, 2  ;;  %s3081_s9 = sand.u32 1, %s4261_s12  }
 0x2b9   : > { %s3082_s18 = scalar_lea.sflag [#allocation3], %s3081_s9 }
 0x2ba   : > { %p4076_p3 = pnand %p4079_p2, %p4355_p8 }
 0x2bc   : > { %4256 = dma.done.wait (!%p4076_p3), %s3082_s18, 4096  }
 0x2bd   : > { %4258 = vsyncadd (!%p4076_p3), %s3082_s18, 4294963200  ;;  %s16_s17 = sadd.s32 1, %s4281_s17   ;;  %s5642_s12 = smov %s4265_s13 }
 0x2be   : > { %p13_p5 = scmp.ge.s32.totalorder %s16_s17, 4   ;;  %s5643_s13 = smov %s4269_s14 }
 0x2bf   : > { %s5644_s14 = smov %s4361_s25  ;;  %s5645_s15 = smov %s4277_s16 }
 0x2c0   : > { %s5646_s16 = smov %s5648_s20  ;;  %15 = sbr.rel (!%p13_p5) target bundleno = 4 (0x4), region = 99 }
 0x2c7   :  { %3087 = vsyncpa [#allocation3], 1 }
 0x2c8   :  { %3089 = vsyncpa [#allocation3 + $0x1], 1 }

</bundles_post_ra>
